<compile_context>
chip_gen: v7x
topology: tpu7x:2x2x1
jax: 0.10.0
libtpu: 0.0.40
codegen_flags: <defaults>
</compile_context>

<pallas_src>
import functools

import jax
import jax.numpy as jnp
from jax.experimental import pallas as pl
from jax.experimental.pallas import tpu as pltpu

BATCH = 1
TIMESPAN = 2
H_DIM = 128
Z_DIM = 256
Z_DIM_2 = 64
BN_EPS = 1e-5

# (Cin, Cout, (kh, kw), (sh, sw), (ph, pw)) for the four encoder convs.
CONV_CFG = (
    (3, 16, (7, 7), (2, 2), (1, 1)),
    (16, 32, (5, 5), (2, 3), (1, 0)),
    (32, 48, (5, 5), (2, 2), (1, 1)),
    (48, 64, (3, 3), (3, 3), (0, 0)),
)
CONV1_BLOCK_M = 1408  # conv1 patch-row block (multiple of 16 for bf16 tiles); 2 blocks


def _vmem():
    return pl.BlockSpec(memory_space=pltpu.MemorySpace.VMEM)


# ----------------------------------------------------------------------------
# Shared GEMM (+bias +ReLU) kernel used by conv1 / conv2.
# ----------------------------------------------------------------------------
def _gemm_bias_act_kernel(x_ref, w_ref, b_ref, o_ref, *, relu):
    y = jnp.dot(x_ref[...], w_ref[...], preferred_element_type=jnp.float32)
    y = y + b_ref[...]
    if relu:
        y = jnp.maximum(y, 0.0)
    o_ref[...] = y.astype(o_ref.dtype)


def gemm_bias_relu(x, w, b, *, relu, out_dtype=jnp.float32, block_m=None):
    """x: (M, K), w: (K, N), b: (1, N) -> (M, N) in out_dtype (f32 accumulation)."""
    M, K = x.shape
    N = w.shape[1]
    kern = functools.partial(_gemm_bias_act_kernel, relu=relu)
    if block_m is None or M <= block_m:
        return pl.pallas_call(
            kern,
            out_shape=jax.ShapeDtypeStruct((M, N), out_dtype),
            in_specs=[_vmem(), _vmem(), _vmem()],
            out_specs=_vmem(),
        )(x, w, b)

    # Grid over M: pipelines the patch DMA against the MXU, and lets the two
    # TensorCores on v7x split the rows ("parallel").
    n_blocks = -(-M // block_m)
    Mp = n_blocks * block_m
    if Mp != M:
        x = jnp.pad(x, ((0, Mp - M), (0, 0)))
    y = pl.pallas_call(
        kern,
        out_shape=jax.ShapeDtypeStruct((Mp, N), out_dtype),
        grid=(n_blocks,),
        in_specs=[
            pl.BlockSpec((block_m, K), lambda i: (i, 0)),
            pl.BlockSpec((K, N), lambda i: (0, 0)),
            pl.BlockSpec((1, N), lambda i: (0, 0)),
        ],
        out_specs=pl.BlockSpec((block_m, N), lambda i: (i, 0)),
        compiler_params=pltpu.CompilerParams(dimension_semantics=("parallel",)),
    )(x, w, b)
    return y[:M] if Mp != M else y


# ----------------------------------------------------------------------------
# Encoder conv layers: NHWC im2col via static strided slices (no XLA gather).
# ----------------------------------------------------------------------------
def im2col_nhwc(x, kh, kw, sh, sw, ph, pw):
    """NHWC im2col; K columns ordered (kh, kw, C) to match the folded weights."""
    N, H, W, C = x.shape
    xp = jnp.pad(x, ((0, 0), (ph, ph), (pw, pw), (0, 0)))
    Ho = (H + 2 * ph - kh) // sh + 1
    Wo = (W + 2 * pw - kw) // sw + 1
    taps = [
        xp[:, di:di + sh * (Ho - 1) + 1:sh, dj:dj + sw * (Wo - 1) + 1:sw, :]
        for di in range(kh) for dj in range(kw)
    ]                                                   # kh*kw x (N, Ho, Wo, C)
    p = jnp.stack(taps, axis=3)                         # (N, Ho, Wo, kh*kw, C)
    return p.reshape(N * Ho * Wo, kh * kw * C), Ho, Wo


def conv_bn_relu_nhwc(x, w_eff, b_eff, cfg, *, block_m=None):
    _, cout, (kh, kw), (sh, sw), (ph, pw) = cfg
    patches, Ho, Wo = im2col_nhwc(x, kh, kw, sh, sw, ph, pw)
    y = gemm_bias_relu(patches, w_eff, b_eff, relu=True,
                       out_dtype=jnp.bfloat16, block_m=block_m)
    return y.reshape(x.shape[0], Ho, Wo, cout)


# ----------------------------------------------------------------------------
# Fused tail kernel: conv3 + conv4 + fc + LSTM + fc_2, everything in VMEM.
# ----------------------------------------------------------------------------
def _tail_kernel(p3_ref,
                 w3_ref, b3_ref, w4_ref, b4_ref,
                 wf0_ref, bf0_ref, wf1_ref, bf1_ref,
                 wih_ref, whh_ref, bl_ref,
                 w20_ref, b20_ref, w21_ref, b21_ref,
                 w22_ref, b22_ref, w23_ref, b23_ref,
                 o_ref, x3_sc):
    n_imgs, ho3, wo3 = 2, 6, 6
    kh4 = kw4 = s4 = 3
    ho4 = wo4 = 2

    # conv3 (+BN folded bias, ReLU) on pre-extracted bf16 patches.
    x3 = jnp.dot(p3_ref[...], w3_ref[...], preferred_element_type=jnp.float32)
    x3 = jnp.maximum(x3 + b3_ref[...], 0.0)             # (72, 48), rows = (n, h, w)
    x3_sc[...] = x3                                      # stage in VMEM scratch for row gather

    # conv4 (k=3, s=3, p=0) im2col fully unrolled with static slices, one GEMM.
    rows = []
    for n in range(n_imgs):
        for hh in range(ho4):
            for ww in range(wo4):
                taps = [
                    x3_sc[pl.ds(n * (ho3 * wo3) + (s4 * hh + di) * wo3 + (s4 * ww + dj), 1), :]
                    for di in range(kh4) for dj in range(kw4)
                ]                                        # 9 x (1, 48)
                rows.append(jnp.concatenate(taps, axis=1))   # (1, 432)
    patches = jnp.concatenate(rows, axis=0)              # (8, 432)
    p = jnp.dot(patches, w4_ref[...], preferred_element_type=jnp.float32) + b4_ref[...]
    p = jnp.maximum(p, 0.0)                              # (8, 64); rows = (n, h, w)

    # (8, 64) -> (2, 256): per-frame lane-concat of the 4 spatial rows.
    # (fc[0] weights were pre-permuted to this (h, w, c) flattening order.)
    phi = jnp.concatenate(
        [jnp.concatenate([p[n * 4 + q:n * 4 + q + 1, :] for q in range(4)], axis=1)
         for n in range(n_imgs)],
        axis=0)                                          # (2, 256)

    # fc: Linear+ReLU, Linear+ReLU
    h1 = jnp.maximum(
        jnp.dot(phi, wf0_ref[...], preferred_element_type=jnp.float32) + bf0_ref[...], 0.0)
    h2 = jnp.maximum(
        jnp.dot(h1, wf1_ref[...], preferred_element_type=jnp.float32) + bf1_ref[...], 0.0)

    # LSTM (1 layer, batch=1, T=2, PyTorch i/f/g/o gate order); the input
    # projection is hoisted out of the recurrence as one batched matmul.
    H = H_DIM
    xw = jnp.dot(h2, wih_ref[...], preferred_element_type=jnp.float32) + bl_ref[...]  # (2, 4H)
    h = jnp.zeros((1, H), jnp.float32)
    c = jnp.zeros((1, H), jnp.float32)
    hs = []
    for t in range(TIMESPAN):
        gates = xw[t:t + 1, :] + jnp.dot(h, whh_ref[...], preferred_element_type=jnp.float32)
        i = jax.nn.sigmoid(gates[:, 0:H])
        f = jax.nn.sigmoid(gates[:, H:2 * H])
        g = jnp.tanh(gates[:, 2 * H:3 * H])
        o = jax.nn.sigmoid(gates[:, 3 * H:4 * H])
        c = f * c + i * g
        h = o * jnp.tanh(c)
        hs.append(h)
    out = jnp.concatenate(hs, axis=1)                    # (1, T*H) = (1, 256)

    # fc_2
    out = jnp.maximum(jnp.dot(out, w20_ref[...], preferred_element_type=jnp.float32) + b20_ref[...], 0.0)
    out = jnp.maximum(jnp.dot(out, w21_ref[...], preferred_element_type=jnp.float32) + b21_ref[...], 0.0)
    out = jnp.maximum(jnp.dot(out, w22_ref[...], preferred_element_type=jnp.float32) + b22_ref[...], 0.0)
    out = jnp.dot(out, w23_ref[...], preferred_element_type=jnp.float32) + b23_ref[...]
    o_ref[...] = out                                     # (1, 2)


def fused_tail(p3, params):
    args = (
        p3,
        params["conv3"]["w"], params["conv3"]["b"],
        params["conv4"]["w"], params["conv4"]["b"],
        params["fc0"]["w"], params["fc0"]["b"],
        params["fc1"]["w"], params["fc1"]["b"],
        params["lstm"]["w_ih"], params["lstm"]["w_hh"], params["lstm"]["b"],
        params["fc2_0"]["w"], params["fc2_0"]["b"],
        params["fc2_1"]["w"], params["fc2_1"]["b"],
        params["fc2_2"]["w"], params["fc2_2"]["b"],
        params["fc2_3"]["w"], params["fc2_3"]["b"],
    )
    return pl.pallas_call(
        _tail_kernel,
        out_shape=jax.ShapeDtypeStruct((BATCH, 2), jnp.float32),
        in_specs=[_vmem()] * len(args),
        out_specs=_vmem(),
        scratch_shapes=[pltpu.VMEM((72, 48), jnp.float32)],
    )(*args)


# ----------------------------------------------------------------------------
# Parameters: synthetic PyTorch-layout init, then fold into kernel layouts.
# ----------------------------------------------------------------------------
def init_params(key):
    keys = iter(jax.random.split(key, 64))

    def conv_layer(cin, cout, k):
        kh, kw = k
        return dict(
            w=0.05 * jax.random.normal(next(keys), (cout, cin, kh, kw), jnp.float32),
            b=0.05 * jax.random.normal(next(keys), (cout,), jnp.float32),
            gamma=1.0 + 0.1 * jax.random.normal(next(keys), (cout,), jnp.float32),
            beta=0.1 * jax.random.normal(next(keys), (cout,), jnp.float32),
            mean=0.1 * jax.random.normal(next(keys), (cout,), jnp.float32),
            var=0.9 + 0.1 * jnp.abs(jax.random.normal(next(keys), (cout,), jnp.float32)))

    def lin_layer(fan_in, fan_out):
        return dict(
            w=0.05 * jax.random.normal(next(keys), (fan_in, fan_out), jnp.float32),
            b=0.05 * jax.random.normal(next(keys), (1, fan_out), jnp.float32))

    encoder = [conv_layer(cin, cout, k) for (cin, cout, k, _, _) in CONV_CFG]
    fc = [lin_layer(Z_DIM, Z_DIM), lin_layer(Z_DIM, Z_DIM_2)]
    lstm = dict(
        w_ih=0.05 * jax.random.normal(next(keys), (Z_DIM_2, 4 * H_DIM), jnp.float32),
        w_hh=0.05 * jax.random.normal(next(keys), (H_DIM, 4 * H_DIM), jnp.float32),
        b=(0.05 * jax.random.normal(next(keys), (1, 4 * H_DIM), jnp.float32)
           + 0.05 * jax.random.normal(next(keys), (1, 4 * H_DIM), jnp.float32)))  # b_ih + b_hh
    fc2 = [lin_layer(TIMESPAN * H_DIM, H_DIM), lin_layer(H_DIM, H_DIM // 2),
           lin_layer(H_DIM // 2, H_DIM // 2), lin_layer(H_DIM // 2, 2)]
    return dict(encoder=encoder, fc=fc, lstm=lstm, fc2=fc2)


def prepare_params(raw):
    """Fold BatchNorm into the convs and convert everything to kernel layouts."""
    enc_w, enc_b = [], []
    conv3 = conv4 = None
    for idx, layer in enumerate(raw["encoder"]):
        cout, cin, kh, kw = layer["w"].shape
        scale = layer["gamma"] / jnp.sqrt(layer["var"] + BN_EPS)
        w_eff = (layer["w"] * scale[:, None, None, None]).transpose(2, 3, 1, 0)
        w_eff = w_eff.reshape(kh * kw * cin, cout)                     # (kh, kw, cin) patch order
        b_eff = ((layer["b"] - layer["mean"]) * scale + layer["beta"]).reshape(1, cout)
        if idx < 2:
            enc_w.append(w_eff.astype(jnp.bfloat16))                   # bf16 MXU operands
            enc_b.append(b_eff)                                        # bias/ReLU stay f32
        elif idx == 2:
            conv3 = dict(w=w_eff.astype(jnp.bfloat16), b=b_eff)        # GEMM fused into tail
        else:
            conv4 = dict(w=w_eff, b=b_eff)                             # fused into tail, f32

    # fc[0]: our encoder output flattens (h, w, c); PyTorch flattens NCHW as
    # (c, h, w) -> permute the weight's input rows to stay equivalent.
    fc0_w = raw["fc"][0]["w"].reshape(64, 4, Z_DIM).transpose(1, 0, 2).reshape(Z_DIM, Z_DIM)
    return dict(
        enc_w=enc_w, enc_b=enc_b, conv3=conv3, conv4=conv4,
        fc0=dict(w=fc0_w, b=raw["fc"][0]["b"]),
        fc1=dict(w=raw["fc"][1]["w"], b=raw["fc"][1]["b"]),
        lstm=dict(w_ih=raw["lstm"]["w_ih"], w_hh=raw["lstm"]["w_hh"], b=raw["lstm"]["b"]),
        fc2_0=raw["fc2"][0], fc2_1=raw["fc2"][1],
        fc2_2=raw["fc2"][2], fc2_3=raw["fc2"][3])


# ----------------------------------------------------------------------------
# Forward pass (mirrors classifier.forward, inference mode)
# ----------------------------------------------------------------------------
def classifier_forward(x, params):
    input_shape = x.shape                                   # (1, 2, 3, 64, 96)
    h = x.reshape(input_shape[0] * input_shape[1], 3, 64, 96)
    h = jnp.transpose(h.astype(jnp.bfloat16), (0, 2, 3, 1))  # NHWC bf16 (2, 64, 96, 3)

    # encoder conv1..conv2 (Dropout is identity at inference)
    h = conv_bn_relu_nhwc(h, params["enc_w"][0], params["enc_b"][0], CONV_CFG[0],
                          block_m=CONV1_BLOCK_M)            # (2, 30, 46, 16)
    h = conv_bn_relu_nhwc(h, params["enc_w"][1], params["enc_b"][1], CONV_CFG[1])  # (2,14,14,32)

    # conv3 patches only (GEMM happens inside the fused tail kernel).
    _, _, (kh, kw), (sh, sw), (ph, pw) = CONV_CFG[2]
    p3, _, _ = im2col_nhwc(h, kh, kw, sh, sw, ph, pw)       # (72, 800) bf16

    # conv3 + conv4 + fc + LSTM + fc_2 all fused into one Pallas kernel.
    return fused_tail(p3, params)                           # (1, 2)


if __name__ == "__main__":
    key = jax.random.PRNGKey(0)
    k_x, k_p = jax.random.split(key)
    # forward() hard-codes the per-frame shape (3, 64, 96); batch_size=1, timespan=2.
    x = jax.random.normal(k_x, (BATCH, TIMESPAN, 3, 64, 96), jnp.float32)
    params = prepare_params(init_params(k_p))

    fwd = jax.jit(classifier_forward)
    out = jax.block_until_ready(fwd(x, params))
    assert out.shape == (BATCH, 2), out.shape
    print("KERNEL_OK")
</pallas_src>

<mosaic_0001>
module attributes {stable_mosaic.version = 11 : i64} {
  func.func @_gemm_bias_act_kernel(%arg0: i32, %arg1: memref<1408x147xbf16, #tpu.memory_space<vmem>>, %arg2: memref<147x16xbf16, #tpu.memory_space<vmem>>, %arg3: memref<1x16xf32, #tpu.memory_space<vmem>>, %arg4: memref<1408x16xbf16, #tpu.memory_space<vmem>>) attributes {dimension_semantics = [#tpu.dimension_semantics<parallel>], iteration_bounds = array<i64: 2>, scalar_prefetch = 0 : i64, scratch_operands = 0 : i64, tpu.core_type = #tpu.core_type<tc>, window_params = [{transform_indices = @transform_0, window_bounds = array<i64: 1408, 147>}, {pipeline_mode = #tpu.pipeline_mode<synchronous>, transform_indices = @transform_1, window_bounds = array<i64: 147, 16>}, {pipeline_mode = #tpu.pipeline_mode<synchronous>, transform_indices = @transform_2, window_bounds = array<i64: 1, 16>}, {transform_indices = @transform_3, window_bounds = array<i64: 1408, 16>}]} {
    %c0 = arith.constant 0 : index
    %c0_0 = arith.constant 0 : index
    %0 = vector.load %arg1[%c0, %c0_0] : memref<1408x147xbf16, #tpu.memory_space<vmem>>, vector<1408x147xbf16>
    %c0_1 = arith.constant 0 : index
    %c0_2 = arith.constant 0 : index
    %1 = vector.load %arg2[%c0_1, %c0_2] : memref<147x16xbf16, #tpu.memory_space<vmem>>, vector<147x16xbf16>
    %cst = arith.constant dense<0.000000e+00> : vector<1408x16xf32>
    %2 = tpu.matmul %0, %1, %cst {dimension_numbers = #tpu.dot_dimension_numbers<[1], [0], [0], [1], [0, 0, 1, 1], [], []>} : vector<1408x147xbf16>, vector<147x16xbf16>, vector<1408x16xf32> -> vector<1408x16xf32>
    %c0_3 = arith.constant 0 : index
    %c0_4 = arith.constant 0 : index
    %3 = vector.load %arg3[%c0_3, %c0_4] : memref<1x16xf32, #tpu.memory_space<vmem>>, vector<1x16xf32>
    %4 = vector.broadcast %3 : vector<1x16xf32> to vector<1408x16xf32>
    %5 = arith.addf %2, %4 : vector<1408x16xf32>
    %cst_5 = arith.constant 0.000000e+00 : f32
    %6 = vector.broadcast %cst_5 : f32 to vector<1408x16xf32>
    %7 = arith.maximumf %5, %6 : vector<1408x16xf32>
    %8 = arith.truncf %7 : vector<1408x16xf32> to vector<1408x16xbf16>
    %c0_6 = arith.constant 0 : index
    %c0_7 = arith.constant 0 : index
    %9 = vector.load %arg4[%c0_6, %c0_7] : memref<1408x16xbf16, #tpu.memory_space<vmem>>, vector<1408x16xbf16>
    tpu.vector_store %arg4[%c0_6, %c0_7], %8 {strides = array<i32>} : memref<1408x16xbf16, #tpu.memory_space<vmem>>, vector<1408x16xbf16>,
    return
  }
  func.func @transform_0(%arg0: i32) -> (i32, i32) {
    %c0_i32 = arith.constant 0 : i32
    %c0_i32_0 = arith.constant 0 : i32
    return %arg0, %c0_i32 : i32, i32
  }
  func.func @transform_1(%arg0: i32) -> (i32, i32) {
    %c0_i32 = arith.constant 0 : i32
    %c0_i32_0 = arith.constant 0 : i32
    %c0_i32_1 = arith.constant 0 : i32
    return %c0_i32, %c0_i32_0 : i32, i32
  }
  func.func @transform_2(%arg0: i32) -> (i32, i32) {
    %c0_i32 = arith.constant 0 : i32
    %c0_i32_0 = arith.constant 0 : i32
    %c0_i32_1 = arith.constant 0 : i32
    return %c0_i32, %c0_i32_0 : i32, i32
  }
  func.func @transform_3(%arg0: i32) -> (i32, i32) {
    %c0_i32 = arith.constant 0 : i32
    %c0_i32_0 = arith.constant 0 : i32
    return %arg0, %c0_i32 : i32, i32
  }
}

module attributes {stable_mosaic.version = 11 : i64} {
  func.func @_gemm_bias_act_kernel(%arg0: memref<392x400xbf16, #tpu.memory_space<vmem>>, %arg1: memref<400x32xbf16, #tpu.memory_space<vmem>>, %arg2: memref<1x32xf32, #tpu.memory_space<vmem>>, %arg3: memref<392x32xbf16, #tpu.memory_space<vmem>>) attributes {dimension_semantics = [], scalar_prefetch = 0 : i64, scratch_operands = 0 : i64, tpu.core_type = #tpu.core_type<tc>} {
    %c0 = arith.constant 0 : index
    %c0_0 = arith.constant 0 : index
    %0 = vector.load %arg0[%c0, %c0_0] : memref<392x400xbf16, #tpu.memory_space<vmem>>, vector<392x400xbf16>
    %c0_1 = arith.constant 0 : index
    %c0_2 = arith.constant 0 : index
    %1 = vector.load %arg1[%c0_1, %c0_2] : memref<400x32xbf16, #tpu.memory_space<vmem>>, vector<400x32xbf16>
    %cst = arith.constant dense<0.000000e+00> : vector<392x32xf32>
    %2 = tpu.matmul %0, %1, %cst {dimension_numbers = #tpu.dot_dimension_numbers<[1], [0], [0], [1], [0, 0, 1, 1], [], []>} : vector<392x400xbf16>, vector<400x32xbf16>, vector<392x32xf32> -> vector<392x32xf32>
    %c0_3 = arith.constant 0 : index
    %c0_4 = arith.constant 0 : index
    %3 = vector.load %arg2[%c0_3, %c0_4] : memref<1x32xf32, #tpu.memory_space<vmem>>, vector<1x32xf32>
    %4 = vector.broadcast %3 : vector<1x32xf32> to vector<392x32xf32>
    %5 = arith.addf %2, %4 : vector<392x32xf32>
    %cst_5 = arith.constant 0.000000e+00 : f32
    %6 = vector.broadcast %cst_5 : f32 to vector<392x32xf32>
    %7 = arith.maximumf %5, %6 : vector<392x32xf32>
    %8 = arith.truncf %7 : vector<392x32xf32> to vector<392x32xbf16>
    %c0_6 = arith.constant 0 : index
    %c0_7 = arith.constant 0 : index
    %9 = vector.load %arg3[%c0_6, %c0_7] : memref<392x32xbf16, #tpu.memory_space<vmem>>, vector<392x32xbf16>
    tpu.vector_store %arg3[%c0_6, %c0_7], %8 {strides = array<i32>} : memref<392x32xbf16, #tpu.memory_space<vmem>>, vector<392x32xbf16>,
    return
  }
}

module attributes {stable_mosaic.version = 11 : i64} {
  func.func @_tail_kernel(%arg0: memref<72x800xbf16, #tpu.memory_space<vmem>>, %arg1: memref<800x48xbf16, #tpu.memory_space<vmem>>, %arg2: memref<1x48xf32, #tpu.memory_space<vmem>>, %arg3: memref<432x64xf32, #tpu.memory_space<vmem>>, %arg4: memref<1x64xf32, #tpu.memory_space<vmem>>, %arg5: memref<256x256xf32, #tpu.memory_space<vmem>>, %arg6: memref<1x256xf32, #tpu.memory_space<vmem>>, %arg7: memref<256x64xf32, #tpu.memory_space<vmem>>, %arg8: memref<1x64xf32, #tpu.memory_space<vmem>>, %arg9: memref<64x512xf32, #tpu.memory_space<vmem>>, %arg10: memref<128x512xf32, #tpu.memory_space<vmem>>, %arg11: memref<1x512xf32, #tpu.memory_space<vmem>>, %arg12: memref<256x128xf32, #tpu.memory_space<vmem>>, %arg13: memref<1x128xf32, #tpu.memory_space<vmem>>, %arg14: memref<128x64xf32, #tpu.memory_space<vmem>>, %arg15: memref<1x64xf32, #tpu.memory_space<vmem>>, %arg16: memref<64x64xf32, #tpu.memory_space<vmem>>, %arg17: memref<1x64xf32, #tpu.memory_space<vmem>>, %arg18: memref<64x2xf32, #tpu.memory_space<vmem>>, %arg19: memref<1x2xf32, #tpu.memory_space<vmem>>, %arg20: memref<1x2xf32, #tpu.memory_space<vmem>>, %arg21: memref<72x48xf32, #tpu.memory_space<vmem>>) attributes {dimension_semantics = [], scalar_prefetch = 0 : i64, scratch_operands = 1 : i64, tpu.core_type = #tpu.core_type<tc>} {
    %c0 = arith.constant 0 : index
    %c0_0 = arith.constant 0 : index
    %0 = vector.load %arg0[%c0, %c0_0] : memref<72x800xbf16, #tpu.memory_space<vmem>>, vector<72x800xbf16>
    %c0_1 = arith.constant 0 : index
    %c0_2 = arith.constant 0 : index
    %1 = vector.load %arg1[%c0_1, %c0_2] : memref<800x48xbf16, #tpu.memory_space<vmem>>, vector<800x48xbf16>
    %cst = arith.constant dense<0.000000e+00> : vector<72x48xf32>
    %2 = tpu.matmul %0, %1, %cst {dimension_numbers = #tpu.dot_dimension_numbers<[1], [0], [0], [1], [0, 0, 1, 1], [], []>} : vector<72x800xbf16>, vector<800x48xbf16>, vector<72x48xf32> -> vector<72x48xf32>
    %c0_3 = arith.constant 0 : index
    %c0_4 = arith.constant 0 : index
    %3 = vector.load %arg2[%c0_3, %c0_4] : memref<1x48xf32, #tpu.memory_space<vmem>>, vector<1x48xf32>
    %4 = vector.broadcast %3 : vector<1x48xf32> to vector<72x48xf32>
    %5 = arith.addf %2, %4 : vector<72x48xf32>
    %cst_5 = arith.constant 0.000000e+00 : f32
    %6 = vector.broadcast %cst_5 : f32 to vector<72x48xf32>
    %7 = arith.maximumf %5, %6 : vector<72x48xf32>
    %c0_6 = arith.constant 0 : index
    %c0_7 = arith.constant 0 : index
    %8 = vector.load %arg21[%c0_6, %c0_7] : memref<72x48xf32, #tpu.memory_space<vmem>>, vector<72x48xf32>
    tpu.vector_store %arg21[%c0_6, %c0_7], %7 {strides = array<i32>} : memref<72x48xf32, #tpu.memory_space<vmem>>, vector<72x48xf32>,
    %c0_8 = arith.constant 0 : index
    %c0_9 = arith.constant 0 : index
    %9 = vector.load %arg21[%c0_8, %c0_9] : memref<72x48xf32, #tpu.memory_space<vmem>>, vector<1x48xf32>
    %c1 = arith.constant 1 : index
    %c0_10 = arith.constant 0 : index
    %10 = vector.load %arg21[%c1, %c0_10] : memref<72x48xf32, #tpu.memory_space<vmem>>, vector<1x48xf32>
    %c2 = arith.constant 2 : index
    %c0_11 = arith.constant 0 : index
    %11 = vector.load %arg21[%c2, %c0_11] : memref<72x48xf32, #tpu.memory_space<vmem>>, vector<1x48xf32>
    %c6 = arith.constant 6 : index
    %c0_12 = arith.constant 0 : index
    %12 = vector.load %arg21[%c6, %c0_12] : memref<72x48xf32, #tpu.memory_space<vmem>>, vector<1x48xf32>
    %c7 = arith.constant 7 : index
    %c0_13 = arith.constant 0 : index
    %13 = vector.load %arg21[%c7, %c0_13] : memref<72x48xf32, #tpu.memory_space<vmem>>, vector<1x48xf32>
    %c8 = arith.constant 8 : index
    %c0_14 = arith.constant 0 : index
    %14 = vector.load %arg21[%c8, %c0_14] : memref<72x48xf32, #tpu.memory_space<vmem>>, vector<1x48xf32>
    %c12 = arith.constant 12 : index
    %c0_15 = arith.constant 0 : index
    %15 = vector.load %arg21[%c12, %c0_15] : memref<72x48xf32, #tpu.memory_space<vmem>>, vector<1x48xf32>
    %c13 = arith.constant 13 : index
    %c0_16 = arith.constant 0 : index
    %16 = vector.load %arg21[%c13, %c0_16] : memref<72x48xf32, #tpu.memory_space<vmem>>, vector<1x48xf32>
    %c14 = arith.constant 14 : index
    %c0_17 = arith.constant 0 : index
    %17 = vector.load %arg21[%c14, %c0_17] : memref<72x48xf32, #tpu.memory_space<vmem>>, vector<1x48xf32>
    %18 = tpu.concatenate %9, %10, %11, %12, %13, %14, %15, %16, %17 in 1 : vector<1x48xf32>, vector<1x48xf32>, vector<1x48xf32>, vector<1x48xf32>, vector<1x48xf32>, vector<1x48xf32>, vector<1x48xf32>, vector<1x48xf32>, vector<1x48xf32> -> vector<1x432xf32>
    %c3 = arith.constant 3 : index
    %c0_18 = arith.constant 0 : index
    %19 = vector.load %arg21[%c3, %c0_18] : memref<72x48xf32, #tpu.memory_space<vmem>>, vector<1x48xf32>
    %c4 = arith.constant 4 : index
    %c0_19 = arith.constant 0 : index
    %20 = vector.load %arg21[%c4, %c0_19] : memref<72x48xf32, #tpu.memory_space<vmem>>, vector<1x48xf32>
    %c5 = arith.constant 5 : index
    %c0_20 = arith.constant 0 : index
    %21 = vector.load %arg21[%c5, %c0_20] : memref<72x48xf32, #tpu.memory_space<vmem>>, vector<1x48xf32>
    %c9 = arith.constant 9 : index
    %c0_21 = arith.constant 0 : index
    %22 = vector.load %arg21[%c9, %c0_21] : memref<72x48xf32, #tpu.memory_space<vmem>>, vector<1x48xf32>
    %c10 = arith.constant 10 : index
    %c0_22 = arith.constant 0 : index
    %23 = vector.load %arg21[%c10, %c0_22] : memref<72x48xf32, #tpu.memory_space<vmem>>, vector<1x48xf32>
    %c11 = arith.constant 11 : index
    %c0_23 = arith.constant 0 : index
    %24 = vector.load %arg21[%c11, %c0_23] : memref<72x48xf32, #tpu.memory_space<vmem>>, vector<1x48xf32>
    %c15 = arith.constant 15 : index
    %c0_24 = arith.constant 0 : index
    %25 = vector.load %arg21[%c15, %c0_24] : memref<72x48xf32, #tpu.memory_space<vmem>>, vector<1x48xf32>
    %c16 = arith.constant 16 : index
    %c0_25 = arith.constant 0 : index
    %26 = vector.load %arg21[%c16, %c0_25] : memref<72x48xf32, #tpu.memory_space<vmem>>, vector<1x48xf32>
    %c17 = arith.constant 17 : index
    %c0_26 = arith.constant 0 : index
    %27 = vector.load %arg21[%c17, %c0_26] : memref<72x48xf32, #tpu.memory_space<vmem>>, vector<1x48xf32>
    %28 = tpu.concatenate %19, %20, %21, %22, %23, %24, %25, %26, %27 in 1 : vector<1x48xf32>, vector<1x48xf32>, vector<1x48xf32>, vector<1x48xf32>, vector<1x48xf32>, vector<1x48xf32>, vector<1x48xf32>, vector<1x48xf32>, vector<1x48xf32> -> vector<1x432xf32>
    %c18 = arith.constant 18 : index
    %c0_27 = arith.constant 0 : index
    %29 = vector.load %arg21[%c18, %c0_27] : memref<72x48xf32, #tpu.memory_space<vmem>>, vector<1x48xf32>
    %c19 = arith.constant 19 : index
    %c0_28 = arith.constant 0 : index
    %30 = vector.load %arg21[%c19, %c0_28] : memref<72x48xf32, #tpu.memory_space<vmem>>, vector<1x48xf32>
    %c20 = arith.constant 20 : index
    %c0_29 = arith.constant 0 : index
    %31 = vector.load %arg21[%c20, %c0_29] : memref<72x48xf32, #tpu.memory_space<vmem>>, vector<1x48xf32>
    %c24 = arith.constant 24 : index
    %c0_30 = arith.constant 0 : index
    %32 = vector.load %arg21[%c24, %c0_30] : memref<72x48xf32, #tpu.memory_space<vmem>>, vector<1x48xf32>
    %c25 = arith.constant 25 : index
    %c0_31 = arith.constant 0 : index
    %33 = vector.load %arg21[%c25, %c0_31] : memref<72x48xf32, #tpu.memory_space<vmem>>, vector<1x48xf32>
    %c26 = arith.constant 26 : index
    %c0_32 = arith.constant 0 : index
    %34 = vector.load %arg21[%c26, %c0_32] : memref<72x48xf32, #tpu.memory_space<vmem>>, vector<1x48xf32>
    %c30 = arith.constant 30 : index
    %c0_33 = arith.constant 0 : index
    %35 = vector.load %arg21[%c30, %c0_33] : memref<72x48xf32, #tpu.memory_space<vmem>>, vector<1x48xf32>
    %c31 = arith.constant 31 : index
    %c0_34 = arith.constant 0 : index
    %36 = vector.load %arg21[%c31, %c0_34] : memref<72x48xf32, #tpu.memory_space<vmem>>, vector<1x48xf32>
    %c32 = arith.constant 32 : index
    %c0_35 = arith.constant 0 : index
    %37 = vector.load %arg21[%c32, %c0_35] : memref<72x48xf32, #tpu.memory_space<vmem>>, vector<1x48xf32>
    %38 = tpu.concatenate %29, %30, %31, %32, %33, %34, %35, %36, %37 in 1 : vector<1x48xf32>, vector<1x48xf32>, vector<1x48xf32>, vector<1x48xf32>, vector<1x48xf32>, vector<1x48xf32>, vector<1x48xf32>, vector<1x48xf32>, vector<1x48xf32> -> vector<1x432xf32>
    %c21 = arith.constant 21 : index
    %c0_36 = arith.constant 0 : index
    %39 = vector.load %arg21[%c21, %c0_36] : memref<72x48xf32, #tpu.memory_space<vmem>>, vector<1x48xf32>
    %c22 = arith.constant 22 : index
    %c0_37 = arith.constant 0 : index
    %40 = vector.load %arg21[%c22, %c0_37] : memref<72x48xf32, #tpu.memory_space<vmem>>, vector<1x48xf32>
    %c23 = arith.constant 23 : index
    %c0_38 = arith.constant 0 : index
    %41 = vector.load %arg21[%c23, %c0_38] : memref<72x48xf32, #tpu.memory_space<vmem>>, vector<1x48xf32>
    %c27 = arith.constant 27 : index
    %c0_39 = arith.constant 0 : index
    %42 = vector.load %arg21[%c27, %c0_39] : memref<72x48xf32, #tpu.memory_space<vmem>>, vector<1x48xf32>
    %c28 = arith.constant 28 : index
    %c0_40 = arith.constant 0 : index
    %43 = vector.load %arg21[%c28, %c0_40] : memref<72x48xf32, #tpu.memory_space<vmem>>, vector<1x48xf32>
    %c29 = arith.constant 29 : index
    %c0_41 = arith.constant 0 : index
    %44 = vector.load %arg21[%c29, %c0_41] : memref<72x48xf32, #tpu.memory_space<vmem>>, vector<1x48xf32>
    %c33 = arith.constant 33 : index
    %c0_42 = arith.constant 0 : index
    %45 = vector.load %arg21[%c33, %c0_42] : memref<72x48xf32, #tpu.memory_space<vmem>>, vector<1x48xf32>
    %c34 = arith.constant 34 : index
    %c0_43 = arith.constant 0 : index
    %46 = vector.load %arg21[%c34, %c0_43] : memref<72x48xf32, #tpu.memory_space<vmem>>, vector<1x48xf32>
    %c35 = arith.constant 35 : index
    %c0_44 = arith.constant 0 : index
    %47 = vector.load %arg21[%c35, %c0_44] : memref<72x48xf32, #tpu.memory_space<vmem>>, vector<1x48xf32>
    %48 = tpu.concatenate %39, %40, %41, %42, %43, %44, %45, %46, %47 in 1 : vector<1x48xf32>, vector<1x48xf32>, vector<1x48xf32>, vector<1x48xf32>, vector<1x48xf32>, vector<1x48xf32>, vector<1x48xf32>, vector<1x48xf32>, vector<1x48xf32> -> vector<1x432xf32>
    %c36 = arith.constant 36 : index
    %c0_45 = arith.constant 0 : index
    %49 = vector.load %arg21[%c36, %c0_45] : memref<72x48xf32, #tpu.memory_space<vmem>>, vector<1x48xf32>
    %c37 = arith.constant 37 : index
    %c0_46 = arith.constant 0 : index
    %50 = vector.load %arg21[%c37, %c0_46] : memref<72x48xf32, #tpu.memory_space<vmem>>, vector<1x48xf32>
    %c38 = arith.constant 38 : index
    %c0_47 = arith.constant 0 : index
    %51 = vector.load %arg21[%c38, %c0_47] : memref<72x48xf32, #tpu.memory_space<vmem>>, vector<1x48xf32>
    %c42 = arith.constant 42 : index
    %c0_48 = arith.constant 0 : index
    %52 = vector.load %arg21[%c42, %c0_48] : memref<72x48xf32, #tpu.memory_space<vmem>>, vector<1x48xf32>
    %c43 = arith.constant 43 : index
    %c0_49 = arith.constant 0 : index
    %53 = vector.load %arg21[%c43, %c0_49] : memref<72x48xf32, #tpu.memory_space<vmem>>, vector<1x48xf32>
    %c44 = arith.constant 44 : index
    %c0_50 = arith.constant 0 : index
    %54 = vector.load %arg21[%c44, %c0_50] : memref<72x48xf32, #tpu.memory_space<vmem>>, vector<1x48xf32>
    %c48 = arith.constant 48 : index
    %c0_51 = arith.constant 0 : index
    %55 = vector.load %arg21[%c48, %c0_51] : memref<72x48xf32, #tpu.memory_space<vmem>>, vector<1x48xf32>
    %c49 = arith.constant 49 : index
    %c0_52 = arith.constant 0 : index
    %56 = vector.load %arg21[%c49, %c0_52] : memref<72x48xf32, #tpu.memory_space<vmem>>, vector<1x48xf32>
    %c50 = arith.constant 50 : index
    %c0_53 = arith.constant 0 : index
    %57 = vector.load %arg21[%c50, %c0_53] : memref<72x48xf32, #tpu.memory_space<vmem>>, vector<1x48xf32>
    %58 = tpu.concatenate %49, %50, %51, %52, %53, %54, %55, %56, %57 in 1 : vector<1x48xf32>, vector<1x48xf32>, vector<1x48xf32>, vector<1x48xf32>, vector<1x48xf32>, vector<1x48xf32>, vector<1x48xf32>, vector<1x48xf32>, vector<1x48xf32> -> vector<1x432xf32>
    %c39 = arith.constant 39 : index
    %c0_54 = arith.constant 0 : index
    %59 = vector.load %arg21[%c39, %c0_54] : memref<72x48xf32, #tpu.memory_space<vmem>>, vector<1x48xf32>
    %c40 = arith.constant 40 : index
    %c0_55 = arith.constant 0 : index
    %60 = vector.load %arg21[%c40, %c0_55] : memref<72x48xf32, #tpu.memory_space<vmem>>, vector<1x48xf32>
    %c41 = arith.constant 41 : index
    %c0_56 = arith.constant 0 : index
    %61 = vector.load %arg21[%c41, %c0_56] : memref<72x48xf32, #tpu.memory_space<vmem>>, vector<1x48xf32>
    %c45 = arith.constant 45 : index
    %c0_57 = arith.constant 0 : index
    %62 = vector.load %arg21[%c45, %c0_57] : memref<72x48xf32, #tpu.memory_space<vmem>>, vector<1x48xf32>
    %c46 = arith.constant 46 : index
    %c0_58 = arith.constant 0 : index
    %63 = vector.load %arg21[%c46, %c0_58] : memref<72x48xf32, #tpu.memory_space<vmem>>, vector<1x48xf32>
    %c47 = arith.constant 47 : index
    %c0_59 = arith.constant 0 : index
    %64 = vector.load %arg21[%c47, %c0_59] : memref<72x48xf32, #tpu.memory_space<vmem>>, vector<1x48xf32>
    %c51 = arith.constant 51 : index
    %c0_60 = arith.constant 0 : index
    %65 = vector.load %arg21[%c51, %c0_60] : memref<72x48xf32, #tpu.memory_space<vmem>>, vector<1x48xf32>
    %c52 = arith.constant 52 : index
    %c0_61 = arith.constant 0 : index
    %66 = vector.load %arg21[%c52, %c0_61] : memref<72x48xf32, #tpu.memory_space<vmem>>, vector<1x48xf32>
    %c53 = arith.constant 53 : index
    %c0_62 = arith.constant 0 : index
    %67 = vector.load %arg21[%c53, %c0_62] : memref<72x48xf32, #tpu.memory_space<vmem>>, vector<1x48xf32>
    %68 = tpu.concatenate %59, %60, %61, %62, %63, %64, %65, %66, %67 in 1 : vector<1x48xf32>, vector<1x48xf32>, vector<1x48xf32>, vector<1x48xf32>, vector<1x48xf32>, vector<1x48xf32>, vector<1x48xf32>, vector<1x48xf32>, vector<1x48xf32> -> vector<1x432xf32>
    %c54 = arith.constant 54 : index
    %c0_63 = arith.constant 0 : index
    %69 = vector.load %arg21[%c54, %c0_63] : memref<72x48xf32, #tpu.memory_space<vmem>>, vector<1x48xf32>
    %c55 = arith.constant 55 : index
    %c0_64 = arith.constant 0 : index
    %70 = vector.load %arg21[%c55, %c0_64] : memref<72x48xf32, #tpu.memory_space<vmem>>, vector<1x48xf32>
    %c56 = arith.constant 56 : index
    %c0_65 = arith.constant 0 : index
    %71 = vector.load %arg21[%c56, %c0_65] : memref<72x48xf32, #tpu.memory_space<vmem>>, vector<1x48xf32>
    %c60 = arith.constant 60 : index
    %c0_66 = arith.constant 0 : index
    %72 = vector.load %arg21[%c60, %c0_66] : memref<72x48xf32, #tpu.memory_space<vmem>>, vector<1x48xf32>
    %c61 = arith.constant 61 : index
    %c0_67 = arith.constant 0 : index
    %73 = vector.load %arg21[%c61, %c0_67] : memref<72x48xf32, #tpu.memory_space<vmem>>, vector<1x48xf32>
    %c62 = arith.constant 62 : index
    %c0_68 = arith.constant 0 : index
    %74 = vector.load %arg21[%c62, %c0_68] : memref<72x48xf32, #tpu.memory_space<vmem>>, vector<1x48xf32>
    %c66 = arith.constant 66 : index
    %c0_69 = arith.constant 0 : index
    %75 = vector.load %arg21[%c66, %c0_69] : memref<72x48xf32, #tpu.memory_space<vmem>>, vector<1x48xf32>
    %c67 = arith.constant 67 : index
    %c0_70 = arith.constant 0 : index
    %76 = vector.load %arg21[%c67, %c0_70] : memref<72x48xf32, #tpu.memory_space<vmem>>, vector<1x48xf32>
    %c68 = arith.constant 68 : index
    %c0_71 = arith.constant 0 : index
    %77 = vector.load %arg21[%c68, %c0_71] : memref<72x48xf32, #tpu.memory_space<vmem>>, vector<1x48xf32>
    %78 = tpu.concatenate %69, %70, %71, %72, %73, %74, %75, %76, %77 in 1 : vector<1x48xf32>, vector<1x48xf32>, vector<1x48xf32>, vector<1x48xf32>, vector<1x48xf32>, vector<1x48xf32>, vector<1x48xf32>, vector<1x48xf32>, vector<1x48xf32> -> vector<1x432xf32>
    %c57 = arith.constant 57 : index
    %c0_72 = arith.constant 0 : index
    %79 = vector.load %arg21[%c57, %c0_72] : memref<72x48xf32, #tpu.memory_space<vmem>>, vector<1x48xf32>
    %c58 = arith.constant 58 : index
    %c0_73 = arith.constant 0 : index
    %80 = vector.load %arg21[%c58, %c0_73] : memref<72x48xf32, #tpu.memory_space<vmem>>, vector<1x48xf32>
    %c59 = arith.constant 59 : index
    %c0_74 = arith.constant 0 : index
    %81 = vector.load %arg21[%c59, %c0_74] : memref<72x48xf32, #tpu.memory_space<vmem>>, vector<1x48xf32>
    %c63 = arith.constant 63 : index
    %c0_75 = arith.constant 0 : index
    %82 = vector.load %arg21[%c63, %c0_75] : memref<72x48xf32, #tpu.memory_space<vmem>>, vector<1x48xf32>
    %c64 = arith.constant 64 : index
    %c0_76 = arith.constant 0 : index
    %83 = vector.load %arg21[%c64, %c0_76] : memref<72x48xf32, #tpu.memory_space<vmem>>, vector<1x48xf32>
    %c65 = arith.constant 65 : index
    %c0_77 = arith.constant 0 : index
    %84 = vector.load %arg21[%c65, %c0_77] : memref<72x48xf32, #tpu.memory_space<vmem>>, vector<1x48xf32>
    %c69 = arith.constant 69 : index
    %c0_78 = arith.constant 0 : index
    %85 = vector.load %arg21[%c69, %c0_78] : memref<72x48xf32, #tpu.memory_space<vmem>>, vector<1x48xf32>
    %c70 = arith.constant 70 : index
    %c0_79 = arith.constant 0 : index
    %86 = vector.load %arg21[%c70, %c0_79] : memref<72x48xf32, #tpu.memory_space<vmem>>, vector<1x48xf32>
    %c71 = arith.constant 71 : index
    %c0_80 = arith.constant 0 : index
    %87 = vector.load %arg21[%c71, %c0_80] : memref<72x48xf32, #tpu.memory_space<vmem>>, vector<1x48xf32>
    %88 = tpu.concatenate %79, %80, %81, %82, %83, %84, %85, %86, %87 in 1 : vector<1x48xf32>, vector<1x48xf32>, vector<1x48xf32>, vector<1x48xf32>, vector<1x48xf32>, vector<1x48xf32>, vector<1x48xf32>, vector<1x48xf32>, vector<1x48xf32> -> vector<1x432xf32>
    %89 = tpu.concatenate %18, %28, %38, %48, %58, %68, %78, %88 in 0 : vector<1x432xf32>, vector<1x432xf32>, vector<1x432xf32>, vector<1x432xf32>, vector<1x432xf32>, vector<1x432xf32>, vector<1x432xf32>, vector<1x432xf32> -> vector<8x432xf32>
    %c0_81 = arith.constant 0 : index
    %c0_82 = arith.constant 0 : index
    %90 = vector.load %arg3[%c0_81, %c0_82] : memref<432x64xf32, #tpu.memory_space<vmem>>, vector<432x64xf32>
    %cst_83 = arith.constant dense<0.000000e+00> : vector<8x64xf32>
    %91 = tpu.matmul %89, %90, %cst_83 {dimension_numbers = #tpu.dot_dimension_numbers<[1], [0], [0], [1], [0, 0, 1, 1], [], []>} : vector<8x432xf32>, vector<432x64xf32>, vector<8x64xf32> -> vector<8x64xf32>
    %c0_84 = arith.constant 0 : index
    %c0_85 = arith.constant 0 : index
    %92 = vector.load %arg4[%c0_84, %c0_85] : memref<1x64xf32, #tpu.memory_space<vmem>>, vector<1x64xf32>
    %93 = vector.broadcast %92 : vector<1x64xf32> to vector<8x64xf32>
    %94 = arith.addf %91, %93 : vector<8x64xf32>
    %cst_86 = arith.constant 0.000000e+00 : f32
    %95 = vector.broadcast %cst_86 : f32 to vector<8x64xf32>
    %96 = arith.maximumf %94, %95 : vector<8x64xf32>
    %97 = vector.extract_strided_slice %96 {offsets = [0, 0], sizes = [1, 64], strides = [1, 1]} : vector<8x64xf32> to vector<1x64xf32>
    %98 = vector.extract_strided_slice %96 {offsets = [1, 0], sizes = [1, 64], strides = [1, 1]} : vector<8x64xf32> to vector<1x64xf32>
    %99 = vector.extract_strided_slice %96 {offsets = [2, 0], sizes = [1, 64], strides = [1, 1]} : vector<8x64xf32> to vector<1x64xf32>
    %100 = vector.extract_strided_slice %96 {offsets = [3, 0], sizes = [1, 64], strides = [1, 1]} : vector<8x64xf32> to vector<1x64xf32>
    %101 = tpu.concatenate %97, %98, %99, %100 in 1 : vector<1x64xf32>, vector<1x64xf32>, vector<1x64xf32>, vector<1x64xf32> -> vector<1x256xf32>
    %102 = vector.extract_strided_slice %96 {offsets = [4, 0], sizes = [1, 64], strides = [1, 1]} : vector<8x64xf32> to vector<1x64xf32>
    %103 = vector.extract_strided_slice %96 {offsets = [5, 0], sizes = [1, 64], strides = [1, 1]} : vector<8x64xf32> to vector<1x64xf32>
    %104 = vector.extract_strided_slice %96 {offsets = [6, 0], sizes = [1, 64], strides = [1, 1]} : vector<8x64xf32> to vector<1x64xf32>
    %105 = vector.extract_strided_slice %96 {offsets = [7, 0], sizes = [1, 64], strides = [1, 1]} : vector<8x64xf32> to vector<1x64xf32>
    %106 = tpu.concatenate %102, %103, %104, %105 in 1 : vector<1x64xf32>, vector<1x64xf32>, vector<1x64xf32>, vector<1x64xf32> -> vector<1x256xf32>
    %107 = tpu.concatenate %101, %106 in 0 : vector<1x256xf32>, vector<1x256xf32> -> vector<2x256xf32>
    %c0_87 = arith.constant 0 : index
    %c0_88 = arith.constant 0 : index
    %108 = vector.load %arg5[%c0_87, %c0_88] : memref<256x256xf32, #tpu.memory_space<vmem>>, vector<256x256xf32>
    %cst_89 = arith.constant dense<0.000000e+00> : vector<2x256xf32>
    %109 = tpu.matmul %107, %108, %cst_89 {dimension_numbers = #tpu.dot_dimension_numbers<[1], [0], [0], [1], [0, 0, 1, 1], [], []>} : vector<2x256xf32>, vector<256x256xf32>, vector<2x256xf32> -> vector<2x256xf32>
    %c0_90 = arith.constant 0 : index
    %c0_91 = arith.constant 0 : index
    %110 = vector.load %arg6[%c0_90, %c0_91] : memref<1x256xf32, #tpu.memory_space<vmem>>, vector<1x256xf32>
    %111 = vector.broadcast %110 : vector<1x256xf32> to vector<2x256xf32>
    %112 = arith.addf %109, %111 : vector<2x256xf32>
    %cst_92 = arith.constant 0.000000e+00 : f32
    %113 = vector.broadcast %cst_92 : f32 to vector<2x256xf32>
    %114 = arith.maximumf %112, %113 : vector<2x256xf32>
    %c0_93 = arith.constant 0 : index
    %c0_94 = arith.constant 0 : index
    %115 = vector.load %arg7[%c0_93, %c0_94] : memref<256x64xf32, #tpu.memory_space<vmem>>, vector<256x64xf32>
    %cst_95 = arith.constant dense<0.000000e+00> : vector<2x64xf32>
    %116 = tpu.matmul %114, %115, %cst_95 {dimension_numbers = #tpu.dot_dimension_numbers<[1], [0], [0], [1], [0, 0, 1, 1], [], []>} : vector<2x256xf32>, vector<256x64xf32>, vector<2x64xf32> -> vector<2x64xf32>
    %c0_96 = arith.constant 0 : index
    %c0_97 = arith.constant 0 : index
    %117 = vector.load %arg8[%c0_96, %c0_97] : memref<1x64xf32, #tpu.memory_space<vmem>>, vector<1x64xf32>
    %118 = vector.broadcast %117 : vector<1x64xf32> to vector<2x64xf32>
    %119 = arith.addf %116, %118 : vector<2x64xf32>
    %cst_98 = arith.constant 0.000000e+00 : f32
    %120 = vector.broadcast %cst_98 : f32 to vector<2x64xf32>
    %121 = arith.maximumf %119, %120 : vector<2x64xf32>
    %c0_99 = arith.constant 0 : index
    %c0_100 = arith.constant 0 : index
    %122 = vector.load %arg9[%c0_99, %c0_100] : memref<64x512xf32, #tpu.memory_space<vmem>>, vector<64x512xf32>
    %cst_101 = arith.constant dense<0.000000e+00> : vector<2x512xf32>
    %123 = tpu.matmul %121, %122, %cst_101 {dimension_numbers = #tpu.dot_dimension_numbers<[1], [0], [0], [1], [0, 0, 1, 1], [], []>} : vector<2x64xf32>, vector<64x512xf32>, vector<2x512xf32> -> vector<2x512xf32>
    %c0_102 = arith.constant 0 : index
    %c0_103 = arith.constant 0 : index
    %124 = vector.load %arg11[%c0_102, %c0_103] : memref<1x512xf32, #tpu.memory_space<vmem>>, vector<1x512xf32>
    %125 = vector.broadcast %124 : vector<1x512xf32> to vector<2x512xf32>
    %126 = arith.addf %123, %125 : vector<2x512xf32>
    %cst_104 = arith.constant 0.000000e+00 : f32
    %127 = vector.broadcast %cst_104 : f32 to vector<1x128xf32>
    %cst_105 = arith.constant 0.000000e+00 : f32
    %128 = vector.broadcast %cst_105 : f32 to vector<1x128xf32>
    %129 = vector.extract_strided_slice %126 {offsets = [0, 0], sizes = [1, 512], strides = [1, 1]} : vector<2x512xf32> to vector<1x512xf32>
    %c0_106 = arith.constant 0 : index
    %c0_107 = arith.constant 0 : index
    %130 = vector.load %arg10[%c0_106, %c0_107] : memref<128x512xf32, #tpu.memory_space<vmem>>, vector<128x512xf32>
    %cst_108 = arith.constant dense<0.000000e+00> : vector<1x512xf32>
    %131 = tpu.matmul %127, %130, %cst_108 {dimension_numbers = #tpu.dot_dimension_numbers<[1], [0], [0], [1], [0, 0, 1, 1], [], []>} : vector<1x128xf32>, vector<128x512xf32>, vector<1x512xf32> -> vector<1x512xf32>
    %132 = arith.addf %129, %131 : vector<1x512xf32>
    %133 = vector.extract_strided_slice %132 {offsets = [0, 0], sizes = [1, 128], strides = [1, 1]} : vector<1x512xf32> to vector<1x128xf32>
    %134 = arith.negf %133 : vector<1x128xf32>
    %135 = math.exp %134 : vector<1x128xf32>
    %cst_109 = arith.constant 1.000000e+00 : f32
    %136 = vector.broadcast %cst_109 : f32 to vector<1x128xf32>
    %137 = arith.addf %136, %135 : vector<1x128xf32>
    %138 = arith.divf %136, %137 : vector<1x128xf32>
    %139 = vector.extract_strided_slice %132 {offsets = [0, 128], sizes = [1, 128], strides = [1, 1]} : vector<1x512xf32> to vector<1x128xf32>
    %140 = arith.negf %139 : vector<1x128xf32>
    %141 = math.exp %140 : vector<1x128xf32>
    %cst_110 = arith.constant 1.000000e+00 : f32
    %142 = vector.broadcast %cst_110 : f32 to vector<1x128xf32>
    %143 = arith.addf %142, %141 : vector<1x128xf32>
    %144 = arith.divf %142, %143 : vector<1x128xf32>
    %145 = vector.extract_strided_slice %132 {offsets = [0, 256], sizes = [1, 128], strides = [1, 1]} : vector<1x512xf32> to vector<1x128xf32>
    %146 = math.tanh %145 : vector<1x128xf32>
    %147 = vector.extract_strided_slice %132 {offsets = [0, 384], sizes = [1, 128], strides = [1, 1]} : vector<1x512xf32> to vector<1x128xf32>
    %148 = arith.negf %147 : vector<1x128xf32>
    %149 = math.exp %148 : vector<1x128xf32>
    %cst_111 = arith.constant 1.000000e+00 : f32
    %150 = vector.broadcast %cst_111 : f32 to vector<1x128xf32>
    %151 = arith.addf %150, %149 : vector<1x128xf32>
    %152 = arith.divf %150, %151 : vector<1x128xf32>
    %153 = arith.mulf %144, %128 : vector<1x128xf32>
    %154 = arith.mulf %138, %146 : vector<1x128xf32>
    %155 = arith.addf %153, %154 : vector<1x128xf32>
    %156 = math.tanh %155 : vector<1x128xf32>
    %157 = arith.mulf %152, %156 : vector<1x128xf32>
    %158 = vector.extract_strided_slice %126 {offsets = [1, 0], sizes = [1, 512], strides = [1, 1]} : vector<2x512xf32> to vector<1x512xf32>
    %c0_112 = arith.constant 0 : index
    %c0_113 = arith.constant 0 : index
    %159 = vector.load %arg10[%c0_112, %c0_113] : memref<128x512xf32, #tpu.memory_space<vmem>>, vector<128x512xf32>
    %cst_114 = arith.constant dense<0.000000e+00> : vector<1x512xf32>
    %160 = tpu.matmul %157, %159, %cst_114 {dimension_numbers = #tpu.dot_dimension_numbers<[1], [0], [0], [1], [0, 0, 1, 1], [], []>} : vector<1x128xf32>, vector<128x512xf32>, vector<1x512xf32> -> vector<1x512xf32>
    %161 = arith.addf %158, %160 : vector<1x512xf32>
    %162 = vector.extract_strided_slice %161 {offsets = [0, 0], sizes = [1, 128], strides = [1, 1]} : vector<1x512xf32> to vector<1x128xf32>
    %163 = arith.negf %162 : vector<1x128xf32>
    %164 = math.exp %163 : vector<1x128xf32>
    %cst_115 = arith.constant 1.000000e+00 : f32
    %165 = vector.broadcast %cst_115 : f32 to vector<1x128xf32>
    %166 = arith.addf %165, %164 : vector<1x128xf32>
    %167 = arith.divf %165, %166 : vector<1x128xf32>
    %168 = vector.extract_strided_slice %161 {offsets = [0, 128], sizes = [1, 128], strides = [1, 1]} : vector<1x512xf32> to vector<1x128xf32>
    %169 = arith.negf %168 : vector<1x128xf32>
    %170 = math.exp %169 : vector<1x128xf32>
    %cst_116 = arith.constant 1.000000e+00 : f32
    %171 = vector.broadcast %cst_116 : f32 to vector<1x128xf32>
    %172 = arith.addf %171, %170 : vector<1x128xf32>
    %173 = arith.divf %171, %172 : vector<1x128xf32>
    %174 = vector.extract_strided_slice %161 {offsets = [0, 256], sizes = [1, 128], strides = [1, 1]} : vector<1x512xf32> to vector<1x128xf32>
    %175 = math.tanh %174 : vector<1x128xf32>
    %176 = vector.extract_strided_slice %161 {offsets = [0, 384], sizes = [1, 128], strides = [1, 1]} : vector<1x512xf32> to vector<1x128xf32>
    %177 = arith.negf %176 : vector<1x128xf32>
    %178 = math.exp %177 : vector<1x128xf32>
    %cst_117 = arith.constant 1.000000e+00 : f32
    %179 = vector.broadcast %cst_117 : f32 to vector<1x128xf32>
    %180 = arith.addf %179, %178 : vector<1x128xf32>
    %181 = arith.divf %179, %180 : vector<1x128xf32>
    %182 = arith.mulf %173, %155 : vector<1x128xf32>
    %183 = arith.mulf %167, %175 : vector<1x128xf32>
    %184 = arith.addf %182, %183 : vector<1x128xf32>
    %185 = math.tanh %184 : vector<1x128xf32>
    %186 = arith.mulf %181, %185 : vector<1x128xf32>
    %187 = tpu.concatenate %157, %186 in 1 : vector<1x128xf32>, vector<1x128xf32> -> vector<1x256xf32>
    %c0_118 = arith.constant 0 : index
    %c0_119 = arith.constant 0 : index
    %188 = vector.load %arg12[%c0_118, %c0_119] : memref<256x128xf32, #tpu.memory_space<vmem>>, vector<256x128xf32>
    %cst_120 = arith.constant dense<0.000000e+00> : vector<1x128xf32>
    %189 = tpu.matmul %187, %188, %cst_120 {dimension_numbers = #tpu.dot_dimension_numbers<[1], [0], [0], [1], [0, 0, 1, 1], [], []>} : vector<1x256xf32>, vector<256x128xf32>, vector<1x128xf32> -> vector<1x128xf32>
    %c0_121 = arith.constant 0 : index
    %c0_122 = arith.constant 0 : index
    %190 = vector.load %arg13[%c0_121, %c0_122] : memref<1x128xf32, #tpu.memory_space<vmem>>, vector<1x128xf32>
    %191 = arith.addf %189, %190 : vector<1x128xf32>
    %cst_123 = arith.constant 0.000000e+00 : f32
    %192 = vector.broadcast %cst_123 : f32 to vector<1x128xf32>
    %193 = arith.maximumf %191, %192 : vector<1x128xf32>
    %c0_124 = arith.constant 0 : index
    %c0_125 = arith.constant 0 : index
    %194 = vector.load %arg14[%c0_124, %c0_125] : memref<128x64xf32, #tpu.memory_space<vmem>>, vector<128x64xf32>
    %cst_126 = arith.constant dense<0.000000e+00> : vector<1x64xf32>
    %195 = tpu.matmul %193, %194, %cst_126 {dimension_numbers = #tpu.dot_dimension_numbers<[1], [0], [0], [1], [0, 0, 1, 1], [], []>} : vector<1x128xf32>, vector<128x64xf32>, vector<1x64xf32> -> vector<1x64xf32>
    %c0_127 = arith.constant 0 : index
    %c0_128 = arith.constant 0 : index
    %196 = vector.load %arg15[%c0_127, %c0_128] : memref<1x64xf32, #tpu.memory_space<vmem>>, vector<1x64xf32>
    %197 = arith.addf %195, %196 : vector<1x64xf32>
    %cst_129 = arith.constant 0.000000e+00 : f32
    %198 = vector.broadcast %cst_129 : f32 to vector<1x64xf32>
    %199 = arith.maximumf %197, %198 : vector<1x64xf32>
    %c0_130 = arith.constant 0 : index
    %c0_131 = arith.constant 0 : index
    %200 = vector.load %arg16[%c0_130, %c0_131] : memref<64x64xf32, #tpu.memory_space<vmem>>, vector<64x64xf32>
    %cst_132 = arith.constant dense<0.000000e+00> : vector<1x64xf32>
    %201 = tpu.matmul %199, %200, %cst_132 {dimension_numbers = #tpu.dot_dimension_numbers<[1], [0], [0], [1], [0, 0, 1, 1], [], []>} : vector<1x64xf32>, vector<64x64xf32>, vector<1x64xf32> -> vector<1x64xf32>
    %c0_133 = arith.constant 0 : index
    %c0_134 = arith.constant 0 : index
    %202 = vector.load %arg17[%c0_133, %c0_134] : memref<1x64xf32, #tpu.memory_space<vmem>>, vector<1x64xf32>
    %203 = arith.addf %201, %202 : vector<1x64xf32>
    %cst_135 = arith.constant 0.000000e+00 : f32
    %204 = vector.broadcast %cst_135 : f32 to vector<1x64xf32>
    %205 = arith.maximumf %203, %204 : vector<1x64xf32>
    %c0_136 = arith.constant 0 : index
    %c0_137 = arith.constant 0 : index
    %206 = vector.load %arg18[%c0_136, %c0_137] : memref<64x2xf32, #tpu.memory_space<vmem>>, vector<64x2xf32>
    %cst_138 = arith.constant dense<0.000000e+00> : vector<1x2xf32>
    %207 = tpu.matmul %205, %206, %cst_138 {dimension_numbers = #tpu.dot_dimension_numbers<[1], [0], [0], [1], [0, 0, 1, 1], [], []>} : vector<1x64xf32>, vector<64x2xf32>, vector<1x2xf32> -> vector<1x2xf32>
    %c0_139 = arith.constant 0 : index
    %c0_140 = arith.constant 0 : index
    %208 = vector.load %arg19[%c0_139, %c0_140] : memref<1x2xf32, #tpu.memory_space<vmem>>, vector<1x2xf32>
    %209 = arith.addf %207, %208 : vector<1x2xf32>
    %c0_141 = arith.constant 0 : index
    %c0_142 = arith.constant 0 : index
    %210 = vector.load %arg20[%c0_141, %c0_142] : memref<1x2xf32, #tpu.memory_space<vmem>>, vector<1x2xf32>
    tpu.vector_store %arg20[%c0_141, %c0_142], %209 {strides = array<i32>} : memref<1x2xf32, #tpu.memory_space<vmem>>, vector<1x2xf32>,
    return
  }
}

</mosaic_0001>

<bundles_post_ra>
// kernel: classifier_forward.3
= control target key start
LH: loop header
LB: loop body
LE: loop exit
PB: predicated region body
PF: predicated region fallthrough
CT: control target
= control target key end

     0   :  { %s4325_s12 = smov 0   ;;  %s5187_s0 = inlined_call_operand.vmem [shape: bf16[2816,147], index: 0, kind: input, shape index: {}]   ;;  %s5188_s1 = inlined_call_operand.vmem [shape: bf16[147,16], index: 1, kind: input, shape index: {}]   ;;  %s5189_s2 = inlined_call_operand.vmem [shape: f32[1,16], index: 2, kind: input, shape index: {}]   ;;  %s5190_s3 = inlined_call_operand.vmem [shape: bf16[2816,16], index: 3, kind: output, shape index: {}]  }
   0x1 LB: > { %s3351_s13 = sadd.s32 4294967295, %s4301_s12   ;;  %p3355_p0 = scmp.ge.s32.totalorder %s4301_s12, 1  ;;  %s4301_s12 = sphi %s4325_s12, %s13_s12  }
   0x2   : > { %p139_p1 = scmp.lt.s32.totalorder %s4301_s12, 3 }
   0x4   : > { %p140_p2 = pnand %p3355_p0, %p139_p1 }
   0x5   : > { %v4019_v0 = vld [vmem:[%s5188_s1] sm:$0xff] (!%p140_p2)   ;;  %v4303_v1 = vmov (!%p140_p2), 0   ;;  %v4020_v2 = vld [vmem:[%s5188_s1 + $0x8] sm:$0xff] (!%p140_p2)   ;;  %v4021_v3 = vld [vmem:[%s5188_s1 + $0x10] sm:$0xff] (!%p140_p2)   ;;  %s164_s20 = smul.u32 (!%p140_p2), 176, %s3351_s13  ;;  %vm1229_vm0 = vcmask (!%p140_p2), 154624  }
   0x6   : > { %143 = sbr.rel (%p140_p2) target bundleno = 611 (0x263), region = 32  ;;  %1501 = vmatprep.subr.bf16.mxu0 (!%p140_p2), %v4303_v1  ;;  %3989 = vmatprep.subr.bf16.mxu1 (!%p140_p2), %v4303_v1  ;;  %v4022_v4 = vld [vmem:[%s5188_s1 + $0x18] sm:$0xff] (!%p140_p2)   ;;  %v4023_v5 = vld [vmem:[%s5188_s1 + $0x20] sm:$0xff] (!%p140_p2)   ;;  %v4024_v8 = vld [vmem:[%s5188_s1 + $0x28] sm:$0xff] (!%p140_p2)   ;;  %vm1494_vm1 = vcmask (!%p140_p2), 1040384   ;;  %vm1495_vm2 = vcmask (!%p140_p2), 1041408  }
   0x7   : > { %1502 = vmatpush1.bf16.msra.mxu0 (!%p140_p2), %v4019_v0  ;;  %3999 = vmatpush1.bf16.msra.mxu1 (!%p140_p2), %v4019_v0  ;;  %p165_p3 = scmp.lt.s32.totalorder (!%p140_p2), %s164_s20, 351  ;;  %v4025_v9 = vld [vmem:[%s5188_s1 + $0x30] sm:$0xff] (!%p140_p2)   ;;  %v4026_v10 = vld [vmem:[%s5188_s1 + $0x38] sm:$0xff] (!%p140_p2)   ;;  %v4304_v11 = vmov (!%p140_p2), 65535   ;;  %v4027_v13 = vld [vmem:[%s5188_s1 + $0x40] sm:$0xff] (!%p140_p2)   ;;  %vm3118_vm3 = vcmask (!%p140_p2), 125952  }
   0x8   : > { %1503 = vmatprep.subr.bf16.mxu0 (!%p140_p2), %v4303_v1  ;;  %3990 = vmatprep.subr.bf16.mxu1 (!%p140_p2), %v4303_v1  ;;  %v1496_v12 = vsel (!%p140_p2), %vm1494_vm1, 4294967295, %v4304_v11  ;;  %v4028_v14 = vld [vmem:[%s5188_s1 + $0x48] ss:$0 sps:$4 sm:$0x33] (!%p140_p2)  }
   0x9   : > { %v1497_v15 = vsel (!%p140_p2), %vm1495_vm2, %v1496_v12, 0 }
   0xa   : > { %v1499_v16 = vand.u32 (!%p140_p2), %v4028_v14, %v1497_v15 }
   0xb   : > { %1504 = vmatpush1.bf16.msra.mxu0 (!%p140_p2), %v4020_v2  ;;  %4000 = vmatpush1.bf16.msra.mxu1 (!%p140_p2), %v4020_v2 }
   0xc   : > { %1505 = vmatprep.subr.bf16.mxu0 (!%p140_p2), %v4303_v1  ;;  %3991 = vmatprep.subr.bf16.mxu1 (!%p140_p2), %v4303_v1 }
   0xd   : > { %s5192_s20 = smov (!%p165_p3, %s164_s20), 351 }
   0xe   : > { %s3812_s23 = sshll.u32 %s5192_s20, 3  ;;  %s3358_s15 = sshll.u32 %s5192_s20, 2 }
   0xf   : > { %1506 = vmatpush1.bf16.msra.mxu0 %v4021_v3  ;;  %4001 = vmatpush1.bf16.msra.mxu1 %v4021_v3  ;;  %s4351_s26 = scalar_lea.vmem %s5187_s0, %s3812_s23  ;;  %s4554_s18 = scalar_lea.vmem %s5190_s3, %s3358_s15 }
  0x10   : > { %1507 = vmatprep.subr.bf16.mxu0 %v4303_v1  ;;  %3992 = vmatprep.subr.bf16.mxu1 %v4303_v1  ;;  %v4031_v6 = vld [vmem:[%s4351_s26 + $0x4] ss:$8 sps:$4 sm:$0xff]   ;;  %v4029_v17 = vld [vmem:[%s4351_s26] ss:$8 sps:$4 sm:$0xff]   ;;  %v4035_v19 = vld [vmem:[%s4351_s26 + $0x14] ss:$8 sps:$4 sm:$0xff]  }
  0x11   : > { %v4034_v7 = vld [vmem:[%s4351_s26 + $0x2c4] ss:$8 sps:$4 sm:$0xff]   ;;  %3546 = vmatprep.mubr.msk.bf16.mxu0 %vm1229_vm0, %v4031_v6  ;;  %v4032_v18 = vld [vmem:[%s4351_s26 + $0x2c0] ss:$8 sps:$4 sm:$0xff]   ;;  %v4037_v20 = vld [vmem:[%s4351_s26 + $0x2d4] ss:$8 sps:$4 sm:$0xff]  }
  0x12   : > { %3590 = vmatprep.mubr.msk.bf16.mxu1 %vm1229_vm0, %v4034_v7  ;;  %v4039_v21 = vld [vmem:[%s4351_s26 + $0x10] ss:$8 sps:$4 sm:$0xff]   ;;  %v4041_v23 = vld [vmem:[%s4351_s26 + $0x24] ss:$8 sps:$4 sm:$0xff]   ;;  %v4045_v25 = vld [vmem:[%s4351_s26 + $0x20] ss:$8 sps:$4 sm:$0xff]  }
  0x13   : > { %1508 = vmatpush1.bf16.msra.mxu0 %v4022_v4  ;;  %4002 = vmatpush1.bf16.msra.mxu1 %v4022_v4  ;;  %v4040_v22 = vld [vmem:[%s4351_s26 + $0x2d0] ss:$8 sps:$4 sm:$0xff]   ;;  %v4043_v24 = vld [vmem:[%s4351_s26 + $0x2e4] ss:$8 sps:$4 sm:$0xff]   ;;  %v4046_v26 = vld [vmem:[%s4351_s26 + $0x2e0] ss:$8 sps:$4 sm:$0xff]  }
  0x14   : > { %1509 = vmatprep.subr.bf16.mxu0 %v4303_v1  ;;  %3993 = vmatprep.subr.bf16.mxu1 %v4303_v1  ;;  %v4047_v27 = vld [vmem:[%s4351_s26 + $0x34] ss:$8 sps:$4 sm:$0xff]   ;;  %v4051_v29 = vld [vmem:[%s4351_s26 + $0x30] ss:$8 sps:$4 sm:$0xff]   ;;  %v4053_v31 = vld [vmem:[%s4351_s26 + $0x44] ss:$8 sps:$4 sm:$0xff]  }
  0x15   : > { %v4049_v28 = vld [vmem:[%s4351_s26 + $0x2f4] ss:$8 sps:$4 sm:$0xff]   ;;  %v4052_v30 = vld [vmem:[%s4351_s26 + $0x2f0] ss:$8 sps:$4 sm:$0xff]   ;;  %v4055_v32 = vld [vmem:[%s4351_s26 + $0x304] ss:$8 sps:$4 sm:$0xff]  }
  0x16   : > { %v4057_v33 = vld [vmem:[%s4351_s26 + $0x40] ss:$8 sps:$4 sm:$0xff]   ;;  %v4059_v35 = vld [vmem:[%s4351_s26 + $0x54] ss:$8 sps:$4 sm:$0xff]   ;;  %v4063_v37 = vld [vmem:[%s4351_s26 + $0x50] ss:$8 sps:$4 sm:$0xff]  }
  0x17   : > { %1510 = vmatpush1.bf16.msra.mxu0 %v4023_v5  ;;  %4003 = vmatpush1.bf16.msra.mxu1 %v4023_v5  ;;  %v4058_v34 = vld [vmem:[%s4351_s26 + $0x300] ss:$8 sps:$4 sm:$0xff]   ;;  %v4061_v36 = vld [vmem:[%s4351_s26 + $0x314] ss:$8 sps:$4 sm:$0xff]   ;;  %v4064_v38 = vld [vmem:[%s4351_s26 + $0x310] ss:$8 sps:$4 sm:$0xff]  }
  0x18   : > { %1511 = vmatprep.subr.bf16.mxu0 %v4303_v1  ;;  %3994 = vmatprep.subr.bf16.mxu1 %v4303_v1  ;;  %v4065_v39 = vld [vmem:[%s4351_s26 + $0x64] ss:$8 sps:$4 sm:$0xff]   ;;  %v4069_v41 = vld [vmem:[%s4351_s26 + $0x60] ss:$8 sps:$4 sm:$0xff]   ;;  %v4071_v43 = vld [vmem:[%s4351_s26 + $0x74] ss:$8 sps:$4 sm:$0xff]  }
  0x19   : > { %v4067_v40 = vld [vmem:[%s4351_s26 + $0x324] ss:$8 sps:$4 sm:$0xff]   ;;  %v4070_v42 = vld [vmem:[%s4351_s26 + $0x320] ss:$8 sps:$4 sm:$0xff]   ;;  %v4073_v44 = vld [vmem:[%s4351_s26 + $0x334] ss:$8 sps:$4 sm:$0xff]  }
  0x1a   : > { %v4075_v45 = vld [vmem:[%s4351_s26 + $0x70] ss:$8 sps:$4 sm:$0xff]   ;;  %v4077_v47 = vld [vmem:[%s4351_s26 + $0x84] ss:$8 sps:$4 sm:$0xff]   ;;  %v4081_v49 = vld [vmem:[%s4351_s26 + $0x80] ss:$8 sps:$4 sm:$0xff]  }
  0x1b   : > { %1512 = vmatpush1.bf16.msra.mxu0 %v4024_v8  ;;  %4004 = vmatpush1.bf16.msra.mxu1 %v4024_v8  ;;  %v4076_v46 = vld [vmem:[%s4351_s26 + $0x330] ss:$8 sps:$4 sm:$0xff]   ;;  %v4079_v48 = vld [vmem:[%s4351_s26 + $0x344] ss:$8 sps:$4 sm:$0xff]   ;;  %v4082_v50 = vld [vmem:[%s4351_s26 + $0x340] ss:$8 sps:$4 sm:$0xff]  }
  0x1c   : > { %1513 = vmatprep.subr.bf16.mxu0 %v4303_v1  ;;  %3995 = vmatprep.subr.bf16.mxu1 %v4303_v1  ;;  %v4083_v51 = vld [vmem:[%s4351_s26 + $0x94] ss:$8 sps:$4 sm:$0xff]   ;;  %v4087_v53 = vld [vmem:[%s4351_s26 + $0x90] ss:$8 sps:$4 sm:$0xff]   ;;  %v4089_v55 = vld [vmem:[%s4351_s26 + $0xa4] ss:$8 sps:$4 sm:$0xff]  }
  0x1d   : > { %v4085_v52 = vld [vmem:[%s4351_s26 + $0x354] ss:$8 sps:$4 sm:$0xff]   ;;  %v4088_v54 = vld [vmem:[%s4351_s26 + $0x350] ss:$8 sps:$4 sm:$0xff]   ;;  %v4091_v56 = vld [vmem:[%s4351_s26 + $0x364] ss:$8 sps:$4 sm:$0xff]  }
  0x1e   : > { %v4093_v57 = vld [vmem:[%s4351_s26 + $0xa0] ss:$8 sps:$4 sm:$0xff]   ;;  %v4095_v59 = vld [vmem:[%s4351_s26 + $0xb4] ss:$8 sps:$4 sm:$0xff]   ;;  %v4099_v61 = vld [vmem:[%s4351_s26 + $0xb0] ss:$8 sps:$4 sm:$0xff]  }
  0x1f   : > { %1514 = vmatpush1.bf16.msra.mxu0 %v4025_v9  ;;  %4005 = vmatpush1.bf16.msra.mxu1 %v4025_v9  ;;  %v4094_v58 = vld [vmem:[%s4351_s26 + $0x360] ss:$8 sps:$4 sm:$0xff]   ;;  %v4097_v60 = vld [vmem:[%s4351_s26 + $0x374] ss:$8 sps:$4 sm:$0xff]   ;;  %v4100_v62 = vld [vmem:[%s4351_s26 + $0x370] ss:$8 sps:$4 sm:$0xff]  }
  0x20   : > { %1515 = vmatprep.subr.bf16.mxu0 %v4303_v1  ;;  %3996 = vmatprep.subr.bf16.mxu1 %v4303_v1  ;;  %v4101_v63 = vld [vmem:[%s4351_s26 + $0xc4] ss:$8 sps:$4 sm:$0xff]   ;;  %v4106_v2 = vld [vmem:[%s4351_s26 + $0x380] ss:$8 sps:$4 sm:$0xff]   ;;  %v4107_v3 = vld [vmem:[%s4351_s26 + $0xd4] ss:$8 sps:$4 sm:$0xff]  }
  0x21   : > { %v4103_v0 = vld [vmem:[%s4351_s26 + $0x384] ss:$8 sps:$4 sm:$0xff]   ;;  %v4109_v4 = vld [vmem:[%s4351_s26 + $0x394] ss:$8 sps:$4 sm:$0xff]   ;;  %v4111_v5 = vld [vmem:[%s4351_s26 + $0xd0] ss:$8 sps:$4 sm:$0xff]  }
  0x22   : > { %v4112_v6 = vld [vmem:[%s4351_s26 + $0x390] ss:$8 sps:$4 sm:$0xff]   ;;  %v4113_v7 = vld [vmem:[%s4351_s26 + $0xe4] ss:$8 sps:$4 sm:$0xff]   ;;  %v4117_v9 = vld [vmem:[%s4351_s26 + $0xe0] ss:$8 sps:$4 sm:$0xff]  }
  0x23   : > { %1516 = vmatpush1.bf16.msra.mxu0 %v4026_v10  ;;  %4006 = vmatpush1.bf16.msra.mxu1 %v4026_v10  ;;  %v4115_v8 = vld [vmem:[%s4351_s26 + $0x3a4] ss:$8 sps:$4 sm:$0xff]   ;;  %v4118_v10 = vld [vmem:[%s4351_s26 + $0x3a0] ss:$8 sps:$4 sm:$0xff]   ;;  %v4119_v11 = vld [vmem:[%s4351_s26 + $0xf4] ss:$8 sps:$4 sm:$0xff]  }
  0x24   : > { %1517 = vmatprep.subr.bf16.mxu0 %v4303_v1  ;;  %3997 = vmatprep.subr.bf16.mxu1 %v4303_v1  ;;  %v4121_v12 = vld [vmem:[%s4351_s26 + $0x3b4] ss:$8 sps:$4 sm:$0xff]   ;;  %v4124_v14 = vld [vmem:[%s4351_s26 + $0x3b0] ss:$8 sps:$4 sm:$0xff]   ;;  %v4125_v15 = vld [vmem:[%s4351_s26 + $0x104] ss:$8 sps:$4 sm:$0xff]  }
  0x27   : > { %1518 = vmatpush1.bf16.msra.mxu0 %v4027_v13  ;;  %4007 = vmatpush1.bf16.msra.mxu1 %v4027_v13  ;;  %v4123_v13 = vld [vmem:[%s4351_s26 + $0xf0] ss:$8 sps:$4 sm:$0xff]  }
  0x28   : > { %1519 = vmatprep.subr.bf16.mxu0 %v4303_v1  ;;  %3998 = vmatprep.subr.bf16.mxu1 %v4303_v1  ;;  %v4105_v1 = vld [vmem:[%s4351_s26 + $0xc0] ss:$8 sps:$4 sm:$0xff]  }
  0x2b   : > { %1520 = vmatpush1.bf16.msra.mxu0 %v1499_v16  ;;  %4008 = vmatpush1.bf16.msra.mxu1 %v1499_v16  ;;  %v4127_v16 = vld [vmem:[%s4351_s26 + $0x3c4] ss:$8 sps:$4 sm:$0xff]  }
  0x2e   : > { %1534 = vmatmul.mubr.bf16.vlgmr.msra.gmra.mrb[0].mxu0 %v4029_v17  ;;  %1886 = vmatmul.mubr.bf16.vlgmr.msra.gmra.mrb[0].mxu1 %v4032_v18  ;;  %v4129_v17 = vld [vmem:[%s4351_s26 + $0x100] ss:$8 sps:$4 sm:$0xff]  }
  0x2f   : > { %3547 = vmatprep.mubr.msk.bf16.mxu0 %vm1229_vm0, %v4035_v19  ;;  %3591 = vmatprep.mubr.msk.bf16.mxu1 %vm1229_vm0, %v4037_v20  ;;  %v4130_v18 = vld [vmem:[%s4351_s26 + $0x3c0] ss:$8 sps:$4 sm:$0xff]   ;;  %v4131_v19 = vld [vmem:[%s4351_s26 + $0x114] ss:$8 sps:$4 sm:$0xff]  }
  0x30   : > { %v4133_v20 = vld [vmem:[%s4351_s26 + $0x3d4] ss:$8 sps:$4 sm:$0xff]  }
  0x36   : > { %1542 = vmatmul.mubr.bf16.gmra.mrb[4].mxu0 %v4039_v21  ;;  %1894 = vmatmul.mubr.bf16.gmra.mrb[4].mxu1 %v4040_v22  ;;  %v4135_v21 = vld [vmem:[%s4351_s26 + $0x110] ss:$8 sps:$4 sm:$0xff]  }
  0x37   : > { %3548 = vmatprep.mubr.msk.bf16.mxu0 %vm1229_vm0, %v4041_v23  ;;  %3592 = vmatprep.mubr.msk.bf16.mxu1 %vm1229_vm0, %v4043_v24  ;;  %v4136_v22 = vld [vmem:[%s4351_s26 + $0x3d0] ss:$8 sps:$4 sm:$0xff]   ;;  %v4137_v23 = vld [vmem:[%s4351_s26 + $0x124] ss:$8 sps:$4 sm:$0xff]  }
  0x38   : > { %v4139_v24 = vld [vmem:[%s4351_s26 + $0x3e4] ss:$8 sps:$4 sm:$0xff]  }
  0x3e   : > { %1550 = vmatmul.mubr.bf16.gmra.mrb[8].mxu0 %v4045_v25  ;;  %1902 = vmatmul.mubr.bf16.gmra.mrb[8].mxu1 %v4046_v26  ;;  %v4141_v25 = vld [vmem:[%s4351_s26 + $0x120] ss:$8 sps:$4 sm:$0xff]  }
  0x3f   : > { %3549 = vmatprep.mubr.msk.bf16.mxu0 %vm1229_vm0, %v4047_v27  ;;  %3593 = vmatprep.mubr.msk.bf16.mxu1 %vm1229_vm0, %v4049_v28  ;;  %v4142_v26 = vld [vmem:[%s4351_s26 + $0x3e0] ss:$8 sps:$4 sm:$0xff]   ;;  %v4143_v27 = vld [vmem:[%s4351_s26 + $0x134] ss:$8 sps:$4 sm:$0xff]  }
  0x40   : > { %v4145_v28 = vld [vmem:[%s4351_s26 + $0x3f4] ss:$8 sps:$4 sm:$0xff]  }
  0x46   : > { %1558 = vmatmul.mubr.bf16.gmra.mrb[12].mxu0 %v4051_v29  ;;  %1910 = vmatmul.mubr.bf16.gmra.mrb[12].mxu1 %v4052_v30  ;;  %v4147_v29 = vld [vmem:[%s4351_s26 + $0x130] ss:$8 sps:$4 sm:$0xff]  }
  0x47   : > { %3550 = vmatprep.mubr.msk.bf16.mxu0 %vm1229_vm0, %v4053_v31  ;;  %3594 = vmatprep.mubr.msk.bf16.mxu1 %vm1229_vm0, %v4055_v32  ;;  %v4148_v30 = vld [vmem:[%s4351_s26 + $0x3f0] ss:$8 sps:$4 sm:$0xff]   ;;  %v4149_v31 = vld [vmem:[%s4351_s26 + $0x144] ss:$8 sps:$4 sm:$0xff]  }
  0x48   : > { %v4151_v32 = vld [vmem:[%s4351_s26 + $0x404] ss:$8 sps:$4 sm:$0xff]  }
  0x4e   : > { %1566 = vmatmul.mubr.bf16.gmra.mrb[16].mxu0 %v4057_v33  ;;  %1918 = vmatmul.mubr.bf16.gmra.mrb[16].mxu1 %v4058_v34  ;;  %v4153_v33 = vld [vmem:[%s4351_s26 + $0x140] ss:$8 sps:$4 sm:$0xff]  }
  0x4f   : > { %3551 = vmatprep.mubr.msk.bf16.mxu0 %vm1229_vm0, %v4059_v35  ;;  %3595 = vmatprep.mubr.msk.bf16.mxu1 %vm1229_vm0, %v4061_v36  ;;  %v4154_v34 = vld [vmem:[%s4351_s26 + $0x400] ss:$8 sps:$4 sm:$0xff]   ;;  %v4155_v35 = vld [vmem:[%s4351_s26 + $0x154] ss:$8 sps:$4 sm:$0xff]  }
  0x50   : > { %v4157_v36 = vld [vmem:[%s4351_s26 + $0x414] ss:$8 sps:$4 sm:$0xff]  }
  0x56   : > { %1574 = vmatmul.mubr.bf16.gmra.mrb[20].mxu0 %v4063_v37  ;;  %1926 = vmatmul.mubr.bf16.gmra.mrb[20].mxu1 %v4064_v38  ;;  %v4159_v37 = vld [vmem:[%s4351_s26 + $0x150] ss:$8 sps:$4 sm:$0xff]  }
  0x57   : > { %3552 = vmatprep.mubr.msk.bf16.mxu0 %vm1229_vm0, %v4065_v39  ;;  %3596 = vmatprep.mubr.msk.bf16.mxu1 %vm1229_vm0, %v4067_v40  ;;  %v4160_v38 = vld [vmem:[%s4351_s26 + $0x410] ss:$8 sps:$4 sm:$0xff]   ;;  %v4161_v39 = vld [vmem:[%s4351_s26 + $0x164] ss:$8 sps:$4 sm:$0xff]  }
  0x58   : > { %v4163_v40 = vld [vmem:[%s4351_s26 + $0x424] ss:$8 sps:$4 sm:$0xff]  }
  0x5e   : > { %1582 = vmatmul.mubr.bf16.gmra.mrb[24].mxu0 %v4069_v41  ;;  %1934 = vmatmul.mubr.bf16.gmra.mrb[24].mxu1 %v4070_v42  ;;  %v4165_v41 = vld [vmem:[%s4351_s26 + $0x160] ss:$8 sps:$4 sm:$0xff]  }
  0x5f   : > { %3553 = vmatprep.mubr.msk.bf16.mxu0 %vm1229_vm0, %v4071_v43  ;;  %3597 = vmatprep.mubr.msk.bf16.mxu1 %vm1229_vm0, %v4073_v44  ;;  %v4166_v42 = vld [vmem:[%s4351_s26 + $0x420] ss:$8 sps:$4 sm:$0xff]   ;;  %v4167_v43 = vld [vmem:[%s4351_s26 + $0x174] ss:$8 sps:$4 sm:$0xff]  }
  0x60   : > { %v4169_v44 = vld [vmem:[%s4351_s26 + $0x434] ss:$8 sps:$4 sm:$0xff]  }
  0x66   : > { %1590 = vmatmul.mubr.bf16.gmra.mrb[28].mxu0 %v4075_v45  ;;  %1942 = vmatmul.mubr.bf16.gmra.mrb[28].mxu1 %v4076_v46  ;;  %v4171_v45 = vld [vmem:[%s4351_s26 + $0x170] ss:$8 sps:$4 sm:$0xff]  }
  0x67   : > { %3554 = vmatprep.mubr.msk.bf16.mxu0 %vm1229_vm0, %v4077_v47  ;;  %3598 = vmatprep.mubr.msk.bf16.mxu1 %vm1229_vm0, %v4079_v48  ;;  %v4172_v46 = vld [vmem:[%s4351_s26 + $0x430] ss:$8 sps:$4 sm:$0xff]   ;;  %v4173_v47 = vld [vmem:[%s4351_s26 + $0x184] ss:$8 sps:$4 sm:$0xff]  }
  0x68   : > { %v4175_v48 = vld [vmem:[%s4351_s26 + $0x444] ss:$8 sps:$4 sm:$0xff]  }
  0x6e   : > { %1598 = vmatmul.mubr.bf16.gmra.mrb[32].mxu0 %v4081_v49  ;;  %1950 = vmatmul.mubr.bf16.gmra.mrb[32].mxu1 %v4082_v50  ;;  %v4177_v49 = vld [vmem:[%s4351_s26 + $0x180] ss:$8 sps:$4 sm:$0xff]  }
  0x6f   : > { %3555 = vmatprep.mubr.msk.bf16.mxu0 %vm1229_vm0, %v4083_v51  ;;  %3599 = vmatprep.mubr.msk.bf16.mxu1 %vm1229_vm0, %v4085_v52  ;;  %v4178_v50 = vld [vmem:[%s4351_s26 + $0x440] ss:$8 sps:$4 sm:$0xff]   ;;  %v4179_v51 = vld [vmem:[%s4351_s26 + $0x194] ss:$8 sps:$4 sm:$0xff]  }
  0x70   : > { %v4181_v52 = vld [vmem:[%s4351_s26 + $0x454] ss:$8 sps:$4 sm:$0xff]  }
  0x76   : > { %1606 = vmatmul.mubr.bf16.gmra.mrb[36].mxu0 %v4087_v53  ;;  %1958 = vmatmul.mubr.bf16.gmra.mrb[36].mxu1 %v4088_v54  ;;  %v4183_v53 = vld [vmem:[%s4351_s26 + $0x190] ss:$8 sps:$4 sm:$0xff]  }
  0x77   : > { %3556 = vmatprep.mubr.msk.bf16.mxu0 %vm1229_vm0, %v4089_v55  ;;  %3600 = vmatprep.mubr.msk.bf16.mxu1 %vm1229_vm0, %v4091_v56  ;;  %v4184_v54 = vld [vmem:[%s4351_s26 + $0x450] ss:$8 sps:$4 sm:$0xff]   ;;  %v4185_v55 = vld [vmem:[%s4351_s26 + $0x1a4] ss:$8 sps:$4 sm:$0xff]  }
  0x78   : > { %v4187_v56 = vld [vmem:[%s4351_s26 + $0x464] ss:$8 sps:$4 sm:$0xff]  }
  0x7e   : > { %1614 = vmatmul.mubr.bf16.gmra.mrb[40].mxu0 %v4093_v57  ;;  %1966 = vmatmul.mubr.bf16.gmra.mrb[40].mxu1 %v4094_v58  ;;  %v4189_v57 = vld [vmem:[%s4351_s26 + $0x1a0] ss:$8 sps:$4 sm:$0xff]  }
  0x7f   : > { %3557 = vmatprep.mubr.msk.bf16.mxu0 %vm1229_vm0, %v4095_v59  ;;  %3601 = vmatprep.mubr.msk.bf16.mxu1 %vm1229_vm0, %v4097_v60  ;;  %v4190_v58 = vld [vmem:[%s4351_s26 + $0x460] ss:$8 sps:$4 sm:$0xff]   ;;  %v4191_v59 = vld [vmem:[%s4351_s26 + $0x1b4] ss:$8 sps:$4 sm:$0xff]  }
  0x80   : > { %v4193_v60 = vld [vmem:[%s4351_s26 + $0x474] ss:$8 sps:$4 sm:$0xff]  }
  0x86   : > { %1622 = vmatmul.mubr.bf16.gmra.mrb[44].mxu0 %v4099_v61  ;;  %1974 = vmatmul.mubr.bf16.gmra.mrb[44].mxu1 %v4100_v62  ;;  %v4538_v61 = vld [vmem:[%s5189_s2] ss:$0 sm:$0xff] }
  0x87   : > { %3558 = vmatprep.mubr.msk.bf16.mxu0 %vm1229_vm0, %v4101_v63  ;;  %3602 = vmatprep.mubr.msk.bf16.mxu1 %vm1229_vm0, %v4103_v0 }
  0x8e   : > { %1630 = vmatmul.mubr.bf16.gmra.mrb[48].mxu0 %v4105_v1  ;;  %1982 = vmatmul.mubr.bf16.gmra.mrb[48].mxu1 %v4106_v2 }
  0x8f   : > { %3559 = vmatprep.mubr.msk.bf16.mxu0 %vm1229_vm0, %v4107_v3  ;;  %3603 = vmatprep.mubr.msk.bf16.mxu1 %vm1229_vm0, %v4109_v4  ;;  %v4195_v4 = vld [vmem:[%s4351_s26 + $0x1b0] ss:$8 sps:$4 sm:$0xff]  }
  0x96   : > { %1638 = vmatmul.mubr.bf16.gmra.mrb[52].mxu0 %v4111_v5  ;;  %1990 = vmatmul.mubr.bf16.gmra.mrb[52].mxu1 %v4112_v6  ;;  %v4196_v5 = vld [vmem:[%s4351_s26 + $0x470] ss:$8 sps:$4 sm:$0xff]  }
  0x97   : > { %3560 = vmatprep.mubr.msk.bf16.mxu0 %vm1229_vm0, %v4113_v7  ;;  %3604 = vmatprep.mubr.msk.bf16.mxu1 %vm1229_vm0, %v4115_v8  ;;  %v4197_v8 = vld [vmem:[%s4351_s26 + $0x1c4] ss:$8 sps:$4 sm:$0xff]  }
  0x9e   : > { %1646 = vmatmul.mubr.bf16.gmra.mrb[56].mxu0 %v4117_v9  ;;  %1998 = vmatmul.mubr.bf16.gmra.mrb[56].mxu1 %v4118_v10  ;;  %v4199_v9 = vld [vmem:[%s4351_s26 + $0x484] ss:$8 sps:$4 sm:$0xff]  }
  0x9f   : > { %3561 = vmatprep.mubr.msk.bf16.mxu0 %vm1229_vm0, %v4119_v11  ;;  %3605 = vmatprep.mubr.msk.bf16.mxu1 %vm1229_vm0, %v4121_v12 }
  0xa6   : > { %1654 = vmatmul.mubr.bf16.gmra.mrb[60].mxu0 %v4123_v13  ;;  %2006 = vmatmul.mubr.bf16.gmra.mrb[60].mxu1 %v4124_v14 }
  0xa7   : > { %3562 = vmatprep.mubr.msk.bf16.mxu0 %vm1229_vm0, %v4125_v15  ;;  %3606 = vmatprep.mubr.msk.bf16.mxu1 %vm1229_vm0, %v4127_v16 }
  0xae   : > { %1662 = vmatmul.mubr.bf16.gmra.mrb[64].mxu0 %v4129_v17  ;;  %2014 = vmatmul.mubr.bf16.gmra.mrb[64].mxu1 %v4130_v18 }
  0xaf   : > { %3563 = vmatprep.mubr.msk.bf16.mxu0 %vm1229_vm0, %v4131_v19  ;;  %3607 = vmatprep.mubr.msk.bf16.mxu1 %vm1229_vm0, %v4133_v20 }
  0xb6   : > { %1670 = vmatmul.mubr.bf16.gmra.mrb[68].mxu0 %v4135_v21  ;;  %2022 = vmatmul.mubr.bf16.gmra.mrb[68].mxu1 %v4136_v22 }
  0xb7   : > { %3564 = vmatprep.mubr.msk.bf16.mxu0 %vm1229_vm0, %v4137_v23  ;;  %3608 = vmatprep.mubr.msk.bf16.mxu1 %vm1229_vm0, %v4139_v24 }
  0xbe   : > { %1678 = vmatmul.mubr.bf16.gmra.mrb[72].mxu0 %v4141_v25  ;;  %2030 = vmatmul.mubr.bf16.gmra.mrb[72].mxu1 %v4142_v26 }
  0xbf   : > { %3565 = vmatprep.mubr.msk.bf16.mxu0 %vm1229_vm0, %v4143_v27  ;;  %3609 = vmatprep.mubr.msk.bf16.mxu1 %vm1229_vm0, %v4145_v28  ;;  %v4201_v28 = vld [vmem:[%s4351_s26 + $0x1c0] ss:$8 sps:$4 sm:$0xff]  }
  0xc6   : > { %1686 = vmatmul.mubr.bf16.gmra.mrb[76].mxu0 %v4147_v29  ;;  %2038 = vmatmul.mubr.bf16.gmra.mrb[76].mxu1 %v4148_v30  ;;  %v4202_v29 = vld [vmem:[%s4351_s26 + $0x480] ss:$8 sps:$4 sm:$0xff]  }
  0xc7   : > { %3566 = vmatprep.mubr.msk.bf16.mxu0 %vm1229_vm0, %v4149_v31  ;;  %3610 = vmatprep.mubr.msk.bf16.mxu1 %vm1229_vm0, %v4151_v32  ;;  %v4203_v32 = vld [vmem:[%s4351_s26 + $0x1d4] ss:$8 sps:$4 sm:$0xff]  }
  0xce   : > { %1694 = vmatmul.mubr.bf16.gmra.mrb[80].mxu0 %v4153_v33  ;;  %2046 = vmatmul.mubr.bf16.gmra.mrb[80].mxu1 %v4154_v34  ;;  %v4205_v33 = vld [vmem:[%s4351_s26 + $0x494] ss:$8 sps:$4 sm:$0xff]  }
  0xcf   : > { %3567 = vmatprep.mubr.msk.bf16.mxu0 %vm1229_vm0, %v4155_v35  ;;  %3611 = vmatprep.mubr.msk.bf16.mxu1 %vm1229_vm0, %v4157_v36 }
  0xd6   : > { %1702 = vmatmul.mubr.bf16.gmra.mrb[84].mxu0 %v4159_v37  ;;  %2054 = vmatmul.mubr.bf16.gmra.mrb[84].mxu1 %v4160_v38 }
  0xd7   : > { %3568 = vmatprep.mubr.msk.bf16.mxu0 %vm1229_vm0, %v4161_v39  ;;  %3612 = vmatprep.mubr.msk.bf16.mxu1 %vm1229_vm0, %v4163_v40 }
  0xde   : > { %1710 = vmatmul.mubr.bf16.gmra.mrb[88].mxu0 %v4165_v41  ;;  %2062 = vmatmul.mubr.bf16.gmra.mrb[88].mxu1 %v4166_v42 }
  0xdf   : > { %3569 = vmatprep.mubr.msk.bf16.mxu0 %vm1229_vm0, %v4167_v43  ;;  %3613 = vmatprep.mubr.msk.bf16.mxu1 %vm1229_vm0, %v4169_v44 }
  0xe6   : > { %1718 = vmatmul.mubr.bf16.gmra.mrb[92].mxu0 %v4171_v45  ;;  %2070 = vmatmul.mubr.bf16.gmra.mrb[92].mxu1 %v4172_v46 }
  0xe7   : > { %3570 = vmatprep.mubr.msk.bf16.mxu0 %vm1229_vm0, %v4173_v47  ;;  %3614 = vmatprep.mubr.msk.bf16.mxu1 %vm1229_vm0, %v4175_v48 }
  0xee   : > { %1726 = vmatmul.mubr.bf16.gmra.mrb[96].mxu0 %v4177_v49  ;;  %2078 = vmatmul.mubr.bf16.gmra.mrb[96].mxu1 %v4178_v50 }
  0xef   : > { %3571 = vmatprep.mubr.msk.bf16.mxu0 %vm1229_vm0, %v4179_v51  ;;  %3615 = vmatprep.mubr.msk.bf16.mxu1 %vm1229_vm0, %v4181_v52  ;;  %v4207_v52 = vld [vmem:[%s4351_s26 + $0x1d0] ss:$8 sps:$4 sm:$0xff]  }
  0xf6   : > { %1734 = vmatmul.mubr.bf16.gmra.mrb[100].mxu0 %v4183_v53  ;;  %2086 = vmatmul.mubr.bf16.gmra.mrb[100].mxu1 %v4184_v54  ;;  %v4208_v53 = vld [vmem:[%s4351_s26 + $0x490] ss:$8 sps:$4 sm:$0xff]  }
  0xf7   : > { %3572 = vmatprep.mubr.msk.bf16.mxu0 %vm1229_vm0, %v4185_v55  ;;  %3616 = vmatprep.mubr.msk.bf16.mxu1 %vm1229_vm0, %v4187_v56  ;;  %v4209_v56 = vld [vmem:[%s4351_s26 + $0x1e4] ss:$8 sps:$4 sm:$0xff]  }
  0xfe   : > { %1742 = vmatmul.mubr.bf16.gmra.mrb[104].mxu0 %v4189_v57  ;;  %2094 = vmatmul.mubr.bf16.gmra.mrb[104].mxu1 %v4190_v58  ;;  %v4211_v57 = vld [vmem:[%s4351_s26 + $0x4a4] ss:$8 sps:$4 sm:$0xff]  }
  0xff   : > { %3573 = vmatprep.mubr.msk.bf16.mxu0 %vm1229_vm0, %v4191_v59  ;;  %3617 = vmatprep.mubr.msk.bf16.mxu1 %vm1229_vm0, %v4193_v60 }
 0x101   : > { %v1535_v62 = vpop.f32.mrb[0].mxu0  ;;  %v1887_v63 = vpop.f32.mrb[0].mxu1 }
 0x102   : > { %v1536_v0 = vadd.f32 %v4538_v61, %v1535_v62  ;;  %v1888_v1 = vadd.f32 %v4538_v61, %v1887_v63  ;;  %v1537_v2 = vpop.f32.mrb[1].mxu0  ;;  %v1889_v3 = vpop.f32.mrb[1].mxu1 }
 0x103   : > { %v1538_v6 = vpop.f32.mrb[2].mxu0  ;;  %v1890_v7 = vpop.f32.mrb[2].mxu1 }
 0x104   : > { %v2238_v10 = vmax.f32 %v1536_v0, 0.0  ;;  %v2326_v11 = vmax.f32 %v1888_v1, 0.0  ;;  %v1539_v12 = vadd.f32 %v4538_v61, %v1538_v6  ;;  %v1891_v13 = vadd.f32 %v4538_v61, %v1890_v7  ;;  %v1540_v14 = vpop.f32.mrb[3].mxu0  ;;  %v1892_v15 = vpop.f32.mrb[3].mxu1 }
 0x105   : > { %v4214_v14 = vld [vmem:[%s4351_s26 + $0x4a0] ss:$8 sps:$4 sm:$0xff]  }
 0x106   : > { %v3813_v16 = vpack.c.bf16 %v2238_v10, %v2238_v10  ;;  %v3901_v17 = vpack.c.bf16 %v2326_v11, %v2326_v11  ;;  %v2239_v18 = vmax.f32 %v1539_v12, 0.0  ;;  %v2327_v19 = vmax.f32 %v1891_v13, 0.0  ;;  %1750 = vmatmul.mubr.bf16.gmra.mrb[108].mxu0 %v4195_v4  ;;  %2102 = vmatmul.mubr.bf16.gmra.mrb[108].mxu1 %v4196_v5  ;;  %v4213_v13 = vld [vmem:[%s4351_s26 + $0x1e0] ss:$8 sps:$4 sm:$0xff]  }
 0x107   : > { %3574 = vmatprep.mubr.msk.bf16.mxu0 %vm1229_vm0, %v4197_v8  ;;  %3618 = vmatprep.mubr.msk.bf16.mxu1 %vm1229_vm0, %v4199_v9 }
 0x108   : > { %3119 = vst.msk [vmem:[%s4554_s18] sm:$0xf] %vm3118_vm3, %v3813_v16  ;;  %3207 = vst.msk [vmem:[%s4554_s18 + $0x160] sm:$0xf] %vm3118_vm3, %v3901_v17  ;;  %v3814_v20 = vpack.c.bf16 %v2239_v18, %v2239_v18  ;;  %v3902_v21 = vpack.c.bf16 %v2327_v19, %v2327_v19  ;;  %v4215_v17 = vld [vmem:[%s4351_s26 + $0x1f4] ss:$8 sps:$4 sm:$0xff]  }
 0x109   : > { %v1543_v22 = vpop.f32.mrb[4].mxu0  ;;  %v1895_v23 = vpop.f32.mrb[4].mxu1  ;;  %v4217_v18 = vld [vmem:[%s4351_s26 + $0x4b4] ss:$8 sps:$4 sm:$0xff]  }
 0x10a   : > { %3120 = vst.msk [vmem:[%s4554_s18 + $0x4] sm:$0xf] %vm3118_vm3, %v3814_v20  ;;  %3208 = vst.msk [vmem:[%s4554_s18 + $0x164] sm:$0xf] %vm3118_vm3, %v3902_v21  ;;  %v1544_v24 = vadd.f32 %v4538_v61, %v1543_v22  ;;  %v1896_v25 = vadd.f32 %v4538_v61, %v1895_v23  ;;  %v1545_v26 = vpop.f32.mrb[5].mxu0  ;;  %v1897_v27 = vpop.f32.mrb[5].mxu1 }
 0x10b   : > { %v1546_v30 = vpop.f32.mrb[6].mxu0  ;;  %v1898_v31 = vpop.f32.mrb[6].mxu1 }
 0x10c   : > { %v2240_v34 = vmax.f32 %v1544_v24, 0.0  ;;  %v2328_v35 = vmax.f32 %v1896_v25, 0.0  ;;  %v1547_v36 = vadd.f32 %v4538_v61, %v1546_v30  ;;  %v1899_v37 = vadd.f32 %v4538_v61, %v1898_v31  ;;  %v1548_v38 = vpop.f32.mrb[7].mxu0  ;;  %v1900_v39 = vpop.f32.mrb[7].mxu1 }
 0x10d   : > { %v4220_v38 = vld [vmem:[%s4351_s26 + $0x4b0] ss:$8 sps:$4 sm:$0xff]  }
 0x10e   : > { %v3815_v40 = vpack.c.bf16 %v2240_v34, %v2240_v34  ;;  %v3903_v41 = vpack.c.bf16 %v2328_v35, %v2328_v35  ;;  %v2241_v42 = vmax.f32 %v1547_v36, 0.0  ;;  %v2329_v43 = vmax.f32 %v1899_v37, 0.0  ;;  %1758 = vmatmul.mubr.bf16.gmra.mrb[112].mxu0 %v4201_v28  ;;  %2110 = vmatmul.mubr.bf16.gmra.mrb[112].mxu1 %v4202_v29  ;;  %v4219_v37 = vld [vmem:[%s4351_s26 + $0x1f0] ss:$8 sps:$4 sm:$0xff]  }
 0x10f   : > { %3575 = vmatprep.mubr.msk.bf16.mxu0 %vm1229_vm0, %v4203_v32  ;;  %3619 = vmatprep.mubr.msk.bf16.mxu1 %vm1229_vm0, %v4205_v33 }
 0x110   : > { %3121 = vst.msk [vmem:[%s4554_s18 + $0x8] sm:$0xf] %vm3118_vm3, %v3815_v40  ;;  %3209 = vst.msk [vmem:[%s4554_s18 + $0x168] sm:$0xf] %vm3118_vm3, %v3903_v41  ;;  %v3816_v44 = vpack.c.bf16 %v2241_v42, %v2241_v42  ;;  %v3904_v45 = vpack.c.bf16 %v2329_v43, %v2329_v43  ;;  %v4221_v41 = vld [vmem:[%s4351_s26 + $0x204] ss:$8 sps:$4 sm:$0xff]  }
 0x111   : > { %v1551_v46 = vpop.f32.mrb[8].mxu0  ;;  %v1903_v47 = vpop.f32.mrb[8].mxu1  ;;  %v4223_v42 = vld [vmem:[%s4351_s26 + $0x4c4] ss:$8 sps:$4 sm:$0xff]  }
 0x112   : > { %3122 = vst.msk [vmem:[%s4554_s18 + $0xc] sm:$0xf] %vm3118_vm3, %v3816_v44  ;;  %3210 = vst.msk [vmem:[%s4554_s18 + $0x16c] sm:$0xf] %vm3118_vm3, %v3904_v45  ;;  %v1552_v48 = vadd.f32 %v4538_v61, %v1551_v46  ;;  %v1904_v49 = vadd.f32 %v4538_v61, %v1903_v47  ;;  %v1553_v50 = vpop.f32.mrb[9].mxu0  ;;  %v1905_v51 = vpop.f32.mrb[9].mxu1 }
 0x113   : > { %v1554_v54 = vpop.f32.mrb[10].mxu0  ;;  %v1906_v55 = vpop.f32.mrb[10].mxu1 }
 0x114   : > { %v2242_v58 = vmax.f32 %v1552_v48, 0.0  ;;  %v2330_v59 = vmax.f32 %v1904_v49, 0.0  ;;  %v1555_v60 = vadd.f32 %v4538_v61, %v1554_v54  ;;  %v1907_v62 = vadd.f32 %v4538_v61, %v1906_v55  ;;  %v1556_v63 = vpop.f32.mrb[11].mxu0  ;;  %v1908_v0 = vpop.f32.mrb[11].mxu1 }
 0x115   : > { %v4226_v63 = vld [vmem:[%s4351_s26 + $0x4c0] ss:$8 sps:$4 sm:$0xff]  }
 0x116   : > { %v3817_v1 = vpack.c.bf16 %v2242_v58, %v2242_v58  ;;  %v3905_v2 = vpack.c.bf16 %v2330_v59, %v2330_v59  ;;  %v2243_v3 = vmax.f32 %v1555_v60, 0.0  ;;  %v2331_v4 = vmax.f32 %v1907_v62, 0.0  ;;  %1766 = vmatmul.mubr.bf16.gmra.mrb[116].mxu0 %v4207_v52  ;;  %2118 = vmatmul.mubr.bf16.gmra.mrb[116].mxu1 %v4208_v53  ;;  %v4225_v62 = vld [vmem:[%s4351_s26 + $0x200] ss:$8 sps:$4 sm:$0xff]  }
 0x117   : > { %3576 = vmatprep.mubr.msk.bf16.mxu0 %vm1229_vm0, %v4209_v56  ;;  %3620 = vmatprep.mubr.msk.bf16.mxu1 %vm1229_vm0, %v4211_v57 }
 0x118   : > { %3123 = vst.msk [vmem:[%s4554_s18 + $0x10] sm:$0xf] %vm3118_vm3, %v3817_v1  ;;  %3211 = vst.msk [vmem:[%s4554_s18 + $0x170] sm:$0xf] %vm3118_vm3, %v3905_v2  ;;  %v3818_v5 = vpack.c.bf16 %v2243_v3, %v2243_v3  ;;  %v3906_v6 = vpack.c.bf16 %v2331_v4, %v2331_v4  ;;  %v4227_v2 = vld [vmem:[%s4351_s26 + $0x214] ss:$8 sps:$4 sm:$0xff]  }
 0x119   : > { %v1559_v7 = vpop.f32.mrb[12].mxu0  ;;  %v1911_v8 = vpop.f32.mrb[12].mxu1  ;;  %v4229_v3 = vld [vmem:[%s4351_s26 + $0x4d4] ss:$8 sps:$4 sm:$0xff]  }
 0x11a   : > { %3124 = vst.msk [vmem:[%s4554_s18 + $0x14] sm:$0xf] %vm3118_vm3, %v3818_v5  ;;  %3212 = vst.msk [vmem:[%s4554_s18 + $0x174] sm:$0xf] %vm3118_vm3, %v3906_v6  ;;  %v1560_v9 = vadd.f32 %v4538_v61, %v1559_v7  ;;  %v1912_v10 = vadd.f32 %v4538_v61, %v1911_v8  ;;  %v1561_v11 = vpop.f32.mrb[13].mxu0  ;;  %v1913_v12 = vpop.f32.mrb[13].mxu1 }
 0x11b   : > { %v1562_v15 = vpop.f32.mrb[14].mxu0  ;;  %v1914_v16 = vpop.f32.mrb[14].mxu1 }
 0x11c   : > { %v2244_v19 = vmax.f32 %v1560_v9, 0.0  ;;  %v2332_v20 = vmax.f32 %v1912_v10, 0.0  ;;  %v1563_v21 = vadd.f32 %v4538_v61, %v1562_v15  ;;  %v1915_v22 = vadd.f32 %v4538_v61, %v1914_v16  ;;  %v1564_v23 = vpop.f32.mrb[15].mxu0  ;;  %v1916_v24 = vpop.f32.mrb[15].mxu1 }
 0x11d   : > { %v4232_v23 = vld [vmem:[%s4351_s26 + $0x4d0] ss:$8 sps:$4 sm:$0xff]  }
 0x11e   : > { %v3819_v25 = vpack.c.bf16 %v2244_v19, %v2244_v19  ;;  %v3907_v26 = vpack.c.bf16 %v2332_v20, %v2332_v20  ;;  %v2245_v27 = vmax.f32 %v1563_v21, 0.0  ;;  %v2333_v28 = vmax.f32 %v1915_v22, 0.0  ;;  %1774 = vmatmul.mubr.bf16.gmra.mrb[120].mxu0 %v4213_v13  ;;  %2126 = vmatmul.mubr.bf16.gmra.mrb[120].mxu1 %v4214_v14  ;;  %v4231_v22 = vld [vmem:[%s4351_s26 + $0x210] ss:$8 sps:$4 sm:$0xff]  }
 0x11f   : > { %3577 = vmatprep.mubr.msk.bf16.mxu0 %vm1229_vm0, %v4215_v17  ;;  %3621 = vmatprep.mubr.msk.bf16.mxu1 %vm1229_vm0, %v4217_v18 }
 0x120   : > { %3125 = vst.msk [vmem:[%s4554_s18 + $0x18] sm:$0xf] %vm3118_vm3, %v3819_v25  ;;  %3213 = vst.msk [vmem:[%s4554_s18 + $0x178] sm:$0xf] %vm3118_vm3, %v3907_v26  ;;  %v3820_v29 = vpack.c.bf16 %v2245_v27, %v2245_v27  ;;  %v3908_v30 = vpack.c.bf16 %v2333_v28, %v2333_v28  ;;  %v4233_v26 = vld [vmem:[%s4351_s26 + $0x224] ss:$8 sps:$4 sm:$0xff]  }
 0x121   : > { %v1567_v31 = vpop.f32.mrb[16].mxu0  ;;  %v1919_v32 = vpop.f32.mrb[16].mxu1  ;;  %v4235_v27 = vld [vmem:[%s4351_s26 + $0x4e4] ss:$8 sps:$4 sm:$0xff]  }
 0x122   : > { %3126 = vst.msk [vmem:[%s4554_s18 + $0x1c] sm:$0xf] %vm3118_vm3, %v3820_v29  ;;  %3214 = vst.msk [vmem:[%s4554_s18 + $0x17c] sm:$0xf] %vm3118_vm3, %v3908_v30  ;;  %v1568_v33 = vadd.f32 %v4538_v61, %v1567_v31  ;;  %v1920_v34 = vadd.f32 %v4538_v61, %v1919_v32  ;;  %v1569_v35 = vpop.f32.mrb[17].mxu0  ;;  %v1921_v36 = vpop.f32.mrb[17].mxu1 }
 0x123   : > { %v1570_v39 = vpop.f32.mrb[18].mxu0  ;;  %v1922_v40 = vpop.f32.mrb[18].mxu1 }
 0x124   : > { %v2246_v43 = vmax.f32 %v1568_v33, 0.0  ;;  %v2334_v44 = vmax.f32 %v1920_v34, 0.0  ;;  %v1571_v45 = vadd.f32 %v4538_v61, %v1570_v39  ;;  %v1923_v46 = vadd.f32 %v4538_v61, %v1922_v40  ;;  %v1572_v47 = vpop.f32.mrb[19].mxu0  ;;  %v1924_v48 = vpop.f32.mrb[19].mxu1 }
 0x125   : > { %v4238_v47 = vld [vmem:[%s4351_s26 + $0x4e0] ss:$8 sps:$4 sm:$0xff]  }
 0x126   : > { %v3821_v49 = vpack.c.bf16 %v2246_v43, %v2246_v43  ;;  %v3909_v50 = vpack.c.bf16 %v2334_v44, %v2334_v44  ;;  %v2247_v51 = vmax.f32 %v1571_v45, 0.0  ;;  %v2335_v52 = vmax.f32 %v1923_v46, 0.0  ;;  %1782 = vmatmul.mubr.bf16.gmra.mrb[124].mxu0 %v4219_v37  ;;  %2134 = vmatmul.mubr.bf16.gmra.mrb[124].mxu1 %v4220_v38  ;;  %v4237_v46 = vld [vmem:[%s4351_s26 + $0x220] ss:$8 sps:$4 sm:$0xff]  }
 0x127   : > { %3578 = vmatprep.mubr.msk.bf16.mxu0 %vm1229_vm0, %v4221_v41  ;;  %3622 = vmatprep.mubr.msk.bf16.mxu1 %vm1229_vm0, %v4223_v42 }
 0x128   : > { %3127 = vst.msk [vmem:[%s4554_s18 + $0x20] sm:$0xf] %vm3118_vm3, %v3821_v49  ;;  %3215 = vst.msk [vmem:[%s4554_s18 + $0x180] sm:$0xf] %vm3118_vm3, %v3909_v50  ;;  %v3822_v53 = vpack.c.bf16 %v2247_v51, %v2247_v51  ;;  %v3910_v54 = vpack.c.bf16 %v2335_v52, %v2335_v52  ;;  %v4239_v50 = vld [vmem:[%s4351_s26 + $0x234] ss:$8 sps:$4 sm:$0xff]  }
 0x129   : > { %v1575_v55 = vpop.f32.mrb[20].mxu0  ;;  %v1927_v56 = vpop.f32.mrb[20].mxu1  ;;  %v4241_v51 = vld [vmem:[%s4351_s26 + $0x4f4] ss:$8 sps:$4 sm:$0xff]  }
 0x12a   : > { %3128 = vst.msk [vmem:[%s4554_s18 + $0x24] sm:$0xf] %vm3118_vm3, %v3822_v53  ;;  %3216 = vst.msk [vmem:[%s4554_s18 + $0x184] sm:$0xf] %vm3118_vm3, %v3910_v54  ;;  %v1576_v57 = vadd.f32 %v4538_v61, %v1575_v55  ;;  %v1928_v58 = vadd.f32 %v4538_v61, %v1927_v56  ;;  %v1577_v59 = vpop.f32.mrb[21].mxu0  ;;  %v1929_v60 = vpop.f32.mrb[21].mxu1 }
 0x12b   : > { %v1578_v0 = vpop.f32.mrb[22].mxu0  ;;  %v1930_v1 = vpop.f32.mrb[22].mxu1 }
 0x12c   : > { %v2248_v4 = vmax.f32 %v1576_v57, 0.0  ;;  %v2336_v5 = vmax.f32 %v1928_v58, 0.0  ;;  %v1579_v6 = vadd.f32 %v4538_v61, %v1578_v0  ;;  %v1931_v7 = vadd.f32 %v4538_v61, %v1930_v1  ;;  %v1580_v8 = vpop.f32.mrb[23].mxu0  ;;  %v1932_v9 = vpop.f32.mrb[23].mxu1 }
 0x12d   : > { %v4244_v8 = vld [vmem:[%s4351_s26 + $0x4f0] ss:$8 sps:$4 sm:$0xff]  }
 0x12e   : > { %v3823_v10 = vpack.c.bf16 %v2248_v4, %v2248_v4  ;;  %v3911_v11 = vpack.c.bf16 %v2336_v5, %v2336_v5  ;;  %v2249_v12 = vmax.f32 %v1579_v6, 0.0  ;;  %v2337_v13 = vmax.f32 %v1931_v7, 0.0  ;;  %1790 = vmatmul.mubr.bf16.gmra.mrb[128].mxu0 %v4225_v62  ;;  %2142 = vmatmul.mubr.bf16.gmra.mrb[128].mxu1 %v4226_v63  ;;  %v4243_v7 = vld [vmem:[%s4351_s26 + $0x230] ss:$8 sps:$4 sm:$0xff]  }
 0x12f   : > { %3579 = vmatprep.mubr.msk.bf16.mxu0 %vm1229_vm0, %v4227_v2  ;;  %3623 = vmatprep.mubr.msk.bf16.mxu1 %vm1229_vm0, %v4229_v3 }
 0x130   : > { %3129 = vst.msk [vmem:[%s4554_s18 + $0x28] sm:$0xf] %vm3118_vm3, %v3823_v10  ;;  %3217 = vst.msk [vmem:[%s4554_s18 + $0x188] sm:$0xf] %vm3118_vm3, %v3911_v11  ;;  %v3824_v14 = vpack.c.bf16 %v2249_v12, %v2249_v12  ;;  %v3912_v15 = vpack.c.bf16 %v2337_v13, %v2337_v13  ;;  %v4245_v11 = vld [vmem:[%s4351_s26 + $0x244] ss:$8 sps:$4 sm:$0xff]  }
 0x131   : > { %v1583_v16 = vpop.f32.mrb[24].mxu0  ;;  %v1935_v17 = vpop.f32.mrb[24].mxu1  ;;  %v4247_v12 = vld [vmem:[%s4351_s26 + $0x504] ss:$8 sps:$4 sm:$0xff]  }
 0x132   : > { %3130 = vst.msk [vmem:[%s4554_s18 + $0x2c] sm:$0xf] %vm3118_vm3, %v3824_v14  ;;  %3218 = vst.msk [vmem:[%s4554_s18 + $0x18c] sm:$0xf] %vm3118_vm3, %v3912_v15  ;;  %v1584_v18 = vadd.f32 %v4538_v61, %v1583_v16  ;;  %v1936_v19 = vadd.f32 %v4538_v61, %v1935_v17  ;;  %v1585_v20 = vpop.f32.mrb[25].mxu0  ;;  %v1937_v21 = vpop.f32.mrb[25].mxu1 }
 0x133   : > { %v1586_v24 = vpop.f32.mrb[26].mxu0  ;;  %v1938_v25 = vpop.f32.mrb[26].mxu1 }
 0x134   : > { %v2250_v28 = vmax.f32 %v1584_v18, 0.0  ;;  %v2338_v29 = vmax.f32 %v1936_v19, 0.0  ;;  %v1587_v30 = vadd.f32 %v4538_v61, %v1586_v24  ;;  %v1939_v31 = vadd.f32 %v4538_v61, %v1938_v25  ;;  %v1588_v32 = vpop.f32.mrb[27].mxu0  ;;  %v1940_v33 = vpop.f32.mrb[27].mxu1 }
 0x135   : > { %v4250_v32 = vld [vmem:[%s4351_s26 + $0x500] ss:$8 sps:$4 sm:$0xff]  }
 0x136   : > { %v3825_v34 = vpack.c.bf16 %v2250_v28, %v2250_v28  ;;  %v3913_v35 = vpack.c.bf16 %v2338_v29, %v2338_v29  ;;  %v2251_v36 = vmax.f32 %v1587_v30, 0.0  ;;  %v2339_v37 = vmax.f32 %v1939_v31, 0.0  ;;  %1798 = vmatmul.mubr.bf16.gmra.mrb[132].mxu0 %v4231_v22  ;;  %2150 = vmatmul.mubr.bf16.gmra.mrb[132].mxu1 %v4232_v23  ;;  %v4249_v31 = vld [vmem:[%s4351_s26 + $0x240] ss:$8 sps:$4 sm:$0xff]  }
 0x137   : > { %3580 = vmatprep.mubr.msk.bf16.mxu0 %vm1229_vm0, %v4233_v26  ;;  %3624 = vmatprep.mubr.msk.bf16.mxu1 %vm1229_vm0, %v4235_v27 }
 0x138   : > { %3131 = vst.msk [vmem:[%s4554_s18 + $0x30] sm:$0xf] %vm3118_vm3, %v3825_v34  ;;  %3219 = vst.msk [vmem:[%s4554_s18 + $0x190] sm:$0xf] %vm3118_vm3, %v3913_v35  ;;  %v3826_v38 = vpack.c.bf16 %v2251_v36, %v2251_v36  ;;  %v3914_v39 = vpack.c.bf16 %v2339_v37, %v2339_v37  ;;  %v4251_v35 = vld [vmem:[%s4351_s26 + $0x254] ss:$8 sps:$4 sm:$0xff]  }
 0x139   : > { %v1591_v40 = vpop.f32.mrb[28].mxu0  ;;  %v1943_v41 = vpop.f32.mrb[28].mxu1  ;;  %v4253_v36 = vld [vmem:[%s4351_s26 + $0x514] ss:$8 sps:$4 sm:$0xff]  }
 0x13a   : > { %3132 = vst.msk [vmem:[%s4554_s18 + $0x34] sm:$0xf] %vm3118_vm3, %v3826_v38  ;;  %3220 = vst.msk [vmem:[%s4554_s18 + $0x194] sm:$0xf] %vm3118_vm3, %v3914_v39  ;;  %v1592_v42 = vadd.f32 %v4538_v61, %v1591_v40  ;;  %v1944_v43 = vadd.f32 %v4538_v61, %v1943_v41  ;;  %v1593_v44 = vpop.f32.mrb[29].mxu0  ;;  %v1945_v45 = vpop.f32.mrb[29].mxu1 }
 0x13b   : > { %v1594_v48 = vpop.f32.mrb[30].mxu0  ;;  %v1946_v49 = vpop.f32.mrb[30].mxu1 }
 0x13c   : > { %v2252_v52 = vmax.f32 %v1592_v42, 0.0  ;;  %v2340_v53 = vmax.f32 %v1944_v43, 0.0  ;;  %v1595_v54 = vadd.f32 %v4538_v61, %v1594_v48  ;;  %v1947_v55 = vadd.f32 %v4538_v61, %v1946_v49  ;;  %v1596_v56 = vpop.f32.mrb[31].mxu0  ;;  %v1948_v57 = vpop.f32.mrb[31].mxu1 }
 0x13d   : > { %v4256_v56 = vld [vmem:[%s4351_s26 + $0x510] ss:$8 sps:$4 sm:$0xff]  }
 0x13e   : > { %v3827_v58 = vpack.c.bf16 %v2252_v52, %v2252_v52  ;;  %v3915_v59 = vpack.c.bf16 %v2340_v53, %v2340_v53  ;;  %v2253_v60 = vmax.f32 %v1595_v54, 0.0  ;;  %v2341_v62 = vmax.f32 %v1947_v55, 0.0  ;;  %1806 = vmatmul.mubr.bf16.gmra.mrb[136].mxu0 %v4237_v46  ;;  %2158 = vmatmul.mubr.bf16.gmra.mrb[136].mxu1 %v4238_v47  ;;  %v4255_v55 = vld [vmem:[%s4351_s26 + $0x250] ss:$8 sps:$4 sm:$0xff]  }
 0x13f   : > { %3581 = vmatprep.mubr.msk.bf16.mxu0 %vm1229_vm0, %v4239_v50  ;;  %3625 = vmatprep.mubr.msk.bf16.mxu1 %vm1229_vm0, %v4241_v51 }
 0x140   : > { %3133 = vst.msk [vmem:[%s4554_s18 + $0x38] sm:$0xf] %vm3118_vm3, %v3827_v58  ;;  %3221 = vst.msk [vmem:[%s4554_s18 + $0x198] sm:$0xf] %vm3118_vm3, %v3915_v59  ;;  %v3828_v63 = vpack.c.bf16 %v2253_v60, %v2253_v60  ;;  %v3916_v0 = vpack.c.bf16 %v2341_v62, %v2341_v62  ;;  %v4257_v59 = vld [vmem:[%s4351_s26 + $0x264] ss:$8 sps:$4 sm:$0xff]  }
 0x141   : > { %v1599_v1 = vpop.f32.mrb[32].mxu0  ;;  %v1951_v2 = vpop.f32.mrb[32].mxu1  ;;  %v4259_v60 = vld [vmem:[%s4351_s26 + $0x524] ss:$8 sps:$4 sm:$0xff]  }
 0x142   : > { %3134 = vst.msk [vmem:[%s4554_s18 + $0x3c] sm:$0xf] %vm3118_vm3, %v3828_v63  ;;  %3222 = vst.msk [vmem:[%s4554_s18 + $0x19c] sm:$0xf] %vm3118_vm3, %v3916_v0  ;;  %v1600_v3 = vadd.f32 %v4538_v61, %v1599_v1  ;;  %v1952_v4 = vadd.f32 %v4538_v61, %v1951_v2  ;;  %v1601_v5 = vpop.f32.mrb[33].mxu0  ;;  %v1953_v6 = vpop.f32.mrb[33].mxu1 }
 0x143   : > { %v1602_v9 = vpop.f32.mrb[34].mxu0  ;;  %v1954_v10 = vpop.f32.mrb[34].mxu1 }
 0x144   : > { %v2254_v13 = vmax.f32 %v1600_v3, 0.0  ;;  %v2342_v14 = vmax.f32 %v1952_v4, 0.0  ;;  %v1603_v15 = vadd.f32 %v4538_v61, %v1602_v9  ;;  %v1955_v16 = vadd.f32 %v4538_v61, %v1954_v10  ;;  %v1604_v17 = vpop.f32.mrb[35].mxu0  ;;  %v1956_v18 = vpop.f32.mrb[35].mxu1 }
 0x145   : > { %v4262_v17 = vld [vmem:[%s4351_s26 + $0x520] ss:$8 sps:$4 sm:$0xff]  }
 0x146   : > { %v3829_v19 = vpack.c.bf16 %v2254_v13, %v2254_v13  ;;  %v3917_v20 = vpack.c.bf16 %v2342_v14, %v2342_v14  ;;  %v2255_v21 = vmax.f32 %v1603_v15, 0.0  ;;  %v2343_v22 = vmax.f32 %v1955_v16, 0.0  ;;  %1814 = vmatmul.mubr.bf16.gmra.mrb[140].mxu0 %v4243_v7  ;;  %2166 = vmatmul.mubr.bf16.gmra.mrb[140].mxu1 %v4244_v8  ;;  %v4261_v16 = vld [vmem:[%s4351_s26 + $0x260] ss:$8 sps:$4 sm:$0xff]  }
 0x147   : > { %3582 = vmatprep.mubr.msk.bf16.mxu0 %vm1229_vm0, %v4245_v11  ;;  %3626 = vmatprep.mubr.msk.bf16.mxu1 %vm1229_vm0, %v4247_v12 }
 0x148   : > { %3135 = vst.msk [vmem:[%s4554_s18 + $0x40] sm:$0xf] %vm3118_vm3, %v3829_v19  ;;  %3223 = vst.msk [vmem:[%s4554_s18 + $0x1a0] sm:$0xf] %vm3118_vm3, %v3917_v20  ;;  %v3830_v23 = vpack.c.bf16 %v2255_v21, %v2255_v21  ;;  %v3918_v24 = vpack.c.bf16 %v2343_v22, %v2343_v22  ;;  %v4263_v20 = vld [vmem:[%s4351_s26 + $0x274] ss:$8 sps:$4 sm:$0xff]  }
 0x149   : > { %v1607_v25 = vpop.f32.mrb[36].mxu0  ;;  %v1959_v26 = vpop.f32.mrb[36].mxu1  ;;  %v4265_v21 = vld [vmem:[%s4351_s26 + $0x534] ss:$8 sps:$4 sm:$0xff]  }
 0x14a   : > { %3136 = vst.msk [vmem:[%s4554_s18 + $0x44] sm:$0xf] %vm3118_vm3, %v3830_v23  ;;  %3224 = vst.msk [vmem:[%s4554_s18 + $0x1a4] sm:$0xf] %vm3118_vm3, %v3918_v24  ;;  %v1608_v27 = vadd.f32 %v4538_v61, %v1607_v25  ;;  %v1960_v28 = vadd.f32 %v4538_v61, %v1959_v26  ;;  %v1609_v29 = vpop.f32.mrb[37].mxu0  ;;  %v1961_v30 = vpop.f32.mrb[37].mxu1 }
 0x14b   : > { %v1610_v33 = vpop.f32.mrb[38].mxu0  ;;  %v1962_v34 = vpop.f32.mrb[38].mxu1 }
 0x14c   : > { %v2256_v37 = vmax.f32 %v1608_v27, 0.0  ;;  %v2344_v38 = vmax.f32 %v1960_v28, 0.0  ;;  %v1611_v39 = vadd.f32 %v4538_v61, %v1610_v33  ;;  %v1963_v40 = vadd.f32 %v4538_v61, %v1962_v34  ;;  %v1612_v41 = vpop.f32.mrb[39].mxu0  ;;  %v1964_v42 = vpop.f32.mrb[39].mxu1 }
 0x14d   : > { %v4268_v41 = vld [vmem:[%s4351_s26 + $0x530] ss:$8 sps:$4 sm:$0xff]  }
 0x14e   : > { %v3831_v43 = vpack.c.bf16 %v2256_v37, %v2256_v37  ;;  %v3919_v44 = vpack.c.bf16 %v2344_v38, %v2344_v38  ;;  %v2257_v45 = vmax.f32 %v1611_v39, 0.0  ;;  %v2345_v46 = vmax.f32 %v1963_v40, 0.0  ;;  %1822 = vmatmul.mubr.bf16.gmra.mrb[144].mxu0 %v4249_v31  ;;  %2174 = vmatmul.mubr.bf16.gmra.mrb[144].mxu1 %v4250_v32  ;;  %v4267_v40 = vld [vmem:[%s4351_s26 + $0x270] ss:$8 sps:$4 sm:$0xff]  }
 0x14f   : > { %3583 = vmatprep.mubr.msk.bf16.mxu0 %vm1229_vm0, %v4251_v35  ;;  %3627 = vmatprep.mubr.msk.bf16.mxu1 %vm1229_vm0, %v4253_v36 }
 0x150   : > { %3137 = vst.msk [vmem:[%s4554_s18 + $0x48] sm:$0xf] %vm3118_vm3, %v3831_v43  ;;  %3225 = vst.msk [vmem:[%s4554_s18 + $0x1a8] sm:$0xf] %vm3118_vm3, %v3919_v44  ;;  %v3832_v47 = vpack.c.bf16 %v2257_v45, %v2257_v45  ;;  %v3920_v48 = vpack.c.bf16 %v2345_v46, %v2345_v46  ;;  %v4269_v44 = vld [vmem:[%s4351_s26 + $0x284] ss:$8 sps:$4 sm:$0xff]  }
 0x151   : > { %v1615_v49 = vpop.f32.mrb[40].mxu0  ;;  %v1967_v50 = vpop.f32.mrb[40].mxu1  ;;  %v4271_v45 = vld [vmem:[%s4351_s26 + $0x544] ss:$8 sps:$4 sm:$0xff]  }
 0x152   : > { %3138 = vst.msk [vmem:[%s4554_s18 + $0x4c] sm:$0xf] %vm3118_vm3, %v3832_v47  ;;  %3226 = vst.msk [vmem:[%s4554_s18 + $0x1ac] sm:$0xf] %vm3118_vm3, %v3920_v48  ;;  %v1616_v51 = vadd.f32 %v4538_v61, %v1615_v49  ;;  %v1968_v52 = vadd.f32 %v4538_v61, %v1967_v50  ;;  %v1617_v53 = vpop.f32.mrb[41].mxu0  ;;  %v1969_v54 = vpop.f32.mrb[41].mxu1 }
 0x153   : > { %v1618_v57 = vpop.f32.mrb[42].mxu0  ;;  %v1970_v58 = vpop.f32.mrb[42].mxu1 }
 0x154   : > { %v2258_v62 = vmax.f32 %v1616_v51, 0.0  ;;  %v2346_v63 = vmax.f32 %v1968_v52, 0.0  ;;  %v1619_v0 = vadd.f32 %v4538_v61, %v1618_v57  ;;  %v1971_v1 = vadd.f32 %v4538_v61, %v1970_v58  ;;  %v1620_v2 = vpop.f32.mrb[43].mxu0  ;;  %v1972_v3 = vpop.f32.mrb[43].mxu1 }
 0x155   : > { %v4274_v2 = vld [vmem:[%s4351_s26 + $0x540] ss:$8 sps:$4 sm:$0xff]  }
 0x156   : > { %v3833_v4 = vpack.c.bf16 %v2258_v62, %v2258_v62  ;;  %v3921_v5 = vpack.c.bf16 %v2346_v63, %v2346_v63  ;;  %v2259_v6 = vmax.f32 %v1619_v0, 0.0  ;;  %v2347_v7 = vmax.f32 %v1971_v1, 0.0  ;;  %1830 = vmatmul.mubr.bf16.gmra.mrb[148].mxu0 %v4255_v55  ;;  %2182 = vmatmul.mubr.bf16.gmra.mrb[148].mxu1 %v4256_v56  ;;  %v4273_v1 = vld [vmem:[%s4351_s26 + $0x280] ss:$8 sps:$4 sm:$0xff]  }
 0x157   : > { %3584 = vmatprep.mubr.msk.bf16.mxu0 %vm1229_vm0, %v4257_v59  ;;  %3628 = vmatprep.mubr.msk.bf16.mxu1 %vm1229_vm0, %v4259_v60 }
 0x158   : > { %3139 = vst.msk [vmem:[%s4554_s18 + $0x50] sm:$0xf] %vm3118_vm3, %v3833_v4  ;;  %3227 = vst.msk [vmem:[%s4554_s18 + $0x1b0] sm:$0xf] %vm3118_vm3, %v3921_v5  ;;  %v3834_v8 = vpack.c.bf16 %v2259_v6, %v2259_v6  ;;  %v3922_v9 = vpack.c.bf16 %v2347_v7, %v2347_v7  ;;  %v4275_v5 = vld [vmem:[%s4351_s26 + $0x294] ss:$8 sps:$4 sm:$0xff]  }
 0x159   : > { %v1623_v10 = vpop.f32.mrb[44].mxu0  ;;  %v1975_v11 = vpop.f32.mrb[44].mxu1  ;;  %v4277_v6 = vld [vmem:[%s4351_s26 + $0x554] ss:$8 sps:$4 sm:$0xff]  }
 0x15a   : > { %3140 = vst.msk [vmem:[%s4554_s18 + $0x54] sm:$0xf] %vm3118_vm3, %v3834_v8  ;;  %3228 = vst.msk [vmem:[%s4554_s18 + $0x1b4] sm:$0xf] %vm3118_vm3, %v3922_v9  ;;  %v1624_v12 = vadd.f32 %v4538_v61, %v1623_v10  ;;  %v1976_v13 = vadd.f32 %v4538_v61, %v1975_v11  ;;  %v1625_v14 = vpop.f32.mrb[45].mxu0  ;;  %v1977_v15 = vpop.f32.mrb[45].mxu1 }
 0x15b   : > { %v1626_v18 = vpop.f32.mrb[46].mxu0  ;;  %v1978_v19 = vpop.f32.mrb[46].mxu1 }
 0x15c   : > { %v2260_v22 = vmax.f32 %v1624_v12, 0.0  ;;  %v2348_v23 = vmax.f32 %v1976_v13, 0.0  ;;  %v1627_v24 = vadd.f32 %v4538_v61, %v1626_v18  ;;  %v1979_v25 = vadd.f32 %v4538_v61, %v1978_v19  ;;  %v1628_v26 = vpop.f32.mrb[47].mxu0  ;;  %v1980_v27 = vpop.f32.mrb[47].mxu1 }
 0x15d   : > { %v4280_v26 = vld [vmem:[%s4351_s26 + $0x550] ss:$8 sps:$4 sm:$0xff]  }
 0x15e   : > { %v3835_v28 = vpack.c.bf16 %v2260_v22, %v2260_v22  ;;  %v3923_v29 = vpack.c.bf16 %v2348_v23, %v2348_v23  ;;  %v2261_v30 = vmax.f32 %v1627_v24, 0.0  ;;  %v2349_v31 = vmax.f32 %v1979_v25, 0.0  ;;  %1838 = vmatmul.mubr.bf16.gmra.mrb[152].mxu0 %v4261_v16  ;;  %2190 = vmatmul.mubr.bf16.gmra.mrb[152].mxu1 %v4262_v17  ;;  %v4279_v25 = vld [vmem:[%s4351_s26 + $0x290] ss:$8 sps:$4 sm:$0xff]  }
 0x15f   : > { %3585 = vmatprep.mubr.msk.bf16.mxu0 %vm1229_vm0, %v4263_v20  ;;  %3629 = vmatprep.mubr.msk.bf16.mxu1 %vm1229_vm0, %v4265_v21 }
 0x160   : > { %3141 = vst.msk [vmem:[%s4554_s18 + $0x58] sm:$0xf] %vm3118_vm3, %v3835_v28  ;;  %3229 = vst.msk [vmem:[%s4554_s18 + $0x1b8] sm:$0xf] %vm3118_vm3, %v3923_v29  ;;  %v3836_v32 = vpack.c.bf16 %v2261_v30, %v2261_v30  ;;  %v3924_v33 = vpack.c.bf16 %v2349_v31, %v2349_v31  ;;  %v4281_v29 = vld [vmem:[%s4351_s26 + $0x2a4] ss:$8 sps:$4 sm:$0xff]  }
 0x161   : > { %v1631_v34 = vpop.f32.mrb[48].mxu0  ;;  %v1983_v35 = vpop.f32.mrb[48].mxu1  ;;  %v4283_v30 = vld [vmem:[%s4351_s26 + $0x564] ss:$8 sps:$4 sm:$0xff]  }
 0x162   : > { %3142 = vst.msk [vmem:[%s4554_s18 + $0x5c] sm:$0xf] %vm3118_vm3, %v3836_v32  ;;  %3230 = vst.msk [vmem:[%s4554_s18 + $0x1bc] sm:$0xf] %vm3118_vm3, %v3924_v33  ;;  %v1632_v36 = vadd.f32 %v4538_v61, %v1631_v34  ;;  %v1984_v37 = vadd.f32 %v4538_v61, %v1983_v35  ;;  %v1633_v38 = vpop.f32.mrb[49].mxu0  ;;  %v1985_v39 = vpop.f32.mrb[49].mxu1 }
 0x163   : > { %v1634_v42 = vpop.f32.mrb[50].mxu0  ;;  %v1986_v43 = vpop.f32.mrb[50].mxu1 }
 0x164   : > { %v2262_v46 = vmax.f32 %v1632_v36, 0.0  ;;  %v2350_v47 = vmax.f32 %v1984_v37, 0.0  ;;  %v1635_v48 = vadd.f32 %v4538_v61, %v1634_v42  ;;  %v1987_v49 = vadd.f32 %v4538_v61, %v1986_v43  ;;  %v1636_v50 = vpop.f32.mrb[51].mxu0  ;;  %v1988_v51 = vpop.f32.mrb[51].mxu1 }
 0x165   : > { %v4286_v50 = vld [vmem:[%s4351_s26 + $0x560] ss:$8 sps:$4 sm:$0xff]  }
 0x166   : > { %v3837_v52 = vpack.c.bf16 %v2262_v46, %v2262_v46  ;;  %v3925_v53 = vpack.c.bf16 %v2350_v47, %v2350_v47  ;;  %v2263_v54 = vmax.f32 %v1635_v48, 0.0  ;;  %v2351_v55 = vmax.f32 %v1987_v49, 0.0  ;;  %1846 = vmatmul.mubr.bf16.gmra.mrb[156].mxu0 %v4267_v40  ;;  %2198 = vmatmul.mubr.bf16.gmra.mrb[156].mxu1 %v4268_v41  ;;  %v4285_v49 = vld [vmem:[%s4351_s26 + $0x2a0] ss:$8 sps:$4 sm:$0xff]  }
 0x167   : > { %3586 = vmatprep.mubr.msk.bf16.mxu0 %vm1229_vm0, %v4269_v44  ;;  %3630 = vmatprep.mubr.msk.bf16.mxu1 %vm1229_vm0, %v4271_v45 }
 0x168   : > { %3143 = vst.msk [vmem:[%s4554_s18 + $0x60] sm:$0xf] %vm3118_vm3, %v3837_v52  ;;  %3231 = vst.msk [vmem:[%s4554_s18 + $0x1c0] sm:$0xf] %vm3118_vm3, %v3925_v53  ;;  %v3838_v56 = vpack.c.bf16 %v2263_v54, %v2263_v54  ;;  %v3926_v57 = vpack.c.bf16 %v2351_v55, %v2351_v55  ;;  %v4287_v53 = vld [vmem:[%s4351_s26 + $0x2b4] ss:$8 sps:$4 sm:$0xff]  }
 0x169   : > { %v1639_v58 = vpop.f32.mrb[52].mxu0  ;;  %v1991_v59 = vpop.f32.mrb[52].mxu1  ;;  %v4289_v54 = vld [vmem:[%s4351_s26 + $0x574] ss:$8 sps:$4 sm:$0xff]  }
 0x16a   : > { %3144 = vst.msk [vmem:[%s4554_s18 + $0x64] sm:$0xf] %vm3118_vm3, %v3838_v56  ;;  %3232 = vst.msk [vmem:[%s4554_s18 + $0x1c4] sm:$0xf] %vm3118_vm3, %v3926_v57  ;;  %v1640_v60 = vadd.f32 %v4538_v61, %v1639_v58  ;;  %v1992_v62 = vadd.f32 %v4538_v61, %v1991_v59  ;;  %v1641_v63 = vpop.f32.mrb[53].mxu0  ;;  %v1993_v0 = vpop.f32.mrb[53].mxu1 }
 0x16b   : > { %v1642_v3 = vpop.f32.mrb[54].mxu0  ;;  %v1994_v4 = vpop.f32.mrb[54].mxu1 }
 0x16c   : > { %v2264_v7 = vmax.f32 %v1640_v60, 0.0  ;;  %v2352_v8 = vmax.f32 %v1992_v62, 0.0  ;;  %v1643_v9 = vadd.f32 %v4538_v61, %v1642_v3  ;;  %v1995_v10 = vadd.f32 %v4538_v61, %v1994_v4  ;;  %v1644_v11 = vpop.f32.mrb[55].mxu0  ;;  %v1996_v12 = vpop.f32.mrb[55].mxu1 }
 0x16d   : > { %v4292_v11 = vld [vmem:[%s4351_s26 + $0x570] ss:$8 sps:$4 sm:$0xff]  }
 0x16e   : > { %v3839_v13 = vpack.c.bf16 %v2264_v7, %v2264_v7  ;;  %v3927_v14 = vpack.c.bf16 %v2352_v8, %v2352_v8  ;;  %v2265_v15 = vmax.f32 %v1643_v9, 0.0  ;;  %v2353_v16 = vmax.f32 %v1995_v10, 0.0  ;;  %1854 = vmatmul.mubr.bf16.gmra.mrb[160].mxu0 %v4273_v1  ;;  %2206 = vmatmul.mubr.bf16.gmra.mrb[160].mxu1 %v4274_v2  ;;  %v4291_v10 = vld [vmem:[%s4351_s26 + $0x2b0] ss:$8 sps:$4 sm:$0xff]  }
 0x16f   : > { %3587 = vmatprep.mubr.msk.bf16.mxu0 %vm1229_vm0, %v4275_v5  ;;  %3631 = vmatprep.mubr.msk.bf16.mxu1 %vm1229_vm0, %v4277_v6  ;;  %v4839_v5 = vld [vmem:[%s5189_s2] ss:$0 sm:$0xff] }
 0x170   : > { %3145 = vst.msk [vmem:[%s4554_s18 + $0x68] sm:$0xf] %vm3118_vm3, %v3839_v13  ;;  %3233 = vst.msk [vmem:[%s4554_s18 + $0x1c8] sm:$0xf] %vm3118_vm3, %v3927_v14  ;;  %v3840_v17 = vpack.c.bf16 %v2265_v15, %v2265_v15  ;;  %v3928_v18 = vpack.c.bf16 %v2353_v16, %v2353_v16 }
 0x171   : > { %v1647_v19 = vpop.f32.mrb[56].mxu0  ;;  %v1999_v20 = vpop.f32.mrb[56].mxu1 }
 0x172   : > { %3146 = vst.msk [vmem:[%s4554_s18 + $0x6c] sm:$0xf] %vm3118_vm3, %v3840_v17  ;;  %3234 = vst.msk [vmem:[%s4554_s18 + $0x1cc] sm:$0xf] %vm3118_vm3, %v3928_v18  ;;  %v1648_v21 = vadd.f32 %v4538_v61, %v1647_v19  ;;  %v2000_v22 = vadd.f32 %v4538_v61, %v1999_v20  ;;  %v1649_v23 = vpop.f32.mrb[57].mxu0  ;;  %v2001_v24 = vpop.f32.mrb[57].mxu1 }
 0x173   : > { %v1650_v27 = vpop.f32.mrb[58].mxu0  ;;  %v2002_v28 = vpop.f32.mrb[58].mxu1 }
 0x174   : > { %v2266_v31 = vmax.f32 %v1648_v21, 0.0  ;;  %v2354_v32 = vmax.f32 %v2000_v22, 0.0  ;;  %v1651_v33 = vadd.f32 %v4538_v61, %v1650_v27  ;;  %v2003_v34 = vadd.f32 %v4538_v61, %v2002_v28  ;;  %v1652_v35 = vpop.f32.mrb[59].mxu0  ;;  %v2004_v36 = vpop.f32.mrb[59].mxu1 }
 0x176   : > { %v3841_v37 = vpack.c.bf16 %v2266_v31, %v2266_v31  ;;  %v3929_v38 = vpack.c.bf16 %v2354_v32, %v2354_v32  ;;  %v2267_v39 = vmax.f32 %v1651_v33, 0.0  ;;  %v2355_v40 = vmax.f32 %v2003_v34, 0.0  ;;  %1862 = vmatmul.mubr.bf16.gmra.mrb[164].mxu0 %v4279_v25  ;;  %2214 = vmatmul.mubr.bf16.gmra.mrb[164].mxu1 %v4280_v26 }
 0x177   : > { %3588 = vmatprep.mubr.msk.bf16.mxu0 %vm1229_vm0, %v4281_v29  ;;  %3632 = vmatprep.mubr.msk.bf16.mxu1 %vm1229_vm0, %v4283_v30 }
 0x178   : > { %3147 = vst.msk [vmem:[%s4554_s18 + $0x70] sm:$0xf] %vm3118_vm3, %v3841_v37  ;;  %3235 = vst.msk [vmem:[%s4554_s18 + $0x1d0] sm:$0xf] %vm3118_vm3, %v3929_v38  ;;  %v3842_v41 = vpack.c.bf16 %v2267_v39, %v2267_v39  ;;  %v3930_v42 = vpack.c.bf16 %v2355_v40, %v2355_v40 }
 0x179   : > { %v1655_v43 = vpop.f32.mrb[60].mxu0  ;;  %v2007_v44 = vpop.f32.mrb[60].mxu1 }
 0x17a   : > { %3148 = vst.msk [vmem:[%s4554_s18 + $0x74] sm:$0xf] %vm3118_vm3, %v3842_v41  ;;  %3236 = vst.msk [vmem:[%s4554_s18 + $0x1d4] sm:$0xf] %vm3118_vm3, %v3930_v42  ;;  %v1656_v45 = vadd.f32 %v4538_v61, %v1655_v43  ;;  %v2008_v46 = vadd.f32 %v4538_v61, %v2007_v44  ;;  %v1657_v47 = vpop.f32.mrb[61].mxu0  ;;  %v2009_v48 = vpop.f32.mrb[61].mxu1 }
 0x17b   : > { %v1658_v51 = vpop.f32.mrb[62].mxu0  ;;  %v2010_v52 = vpop.f32.mrb[62].mxu1 }
 0x17c   : > { %v2268_v55 = vmax.f32 %v1656_v45, 0.0  ;;  %v2356_v56 = vmax.f32 %v2008_v46, 0.0  ;;  %v1659_v57 = vadd.f32 %v4538_v61, %v1658_v51  ;;  %v2011_v58 = vadd.f32 %v4538_v61, %v2010_v52  ;;  %v1660_v59 = vpop.f32.mrb[63].mxu0  ;;  %v2012_v60 = vpop.f32.mrb[63].mxu1 }
 0x17e   : > { %v3843_v62 = vpack.c.bf16 %v2268_v55, %v2268_v55  ;;  %v3931_v63 = vpack.c.bf16 %v2356_v56, %v2356_v56  ;;  %v2269_v0 = vmax.f32 %v1659_v57, 0.0  ;;  %v2357_v1 = vmax.f32 %v2011_v58, 0.0  ;;  %1870 = vmatmul.mubr.bf16.gmra.mrb[168].mxu0 %v4285_v49  ;;  %2222 = vmatmul.mubr.bf16.gmra.mrb[168].mxu1 %v4286_v50 }
 0x17f   : > { %3589 = vmatprep.mubr.msk.bf16.mxu0 %vm1229_vm0, %v4287_v53  ;;  %3633 = vmatprep.mubr.msk.bf16.mxu1 %vm1229_vm0, %v4289_v54 }
 0x180   : > { %3149 = vst.msk [vmem:[%s4554_s18 + $0x78] sm:$0xf] %vm3118_vm3, %v3843_v62  ;;  %3237 = vst.msk [vmem:[%s4554_s18 + $0x1d8] sm:$0xf] %vm3118_vm3, %v3931_v63  ;;  %v3844_v61 = vpack.c.bf16 %v2269_v0, %v2269_v0  ;;  %v3932_v2 = vpack.c.bf16 %v2357_v1, %v2357_v1 }
 0x181   : > { %v1663_v3 = vpop.f32.mrb[64].mxu0  ;;  %v2015_v4 = vpop.f32.mrb[64].mxu1 }
 0x182   : > { %3150 = vst.msk [vmem:[%s4554_s18 + $0x7c] sm:$0xf] %vm3118_vm3, %v3844_v61  ;;  %3238 = vst.msk [vmem:[%s4554_s18 + $0x1dc] sm:$0xf] %vm3118_vm3, %v3932_v2  ;;  %v1664_v6 = vadd.f32 %v4839_v5, %v1663_v3  ;;  %v2016_v7 = vadd.f32 %v4839_v5, %v2015_v4  ;;  %v1665_v8 = vpop.f32.mrb[65].mxu0  ;;  %v2017_v9 = vpop.f32.mrb[65].mxu1 }
 0x183   : > { %v1666_v12 = vpop.f32.mrb[66].mxu0  ;;  %v2018_v13 = vpop.f32.mrb[66].mxu1 }
 0x184   : > { %v2270_v14 = vmax.f32 %v1664_v6, 0.0  ;;  %v2358_v15 = vmax.f32 %v2016_v7, 0.0  ;;  %v1667_v16 = vadd.f32 %v4839_v5, %v1666_v12  ;;  %v2019_v17 = vadd.f32 %v4839_v5, %v2018_v13  ;;  %v1668_v18 = vpop.f32.mrb[67].mxu0  ;;  %v2020_v19 = vpop.f32.mrb[67].mxu1 }
 0x186   : > { %v3845_v20 = vpack.c.bf16 %v2270_v14, %v2270_v14  ;;  %v3933_v21 = vpack.c.bf16 %v2358_v15, %v2358_v15  ;;  %v2271_v22 = vmax.f32 %v1667_v16, 0.0  ;;  %v2359_v23 = vmax.f32 %v2019_v17, 0.0  ;;  %1878 = vmatmul.mubr.bf16.gmra.mrb[172].mxu0 %v4291_v10  ;;  %2230 = vmatmul.mubr.bf16.gmra.mrb[172].mxu1 %v4292_v11 }
 0x188   : > { %3151 = vst.msk [vmem:[%s4554_s18 + $0x80] sm:$0xf] %vm3118_vm3, %v3845_v20  ;;  %3239 = vst.msk [vmem:[%s4554_s18 + $0x1e0] sm:$0xf] %vm3118_vm3, %v3933_v21  ;;  %v3846_v24 = vpack.c.bf16 %v2271_v22, %v2271_v22  ;;  %v3934_v25 = vpack.c.bf16 %v2359_v23, %v2359_v23 }
 0x189   : > { %v1671_v26 = vpop.f32.mrb[68].mxu0  ;;  %v2023_v27 = vpop.f32.mrb[68].mxu1 }
 0x18a   : > { %3152 = vst.msk [vmem:[%s4554_s18 + $0x84] sm:$0xf] %vm3118_vm3, %v3846_v24  ;;  %3240 = vst.msk [vmem:[%s4554_s18 + $0x1e4] sm:$0xf] %vm3118_vm3, %v3934_v25  ;;  %v1672_v28 = vadd.f32 %v4839_v5, %v1671_v26  ;;  %v2024_v29 = vadd.f32 %v4839_v5, %v2023_v27  ;;  %v1673_v30 = vpop.f32.mrb[69].mxu0  ;;  %v2025_v31 = vpop.f32.mrb[69].mxu1 }
 0x18b   : > { %v1674_v32 = vpop.f32.mrb[70].mxu0  ;;  %v2026_v33 = vpop.f32.mrb[70].mxu1 }
 0x18c   : > { %v2272_v34 = vmax.f32 %v1672_v28, 0.0  ;;  %v2360_v35 = vmax.f32 %v2024_v29, 0.0  ;;  %v1675_v36 = vadd.f32 %v4839_v5, %v1674_v32  ;;  %v2027_v37 = vadd.f32 %v4839_v5, %v2026_v33  ;;  %v1676_v38 = vpop.f32.mrb[71].mxu0  ;;  %v2028_v39 = vpop.f32.mrb[71].mxu1 }
 0x18e   : > { %v3847_v40 = vpack.c.bf16 %v2272_v34, %v2272_v34  ;;  %v3935_v41 = vpack.c.bf16 %v2360_v35, %v2360_v35  ;;  %v2273_v42 = vmax.f32 %v1675_v36, 0.0  ;;  %v2361_v43 = vmax.f32 %v2027_v37, 0.0 }
 0x190   : > { %3153 = vst.msk [vmem:[%s4554_s18 + $0x88] sm:$0xf] %vm3118_vm3, %v3847_v40  ;;  %3241 = vst.msk [vmem:[%s4554_s18 + $0x1e8] sm:$0xf] %vm3118_vm3, %v3935_v41  ;;  %v3848_v44 = vpack.c.bf16 %v2273_v42, %v2273_v42  ;;  %v3936_v45 = vpack.c.bf16 %v2361_v43, %v2361_v43 }
 0x191   : > { %v1679_v46 = vpop.f32.mrb[72].mxu0  ;;  %v2031_v47 = vpop.f32.mrb[72].mxu1 }
 0x192   : > { %3154 = vst.msk [vmem:[%s4554_s18 + $0x8c] sm:$0xf] %vm3118_vm3, %v3848_v44  ;;  %3242 = vst.msk [vmem:[%s4554_s18 + $0x1ec] sm:$0xf] %vm3118_vm3, %v3936_v45  ;;  %v1680_v48 = vadd.f32 %v4839_v5, %v1679_v46  ;;  %v2032_v49 = vadd.f32 %v4839_v5, %v2031_v47  ;;  %v1681_v50 = vpop.f32.mrb[73].mxu0  ;;  %v2033_v51 = vpop.f32.mrb[73].mxu1 }
 0x193   : > { %v1682_v52 = vpop.f32.mrb[74].mxu0  ;;  %v2034_v53 = vpop.f32.mrb[74].mxu1 }
 0x194   : > { %v2274_v54 = vmax.f32 %v1680_v48, 0.0  ;;  %v2362_v55 = vmax.f32 %v2032_v49, 0.0  ;;  %v1683_v56 = vadd.f32 %v4839_v5, %v1682_v52  ;;  %v2035_v57 = vadd.f32 %v4839_v5, %v2034_v53  ;;  %v1684_v58 = vpop.f32.mrb[75].mxu0  ;;  %v2036_v59 = vpop.f32.mrb[75].mxu1 }
 0x196   : > { %v3849_v60 = vpack.c.bf16 %v2274_v54, %v2274_v54  ;;  %v3937_v62 = vpack.c.bf16 %v2362_v55, %v2362_v55  ;;  %v2275_v63 = vmax.f32 %v1683_v56, 0.0  ;;  %v2363_v0 = vmax.f32 %v2035_v57, 0.0 }
 0x198   : > { %3155 = vst.msk [vmem:[%s4554_s18 + $0x90] sm:$0xf] %vm3118_vm3, %v3849_v60  ;;  %3243 = vst.msk [vmem:[%s4554_s18 + $0x1f0] sm:$0xf] %vm3118_vm3, %v3937_v62  ;;  %v3850_v1 = vpack.c.bf16 %v2275_v63, %v2275_v63  ;;  %v3938_v61 = vpack.c.bf16 %v2363_v0, %v2363_v0 }
 0x199   : > { %v1687_v2 = vpop.f32.mrb[76].mxu0  ;;  %v2039_v3 = vpop.f32.mrb[76].mxu1 }
 0x19a   : > { %3156 = vst.msk [vmem:[%s4554_s18 + $0x94] sm:$0xf] %vm3118_vm3, %v3850_v1  ;;  %3244 = vst.msk [vmem:[%s4554_s18 + $0x1f4] sm:$0xf] %vm3118_vm3, %v3938_v61  ;;  %v1688_v4 = vadd.f32 %v4839_v5, %v1687_v2  ;;  %v2040_v6 = vadd.f32 %v4839_v5, %v2039_v3  ;;  %v1689_v7 = vpop.f32.mrb[77].mxu0  ;;  %v2041_v8 = vpop.f32.mrb[77].mxu1 }
 0x19b   : > { %v1690_v9 = vpop.f32.mrb[78].mxu0  ;;  %v2042_v10 = vpop.f32.mrb[78].mxu1 }
 0x19c   : > { %v2276_v11 = vmax.f32 %v1688_v4, 0.0  ;;  %v2364_v12 = vmax.f32 %v2040_v6, 0.0  ;;  %v1691_v13 = vadd.f32 %v4839_v5, %v1690_v9  ;;  %v2043_v14 = vadd.f32 %v4839_v5, %v2042_v10  ;;  %v1692_v15 = vpop.f32.mrb[79].mxu0  ;;  %v2044_v16 = vpop.f32.mrb[79].mxu1 }
 0x19e   : > { %v3851_v17 = vpack.c.bf16 %v2276_v11, %v2276_v11  ;;  %v3939_v18 = vpack.c.bf16 %v2364_v12, %v2364_v12  ;;  %v2277_v19 = vmax.f32 %v1691_v13, 0.0  ;;  %v2365_v20 = vmax.f32 %v2043_v14, 0.0 }
 0x1a0   : > { %3157 = vst.msk [vmem:[%s4554_s18 + $0x98] sm:$0xf] %vm3118_vm3, %v3851_v17  ;;  %3245 = vst.msk [vmem:[%s4554_s18 + $0x1f8] sm:$0xf] %vm3118_vm3, %v3939_v18  ;;  %v3852_v21 = vpack.c.bf16 %v2277_v19, %v2277_v19  ;;  %v3940_v22 = vpack.c.bf16 %v2365_v20, %v2365_v20 }
 0x1a1   : > { %v1695_v23 = vpop.f32.mrb[80].mxu0  ;;  %v2047_v24 = vpop.f32.mrb[80].mxu1 }
 0x1a2   : > { %3158 = vst.msk [vmem:[%s4554_s18 + $0x9c] sm:$0xf] %vm3118_vm3, %v3852_v21  ;;  %3246 = vst.msk [vmem:[%s4554_s18 + $0x1fc] sm:$0xf] %vm3118_vm3, %v3940_v22  ;;  %v1696_v25 = vadd.f32 %v4839_v5, %v1695_v23  ;;  %v2048_v26 = vadd.f32 %v4839_v5, %v2047_v24  ;;  %v1697_v27 = vpop.f32.mrb[81].mxu0  ;;  %v2049_v28 = vpop.f32.mrb[81].mxu1 }
 0x1a3   : > { %v1698_v29 = vpop.f32.mrb[82].mxu0  ;;  %v2050_v30 = vpop.f32.mrb[82].mxu1 }
 0x1a4   : > { %v2278_v31 = vmax.f32 %v1696_v25, 0.0  ;;  %v2366_v32 = vmax.f32 %v2048_v26, 0.0  ;;  %v1699_v33 = vadd.f32 %v4839_v5, %v1698_v29  ;;  %v2051_v34 = vadd.f32 %v4839_v5, %v2050_v30  ;;  %v1700_v35 = vpop.f32.mrb[83].mxu0  ;;  %v2052_v36 = vpop.f32.mrb[83].mxu1 }
 0x1a6   : > { %v3853_v37 = vpack.c.bf16 %v2278_v31, %v2278_v31  ;;  %v3941_v38 = vpack.c.bf16 %v2366_v32, %v2366_v32  ;;  %v2279_v39 = vmax.f32 %v1699_v33, 0.0  ;;  %v2367_v40 = vmax.f32 %v2051_v34, 0.0 }
 0x1a8   : > { %3159 = vst.msk [vmem:[%s4554_s18 + $0xa0] sm:$0xf] %vm3118_vm3, %v3853_v37  ;;  %3247 = vst.msk [vmem:[%s4554_s18 + $0x200] sm:$0xf] %vm3118_vm3, %v3941_v38  ;;  %v3854_v41 = vpack.c.bf16 %v2279_v39, %v2279_v39  ;;  %v3942_v42 = vpack.c.bf16 %v2367_v40, %v2367_v40 }
 0x1a9   : > { %v1703_v43 = vpop.f32.mrb[84].mxu0  ;;  %v2055_v44 = vpop.f32.mrb[84].mxu1 }
 0x1aa   : > { %3160 = vst.msk [vmem:[%s4554_s18 + $0xa4] sm:$0xf] %vm3118_vm3, %v3854_v41  ;;  %3248 = vst.msk [vmem:[%s4554_s18 + $0x204] sm:$0xf] %vm3118_vm3, %v3942_v42  ;;  %v1704_v45 = vadd.f32 %v4839_v5, %v1703_v43  ;;  %v2056_v46 = vadd.f32 %v4839_v5, %v2055_v44  ;;  %v1705_v47 = vpop.f32.mrb[85].mxu0  ;;  %v2057_v48 = vpop.f32.mrb[85].mxu1 }
 0x1ab   : > { %v1706_v49 = vpop.f32.mrb[86].mxu0  ;;  %v2058_v50 = vpop.f32.mrb[86].mxu1 }
 0x1ac   : > { %v2280_v51 = vmax.f32 %v1704_v45, 0.0  ;;  %v2368_v52 = vmax.f32 %v2056_v46, 0.0  ;;  %v1707_v53 = vadd.f32 %v4839_v5, %v1706_v49  ;;  %v2059_v54 = vadd.f32 %v4839_v5, %v2058_v50  ;;  %v1708_v55 = vpop.f32.mrb[87].mxu0  ;;  %v2060_v56 = vpop.f32.mrb[87].mxu1 }
 0x1ae   : > { %v3855_v57 = vpack.c.bf16 %v2280_v51, %v2280_v51  ;;  %v3943_v58 = vpack.c.bf16 %v2368_v52, %v2368_v52  ;;  %v2281_v59 = vmax.f32 %v1707_v53, 0.0  ;;  %v2369_v60 = vmax.f32 %v2059_v54, 0.0 }
 0x1b0   : > { %3161 = vst.msk [vmem:[%s4554_s18 + $0xa8] sm:$0xf] %vm3118_vm3, %v3855_v57  ;;  %3249 = vst.msk [vmem:[%s4554_s18 + $0x208] sm:$0xf] %vm3118_vm3, %v3943_v58  ;;  %v3856_v62 = vpack.c.bf16 %v2281_v59, %v2281_v59  ;;  %v3944_v63 = vpack.c.bf16 %v2369_v60, %v2369_v60 }
 0x1b1   : > { %v1711_v0 = vpop.f32.mrb[88].mxu0  ;;  %v2063_v1 = vpop.f32.mrb[88].mxu1 }
 0x1b2   : > { %3162 = vst.msk [vmem:[%s4554_s18 + $0xac] sm:$0xf] %vm3118_vm3, %v3856_v62  ;;  %3250 = vst.msk [vmem:[%s4554_s18 + $0x20c] sm:$0xf] %vm3118_vm3, %v3944_v63  ;;  %v1712_v61 = vadd.f32 %v4839_v5, %v1711_v0  ;;  %v2064_v2 = vadd.f32 %v4839_v5, %v2063_v1  ;;  %v1713_v3 = vpop.f32.mrb[89].mxu0  ;;  %v2065_v4 = vpop.f32.mrb[89].mxu1 }
 0x1b3   : > { %v1714_v6 = vpop.f32.mrb[90].mxu0  ;;  %v2066_v7 = vpop.f32.mrb[90].mxu1 }
 0x1b4   : > { %v2282_v8 = vmax.f32 %v1712_v61, 0.0  ;;  %v2370_v9 = vmax.f32 %v2064_v2, 0.0  ;;  %v1715_v10 = vadd.f32 %v4839_v5, %v1714_v6  ;;  %v2067_v11 = vadd.f32 %v4839_v5, %v2066_v7  ;;  %v1716_v12 = vpop.f32.mrb[91].mxu0  ;;  %v2068_v13 = vpop.f32.mrb[91].mxu1 }
 0x1b6   : > { %v3857_v14 = vpack.c.bf16 %v2282_v8, %v2282_v8  ;;  %v3945_v15 = vpack.c.bf16 %v2370_v9, %v2370_v9  ;;  %v2283_v16 = vmax.f32 %v1715_v10, 0.0  ;;  %v2371_v17 = vmax.f32 %v2067_v11, 0.0 }
 0x1b8   : > { %3163 = vst.msk [vmem:[%s4554_s18 + $0xb0] sm:$0xf] %vm3118_vm3, %v3857_v14  ;;  %3251 = vst.msk [vmem:[%s4554_s18 + $0x210] sm:$0xf] %vm3118_vm3, %v3945_v15  ;;  %v3858_v18 = vpack.c.bf16 %v2283_v16, %v2283_v16  ;;  %v3946_v19 = vpack.c.bf16 %v2371_v17, %v2371_v17 }
 0x1b9   : > { %v1719_v20 = vpop.f32.mrb[92].mxu0  ;;  %v2071_v21 = vpop.f32.mrb[92].mxu1 }
 0x1ba   : > { %3164 = vst.msk [vmem:[%s4554_s18 + $0xb4] sm:$0xf] %vm3118_vm3, %v3858_v18  ;;  %3252 = vst.msk [vmem:[%s4554_s18 + $0x214] sm:$0xf] %vm3118_vm3, %v3946_v19  ;;  %v1720_v22 = vadd.f32 %v4839_v5, %v1719_v20  ;;  %v2072_v23 = vadd.f32 %v4839_v5, %v2071_v21  ;;  %v1721_v24 = vpop.f32.mrb[93].mxu0  ;;  %v2073_v25 = vpop.f32.mrb[93].mxu1 }
 0x1bb   : > { %v1722_v26 = vpop.f32.mrb[94].mxu0  ;;  %v2074_v27 = vpop.f32.mrb[94].mxu1 }
 0x1bc   : > { %v2284_v28 = vmax.f32 %v1720_v22, 0.0  ;;  %v2372_v29 = vmax.f32 %v2072_v23, 0.0  ;;  %v1723_v30 = vadd.f32 %v4839_v5, %v1722_v26  ;;  %v2075_v31 = vadd.f32 %v4839_v5, %v2074_v27  ;;  %v1724_v32 = vpop.f32.mrb[95].mxu0  ;;  %v2076_v33 = vpop.f32.mrb[95].mxu1 }
 0x1be   : > { %v3859_v34 = vpack.c.bf16 %v2284_v28, %v2284_v28  ;;  %v3947_v35 = vpack.c.bf16 %v2372_v29, %v2372_v29  ;;  %v2285_v36 = vmax.f32 %v1723_v30, 0.0  ;;  %v2373_v37 = vmax.f32 %v2075_v31, 0.0 }
 0x1c0   : > { %3165 = vst.msk [vmem:[%s4554_s18 + $0xb8] sm:$0xf] %vm3118_vm3, %v3859_v34  ;;  %3253 = vst.msk [vmem:[%s4554_s18 + $0x218] sm:$0xf] %vm3118_vm3, %v3947_v35  ;;  %v3860_v38 = vpack.c.bf16 %v2285_v36, %v2285_v36  ;;  %v3948_v39 = vpack.c.bf16 %v2373_v37, %v2373_v37 }
 0x1c1   : > { %v1727_v40 = vpop.f32.mrb[96].mxu0  ;;  %v2079_v41 = vpop.f32.mrb[96].mxu1 }
 0x1c2   : > { %3166 = vst.msk [vmem:[%s4554_s18 + $0xbc] sm:$0xf] %vm3118_vm3, %v3860_v38  ;;  %3254 = vst.msk [vmem:[%s4554_s18 + $0x21c] sm:$0xf] %vm3118_vm3, %v3948_v39  ;;  %v1728_v42 = vadd.f32 %v4839_v5, %v1727_v40  ;;  %v2080_v43 = vadd.f32 %v4839_v5, %v2079_v41  ;;  %v1729_v44 = vpop.f32.mrb[97].mxu0  ;;  %v2081_v45 = vpop.f32.mrb[97].mxu1 }
 0x1c3   : > { %v1730_v46 = vpop.f32.mrb[98].mxu0  ;;  %v2082_v47 = vpop.f32.mrb[98].mxu1 }
 0x1c4   : > { %v2286_v48 = vmax.f32 %v1728_v42, 0.0  ;;  %v2374_v49 = vmax.f32 %v2080_v43, 0.0  ;;  %v1731_v50 = vadd.f32 %v4839_v5, %v1730_v46  ;;  %v2083_v51 = vadd.f32 %v4839_v5, %v2082_v47  ;;  %v1732_v52 = vpop.f32.mrb[99].mxu0  ;;  %v2084_v53 = vpop.f32.mrb[99].mxu1 }
 0x1c6   : > { %v3861_v54 = vpack.c.bf16 %v2286_v48, %v2286_v48  ;;  %v3949_v55 = vpack.c.bf16 %v2374_v49, %v2374_v49  ;;  %v2287_v56 = vmax.f32 %v1731_v50, 0.0  ;;  %v2375_v57 = vmax.f32 %v2083_v51, 0.0 }
 0x1c8   : > { %3167 = vst.msk [vmem:[%s4554_s18 + $0xc0] sm:$0xf] %vm3118_vm3, %v3861_v54  ;;  %3255 = vst.msk [vmem:[%s4554_s18 + $0x220] sm:$0xf] %vm3118_vm3, %v3949_v55  ;;  %v3862_v58 = vpack.c.bf16 %v2287_v56, %v2287_v56  ;;  %v3950_v59 = vpack.c.bf16 %v2375_v57, %v2375_v57 }
 0x1c9   : > { %v1735_v60 = vpop.f32.mrb[100].mxu0  ;;  %v2087_v62 = vpop.f32.mrb[100].mxu1 }
 0x1ca   : > { %3168 = vst.msk [vmem:[%s4554_s18 + $0xc4] sm:$0xf] %vm3118_vm3, %v3862_v58  ;;  %3256 = vst.msk [vmem:[%s4554_s18 + $0x224] sm:$0xf] %vm3118_vm3, %v3950_v59  ;;  %v1736_v63 = vadd.f32 %v4839_v5, %v1735_v60  ;;  %v2088_v0 = vadd.f32 %v4839_v5, %v2087_v62  ;;  %v1737_v1 = vpop.f32.mrb[101].mxu0  ;;  %v2089_v61 = vpop.f32.mrb[101].mxu1 }
 0x1cb   : > { %v1738_v2 = vpop.f32.mrb[102].mxu0  ;;  %v2090_v3 = vpop.f32.mrb[102].mxu1 }
 0x1cc   : > { %v2288_v4 = vmax.f32 %v1736_v63, 0.0  ;;  %v2376_v6 = vmax.f32 %v2088_v0, 0.0  ;;  %v1739_v7 = vadd.f32 %v4839_v5, %v1738_v2  ;;  %v2091_v8 = vadd.f32 %v4839_v5, %v2090_v3  ;;  %v1740_v9 = vpop.f32.mrb[103].mxu0  ;;  %v2092_v10 = vpop.f32.mrb[103].mxu1 }
 0x1ce   : > { %v3863_v11 = vpack.c.bf16 %v2288_v4, %v2288_v4  ;;  %v3951_v12 = vpack.c.bf16 %v2376_v6, %v2376_v6  ;;  %v2289_v13 = vmax.f32 %v1739_v7, 0.0  ;;  %v2377_v14 = vmax.f32 %v2091_v8, 0.0 }
 0x1d0   : > { %3169 = vst.msk [vmem:[%s4554_s18 + $0xc8] sm:$0xf] %vm3118_vm3, %v3863_v11  ;;  %3257 = vst.msk [vmem:[%s4554_s18 + $0x228] sm:$0xf] %vm3118_vm3, %v3951_v12  ;;  %v3864_v15 = vpack.c.bf16 %v2289_v13, %v2289_v13  ;;  %v3952_v16 = vpack.c.bf16 %v2377_v14, %v2377_v14 }
 0x1d1   : > { %v1743_v17 = vpop.f32.mrb[104].mxu0  ;;  %v2095_v18 = vpop.f32.mrb[104].mxu1 }
 0x1d2   : > { %3170 = vst.msk [vmem:[%s4554_s18 + $0xcc] sm:$0xf] %vm3118_vm3, %v3864_v15  ;;  %3258 = vst.msk [vmem:[%s4554_s18 + $0x22c] sm:$0xf] %vm3118_vm3, %v3952_v16  ;;  %v1744_v19 = vadd.f32 %v4839_v5, %v1743_v17  ;;  %v2096_v20 = vadd.f32 %v4839_v5, %v2095_v18  ;;  %v1745_v21 = vpop.f32.mrb[105].mxu0  ;;  %v2097_v22 = vpop.f32.mrb[105].mxu1 }
 0x1d3   : > { %v1746_v23 = vpop.f32.mrb[106].mxu0  ;;  %v2098_v24 = vpop.f32.mrb[106].mxu1 }
 0x1d4   : > { %v2290_v25 = vmax.f32 %v1744_v19, 0.0  ;;  %v2378_v26 = vmax.f32 %v2096_v20, 0.0  ;;  %v1747_v27 = vadd.f32 %v4839_v5, %v1746_v23  ;;  %v2099_v28 = vadd.f32 %v4839_v5, %v2098_v24  ;;  %v1748_v29 = vpop.f32.mrb[107].mxu0  ;;  %v2100_v30 = vpop.f32.mrb[107].mxu1 }
 0x1d6   : > { %v3865_v31 = vpack.c.bf16 %v2290_v25, %v2290_v25  ;;  %v3953_v32 = vpack.c.bf16 %v2378_v26, %v2378_v26  ;;  %v2291_v33 = vmax.f32 %v1747_v27, 0.0  ;;  %v2379_v34 = vmax.f32 %v2099_v28, 0.0 }
 0x1d8   : > { %3171 = vst.msk [vmem:[%s4554_s18 + $0xd0] sm:$0xf] %vm3118_vm3, %v3865_v31  ;;  %3259 = vst.msk [vmem:[%s4554_s18 + $0x230] sm:$0xf] %vm3118_vm3, %v3953_v32  ;;  %v3866_v35 = vpack.c.bf16 %v2291_v33, %v2291_v33  ;;  %v3954_v36 = vpack.c.bf16 %v2379_v34, %v2379_v34 }
 0x1d9   : > { %v1751_v37 = vpop.f32.mrb[108].mxu0  ;;  %v2103_v38 = vpop.f32.mrb[108].mxu1 }
 0x1da   : > { %3172 = vst.msk [vmem:[%s4554_s18 + $0xd4] sm:$0xf] %vm3118_vm3, %v3866_v35  ;;  %3260 = vst.msk [vmem:[%s4554_s18 + $0x234] sm:$0xf] %vm3118_vm3, %v3954_v36  ;;  %v1752_v39 = vadd.f32 %v4839_v5, %v1751_v37  ;;  %v2104_v40 = vadd.f32 %v4839_v5, %v2103_v38  ;;  %v1753_v41 = vpop.f32.mrb[109].mxu0  ;;  %v2105_v42 = vpop.f32.mrb[109].mxu1 }
 0x1db   : > { %v1754_v43 = vpop.f32.mrb[110].mxu0  ;;  %v2106_v44 = vpop.f32.mrb[110].mxu1 }
 0x1dc   : > { %v2292_v45 = vmax.f32 %v1752_v39, 0.0  ;;  %v2380_v46 = vmax.f32 %v2104_v40, 0.0  ;;  %v1755_v47 = vadd.f32 %v4839_v5, %v1754_v43  ;;  %v2107_v48 = vadd.f32 %v4839_v5, %v2106_v44  ;;  %v1756_v49 = vpop.f32.mrb[111].mxu0  ;;  %v2108_v50 = vpop.f32.mrb[111].mxu1 }
 0x1de   : > { %v3867_v51 = vpack.c.bf16 %v2292_v45, %v2292_v45  ;;  %v3955_v52 = vpack.c.bf16 %v2380_v46, %v2380_v46  ;;  %v2293_v53 = vmax.f32 %v1755_v47, 0.0  ;;  %v2381_v54 = vmax.f32 %v2107_v48, 0.0 }
 0x1e0   : > { %3173 = vst.msk [vmem:[%s4554_s18 + $0xd8] sm:$0xf] %vm3118_vm3, %v3867_v51  ;;  %3261 = vst.msk [vmem:[%s4554_s18 + $0x238] sm:$0xf] %vm3118_vm3, %v3955_v52  ;;  %v3868_v55 = vpack.c.bf16 %v2293_v53, %v2293_v53  ;;  %v3956_v56 = vpack.c.bf16 %v2381_v54, %v2381_v54 }
 0x1e1   : > { %v1759_v57 = vpop.f32.mrb[112].mxu0  ;;  %v2111_v58 = vpop.f32.mrb[112].mxu1 }
 0x1e2   : > { %3174 = vst.msk [vmem:[%s4554_s18 + $0xdc] sm:$0xf] %vm3118_vm3, %v3868_v55  ;;  %3262 = vst.msk [vmem:[%s4554_s18 + $0x23c] sm:$0xf] %vm3118_vm3, %v3956_v56  ;;  %v1760_v59 = vadd.f32 %v4839_v5, %v1759_v57  ;;  %v2112_v60 = vadd.f32 %v4839_v5, %v2111_v58  ;;  %v1761_v62 = vpop.f32.mrb[113].mxu0  ;;  %v2113_v63 = vpop.f32.mrb[113].mxu1 }
 0x1e3   : > { %v1762_v0 = vpop.f32.mrb[114].mxu0  ;;  %v2114_v1 = vpop.f32.mrb[114].mxu1 }
 0x1e4   : > { %v2294_v61 = vmax.f32 %v1760_v59, 0.0  ;;  %v2382_v2 = vmax.f32 %v2112_v60, 0.0  ;;  %v1763_v3 = vadd.f32 %v4839_v5, %v1762_v0  ;;  %v2115_v4 = vadd.f32 %v4839_v5, %v2114_v1  ;;  %v1764_v6 = vpop.f32.mrb[115].mxu0  ;;  %v2116_v7 = vpop.f32.mrb[115].mxu1 }
 0x1e6   : > { %v3869_v8 = vpack.c.bf16 %v2294_v61, %v2294_v61  ;;  %v3957_v9 = vpack.c.bf16 %v2382_v2, %v2382_v2  ;;  %v2295_v10 = vmax.f32 %v1763_v3, 0.0  ;;  %v2383_v11 = vmax.f32 %v2115_v4, 0.0 }
 0x1e8   : > { %3175 = vst.msk [vmem:[%s4554_s18 + $0xe0] sm:$0xf] %vm3118_vm3, %v3869_v8  ;;  %3263 = vst.msk [vmem:[%s4554_s18 + $0x240] sm:$0xf] %vm3118_vm3, %v3957_v9  ;;  %v3870_v12 = vpack.c.bf16 %v2295_v10, %v2295_v10  ;;  %v3958_v13 = vpack.c.bf16 %v2383_v11, %v2383_v11 }
 0x1e9   : > { %v1767_v14 = vpop.f32.mrb[116].mxu0  ;;  %v2119_v15 = vpop.f32.mrb[116].mxu1 }
 0x1ea   : > { %3176 = vst.msk [vmem:[%s4554_s18 + $0xe4] sm:$0xf] %vm3118_vm3, %v3870_v12  ;;  %3264 = vst.msk [vmem:[%s4554_s18 + $0x244] sm:$0xf] %vm3118_vm3, %v3958_v13  ;;  %v1768_v16 = vadd.f32 %v4839_v5, %v1767_v14  ;;  %v2120_v17 = vadd.f32 %v4839_v5, %v2119_v15  ;;  %v1769_v18 = vpop.f32.mrb[117].mxu0  ;;  %v2121_v19 = vpop.f32.mrb[117].mxu1 }
 0x1eb   : > { %v1770_v20 = vpop.f32.mrb[118].mxu0  ;;  %v2122_v21 = vpop.f32.mrb[118].mxu1 }
 0x1ec   : > { %v2296_v22 = vmax.f32 %v1768_v16, 0.0  ;;  %v2384_v23 = vmax.f32 %v2120_v17, 0.0  ;;  %v1771_v24 = vadd.f32 %v4839_v5, %v1770_v20  ;;  %v2123_v25 = vadd.f32 %v4839_v5, %v2122_v21  ;;  %v1772_v26 = vpop.f32.mrb[119].mxu0  ;;  %v2124_v27 = vpop.f32.mrb[119].mxu1 }
 0x1ee   : > { %v3871_v28 = vpack.c.bf16 %v2296_v22, %v2296_v22  ;;  %v3959_v29 = vpack.c.bf16 %v2384_v23, %v2384_v23  ;;  %v2297_v30 = vmax.f32 %v1771_v24, 0.0  ;;  %v2385_v31 = vmax.f32 %v2123_v25, 0.0 }
 0x1f0   : > { %3177 = vst.msk [vmem:[%s4554_s18 + $0xe8] sm:$0xf] %vm3118_vm3, %v3871_v28  ;;  %3265 = vst.msk [vmem:[%s4554_s18 + $0x248] sm:$0xf] %vm3118_vm3, %v3959_v29  ;;  %v3872_v32 = vpack.c.bf16 %v2297_v30, %v2297_v30  ;;  %v3960_v33 = vpack.c.bf16 %v2385_v31, %v2385_v31 }
 0x1f1   : > { %v1775_v34 = vpop.f32.mrb[120].mxu0  ;;  %v2127_v35 = vpop.f32.mrb[120].mxu1 }
 0x1f2   : > { %3178 = vst.msk [vmem:[%s4554_s18 + $0xec] sm:$0xf] %vm3118_vm3, %v3872_v32  ;;  %3266 = vst.msk [vmem:[%s4554_s18 + $0x24c] sm:$0xf] %vm3118_vm3, %v3960_v33  ;;  %v1776_v36 = vadd.f32 %v4839_v5, %v1775_v34  ;;  %v2128_v37 = vadd.f32 %v4839_v5, %v2127_v35  ;;  %v1777_v38 = vpop.f32.mrb[121].mxu0  ;;  %v2129_v39 = vpop.f32.mrb[121].mxu1 }
 0x1f3   : > { %v1778_v40 = vpop.f32.mrb[122].mxu0  ;;  %v2130_v41 = vpop.f32.mrb[122].mxu1 }
 0x1f4   : > { %v2298_v42 = vmax.f32 %v1776_v36, 0.0  ;;  %v2386_v43 = vmax.f32 %v2128_v37, 0.0  ;;  %v1779_v44 = vadd.f32 %v4839_v5, %v1778_v40  ;;  %v2131_v45 = vadd.f32 %v4839_v5, %v2130_v41  ;;  %v1780_v46 = vpop.f32.mrb[123].mxu0  ;;  %v2132_v47 = vpop.f32.mrb[123].mxu1 }
 0x1f6   : > { %v3873_v48 = vpack.c.bf16 %v2298_v42, %v2298_v42  ;;  %v3961_v49 = vpack.c.bf16 %v2386_v43, %v2386_v43  ;;  %v2299_v50 = vmax.f32 %v1779_v44, 0.0  ;;  %v2387_v51 = vmax.f32 %v2131_v45, 0.0 }
 0x1f8   : > { %3179 = vst.msk [vmem:[%s4554_s18 + $0xf0] sm:$0xf] %vm3118_vm3, %v3873_v48  ;;  %3267 = vst.msk [vmem:[%s4554_s18 + $0x250] sm:$0xf] %vm3118_vm3, %v3961_v49  ;;  %v3874_v52 = vpack.c.bf16 %v2299_v50, %v2299_v50  ;;  %v3962_v53 = vpack.c.bf16 %v2387_v51, %v2387_v51 }
 0x1f9   : > { %v1783_v54 = vpop.f32.mrb[124].mxu0  ;;  %v2135_v55 = vpop.f32.mrb[124].mxu1 }
 0x1fa   : > { %3180 = vst.msk [vmem:[%s4554_s18 + $0xf4] sm:$0xf] %vm3118_vm3, %v3874_v52  ;;  %3268 = vst.msk [vmem:[%s4554_s18 + $0x254] sm:$0xf] %vm3118_vm3, %v3962_v53  ;;  %v1784_v56 = vadd.f32 %v4839_v5, %v1783_v54  ;;  %v2136_v57 = vadd.f32 %v4839_v5, %v2135_v55  ;;  %v1785_v58 = vpop.f32.mrb[125].mxu0  ;;  %v2137_v59 = vpop.f32.mrb[125].mxu1 }
 0x1fb   : > { %v1786_v60 = vpop.f32.mrb[126].mxu0  ;;  %v2138_v62 = vpop.f32.mrb[126].mxu1 }
 0x1fc   : > { %v2300_v63 = vmax.f32 %v1784_v56, 0.0  ;;  %v2388_v0 = vmax.f32 %v2136_v57, 0.0  ;;  %v1787_v1 = vadd.f32 %v4839_v5, %v1786_v60  ;;  %v2139_v61 = vadd.f32 %v4839_v5, %v2138_v62  ;;  %v1788_v2 = vpop.f32.mrb[127].mxu0  ;;  %v2140_v3 = vpop.f32.mrb[127].mxu1 }
 0x1fe   : > { %v3875_v4 = vpack.c.bf16 %v2300_v63, %v2300_v63  ;;  %v3963_v6 = vpack.c.bf16 %v2388_v0, %v2388_v0  ;;  %v2301_v7 = vmax.f32 %v1787_v1, 0.0  ;;  %v2389_v8 = vmax.f32 %v2139_v61, 0.0 }
 0x200   : > { %3181 = vst.msk [vmem:[%s4554_s18 + $0xf8] sm:$0xf] %vm3118_vm3, %v3875_v4  ;;  %3269 = vst.msk [vmem:[%s4554_s18 + $0x258] sm:$0xf] %vm3118_vm3, %v3963_v6  ;;  %v3876_v9 = vpack.c.bf16 %v2301_v7, %v2301_v7  ;;  %v3964_v10 = vpack.c.bf16 %v2389_v8, %v2389_v8 }
 0x201   : > { %v1791_v11 = vpop.f32.mrb[128].mxu0  ;;  %v2143_v12 = vpop.f32.mrb[128].mxu1 }
 0x202   : > { %3182 = vst.msk [vmem:[%s4554_s18 + $0xfc] sm:$0xf] %vm3118_vm3, %v3876_v9  ;;  %3270 = vst.msk [vmem:[%s4554_s18 + $0x25c] sm:$0xf] %vm3118_vm3, %v3964_v10  ;;  %v1792_v13 = vadd.f32 %v4839_v5, %v1791_v11  ;;  %v2144_v14 = vadd.f32 %v4839_v5, %v2143_v12  ;;  %v1793_v15 = vpop.f32.mrb[129].mxu0  ;;  %v2145_v16 = vpop.f32.mrb[129].mxu1 }
 0x203   : > { %v1794_v17 = vpop.f32.mrb[130].mxu0  ;;  %v2146_v18 = vpop.f32.mrb[130].mxu1 }
 0x204   : > { %v2302_v19 = vmax.f32 %v1792_v13, 0.0  ;;  %v2390_v20 = vmax.f32 %v2144_v14, 0.0  ;;  %v1795_v21 = vadd.f32 %v4839_v5, %v1794_v17  ;;  %v2147_v22 = vadd.f32 %v4839_v5, %v2146_v18  ;;  %v1796_v23 = vpop.f32.mrb[131].mxu0  ;;  %v2148_v24 = vpop.f32.mrb[131].mxu1 }
 0x206   : > { %v3877_v25 = vpack.c.bf16 %v2302_v19, %v2302_v19  ;;  %v3965_v26 = vpack.c.bf16 %v2390_v20, %v2390_v20  ;;  %v2303_v27 = vmax.f32 %v1795_v21, 0.0  ;;  %v2391_v28 = vmax.f32 %v2147_v22, 0.0 }
 0x208   : > { %3183 = vst.msk [vmem:[%s4554_s18 + $0x100] sm:$0xf] %vm3118_vm3, %v3877_v25  ;;  %3271 = vst.msk [vmem:[%s4554_s18 + $0x260] sm:$0xf] %vm3118_vm3, %v3965_v26  ;;  %v3878_v29 = vpack.c.bf16 %v2303_v27, %v2303_v27  ;;  %v3966_v30 = vpack.c.bf16 %v2391_v28, %v2391_v28 }
 0x209   : > { %v1799_v31 = vpop.f32.mrb[132].mxu0  ;;  %v2151_v32 = vpop.f32.mrb[132].mxu1 }
 0x20a   : > { %3184 = vst.msk [vmem:[%s4554_s18 + $0x104] sm:$0xf] %vm3118_vm3, %v3878_v29  ;;  %3272 = vst.msk [vmem:[%s4554_s18 + $0x264] sm:$0xf] %vm3118_vm3, %v3966_v30  ;;  %v1800_v33 = vadd.f32 %v4839_v5, %v1799_v31  ;;  %v2152_v34 = vadd.f32 %v4839_v5, %v2151_v32  ;;  %v1801_v35 = vpop.f32.mrb[133].mxu0  ;;  %v2153_v36 = vpop.f32.mrb[133].mxu1 }
 0x20b   : > { %v1802_v37 = vpop.f32.mrb[134].mxu0  ;;  %v2154_v38 = vpop.f32.mrb[134].mxu1 }
 0x20c   : > { %v2304_v39 = vmax.f32 %v1800_v33, 0.0  ;;  %v2392_v40 = vmax.f32 %v2152_v34, 0.0  ;;  %v1803_v41 = vadd.f32 %v4839_v5, %v1802_v37  ;;  %v2155_v42 = vadd.f32 %v4839_v5, %v2154_v38  ;;  %v1804_v43 = vpop.f32.mrb[135].mxu0  ;;  %v2156_v44 = vpop.f32.mrb[135].mxu1 }
 0x20e   : > { %v3879_v45 = vpack.c.bf16 %v2304_v39, %v2304_v39  ;;  %v3967_v46 = vpack.c.bf16 %v2392_v40, %v2392_v40  ;;  %v2305_v47 = vmax.f32 %v1803_v41, 0.0  ;;  %v2393_v48 = vmax.f32 %v2155_v42, 0.0 }
 0x210   : > { %3185 = vst.msk [vmem:[%s4554_s18 + $0x108] sm:$0xf] %vm3118_vm3, %v3879_v45  ;;  %3273 = vst.msk [vmem:[%s4554_s18 + $0x268] sm:$0xf] %vm3118_vm3, %v3967_v46  ;;  %v3880_v49 = vpack.c.bf16 %v2305_v47, %v2305_v47  ;;  %v3968_v50 = vpack.c.bf16 %v2393_v48, %v2393_v48 }
 0x211   : > { %v1807_v51 = vpop.f32.mrb[136].mxu0  ;;  %v2159_v52 = vpop.f32.mrb[136].mxu1 }
 0x212   : > { %3186 = vst.msk [vmem:[%s4554_s18 + $0x10c] sm:$0xf] %vm3118_vm3, %v3880_v49  ;;  %3274 = vst.msk [vmem:[%s4554_s18 + $0x26c] sm:$0xf] %vm3118_vm3, %v3968_v50  ;;  %v1808_v53 = vadd.f32 %v4839_v5, %v1807_v51  ;;  %v2160_v54 = vadd.f32 %v4839_v5, %v2159_v52  ;;  %v1809_v55 = vpop.f32.mrb[137].mxu0  ;;  %v2161_v56 = vpop.f32.mrb[137].mxu1 }
 0x213   : > { %v1810_v57 = vpop.f32.mrb[138].mxu0  ;;  %v2162_v58 = vpop.f32.mrb[138].mxu1 }
 0x214   : > { %v2306_v59 = vmax.f32 %v1808_v53, 0.0  ;;  %v2394_v60 = vmax.f32 %v2160_v54, 0.0  ;;  %v1811_v62 = vadd.f32 %v4839_v5, %v1810_v57  ;;  %v2163_v63 = vadd.f32 %v4839_v5, %v2162_v58  ;;  %v1812_v0 = vpop.f32.mrb[139].mxu0  ;;  %v2164_v1 = vpop.f32.mrb[139].mxu1  ;;  %v5100_v58 = vld [vmem:[%s5189_s2] ss:$0 sm:$0xff] }
 0x216   : > { %v3881_v61 = vpack.c.bf16 %v2306_v59, %v2306_v59  ;;  %v3969_v2 = vpack.c.bf16 %v2394_v60, %v2394_v60  ;;  %v2307_v3 = vmax.f32 %v1811_v62, 0.0  ;;  %v2395_v4 = vmax.f32 %v2163_v63, 0.0 }
 0x218   : > { %3187 = vst.msk [vmem:[%s4554_s18 + $0x110] sm:$0xf] %vm3118_vm3, %v3881_v61  ;;  %3275 = vst.msk [vmem:[%s4554_s18 + $0x270] sm:$0xf] %vm3118_vm3, %v3969_v2  ;;  %v3882_v6 = vpack.c.bf16 %v2307_v3, %v2307_v3  ;;  %v3970_v7 = vpack.c.bf16 %v2395_v4, %v2395_v4 }
 0x219   : > { %v1815_v8 = vpop.f32.mrb[140].mxu0  ;;  %v2167_v9 = vpop.f32.mrb[140].mxu1 }
 0x21a   : > { %3188 = vst.msk [vmem:[%s4554_s18 + $0x114] sm:$0xf] %vm3118_vm3, %v3882_v6  ;;  %3276 = vst.msk [vmem:[%s4554_s18 + $0x274] sm:$0xf] %vm3118_vm3, %v3970_v7  ;;  %v1816_v10 = vadd.f32 %v4839_v5, %v1815_v8  ;;  %v2168_v11 = vadd.f32 %v4839_v5, %v2167_v9  ;;  %v1817_v12 = vpop.f32.mrb[141].mxu0  ;;  %v2169_v13 = vpop.f32.mrb[141].mxu1 }
 0x21b   : > { %v1818_v14 = vpop.f32.mrb[142].mxu0  ;;  %v2170_v15 = vpop.f32.mrb[142].mxu1 }
 0x21c   : > { %v2308_v16 = vmax.f32 %v1816_v10, 0.0  ;;  %v2396_v17 = vmax.f32 %v2168_v11, 0.0  ;;  %v1819_v18 = vadd.f32 %v4839_v5, %v1818_v14  ;;  %v2171_v19 = vadd.f32 %v4839_v5, %v2170_v15  ;;  %v1820_v20 = vpop.f32.mrb[143].mxu0  ;;  %v2172_v21 = vpop.f32.mrb[143].mxu1 }
 0x21e   : > { %v3883_v22 = vpack.c.bf16 %v2308_v16, %v2308_v16  ;;  %v3971_v23 = vpack.c.bf16 %v2396_v17, %v2396_v17  ;;  %v2309_v24 = vmax.f32 %v1819_v18, 0.0  ;;  %v2397_v25 = vmax.f32 %v2171_v19, 0.0 }
 0x220   : > { %3189 = vst.msk [vmem:[%s4554_s18 + $0x118] sm:$0xf] %vm3118_vm3, %v3883_v22  ;;  %3277 = vst.msk [vmem:[%s4554_s18 + $0x278] sm:$0xf] %vm3118_vm3, %v3971_v23  ;;  %v3884_v26 = vpack.c.bf16 %v2309_v24, %v2309_v24  ;;  %v3972_v27 = vpack.c.bf16 %v2397_v25, %v2397_v25 }
 0x221   : > { %v1823_v28 = vpop.f32.mrb[144].mxu0  ;;  %v2175_v29 = vpop.f32.mrb[144].mxu1 }
 0x222   : > { %3190 = vst.msk [vmem:[%s4554_s18 + $0x11c] sm:$0xf] %vm3118_vm3, %v3884_v26  ;;  %3278 = vst.msk [vmem:[%s4554_s18 + $0x27c] sm:$0xf] %vm3118_vm3, %v3972_v27  ;;  %v1824_v30 = vadd.f32 %v4839_v5, %v1823_v28  ;;  %v2176_v31 = vadd.f32 %v4839_v5, %v2175_v29  ;;  %v1825_v32 = vpop.f32.mrb[145].mxu0  ;;  %v2177_v33 = vpop.f32.mrb[145].mxu1 }
 0x223   : > { %v1826_v34 = vpop.f32.mrb[146].mxu0  ;;  %v2178_v35 = vpop.f32.mrb[146].mxu1 }
 0x224   : > { %v2310_v36 = vmax.f32 %v1824_v30, 0.0  ;;  %v2398_v37 = vmax.f32 %v2176_v31, 0.0  ;;  %v1827_v38 = vadd.f32 %v4839_v5, %v1826_v34  ;;  %v2179_v39 = vadd.f32 %v4839_v5, %v2178_v35  ;;  %v1828_v40 = vpop.f32.mrb[147].mxu0  ;;  %v2180_v41 = vpop.f32.mrb[147].mxu1 }
 0x226   : > { %v3885_v42 = vpack.c.bf16 %v2310_v36, %v2310_v36  ;;  %v3973_v43 = vpack.c.bf16 %v2398_v37, %v2398_v37  ;;  %v2311_v44 = vmax.f32 %v1827_v38, 0.0  ;;  %v2399_v45 = vmax.f32 %v2179_v39, 0.0 }
 0x228   : > { %3191 = vst.msk [vmem:[%s4554_s18 + $0x120] sm:$0xf] %vm3118_vm3, %v3885_v42  ;;  %3279 = vst.msk [vmem:[%s4554_s18 + $0x280] sm:$0xf] %vm3118_vm3, %v3973_v43  ;;  %v3886_v46 = vpack.c.bf16 %v2311_v44, %v2311_v44  ;;  %v3974_v47 = vpack.c.bf16 %v2399_v45, %v2399_v45 }
 0x229   : > { %v1831_v48 = vpop.f32.mrb[148].mxu0  ;;  %v2183_v49 = vpop.f32.mrb[148].mxu1 }
 0x22a   : > { %3192 = vst.msk [vmem:[%s4554_s18 + $0x124] sm:$0xf] %vm3118_vm3, %v3886_v46  ;;  %3280 = vst.msk [vmem:[%s4554_s18 + $0x284] sm:$0xf] %vm3118_vm3, %v3974_v47  ;;  %v1832_v50 = vadd.f32 %v4839_v5, %v1831_v48  ;;  %v2184_v51 = vadd.f32 %v4839_v5, %v2183_v49  ;;  %v1833_v52 = vpop.f32.mrb[149].mxu0  ;;  %v2185_v53 = vpop.f32.mrb[149].mxu1 }
 0x22b   : > { %v1834_v54 = vpop.f32.mrb[150].mxu0  ;;  %v2186_v55 = vpop.f32.mrb[150].mxu1 }
 0x22c   : > { %v2312_v56 = vmax.f32 %v1832_v50, 0.0  ;;  %v2400_v57 = vmax.f32 %v2184_v51, 0.0  ;;  %v1835_v59 = vadd.f32 %v5100_v58, %v1834_v54  ;;  %v2187_v60 = vadd.f32 %v5100_v58, %v2186_v55  ;;  %v1836_v5 = vpop.f32.mrb[151].mxu0  ;;  %v2188_v62 = vpop.f32.mrb[151].mxu1 }
 0x22e   : > { %v3887_v63 = vpack.c.bf16 %v2312_v56, %v2312_v56  ;;  %v3975_v0 = vpack.c.bf16 %v2400_v57, %v2400_v57  ;;  %v2313_v1 = vmax.f32 %v1835_v59, 0.0  ;;  %v2401_v61 = vmax.f32 %v2187_v60, 0.0 }
 0x230   : > { %3193 = vst.msk [vmem:[%s4554_s18 + $0x128] sm:$0xf] %vm3118_vm3, %v3887_v63  ;;  %3281 = vst.msk [vmem:[%s4554_s18 + $0x288] sm:$0xf] %vm3118_vm3, %v3975_v0  ;;  %v3888_v2 = vpack.c.bf16 %v2313_v1, %v2313_v1  ;;  %v3976_v3 = vpack.c.bf16 %v2401_v61, %v2401_v61 }
 0x231   : > { %v1839_v4 = vpop.f32.mrb[152].mxu0  ;;  %v2191_v6 = vpop.f32.mrb[152].mxu1 }
 0x232   : > { %3194 = vst.msk [vmem:[%s4554_s18 + $0x12c] sm:$0xf] %vm3118_vm3, %v3888_v2  ;;  %3282 = vst.msk [vmem:[%s4554_s18 + $0x28c] sm:$0xf] %vm3118_vm3, %v3976_v3  ;;  %v1840_v7 = vadd.f32 %v5100_v58, %v1839_v4  ;;  %v2192_v8 = vadd.f32 %v5100_v58, %v2191_v6  ;;  %v1841_v9 = vpop.f32.mrb[153].mxu0  ;;  %v2193_v10 = vpop.f32.mrb[153].mxu1 }
 0x233   : > { %v1842_v11 = vpop.f32.mrb[154].mxu0  ;;  %v2194_v12 = vpop.f32.mrb[154].mxu1 }
 0x234   : > { %v2314_v13 = vmax.f32 %v1840_v7, 0.0  ;;  %v2402_v14 = vmax.f32 %v2192_v8, 0.0  ;;  %v1843_v15 = vadd.f32 %v5100_v58, %v1842_v11  ;;  %v2195_v16 = vadd.f32 %v5100_v58, %v2194_v12  ;;  %v1844_v17 = vpop.f32.mrb[155].mxu0  ;;  %v2196_v18 = vpop.f32.mrb[155].mxu1 }
 0x236   : > { %v3889_v19 = vpack.c.bf16 %v2314_v13, %v2314_v13  ;;  %v3977_v20 = vpack.c.bf16 %v2402_v14, %v2402_v14  ;;  %v2315_v21 = vmax.f32 %v1843_v15, 0.0  ;;  %v2403_v22 = vmax.f32 %v2195_v16, 0.0 }
 0x238   : > { %3195 = vst.msk [vmem:[%s4554_s18 + $0x130] sm:$0xf] %vm3118_vm3, %v3889_v19  ;;  %3283 = vst.msk [vmem:[%s4554_s18 + $0x290] sm:$0xf] %vm3118_vm3, %v3977_v20  ;;  %v3890_v23 = vpack.c.bf16 %v2315_v21, %v2315_v21  ;;  %v3978_v24 = vpack.c.bf16 %v2403_v22, %v2403_v22 }
 0x239   : > { %v1847_v25 = vpop.f32.mrb[156].mxu0  ;;  %v2199_v26 = vpop.f32.mrb[156].mxu1 }
 0x23a   : > { %3196 = vst.msk [vmem:[%s4554_s18 + $0x134] sm:$0xf] %vm3118_vm3, %v3890_v23  ;;  %3284 = vst.msk [vmem:[%s4554_s18 + $0x294] sm:$0xf] %vm3118_vm3, %v3978_v24  ;;  %v1848_v27 = vadd.f32 %v5100_v58, %v1847_v25  ;;  %v2200_v28 = vadd.f32 %v5100_v58, %v2199_v26  ;;  %v1849_v29 = vpop.f32.mrb[157].mxu0  ;;  %v2201_v30 = vpop.f32.mrb[157].mxu1 }
 0x23b   : > { %v1850_v31 = vpop.f32.mrb[158].mxu0  ;;  %v2202_v32 = vpop.f32.mrb[158].mxu1 }
 0x23c   : > { %v2316_v33 = vmax.f32 %v1848_v27, 0.0  ;;  %v2404_v34 = vmax.f32 %v2200_v28, 0.0  ;;  %v1851_v35 = vadd.f32 %v5100_v58, %v1850_v31  ;;  %v2203_v36 = vadd.f32 %v5100_v58, %v2202_v32  ;;  %v1852_v37 = vpop.f32.mrb[159].mxu0  ;;  %v2204_v38 = vpop.f32.mrb[159].mxu1 }
 0x23e   : > { %v3891_v39 = vpack.c.bf16 %v2316_v33, %v2316_v33  ;;  %v3979_v40 = vpack.c.bf16 %v2404_v34, %v2404_v34  ;;  %v2317_v41 = vmax.f32 %v1851_v35, 0.0  ;;  %v2405_v42 = vmax.f32 %v2203_v36, 0.0 }
 0x240   : > { %3197 = vst.msk [vmem:[%s4554_s18 + $0x138] sm:$0xf] %vm3118_vm3, %v3891_v39  ;;  %3285 = vst.msk [vmem:[%s4554_s18 + $0x298] sm:$0xf] %vm3118_vm3, %v3979_v40  ;;  %v3892_v43 = vpack.c.bf16 %v2317_v41, %v2317_v41  ;;  %v3980_v44 = vpack.c.bf16 %v2405_v42, %v2405_v42 }
 0x241   : > { %v1855_v45 = vpop.f32.mrb[160].mxu0  ;;  %v2207_v46 = vpop.f32.mrb[160].mxu1 }
 0x242   : > { %3198 = vst.msk [vmem:[%s4554_s18 + $0x13c] sm:$0xf] %vm3118_vm3, %v3892_v43  ;;  %3286 = vst.msk [vmem:[%s4554_s18 + $0x29c] sm:$0xf] %vm3118_vm3, %v3980_v44  ;;  %v1856_v47 = vadd.f32 %v5100_v58, %v1855_v45  ;;  %v2208_v48 = vadd.f32 %v5100_v58, %v2207_v46  ;;  %v1857_v49 = vpop.f32.mrb[161].mxu0  ;;  %v2209_v50 = vpop.f32.mrb[161].mxu1 }
 0x243   : > { %v1858_v51 = vpop.f32.mrb[162].mxu0  ;;  %v2210_v52 = vpop.f32.mrb[162].mxu1 }
 0x244   : > { %v2318_v53 = vmax.f32 %v1856_v47, 0.0  ;;  %v2406_v54 = vmax.f32 %v2208_v48, 0.0  ;;  %v1859_v55 = vadd.f32 %v5100_v58, %v1858_v51  ;;  %v2211_v56 = vadd.f32 %v5100_v58, %v2210_v52  ;;  %v1860_v57 = vpop.f32.mrb[163].mxu0  ;;  %v2212_v59 = vpop.f32.mrb[163].mxu1 }
 0x246   : > { %v3893_v60 = vpack.c.bf16 %v2318_v53, %v2318_v53  ;;  %v3981_v5 = vpack.c.bf16 %v2406_v54, %v2406_v54  ;;  %v2319_v62 = vmax.f32 %v1859_v55, 0.0  ;;  %v2407_v63 = vmax.f32 %v2211_v56, 0.0 }
 0x248   : > { %3199 = vst.msk [vmem:[%s4554_s18 + $0x140] sm:$0xf] %vm3118_vm3, %v3893_v60  ;;  %3287 = vst.msk [vmem:[%s4554_s18 + $0x2a0] sm:$0xf] %vm3118_vm3, %v3981_v5  ;;  %v3894_v0 = vpack.c.bf16 %v2319_v62, %v2319_v62  ;;  %v3982_v1 = vpack.c.bf16 %v2407_v63, %v2407_v63 }
 0x249   : > { %v1863_v61 = vpop.f32.mrb[164].mxu0  ;;  %v2215_v2 = vpop.f32.mrb[164].mxu1 }
 0x24a   : > { %3200 = vst.msk [vmem:[%s4554_s18 + $0x144] sm:$0xf] %vm3118_vm3, %v3894_v0  ;;  %3288 = vst.msk [vmem:[%s4554_s18 + $0x2a4] sm:$0xf] %vm3118_vm3, %v3982_v1  ;;  %v1864_v3 = vadd.f32 %v5100_v58, %v1863_v61  ;;  %v2216_v4 = vadd.f32 %v5100_v58, %v2215_v2  ;;  %v1865_v6 = vpop.f32.mrb[165].mxu0  ;;  %v2217_v7 = vpop.f32.mrb[165].mxu1 }
 0x24b   : > { %v1866_v8 = vpop.f32.mrb[166].mxu0  ;;  %v2218_v9 = vpop.f32.mrb[166].mxu1 }
 0x24c   : > { %v2320_v10 = vmax.f32 %v1864_v3, 0.0  ;;  %v2408_v11 = vmax.f32 %v2216_v4, 0.0  ;;  %v1867_v12 = vadd.f32 %v5100_v58, %v1866_v8  ;;  %v2219_v13 = vadd.f32 %v5100_v58, %v2218_v9  ;;  %v1868_v14 = vpop.f32.mrb[167].mxu0  ;;  %v2220_v15 = vpop.f32.mrb[167].mxu1 }
 0x24e   : > { %v3895_v16 = vpack.c.bf16 %v2320_v10, %v2320_v10  ;;  %v3983_v17 = vpack.c.bf16 %v2408_v11, %v2408_v11  ;;  %v2321_v18 = vmax.f32 %v1867_v12, 0.0  ;;  %v2409_v19 = vmax.f32 %v2219_v13, 0.0 }
 0x250   : > { %3201 = vst.msk [vmem:[%s4554_s18 + $0x148] sm:$0xf] %vm3118_vm3, %v3895_v16  ;;  %3289 = vst.msk [vmem:[%s4554_s18 + $0x2a8] sm:$0xf] %vm3118_vm3, %v3983_v17  ;;  %v3896_v20 = vpack.c.bf16 %v2321_v18, %v2321_v18  ;;  %v3984_v21 = vpack.c.bf16 %v2409_v19, %v2409_v19 }
 0x251   : > { %v1871_v22 = vpop.f32.mrb[168].mxu0  ;;  %v2223_v23 = vpop.f32.mrb[168].mxu1 }
 0x252   : > { %3202 = vst.msk [vmem:[%s4554_s18 + $0x14c] sm:$0xf] %vm3118_vm3, %v3896_v20  ;;  %3290 = vst.msk [vmem:[%s4554_s18 + $0x2ac] sm:$0xf] %vm3118_vm3, %v3984_v21  ;;  %v1872_v24 = vadd.f32 %v5100_v58, %v1871_v22  ;;  %v2224_v25 = vadd.f32 %v5100_v58, %v2223_v23  ;;  %v1873_v26 = vpop.f32.mrb[169].mxu0  ;;  %v2225_v27 = vpop.f32.mrb[169].mxu1 }
 0x253   : > { %v1874_v28 = vpop.f32.mrb[170].mxu0  ;;  %v2226_v29 = vpop.f32.mrb[170].mxu1 }
 0x254   : > { %v2322_v30 = vmax.f32 %v1872_v24, 0.0  ;;  %v2410_v31 = vmax.f32 %v2224_v25, 0.0  ;;  %v1875_v32 = vadd.f32 %v5100_v58, %v1874_v28  ;;  %v2227_v33 = vadd.f32 %v5100_v58, %v2226_v29  ;;  %v1876_v34 = vpop.f32.mrb[171].mxu0  ;;  %v2228_v35 = vpop.f32.mrb[171].mxu1 }
 0x256   : > { %v3897_v36 = vpack.c.bf16 %v2322_v30, %v2322_v30  ;;  %v3985_v37 = vpack.c.bf16 %v2410_v31, %v2410_v31  ;;  %v2323_v38 = vmax.f32 %v1875_v32, 0.0  ;;  %v2411_v39 = vmax.f32 %v2227_v33, 0.0 }
 0x258   : > { %3203 = vst.msk [vmem:[%s4554_s18 + $0x150] sm:$0xf] %vm3118_vm3, %v3897_v36  ;;  %3291 = vst.msk [vmem:[%s4554_s18 + $0x2b0] sm:$0xf] %vm3118_vm3, %v3985_v37  ;;  %v3898_v40 = vpack.c.bf16 %v2323_v38, %v2323_v38  ;;  %v3986_v41 = vpack.c.bf16 %v2411_v39, %v2411_v39 }
 0x259   : > { %v1879_v42 = vpop.f32.mrb[172].mxu0  ;;  %v2231_v43 = vpop.f32.mrb[172].mxu1 }
 0x25a   : > { %3204 = vst.msk [vmem:[%s4554_s18 + $0x154] sm:$0xf] %vm3118_vm3, %v3898_v40  ;;  %3292 = vst.msk [vmem:[%s4554_s18 + $0x2b4] sm:$0xf] %vm3118_vm3, %v3986_v41  ;;  %v1880_v44 = vadd.f32 %v5100_v58, %v1879_v42  ;;  %v2232_v45 = vadd.f32 %v5100_v58, %v2231_v43  ;;  %v1881_v46 = vpop.f32.mrb[173].mxu0  ;;  %v2233_v47 = vpop.f32.mrb[173].mxu1 }
 0x25b   : > { %v1882_v48 = vpop.f32.mrb[174].mxu0  ;;  %v2234_v49 = vpop.f32.mrb[174].mxu1 }
 0x25c   : > { %v2324_v50 = vmax.f32 %v1880_v44, 0.0  ;;  %v2412_v51 = vmax.f32 %v2232_v45, 0.0  ;;  %v1883_v52 = vadd.f32 %v5100_v58, %v1882_v48  ;;  %v2235_v53 = vadd.f32 %v5100_v58, %v2234_v49  ;;  %v1884_v54 = vpop.f32.mrb[175].mxu0  ;;  %v2236_v55 = vpop.f32.mrb[175].mxu1 }
 0x25e   : > { %v3899_v56 = vpack.c.bf16 %v2324_v50, %v2324_v50  ;;  %v3987_v57 = vpack.c.bf16 %v2412_v51, %v2412_v51  ;;  %v2325_v59 = vmax.f32 %v1883_v52, 0.0  ;;  %v2413_v60 = vmax.f32 %v2235_v53, 0.0 }
 0x260   : > { %3205 = vst.msk [vmem:[%s4554_s18 + $0x158] sm:$0xf] %vm3118_vm3, %v3899_v56  ;;  %3293 = vst.msk [vmem:[%s4554_s18 + $0x2b8] sm:$0xf] %vm3118_vm3, %v3987_v57  ;;  %v3900_v5 = vpack.c.bf16 %v2325_v59, %v2325_v59  ;;  %v3988_v62 = vpack.c.bf16 %v2413_v60, %v2413_v60 }
 0x262   : > { %3206 = vst.msk [vmem:[%s4554_s18 + $0x15c] sm:$0xf] %vm3118_vm3, %v3900_v5  ;;  %3294 = vst.msk [vmem:[%s4554_s18 + $0x2bc] sm:$0xf] %vm3118_vm3, %v3988_v62 }
 0x263 PF: > { %s13_s12 = sadd.s32 1, %s4301_s12  }
 0x264   : > { %p10_p4 = scmp.ge.s32.totalorder %s13_s12, 4  }
 0x266   :  { %12 = sbr.rel (!%p10_p4) target bundleno = 1 (0x1), region = 62 }

// kernel: classifier_forward.4
= control target key start
LH: loop header
LB: loop body
LE: loop exit
PB: predicated region body
PF: predicated region fallthrough
CT: control target
= control target key end

     0   :  { %v2150_v0 = vmov 0   ;;  %vm789_vm0 = vcmask 130048   ;;  %vm1575_vm1 = vcmask 257024   ;;  %s2840_s1 = inlined_call_operand.vmem [shape: bf16[400,32], index: 1, kind: input, shape index: {}]   ;;  %s2841_s0 = inlined_call_operand.vmem [shape: bf16[392,400], index: 0, kind: input, shape index: {}]   ;;  %s2842_s2 = inlined_call_operand.vmem [shape: f32[1,32], index: 2, kind: input, shape index: {}]   ;;  %s2843_s3 = inlined_call_operand.vmem [shape: bf16[392,32], index: 3, kind: output, shape index: {}]  }
   0x1   :  { %865 = vmatprep.subr.bf16.mxu1 %v2150_v0  ;;  %v1977_v1 = vld [vmem:[%s2840_s1] sm:$0xff]   ;;  %1097 = vmatprep.subr.bf16.mxu0 %v2150_v0  ;;  %v1978_v2 = vld [vmem:[%s2840_s1 + $0x8] sm:$0xff]   ;;  %v1979_v3 = vld [vmem:[%s2840_s1 + $0x10] sm:$0xff]  }
   0x2   :  { %866 = vmatpush1.bf16.msra.mxu1 %v1977_v1  ;;  %v1984_v4 = vld [vmem:[%s2840_s1 + $0x80] sm:$0xff]   ;;  %v1986_v5 = vld [vmem:[%s2840_s1 + $0x88] sm:$0xff]   ;;  %v1980_v6 = vld [vmem:[%s2840_s1 + $0x18] sm:$0xff]  }
   0x3   :  { %867 = vmatprep.subr.bf16.mxu1 %v2150_v0  ;;  %1098 = vmatpush1.bf16.msra.mxu0 %v1984_v4  ;;  %v1988_v7 = vld [vmem:[%s2840_s1 + $0x90] sm:$0xff]   ;;  %v1981_v8 = vld [vmem:[%s2840_s1 + $0x20] sm:$0xff]   ;;  %v1990_v9 = vld [vmem:[%s2840_s1 + $0x98] sm:$0xff]  }
   0x4   :  { %1099 = vmatprep.subr.bf16.mxu0 %v2150_v0  ;;  %v1982_v10 = vld [vmem:[%s2840_s1 + $0x28] sm:$0xff]   ;;  %v1992_v11 = vld [vmem:[%s2840_s1 + $0xa0] sm:$0xff]   ;;  %v1983_v12 = vld [vmem:[%s2840_s1 + $0x30] sm:$0xff]  }
   0x5   :  { %v1985_v13 = vld [vmem:[%s2840_s1 + $0x38] sm:$0xff]   ;;  %v1994_v14 = vld [vmem:[%s2840_s1 + $0xa8] sm:$0xff]   ;;  %v2007_v16 = vld [vmem:[%s2841_s0 + $0x4] ss:$16 sps:$4 sm:$0xff]  }
   0x6   :  { %868 = vmatpush1.bf16.msra.mxu1 %v1978_v2  ;;  %v2004_v15 = vld [vmem:[%s2841_s0 + $0xc] ss:$16 sps:$4 sm:$0xff]   ;;  %v1996_v17 = vld [vmem:[%s2840_s1 + $0xb0] sm:$0xff]   ;;  %897 = vmatprep.mubr.bf16.mxu1 %v2007_v16  ;;  %v1987_v18 = vld [vmem:[%s2840_s1 + $0x40] sm:$0xff]  }
   0x7   :  { %869 = vmatprep.subr.bf16.mxu1 %v2150_v0  ;;  %1100 = vmatpush1.bf16.msra.mxu0 %v1986_v5  ;;  %v1998_v19 = vld [vmem:[%s2840_s1 + $0xb8] sm:$0xff]   ;;  %v1989_v20 = vld [vmem:[%s2840_s1 + $0x48] sm:$0xff]   ;;  %v2000_v21 = vld [vmem:[%s2840_s1 + $0xc0] sm:$0xff]  }
   0x8   :  { %1101 = vmatprep.subr.bf16.mxu0 %v2150_v0  ;;  %1755 = vmatprep.mubr.msk.bf16.mxu0 %vm789_vm0, %v2004_v15  ;;  %v1991_v22 = vld [vmem:[%s2840_s1 + $0x50] sm:$0xff]   ;;  %v2002_v23 = vld [vmem:[%s2841_s0 + $0x8] ss:$16 sps:$4 sm:$0xff]   ;;  %v2008_v24 = vld [vmem:[%s2841_s0 + $0x2c] ss:$16 sps:$4 sm:$0xff]  }
   0x9   :  { %v1993_v25 = vld [vmem:[%s2840_s1 + $0x58] sm:$0xff]   ;;  %v1995_v26 = vld [vmem:[%s2840_s1 + $0x60] sm:$0xff]   ;;  %v1997_v29 = vld [vmem:[%s2840_s1 + $0x68] sm:$0xff]  }
   0xa   :  { %870 = vmatpush1.bf16.msra.mxu1 %v1979_v3  ;;  %v2012_v27 = vld [vmem:[%s2841_s0 + $0x28] ss:$16 sps:$4 sm:$0xff]   ;;  %v2014_v28 = vld [vmem:[%s2841_s0 + $0x4c] ss:$16 sps:$4 sm:$0xff]   ;;  %v1999_v30 = vld [vmem:[%s2840_s1 + $0x70] sm:$0xff]  }
   0xb   :  { %871 = vmatprep.subr.bf16.mxu1 %v2150_v0  ;;  %1102 = vmatpush1.bf16.msra.mxu0 %v1988_v7  ;;  %v2018_v31 = vld [vmem:[%s2841_s0 + $0x48] ss:$16 sps:$4 sm:$0xff]   ;;  %v2020_v32 = vld [vmem:[%s2841_s0 + $0x6c] ss:$16 sps:$4 sm:$0xff]   ;;  %v2005_v34 = vld [vmem:[%s2841_s0] ss:$16 sps:$4 sm:$0xff]  }
   0xc   :  { %1103 = vmatprep.subr.bf16.mxu0 %v2150_v0  ;;  %v2001_v33 = vld [vmem:[%s2840_s1 + $0x78] sm:$0xff]   ;;  %v2010_v35 = vld [vmem:[%s2841_s0 + $0x24] ss:$16 sps:$4 sm:$0xff]   ;;  %v2013_v38 = vld [vmem:[%s2841_s0 + $0x20] ss:$16 sps:$4 sm:$0xff]  }
   0xd   :  { %v2024_v36 = vld [vmem:[%s2841_s0 + $0x68] ss:$16 sps:$4 sm:$0xff]   ;;  %v2026_v37 = vld [vmem:[%s2841_s0 + $0x8c] ss:$16 sps:$4 sm:$0xff]   ;;  %v2016_v39 = vld [vmem:[%s2841_s0 + $0x44] ss:$16 sps:$4 sm:$0xff]  }
   0xe   :  { %872 = vmatpush1.bf16.msra.mxu1 %v1980_v6  ;;  %v2030_v40 = vld [vmem:[%s2841_s0 + $0x88] ss:$16 sps:$4 sm:$0xff]   ;;  %v2032_v41 = vld [vmem:[%s2841_s0 + $0xac] ss:$16 sps:$4 sm:$0xff]   ;;  %v2019_v42 = vld [vmem:[%s2841_s0 + $0x40] ss:$16 sps:$4 sm:$0xff]  }
   0xf   :  { %873 = vmatprep.subr.bf16.mxu1 %v2150_v0  ;;  %1104 = vmatpush1.bf16.msra.mxu0 %v1990_v9  ;;  %v2022_v43 = vld [vmem:[%s2841_s0 + $0x64] ss:$16 sps:$4 sm:$0xff]   ;;  %v2036_v44 = vld [vmem:[%s2841_s0 + $0xa8] ss:$16 sps:$4 sm:$0xff]   ;;  %v2038_v45 = vld [vmem:[%s2841_s0 + $0xcc] ss:$16 sps:$4 sm:$0xff]  }
  0x10   :  { %1105 = vmatprep.subr.bf16.mxu0 %v2150_v0  ;;  %v2025_v46 = vld [vmem:[%s2841_s0 + $0x60] ss:$16 sps:$4 sm:$0xff]   ;;  %v2028_v47 = vld [vmem:[%s2841_s0 + $0x84] ss:$16 sps:$4 sm:$0xff]   ;;  %v2042_v48 = vld [vmem:[%s2841_s0 + $0xc8] ss:$16 sps:$4 sm:$0xff]  }
  0x11   :  { %v2044_v49 = vld [vmem:[%s2841_s0 + $0xec] ss:$16 sps:$4 sm:$0xff]   ;;  %v2031_v50 = vld [vmem:[%s2841_s0 + $0x80] ss:$16 sps:$4 sm:$0xff]   ;;  %v2034_v51 = vld [vmem:[%s2841_s0 + $0xa4] ss:$16 sps:$4 sm:$0xff]  }
  0x12   :  { %874 = vmatpush1.bf16.msra.mxu1 %v1981_v8  ;;  %v2048_v52 = vld [vmem:[%s2841_s0 + $0xe8] ss:$16 sps:$4 sm:$0xff]   ;;  %v2050_v53 = vld [vmem:[%s2841_s0 + $0x10c] ss:$16 sps:$4 sm:$0xff]   ;;  %v2037_v54 = vld [vmem:[%s2841_s0 + $0xa0] ss:$16 sps:$4 sm:$0xff]  }
  0x13   :  { %875 = vmatprep.subr.bf16.mxu1 %v2150_v0  ;;  %1106 = vmatpush1.bf16.msra.mxu0 %v1992_v11  ;;  %v2040_v55 = vld [vmem:[%s2841_s0 + $0xc4] ss:$16 sps:$4 sm:$0xff]   ;;  %v2054_v56 = vld [vmem:[%s2841_s0 + $0x108] ss:$16 sps:$4 sm:$0xff]   ;;  %v2056_v57 = vld [vmem:[%s2841_s0 + $0x12c] ss:$16 sps:$4 sm:$0xff]  }
  0x14   :  { %1107 = vmatprep.subr.bf16.mxu0 %v2150_v0  ;;  %v2043_v58 = vld [vmem:[%s2841_s0 + $0xc0] ss:$16 sps:$4 sm:$0xff]   ;;  %v2046_v59 = vld [vmem:[%s2841_s0 + $0xe4] ss:$16 sps:$4 sm:$0xff]   ;;  %v2060_v60 = vld [vmem:[%s2841_s0 + $0x128] ss:$16 sps:$4 sm:$0xff]  }
  0x15   :  { %v2062_v61 = vld [vmem:[%s2841_s0 + $0x14c] ss:$16 sps:$4 sm:$0xff]   ;;  %v2049_v62 = vld [vmem:[%s2841_s0 + $0xe0] ss:$16 sps:$4 sm:$0xff]   ;;  %v2052_v63 = vld [vmem:[%s2841_s0 + $0x104] ss:$16 sps:$4 sm:$0xff]  }
  0x16   :  { %876 = vmatpush1.bf16.msra.mxu1 %v1982_v10  ;;  %v2068_v1 = vld [vmem:[%s2841_s0 + $0x16c] ss:$16 sps:$4 sm:$0xff]   ;;  %v2055_v2 = vld [vmem:[%s2841_s0 + $0x100] ss:$16 sps:$4 sm:$0xff]   ;;  %v2058_v3 = vld [vmem:[%s2841_s0 + $0x124] ss:$16 sps:$4 sm:$0xff]  }
  0x17   :  { %877 = vmatprep.subr.bf16.mxu1 %v2150_v0  ;;  %1108 = vmatpush1.bf16.msra.mxu0 %v1994_v14  ;;  %v2072_v4 = vld [vmem:[%s2841_s0 + $0x168] ss:$16 sps:$4 sm:$0xff]   ;;  %v2074_v5 = vld [vmem:[%s2841_s0 + $0x18c] ss:$16 sps:$4 sm:$0xff]   ;;  %v2061_v6 = vld [vmem:[%s2841_s0 + $0x120] ss:$16 sps:$4 sm:$0xff]  }
  0x18   :  { %1109 = vmatprep.subr.bf16.mxu0 %v2150_v0  ;;  %v2064_v7 = vld [vmem:[%s2841_s0 + $0x144] ss:$16 sps:$4 sm:$0xff]   ;;  %v2078_v8 = vld [vmem:[%s2841_s0 + $0x188] ss:$16 sps:$4 sm:$0xff]   ;;  %v2080_v9 = vld [vmem:[%s2841_s0 + $0x1ac] ss:$16 sps:$4 sm:$0xff]  }
  0x19   :  { %v2067_v10 = vld [vmem:[%s2841_s0 + $0x140] ss:$16 sps:$4 sm:$0xff]   ;;  %v2070_v11 = vld [vmem:[%s2841_s0 + $0x164] ss:$16 sps:$4 sm:$0xff]   ;;  %v2090_v16 = vld [vmem:[%s2841_s0 + $0x1c8] ss:$16 sps:$4 sm:$0xff]  }
  0x1a   :  { %878 = vmatpush1.bf16.msra.mxu1 %v1983_v12  ;;  %v2084_v12 = vld [vmem:[%s2841_s0 + $0x1a8] ss:$16 sps:$4 sm:$0xff]   ;;  %v2073_v14 = vld [vmem:[%s2841_s0 + $0x160] ss:$16 sps:$4 sm:$0xff]   ;;  %v2076_v15 = vld [vmem:[%s2841_s0 + $0x184] ss:$16 sps:$4 sm:$0xff]  }
  0x1b   :  { %879 = vmatprep.subr.bf16.mxu1 %v2150_v0  ;;  %1110 = vmatpush1.bf16.msra.mxu0 %v1996_v17  ;;  %v2092_v17 = vld [vmem:[%s2841_s0 + $0x1ec] ss:$16 sps:$4 sm:$0xff]  }
  0x1c   :  { %1111 = vmatprep.subr.bf16.mxu0 %v2150_v0 }
  0x1e   :  { %880 = vmatpush1.bf16.msra.mxu1 %v1985_v13  ;;  %v2086_v13 = vld [vmem:[%s2841_s0 + $0x1cc] ss:$16 sps:$4 sm:$0xff]  }
  0x1f   :  { %881 = vmatprep.subr.bf16.mxu1 %v2150_v0  ;;  %1112 = vmatpush1.bf16.msra.mxu0 %v1998_v19  ;;  %v2082_v19 = vld [vmem:[%s2841_s0 + $0x1a4] ss:$16 sps:$4 sm:$0xff]  }
  0x20   :  { %1113 = vmatprep.subr.bf16.mxu0 %v2150_v0 }
  0x22   :  { %882 = vmatpush1.bf16.msra.mxu1 %v1987_v18  ;;  %v2079_v18 = vld [vmem:[%s2841_s0 + $0x180] ss:$16 sps:$4 sm:$0xff]  }
  0x23   :  { %883 = vmatprep.subr.bf16.mxu1 %v2150_v0  ;;  %1114 = vmatpush1.bf16.msra.mxu0 %v2000_v21  ;;  %v2098_v21 = vld [vmem:[%s2841_s0 + $0x20c] ss:$16 sps:$4 sm:$0xff]  }
  0x26   :  { %884 = vmatpush1.bf16.msra.mxu1 %v1989_v20  ;;  %1130 = vmatmul.mubr.bf16.vlgmr.msra.gmra.mrb[0].mxu0 %v2002_v23  ;;  %v2096_v20 = vld [vmem:[%s2841_s0 + $0x1e8] ss:$16 sps:$4 sm:$0xff]   ;;  %v2088_v23 = vld [vmem:[%s2841_s0 + $0x1c4] ss:$16 sps:$4 sm:$0xff]  }
  0x27   :  { %885 = vmatprep.subr.bf16.mxu1 %v2150_v0  ;;  %1756 = vmatprep.mubr.msk.bf16.mxu0 %vm789_vm0, %v2008_v24  ;;  %v2102_v24 = vld [vmem:[%s2841_s0 + $0x208] ss:$16 sps:$4 sm:$0xff]  }
  0x2a   :  { %886 = vmatpush1.bf16.msra.mxu1 %v1991_v22  ;;  %v2085_v22 = vld [vmem:[%s2841_s0 + $0x1a0] ss:$16 sps:$4 sm:$0xff]  }
  0x2b   :  { %887 = vmatprep.subr.bf16.mxu1 %v2150_v0 }
  0x2e   :  { %888 = vmatpush1.bf16.msra.mxu1 %v1993_v25  ;;  %1138 = vmatmul.mubr.bf16.gmra.mrb[4].mxu0 %v2012_v27  ;;  %v2104_v25 = vld [vmem:[%s2841_s0 + $0x22c] ss:$16 sps:$4 sm:$0xff]   ;;  %v2094_v27 = vld [vmem:[%s2841_s0 + $0x1e4] ss:$16 sps:$4 sm:$0xff]  }
  0x2f   :  { %889 = vmatprep.subr.bf16.mxu1 %v2150_v0  ;;  %1757 = vmatprep.mubr.msk.bf16.mxu0 %vm789_vm0, %v2014_v28  ;;  %v2108_v28 = vld [vmem:[%s2841_s0 + $0x228] ss:$16 sps:$4 sm:$0xff]  }
  0x32   :  { %890 = vmatpush1.bf16.msra.mxu1 %v1995_v26  ;;  %v2091_v26 = vld [vmem:[%s2841_s0 + $0x1c0] ss:$16 sps:$4 sm:$0xff]  }
  0x33   :  { %891 = vmatprep.subr.bf16.mxu1 %v2150_v0 }
  0x36   :  { %892 = vmatpush1.bf16.msra.mxu1 %v1997_v29  ;;  %1146 = vmatmul.mubr.bf16.gmra.mrb[8].mxu0 %v2018_v31  ;;  %v2110_v29 = vld [vmem:[%s2841_s0 + $0x24c] ss:$16 sps:$4 sm:$0xff]   ;;  %v2100_v31 = vld [vmem:[%s2841_s0 + $0x204] ss:$16 sps:$4 sm:$0xff]  }
  0x37   :  { %893 = vmatprep.subr.bf16.mxu1 %v2150_v0  ;;  %1758 = vmatprep.mubr.msk.bf16.mxu0 %vm789_vm0, %v2020_v32  ;;  %v2114_v32 = vld [vmem:[%s2841_s0 + $0x248] ss:$16 sps:$4 sm:$0xff]  }
  0x3a   :  { %894 = vmatpush1.bf16.msra.mxu1 %v1999_v30  ;;  %v2097_v30 = vld [vmem:[%s2841_s0 + $0x1e0] ss:$16 sps:$4 sm:$0xff]  }
  0x3b   :  { %895 = vmatprep.subr.bf16.mxu1 %v2150_v0  ;;  %v2066_v0 = vld [vmem:[%s2841_s0 + $0x148] ss:$16 sps:$4 sm:$0xff]  }
  0x3e   :  { %896 = vmatpush1.bf16.msra.mxu1 %v2001_v33  ;;  %1154 = vmatmul.mubr.bf16.gmra.mrb[12].mxu0 %v2024_v36  ;;  %v2116_v33 = vld [vmem:[%s2841_s0 + $0x26c] ss:$16 sps:$4 sm:$0xff]   ;;  %v2120_v36 = vld [vmem:[%s2841_s0 + $0x268] ss:$16 sps:$4 sm:$0xff]  }
  0x3f   :  { %1759 = vmatprep.mubr.msk.bf16.mxu0 %vm789_vm0, %v2026_v37  ;;  %v2122_v37 = vld [vmem:[%s2841_s0 + $0x28c] ss:$16 sps:$4 sm:$0xff]  }
  0x41   :  { %898 = vmatmul.mubr.bf16.vlgmr.msra.gmra.mrb[0].mxu1 %v2005_v34  ;;  %v2103_v34 = vld [vmem:[%s2841_s0 + $0x200] ss:$16 sps:$4 sm:$0xff]  }
  0x42   :  { %905 = vmatprep.mubr.bf16.mxu1 %v2010_v35  ;;  %v2106_v35 = vld [vmem:[%s2841_s0 + $0x224] ss:$16 sps:$4 sm:$0xff]  }
  0x46   :  { %1162 = vmatmul.mubr.bf16.gmra.mrb[16].mxu0 %v2030_v40  ;;  %v2126_v40 = vld [vmem:[%s2841_s0 + $0x288] ss:$16 sps:$4 sm:$0xff]  }
  0x47   :  { %1760 = vmatprep.mubr.msk.bf16.mxu0 %vm789_vm0, %v2032_v41  ;;  %v2128_v41 = vld [vmem:[%s2841_s0 + $0x2ac] ss:$16 sps:$4 sm:$0xff]  }
  0x49   :  { %906 = vmatmul.mubr.bf16.gmra.mrb[4].mxu1 %v2013_v38  ;;  %v2109_v38 = vld [vmem:[%s2841_s0 + $0x220] ss:$16 sps:$4 sm:$0xff]  }
  0x4a   :  { %913 = vmatprep.mubr.bf16.mxu1 %v2016_v39  ;;  %v2112_v39 = vld [vmem:[%s2841_s0 + $0x244] ss:$16 sps:$4 sm:$0xff]  }
  0x4e   :  { %1170 = vmatmul.mubr.bf16.gmra.mrb[20].mxu0 %v2036_v44  ;;  %v2132_v44 = vld [vmem:[%s2841_s0 + $0x2a8] ss:$16 sps:$4 sm:$0xff]  }
  0x4f   :  { %1761 = vmatprep.mubr.msk.bf16.mxu0 %vm789_vm0, %v2038_v45  ;;  %v2134_v45 = vld [vmem:[%s2841_s0 + $0x2cc] ss:$16 sps:$4 sm:$0xff]  }
  0x51   :  { %914 = vmatmul.mubr.bf16.gmra.mrb[8].mxu1 %v2019_v42  ;;  %v2115_v42 = vld [vmem:[%s2841_s0 + $0x240] ss:$16 sps:$4 sm:$0xff]  }
  0x52   :  { %921 = vmatprep.mubr.bf16.mxu1 %v2022_v43  ;;  %v2118_v43 = vld [vmem:[%s2841_s0 + $0x264] ss:$16 sps:$4 sm:$0xff]  }
  0x56   :  { %1178 = vmatmul.mubr.bf16.gmra.mrb[24].mxu0 %v2042_v48  ;;  %v2138_v48 = vld [vmem:[%s2841_s0 + $0x2c8] ss:$16 sps:$4 sm:$0xff]  }
  0x57   :  { %1762 = vmatprep.mubr.msk.bf16.mxu0 %vm789_vm0, %v2044_v49  ;;  %v2140_v49 = vld [vmem:[%s2841_s0 + $0x2ec] ss:$16 sps:$4 sm:$0xff]  }
  0x59   :  { %922 = vmatmul.mubr.bf16.gmra.mrb[12].mxu1 %v2025_v46  ;;  %v2121_v46 = vld [vmem:[%s2841_s0 + $0x260] ss:$16 sps:$4 sm:$0xff]  }
  0x5a   :  { %929 = vmatprep.mubr.bf16.mxu1 %v2028_v47  ;;  %v2124_v47 = vld [vmem:[%s2841_s0 + $0x284] ss:$16 sps:$4 sm:$0xff]  }
  0x5e   :  { %1186 = vmatmul.mubr.bf16.gmra.mrb[28].mxu0 %v2048_v52  ;;  %v112_v52 = vld [vmem:[%s2841_s0 + $0x308] sm:$0xff] }
  0x5f   :  { %1763 = vmatprep.mubr.msk.bf16.mxu0 %vm789_vm0, %v2050_v53  ;;  %v2144_v53 = vld [vmem:[%s2841_s0 + $0x2e8] ss:$16 sps:$4 sm:$0xff]  }
  0x61   :  { %930 = vmatmul.mubr.bf16.gmra.mrb[16].mxu1 %v2031_v50  ;;  %v2127_v50 = vld [vmem:[%s2841_s0 + $0x280] ss:$16 sps:$4 sm:$0xff]  }
  0x62   :  { %937 = vmatprep.mubr.bf16.mxu1 %v2034_v51  ;;  %v2130_v51 = vld [vmem:[%s2841_s0 + $0x2a4] ss:$16 sps:$4 sm:$0xff]  }
  0x66   :  { %1194 = vmatmul.mubr.bf16.gmra.mrb[32].mxu0 %v2054_v56  ;;  %v2136_v56 = vld [vmem:[%s2841_s0 + $0x2c4] ss:$16 sps:$4 sm:$0xff]  }
  0x67   :  { %1764 = vmatprep.mubr.msk.bf16.mxu0 %vm789_vm0, %v2056_v57  ;;  %v1728_v57 = vcombine.low %v112_v52, %v112_v52 }
  0x69   :  { %938 = vmatmul.mubr.bf16.gmra.mrb[20].mxu1 %v2037_v54  ;;  %v1729_v54 = vcombine.high %v112_v52, %v112_v52 }
  0x6a   :  { %945 = vmatprep.mubr.bf16.mxu1 %v2040_v55  ;;  %v2133_v55 = vld [vmem:[%s2841_s0 + $0x2a0] ss:$16 sps:$4 sm:$0xff]  }
  0x6e   :  { %1202 = vmatmul.mubr.bf16.gmra.mrb[36].mxu0 %v2060_v60  ;;  %v111_v60 = vld [vmem:[%s2841_s0 + $0x300] sm:$0xff] }
  0x6f   :  { %1765 = vmatprep.mubr.msk.bf16.mxu0 %vm789_vm0, %v2062_v61  ;;  %v2145_v61 = vld [vmem:[%s2841_s0 + $0x2e0] ss:$16 sps:$4 sm:$0xff]  }
  0x71   :  { %946 = vmatmul.mubr.bf16.gmra.mrb[24].mxu1 %v2043_v58  ;;  %v2139_v58 = vld [vmem:[%s2841_s0 + $0x2c0] ss:$16 sps:$4 sm:$0xff]  }
  0x72   :  { %953 = vmatprep.mubr.bf16.mxu1 %v2046_v59  ;;  %v2142_v59 = vld [vmem:[%s2841_s0 + $0x2e4] ss:$16 sps:$4 sm:$0xff]  }
  0x76   :  { %1210 = vmatmul.mubr.bf16.gmra.mrb[40].mxu0 %v2066_v0 }
  0x77   :  { %1766 = vmatprep.mubr.msk.bf16.mxu0 %vm789_vm0, %v2068_v1 }
  0x79   :  { %954 = vmatmul.mubr.bf16.gmra.mrb[28].mxu1 %v2049_v62  ;;  %v1727_v62 = vcombine.high %v111_v60, %v111_v60 }
  0x7a   :  { %961 = vmatprep.mubr.bf16.mxu1 %v2052_v63  ;;  %v1726_v63 = vcombine.low %v111_v60, %v111_v60 }
  0x7e   :  { %1218 = vmatmul.mubr.bf16.gmra.mrb[44].mxu0 %v2072_v4 }
  0x7f   :  { %1767 = vmatprep.mubr.msk.bf16.mxu0 %vm789_vm0, %v2074_v5 }
  0x81   :  { %962 = vmatmul.mubr.bf16.gmra.mrb[32].mxu1 %v2055_v2 }
  0x82   :  { %969 = vmatprep.mubr.bf16.mxu1 %v2058_v3 }
  0x86   :  { %1226 = vmatmul.mubr.bf16.gmra.mrb[48].mxu0 %v2078_v8 }
  0x87   :  { %1768 = vmatprep.mubr.msk.bf16.mxu0 %vm789_vm0, %v2080_v9 }
  0x89   :  { %970 = vmatmul.mubr.bf16.gmra.mrb[36].mxu1 %v2061_v6 }
  0x8a   :  { %977 = vmatprep.mubr.bf16.mxu1 %v2064_v7 }
  0x8e   :  { %1234 = vmatmul.mubr.bf16.gmra.mrb[52].mxu0 %v2084_v12 }
  0x8f   :  { %1769 = vmatprep.mubr.msk.bf16.mxu0 %vm789_vm0, %v2086_v13 }
  0x91   :  { %978 = vmatmul.mubr.bf16.gmra.mrb[40].mxu1 %v2067_v10 }
  0x92   :  { %985 = vmatprep.mubr.bf16.mxu1 %v2070_v11  ;;  %v2593_v11 = vld [vmem:[%s2842_s2] ss:$0 sm:$0xff] }
  0x96   :  { %1242 = vmatmul.mubr.bf16.gmra.mrb[56].mxu0 %v2090_v16 }
  0x97   :  { %1770 = vmatprep.mubr.msk.bf16.mxu0 %vm789_vm0, %v2092_v17 }
  0x99   :  { %986 = vmatmul.mubr.bf16.gmra.mrb[44].mxu1 %v2073_v14 }
  0x9a   :  { %993 = vmatprep.mubr.bf16.mxu1 %v2076_v15 }
  0x9e   :  { %1250 = vmatmul.mubr.bf16.gmra.mrb[60].mxu0 %v2096_v20 }
  0x9f   :  { %1771 = vmatprep.mubr.msk.bf16.mxu0 %vm789_vm0, %v2098_v21 }
  0xa1   :  { %994 = vmatmul.mubr.bf16.gmra.mrb[48].mxu1 %v2079_v18 }
  0xa2   :  { %1001 = vmatprep.mubr.bf16.mxu1 %v2082_v19 }
  0xa6   :  { %1258 = vmatmul.mubr.bf16.gmra.mrb[64].mxu0 %v2102_v24 }
  0xa7   :  { %1772 = vmatprep.mubr.msk.bf16.mxu0 %vm789_vm0, %v2104_v25 }
  0xa9   :  { %1002 = vmatmul.mubr.bf16.gmra.mrb[52].mxu1 %v2085_v22 }
  0xaa   :  { %1009 = vmatprep.mubr.bf16.mxu1 %v2088_v23 }
  0xae   :  { %1266 = vmatmul.mubr.bf16.gmra.mrb[68].mxu0 %v2108_v28 }
  0xaf   :  { %1773 = vmatprep.mubr.msk.bf16.mxu0 %vm789_vm0, %v2110_v29 }
  0xb1   :  { %1010 = vmatmul.mubr.bf16.gmra.mrb[56].mxu1 %v2091_v26 }
  0xb2   :  { %1017 = vmatprep.mubr.bf16.mxu1 %v2094_v27 }
  0xb6   :  { %1274 = vmatmul.mubr.bf16.gmra.mrb[72].mxu0 %v2114_v32 }
  0xb7   :  { %1774 = vmatprep.mubr.msk.bf16.mxu0 %vm789_vm0, %v2116_v33 }
  0xb9   :  { %1018 = vmatmul.mubr.bf16.gmra.mrb[60].mxu1 %v2097_v30 }
  0xba   :  { %1025 = vmatprep.mubr.bf16.mxu1 %v2100_v31 }
  0xbe   :  { %1282 = vmatmul.mubr.bf16.gmra.mrb[76].mxu0 %v2120_v36 }
  0xbf   :  { %1775 = vmatprep.mubr.msk.bf16.mxu0 %vm789_vm0, %v2122_v37 }
  0xc1   :  { %1026 = vmatmul.mubr.bf16.gmra.mrb[64].mxu1 %v2103_v34 }
  0xc2   :  { %1033 = vmatprep.mubr.bf16.mxu1 %v2106_v35 }
  0xc6   :  { %1290 = vmatmul.mubr.bf16.gmra.mrb[80].mxu0 %v2126_v40 }
  0xc7   :  { %1776 = vmatprep.mubr.msk.bf16.mxu0 %vm789_vm0, %v2128_v41 }
  0xc9   :  { %1034 = vmatmul.mubr.bf16.gmra.mrb[68].mxu1 %v2109_v38 }
  0xca   :  { %1041 = vmatprep.mubr.bf16.mxu1 %v2112_v39 }
  0xce   :  { %1298 = vmatmul.mubr.bf16.gmra.mrb[84].mxu0 %v2132_v44 }
  0xcf   :  { %1777 = vmatprep.mubr.msk.bf16.mxu0 %vm789_vm0, %v2134_v45 }
  0xd1   :  { %1042 = vmatmul.mubr.bf16.gmra.mrb[72].mxu1 %v2115_v42 }
  0xd2   :  { %1049 = vmatprep.mubr.bf16.mxu1 %v2118_v43 }
  0xd6   :  { %1306 = vmatmul.mubr.bf16.gmra.mrb[88].mxu0 %v2138_v48 }
  0xd7   :  { %1778 = vmatprep.mubr.msk.bf16.mxu0 %vm789_vm0, %v2140_v49 }
  0xd9   :  { %1050 = vmatmul.mubr.bf16.gmra.mrb[76].mxu1 %v2121_v46 }
  0xda   :  { %1057 = vmatprep.mubr.bf16.mxu1 %v2124_v47 }
  0xde   :  { %1314 = vmatmul.mubr.bf16.gmra.mrb[92].mxu0 %v2144_v53 }
  0xdf   :  { %1779 = vmatprep.mubr.msk.bf16.mxu0 %vm789_vm0, %v1729_v54 }
  0xe1   :  { %1058 = vmatmul.mubr.bf16.gmra.mrb[80].mxu1 %v2127_v50 }
  0xe2   :  { %1065 = vmatprep.mubr.bf16.mxu1 %v2130_v51 }
  0xe6   :  { %1322 = vmatmul.mubr.bf16.gmra.mrb[96].mxu0 %v1728_v57 }
  0xe9   :  { %1066 = vmatmul.mubr.bf16.gmra.mrb[84].mxu1 %v2133_v55 }
  0xea   :  { %1073 = vmatprep.mubr.bf16.mxu1 %v2136_v56 }
  0xf1   :  { %1074 = vmatmul.mubr.bf16.gmra.mrb[88].mxu1 %v2139_v58 }
  0xf2   :  { %1081 = vmatprep.mubr.bf16.mxu1 %v2142_v59 }
  0xf9   :  { %1082 = vmatmul.mubr.bf16.gmra.mrb[92].mxu1 %v2145_v61  ;;  %v1131_v0 = vpop.f32.mrb[0].mxu0 }
  0xfa   :  { %1089 = vmatprep.mubr.bf16.mxu1 %v1727_v62  ;;  %v1133_v1 = vpop.f32.mrb[1].mxu0 }
  0xfb   :  { %v1134_v2 = vpop.f32.mrb[2].mxu0 }
  0xfc   :  { %v1136_v3 = vpop.f32.mrb[3].mxu0 }
 0x101   :  { %1090 = vmatmul.mubr.bf16.gmra.mrb[96].mxu1 %v1726_v63  ;;  %v1139_v4 = vpop.f32.mrb[4].mxu0 }
 0x102   :  { %v1141_v5 = vpop.f32.mrb[5].mxu0 }
 0x103   :  { %v1142_v6 = vpop.f32.mrb[6].mxu0 }
 0x104   :  { %v1144_v7 = vpop.f32.mrb[7].mxu0 }
 0x109   :  { %v1147_v8 = vpop.f32.mrb[8].mxu0 }
 0x10a   :  { %v1149_v9 = vpop.f32.mrb[9].mxu0 }
 0x10b   :  { %v1150_v10 = vpop.f32.mrb[10].mxu0 }
 0x10c   :  { %v1152_v12 = vpop.f32.mrb[11].mxu0 }
 0x111   :  { %v1155_v20 = vpop.f32.mrb[12].mxu0 }
 0x112   :  { %v1157_v21 = vpop.f32.mrb[13].mxu0 }
 0x113   :  { %v1158_v24 = vpop.f32.mrb[14].mxu0 }
 0x114   :  { %v899_v13 = vpop.f32.mrb[0].mxu1  ;;  %v1160_v25 = vpop.f32.mrb[15].mxu0 }
 0x115   :  { %v900_v14 = vadd.f32 %v2593_v11, %v899_v13  ;;  %v901_v15 = vpop.f32.mrb[1].mxu1 }
 0x116   :  { %v902_v16 = vpop.f32.mrb[2].mxu1 }
 0x117   :  { %v1132_v17 = vadd.f32 %v1131_v0, %v900_v14  ;;  %v903_v18 = vadd.f32 %v2593_v11, %v902_v16  ;;  %v904_v19 = vpop.f32.mrb[3].mxu1 }
 0x119   :  { %v1329_v22 = vmax.f32 %v1132_v17, 0.0  ;;  %v1135_v23 = vadd.f32 %v1134_v2, %v903_v18  ;;  %v1163_v36 = vpop.f32.mrb[16].mxu0 }
 0x11a   :  { %v1165_v37 = vpop.f32.mrb[17].mxu0 }
 0x11b   :  { %v1829_v26 = vpack.c.bf16 %v1329_v22, %v1329_v22  ;;  %v1330_v27 = vmax.f32 %v1135_v23, 0.0  ;;  %v1166_v40 = vpop.f32.mrb[18].mxu0 }
 0x11c   :  { %v907_v28 = vpop.f32.mrb[4].mxu1  ;;  %v1168_v41 = vpop.f32.mrb[19].mxu0 }
 0x11d   :  { %1576 = vst.msk [vmem:[%s2843_s3] sm:$0xf] %vm1575_vm1, %v1829_v26  ;;  %v1830_v29 = vpack.c.bf16 %v1330_v27, %v1330_v27  ;;  %v908_v30 = vadd.f32 %v2593_v11, %v907_v28  ;;  %v909_v31 = vpop.f32.mrb[5].mxu1 }
 0x11e   :  { %v910_v32 = vpop.f32.mrb[6].mxu1 }
 0x11f   :  { %1577 = vst.msk [vmem:[%s2843_s3 + $0x4] sm:$0xf] %vm1575_vm1, %v1830_v29  ;;  %v1140_v33 = vadd.f32 %v1139_v4, %v908_v30  ;;  %v911_v34 = vadd.f32 %v2593_v11, %v910_v32  ;;  %v912_v35 = vpop.f32.mrb[7].mxu1 }
 0x121   :  { %v1331_v38 = vmax.f32 %v1140_v33, 0.0  ;;  %v1143_v39 = vadd.f32 %v1142_v6, %v911_v34  ;;  %v1171_v52 = vpop.f32.mrb[20].mxu0 }
 0x122   :  { %v1173_v53 = vpop.f32.mrb[21].mxu0 }
 0x123   :  { %v1831_v42 = vpack.c.bf16 %v1331_v38, %v1331_v38  ;;  %v1332_v43 = vmax.f32 %v1143_v39, 0.0  ;;  %v1174_v56 = vpop.f32.mrb[22].mxu0 }
 0x124   :  { %v915_v44 = vpop.f32.mrb[8].mxu1  ;;  %v1176_v57 = vpop.f32.mrb[23].mxu0 }
 0x125   :  { %1578 = vst.msk [vmem:[%s2843_s3 + $0x8] sm:$0xf] %vm1575_vm1, %v1831_v42  ;;  %v1832_v45 = vpack.c.bf16 %v1332_v43, %v1332_v43  ;;  %v916_v46 = vadd.f32 %v2593_v11, %v915_v44  ;;  %v917_v47 = vpop.f32.mrb[9].mxu1 }
 0x126   :  { %v918_v48 = vpop.f32.mrb[10].mxu1 }
 0x127   :  { %1579 = vst.msk [vmem:[%s2843_s3 + $0xc] sm:$0xf] %vm1575_vm1, %v1832_v45  ;;  %v1148_v49 = vadd.f32 %v1147_v8, %v916_v46  ;;  %v919_v50 = vadd.f32 %v2593_v11, %v918_v48  ;;  %v920_v51 = vpop.f32.mrb[11].mxu1 }
 0x129   :  { %v1333_v54 = vmax.f32 %v1148_v49, 0.0  ;;  %v1151_v55 = vadd.f32 %v1150_v10, %v919_v50  ;;  %v1179_v4 = vpop.f32.mrb[24].mxu0 }
 0x12a   :  { %v1181_v5 = vpop.f32.mrb[25].mxu0 }
 0x12b   :  { %v1833_v58 = vpack.c.bf16 %v1333_v54, %v1333_v54  ;;  %v1334_v59 = vmax.f32 %v1151_v55, 0.0  ;;  %v1182_v8 = vpop.f32.mrb[26].mxu0 }
 0x12c   :  { %v923_v60 = vpop.f32.mrb[12].mxu1  ;;  %v1184_v9 = vpop.f32.mrb[27].mxu0 }
 0x12d   :  { %1580 = vst.msk [vmem:[%s2843_s3 + $0x10] sm:$0xf] %vm1575_vm1, %v1833_v58  ;;  %v1834_v61 = vpack.c.bf16 %v1334_v59, %v1334_v59  ;;  %v924_v62 = vadd.f32 %v2593_v11, %v923_v60  ;;  %v925_v63 = vpop.f32.mrb[13].mxu1 }
 0x12e   :  { %v926_v0 = vpop.f32.mrb[14].mxu1 }
 0x12f   :  { %1581 = vst.msk [vmem:[%s2843_s3 + $0x14] sm:$0xf] %vm1575_vm1, %v1834_v61  ;;  %v1156_v1 = vadd.f32 %v1155_v20, %v924_v62  ;;  %v927_v2 = vadd.f32 %v2593_v11, %v926_v0  ;;  %v928_v3 = vpop.f32.mrb[15].mxu1 }
 0x131   :  { %v1335_v6 = vmax.f32 %v1156_v1, 0.0  ;;  %v1159_v7 = vadd.f32 %v1158_v24, %v927_v2  ;;  %v1187_v21 = vpop.f32.mrb[28].mxu0 }
 0x132   :  { %v1189_v22 = vpop.f32.mrb[29].mxu0 }
 0x133   :  { %v1835_v10 = vpack.c.bf16 %v1335_v6, %v1335_v6  ;;  %v1336_v12 = vmax.f32 %v1159_v7, 0.0  ;;  %v1190_v25 = vpop.f32.mrb[30].mxu0 }
 0x134   :  { %v931_v13 = vpop.f32.mrb[16].mxu1  ;;  %v1192_v26 = vpop.f32.mrb[31].mxu0 }
 0x135   :  { %1582 = vst.msk [vmem:[%s2843_s3 + $0x18] sm:$0xf] %vm1575_vm1, %v1835_v10  ;;  %v1836_v14 = vpack.c.bf16 %v1336_v12, %v1336_v12  ;;  %v932_v15 = vadd.f32 %v2593_v11, %v931_v13  ;;  %v933_v16 = vpop.f32.mrb[17].mxu1 }
 0x136   :  { %v934_v17 = vpop.f32.mrb[18].mxu1 }
 0x137   :  { %1583 = vst.msk [vmem:[%s2843_s3 + $0x1c] sm:$0xf] %vm1575_vm1, %v1836_v14  ;;  %v1164_v18 = vadd.f32 %v1163_v36, %v932_v15  ;;  %v935_v19 = vadd.f32 %v2593_v11, %v934_v17  ;;  %v936_v20 = vpop.f32.mrb[19].mxu1 }
 0x139   :  { %v1337_v23 = vmax.f32 %v1164_v18, 0.0  ;;  %v1167_v24 = vadd.f32 %v1166_v40, %v935_v19  ;;  %v1195_v37 = vpop.f32.mrb[32].mxu0 }
 0x13a   :  { %v1197_v38 = vpop.f32.mrb[33].mxu0 }
 0x13b   :  { %v1837_v27 = vpack.c.bf16 %v1337_v23, %v1337_v23  ;;  %v1338_v28 = vmax.f32 %v1167_v24, 0.0  ;;  %v1198_v41 = vpop.f32.mrb[34].mxu0 }
 0x13c   :  { %v939_v29 = vpop.f32.mrb[20].mxu1  ;;  %v1200_v42 = vpop.f32.mrb[35].mxu0 }
 0x13d   :  { %1584 = vst.msk [vmem:[%s2843_s3 + $0x20] sm:$0xf] %vm1575_vm1, %v1837_v27  ;;  %v1838_v30 = vpack.c.bf16 %v1338_v28, %v1338_v28  ;;  %v940_v31 = vadd.f32 %v2593_v11, %v939_v29  ;;  %v941_v32 = vpop.f32.mrb[21].mxu1 }
 0x13e   :  { %v942_v33 = vpop.f32.mrb[22].mxu1 }
 0x13f   :  { %1585 = vst.msk [vmem:[%s2843_s3 + $0x24] sm:$0xf] %vm1575_vm1, %v1838_v30  ;;  %v1172_v34 = vadd.f32 %v1171_v52, %v940_v31  ;;  %v943_v35 = vadd.f32 %v2593_v11, %v942_v33  ;;  %v944_v36 = vpop.f32.mrb[23].mxu1 }
 0x141   :  { %v1339_v39 = vmax.f32 %v1172_v34, 0.0  ;;  %v1175_v40 = vadd.f32 %v1174_v56, %v943_v35  ;;  %v1203_v53 = vpop.f32.mrb[36].mxu0 }
 0x142   :  { %v1205_v54 = vpop.f32.mrb[37].mxu0 }
 0x143   :  { %v1839_v43 = vpack.c.bf16 %v1339_v39, %v1339_v39  ;;  %v1340_v44 = vmax.f32 %v1175_v40, 0.0  ;;  %v1206_v57 = vpop.f32.mrb[38].mxu0 }
 0x144   :  { %v947_v45 = vpop.f32.mrb[24].mxu1  ;;  %v1208_v58 = vpop.f32.mrb[39].mxu0 }
 0x145   :  { %1586 = vst.msk [vmem:[%s2843_s3 + $0x28] sm:$0xf] %vm1575_vm1, %v1839_v43  ;;  %v1840_v46 = vpack.c.bf16 %v1340_v44, %v1340_v44  ;;  %v948_v47 = vadd.f32 %v2593_v11, %v947_v45  ;;  %v949_v48 = vpop.f32.mrb[25].mxu1 }
 0x146   :  { %v950_v49 = vpop.f32.mrb[26].mxu1 }
 0x147   :  { %1587 = vst.msk [vmem:[%s2843_s3 + $0x2c] sm:$0xf] %vm1575_vm1, %v1840_v46  ;;  %v1180_v50 = vadd.f32 %v1179_v4, %v948_v47  ;;  %v951_v51 = vadd.f32 %v2593_v11, %v950_v49  ;;  %v952_v52 = vpop.f32.mrb[27].mxu1 }
 0x149   :  { %v1341_v55 = vmax.f32 %v1180_v50, 0.0  ;;  %v1183_v56 = vadd.f32 %v1182_v8, %v951_v51  ;;  %v1211_v5 = vpop.f32.mrb[40].mxu0 }
 0x14a   :  { %v1213_v6 = vpop.f32.mrb[41].mxu0 }
 0x14b   :  { %v1841_v59 = vpack.c.bf16 %v1341_v55, %v1341_v55  ;;  %v1342_v60 = vmax.f32 %v1183_v56, 0.0  ;;  %v1214_v9 = vpop.f32.mrb[42].mxu0 }
 0x14c   :  { %v955_v61 = vpop.f32.mrb[28].mxu1  ;;  %v1216_v10 = vpop.f32.mrb[43].mxu0 }
 0x14d   :  { %1588 = vst.msk [vmem:[%s2843_s3 + $0x30] sm:$0xf] %vm1575_vm1, %v1841_v59  ;;  %v1842_v62 = vpack.c.bf16 %v1342_v60, %v1342_v60  ;;  %v956_v63 = vadd.f32 %v2593_v11, %v955_v61  ;;  %v957_v0 = vpop.f32.mrb[29].mxu1 }
 0x14e   :  { %v958_v1 = vpop.f32.mrb[30].mxu1 }
 0x14f   :  { %1589 = vst.msk [vmem:[%s2843_s3 + $0x34] sm:$0xf] %vm1575_vm1, %v1842_v62  ;;  %v1188_v2 = vadd.f32 %v1187_v21, %v956_v63  ;;  %v959_v3 = vadd.f32 %v2593_v11, %v958_v1  ;;  %v960_v4 = vpop.f32.mrb[31].mxu1 }
 0x151   :  { %v1343_v7 = vmax.f32 %v1188_v2, 0.0  ;;  %v1191_v8 = vadd.f32 %v1190_v25, %v959_v3  ;;  %v1219_v22 = vpop.f32.mrb[44].mxu0 }
 0x152   :  { %v1221_v23 = vpop.f32.mrb[45].mxu0 }
 0x153   :  { %v1843_v12 = vpack.c.bf16 %v1343_v7, %v1343_v7  ;;  %v1344_v13 = vmax.f32 %v1191_v8, 0.0  ;;  %v1222_v26 = vpop.f32.mrb[46].mxu0 }
 0x154   :  { %v963_v14 = vpop.f32.mrb[32].mxu1  ;;  %v1224_v27 = vpop.f32.mrb[47].mxu0 }
 0x155   :  { %1590 = vst.msk [vmem:[%s2843_s3 + $0x38] sm:$0xf] %vm1575_vm1, %v1843_v12  ;;  %v1844_v15 = vpack.c.bf16 %v1344_v13, %v1344_v13  ;;  %v964_v16 = vadd.f32 %v2593_v11, %v963_v14  ;;  %v965_v17 = vpop.f32.mrb[33].mxu1 }
 0x156   :  { %v966_v18 = vpop.f32.mrb[34].mxu1 }
 0x157   :  { %1591 = vst.msk [vmem:[%s2843_s3 + $0x3c] sm:$0xf] %vm1575_vm1, %v1844_v15  ;;  %v1196_v19 = vadd.f32 %v1195_v37, %v964_v16  ;;  %v967_v20 = vadd.f32 %v2593_v11, %v966_v18  ;;  %v968_v21 = vpop.f32.mrb[35].mxu1 }
 0x159   :  { %v1345_v24 = vmax.f32 %v1196_v19, 0.0  ;;  %v1199_v25 = vadd.f32 %v1198_v41, %v967_v20  ;;  %v1227_v38 = vpop.f32.mrb[48].mxu0 }
 0x15a   :  { %v1229_v39 = vpop.f32.mrb[49].mxu0 }
 0x15b   :  { %v1845_v28 = vpack.c.bf16 %v1345_v24, %v1345_v24  ;;  %v1346_v29 = vmax.f32 %v1199_v25, 0.0  ;;  %v1230_v42 = vpop.f32.mrb[50].mxu0 }
 0x15c   :  { %v971_v30 = vpop.f32.mrb[36].mxu1  ;;  %v1232_v43 = vpop.f32.mrb[51].mxu0 }
 0x15d   :  { %1592 = vst.msk [vmem:[%s2843_s3 + $0x40] sm:$0xf] %vm1575_vm1, %v1845_v28  ;;  %v1846_v31 = vpack.c.bf16 %v1346_v29, %v1346_v29  ;;  %v972_v32 = vadd.f32 %v2593_v11, %v971_v30  ;;  %v973_v33 = vpop.f32.mrb[37].mxu1 }
 0x15e   :  { %v974_v34 = vpop.f32.mrb[38].mxu1 }
 0x15f   :  { %1593 = vst.msk [vmem:[%s2843_s3 + $0x44] sm:$0xf] %vm1575_vm1, %v1846_v31  ;;  %v1204_v35 = vadd.f32 %v1203_v53, %v972_v32  ;;  %v975_v36 = vadd.f32 %v2593_v11, %v974_v34  ;;  %v976_v37 = vpop.f32.mrb[39].mxu1 }
 0x161   :  { %v1347_v40 = vmax.f32 %v1204_v35, 0.0  ;;  %v1207_v41 = vadd.f32 %v1206_v57, %v975_v36  ;;  %v1235_v54 = vpop.f32.mrb[52].mxu0 }
 0x162   :  { %v1237_v55 = vpop.f32.mrb[53].mxu0 }
 0x163   :  { %v1847_v44 = vpack.c.bf16 %v1347_v40, %v1347_v40  ;;  %v1348_v45 = vmax.f32 %v1207_v41, 0.0  ;;  %v1238_v58 = vpop.f32.mrb[54].mxu0 }
 0x164   :  { %v979_v46 = vpop.f32.mrb[40].mxu1  ;;  %v1240_v59 = vpop.f32.mrb[55].mxu0 }
 0x165   :  { %1594 = vst.msk [vmem:[%s2843_s3 + $0x48] sm:$0xf] %vm1575_vm1, %v1847_v44  ;;  %v1848_v47 = vpack.c.bf16 %v1348_v45, %v1348_v45  ;;  %v980_v48 = vadd.f32 %v2593_v11, %v979_v46  ;;  %v981_v49 = vpop.f32.mrb[41].mxu1 }
 0x166   :  { %v982_v50 = vpop.f32.mrb[42].mxu1 }
 0x167   :  { %1595 = vst.msk [vmem:[%s2843_s3 + $0x4c] sm:$0xf] %vm1575_vm1, %v1848_v47  ;;  %v1212_v51 = vadd.f32 %v1211_v5, %v980_v48  ;;  %v983_v52 = vadd.f32 %v2593_v11, %v982_v50  ;;  %v984_v53 = vpop.f32.mrb[43].mxu1 }
 0x169   :  { %v1349_v56 = vmax.f32 %v1212_v51, 0.0  ;;  %v1215_v57 = vadd.f32 %v1214_v9, %v983_v52  ;;  %v1243_v6 = vpop.f32.mrb[56].mxu0 }
 0x16a   :  { %v1245_v7 = vpop.f32.mrb[57].mxu0 }
 0x16b   :  { %v1849_v60 = vpack.c.bf16 %v1349_v56, %v1349_v56  ;;  %v1350_v61 = vmax.f32 %v1215_v57, 0.0  ;;  %v1246_v10 = vpop.f32.mrb[58].mxu0 }
 0x16c   :  { %v987_v62 = vpop.f32.mrb[44].mxu1  ;;  %v1248_v12 = vpop.f32.mrb[59].mxu0 }
 0x16d   :  { %1596 = vst.msk [vmem:[%s2843_s3 + $0x50] sm:$0xf] %vm1575_vm1, %v1849_v60  ;;  %v1850_v63 = vpack.c.bf16 %v1350_v61, %v1350_v61  ;;  %v988_v0 = vadd.f32 %v2593_v11, %v987_v62  ;;  %v989_v1 = vpop.f32.mrb[45].mxu1 }
 0x16e   :  { %v990_v2 = vpop.f32.mrb[46].mxu1 }
 0x16f   :  { %1597 = vst.msk [vmem:[%s2843_s3 + $0x54] sm:$0xf] %vm1575_vm1, %v1850_v63  ;;  %v1220_v3 = vadd.f32 %v1219_v22, %v988_v0  ;;  %v991_v4 = vadd.f32 %v2593_v11, %v990_v2  ;;  %v992_v5 = vpop.f32.mrb[47].mxu1 }
 0x171   :  { %v1351_v8 = vmax.f32 %v1220_v3, 0.0  ;;  %v1223_v9 = vadd.f32 %v1222_v26, %v991_v4  ;;  %v1251_v23 = vpop.f32.mrb[60].mxu0 }
 0x172   :  { %v1253_v24 = vpop.f32.mrb[61].mxu0 }
 0x173   :  { %v1851_v13 = vpack.c.bf16 %v1351_v8, %v1351_v8  ;;  %v1352_v14 = vmax.f32 %v1223_v9, 0.0  ;;  %v1254_v27 = vpop.f32.mrb[62].mxu0 }
 0x174   :  { %v995_v15 = vpop.f32.mrb[48].mxu1  ;;  %v1256_v28 = vpop.f32.mrb[63].mxu0 }
 0x175   :  { %1598 = vst.msk [vmem:[%s2843_s3 + $0x58] sm:$0xf] %vm1575_vm1, %v1851_v13  ;;  %v1852_v16 = vpack.c.bf16 %v1352_v14, %v1352_v14  ;;  %v996_v17 = vadd.f32 %v2593_v11, %v995_v15  ;;  %v997_v18 = vpop.f32.mrb[49].mxu1 }
 0x176   :  { %v998_v19 = vpop.f32.mrb[50].mxu1 }
 0x177   :  { %1599 = vst.msk [vmem:[%s2843_s3 + $0x5c] sm:$0xf] %vm1575_vm1, %v1852_v16  ;;  %v1228_v20 = vadd.f32 %v1227_v38, %v996_v17  ;;  %v999_v21 = vadd.f32 %v2593_v11, %v998_v19  ;;  %v1000_v22 = vpop.f32.mrb[51].mxu1 }
 0x179   :  { %v1353_v25 = vmax.f32 %v1228_v20, 0.0  ;;  %v1231_v26 = vadd.f32 %v1230_v42, %v999_v21  ;;  %v1259_v39 = vpop.f32.mrb[64].mxu0 }
 0x17a   :  { %v1261_v40 = vpop.f32.mrb[65].mxu0 }
 0x17b   :  { %v1853_v29 = vpack.c.bf16 %v1353_v25, %v1353_v25  ;;  %v1354_v30 = vmax.f32 %v1231_v26, 0.0  ;;  %v1262_v43 = vpop.f32.mrb[66].mxu0 }
 0x17c   :  { %v1003_v31 = vpop.f32.mrb[52].mxu1  ;;  %v1264_v44 = vpop.f32.mrb[67].mxu0 }
 0x17d   :  { %1600 = vst.msk [vmem:[%s2843_s3 + $0x60] sm:$0xf] %vm1575_vm1, %v1853_v29  ;;  %v1854_v32 = vpack.c.bf16 %v1354_v30, %v1354_v30  ;;  %v1004_v33 = vadd.f32 %v2593_v11, %v1003_v31  ;;  %v1005_v34 = vpop.f32.mrb[53].mxu1 }
 0x17e   :  { %v1006_v35 = vpop.f32.mrb[54].mxu1 }
 0x17f   :  { %1601 = vst.msk [vmem:[%s2843_s3 + $0x64] sm:$0xf] %vm1575_vm1, %v1854_v32  ;;  %v1236_v36 = vadd.f32 %v1235_v54, %v1004_v33  ;;  %v1007_v37 = vadd.f32 %v2593_v11, %v1006_v35  ;;  %v1008_v38 = vpop.f32.mrb[55].mxu1 }
 0x181   :  { %v1355_v41 = vmax.f32 %v1236_v36, 0.0  ;;  %v1239_v42 = vadd.f32 %v1238_v58, %v1007_v37  ;;  %v1267_v55 = vpop.f32.mrb[68].mxu0 }
 0x182   :  { %v1269_v56 = vpop.f32.mrb[69].mxu0 }
 0x183   :  { %v1855_v45 = vpack.c.bf16 %v1355_v41, %v1355_v41  ;;  %v1356_v46 = vmax.f32 %v1239_v42, 0.0  ;;  %v1270_v59 = vpop.f32.mrb[70].mxu0 }
 0x184   :  { %v1011_v47 = vpop.f32.mrb[56].mxu1  ;;  %v1272_v60 = vpop.f32.mrb[71].mxu0 }
 0x185   :  { %1602 = vst.msk [vmem:[%s2843_s3 + $0x68] sm:$0xf] %vm1575_vm1, %v1855_v45  ;;  %v1856_v48 = vpack.c.bf16 %v1356_v46, %v1356_v46  ;;  %v1012_v49 = vadd.f32 %v2593_v11, %v1011_v47  ;;  %v1013_v50 = vpop.f32.mrb[57].mxu1 }
 0x186   :  { %v1014_v51 = vpop.f32.mrb[58].mxu1 }
 0x187   :  { %1603 = vst.msk [vmem:[%s2843_s3 + $0x6c] sm:$0xf] %vm1575_vm1, %v1856_v48  ;;  %v1244_v52 = vadd.f32 %v1243_v6, %v1012_v49  ;;  %v1015_v53 = vadd.f32 %v2593_v11, %v1014_v51  ;;  %v1016_v54 = vpop.f32.mrb[59].mxu1 }
 0x189   :  { %v1357_v57 = vmax.f32 %v1244_v52, 0.0  ;;  %v1247_v58 = vadd.f32 %v1246_v10, %v1015_v53  ;;  %v1275_v7 = vpop.f32.mrb[72].mxu0 }
 0x18a   :  { %v1277_v8 = vpop.f32.mrb[73].mxu0 }
 0x18b   :  { %v1857_v61 = vpack.c.bf16 %v1357_v57, %v1357_v57  ;;  %v1358_v62 = vmax.f32 %v1247_v58, 0.0  ;;  %v1278_v12 = vpop.f32.mrb[74].mxu0 }
 0x18c   :  { %v1019_v63 = vpop.f32.mrb[60].mxu1  ;;  %v1280_v13 = vpop.f32.mrb[75].mxu0 }
 0x18d   :  { %1604 = vst.msk [vmem:[%s2843_s3 + $0x70] sm:$0xf] %vm1575_vm1, %v1857_v61  ;;  %v1858_v0 = vpack.c.bf16 %v1358_v62, %v1358_v62  ;;  %v1020_v1 = vadd.f32 %v2593_v11, %v1019_v63  ;;  %v1021_v2 = vpop.f32.mrb[61].mxu1 }
 0x18e   :  { %v1022_v3 = vpop.f32.mrb[62].mxu1 }
 0x18f   :  { %1605 = vst.msk [vmem:[%s2843_s3 + $0x74] sm:$0xf] %vm1575_vm1, %v1858_v0  ;;  %v1252_v4 = vadd.f32 %v1251_v23, %v1020_v1  ;;  %v1023_v5 = vadd.f32 %v2593_v11, %v1022_v3  ;;  %v1024_v6 = vpop.f32.mrb[63].mxu1 }
 0x191   :  { %v1359_v9 = vmax.f32 %v1252_v4, 0.0  ;;  %v1255_v10 = vadd.f32 %v1254_v27, %v1023_v5  ;;  %v1283_v24 = vpop.f32.mrb[76].mxu0 }
 0x192   :  { %v1285_v25 = vpop.f32.mrb[77].mxu0 }
 0x193   :  { %v1859_v14 = vpack.c.bf16 %v1359_v9, %v1359_v9  ;;  %v1360_v15 = vmax.f32 %v1255_v10, 0.0  ;;  %v1286_v28 = vpop.f32.mrb[78].mxu0 }
 0x194   :  { %v1027_v16 = vpop.f32.mrb[64].mxu1  ;;  %v1288_v29 = vpop.f32.mrb[79].mxu0 }
 0x195   :  { %1606 = vst.msk [vmem:[%s2843_s3 + $0x78] sm:$0xf] %vm1575_vm1, %v1859_v14  ;;  %v1860_v17 = vpack.c.bf16 %v1360_v15, %v1360_v15  ;;  %v1028_v18 = vadd.f32 %v2593_v11, %v1027_v16  ;;  %v1029_v19 = vpop.f32.mrb[65].mxu1 }
 0x196   :  { %v1030_v20 = vpop.f32.mrb[66].mxu1 }
 0x197   :  { %1607 = vst.msk [vmem:[%s2843_s3 + $0x7c] sm:$0xf] %vm1575_vm1, %v1860_v17  ;;  %v1260_v21 = vadd.f32 %v1259_v39, %v1028_v18  ;;  %v1031_v22 = vadd.f32 %v2593_v11, %v1030_v20  ;;  %v1032_v23 = vpop.f32.mrb[67].mxu1 }
 0x199   :  { %v1361_v26 = vmax.f32 %v1260_v21, 0.0  ;;  %v1263_v27 = vadd.f32 %v1262_v43, %v1031_v22  ;;  %v1291_v40 = vpop.f32.mrb[80].mxu0 }
 0x19a   :  { %v1293_v41 = vpop.f32.mrb[81].mxu0 }
 0x19b   :  { %v1861_v30 = vpack.c.bf16 %v1361_v26, %v1361_v26  ;;  %v1362_v31 = vmax.f32 %v1263_v27, 0.0  ;;  %v1294_v44 = vpop.f32.mrb[82].mxu0 }
 0x19c   :  { %v1035_v32 = vpop.f32.mrb[68].mxu1  ;;  %v1296_v45 = vpop.f32.mrb[83].mxu0 }
 0x19d   :  { %1608 = vst.msk [vmem:[%s2843_s3 + $0x80] sm:$0xf] %vm1575_vm1, %v1861_v30  ;;  %v1862_v33 = vpack.c.bf16 %v1362_v31, %v1362_v31  ;;  %v1036_v34 = vadd.f32 %v2593_v11, %v1035_v32  ;;  %v1037_v35 = vpop.f32.mrb[69].mxu1 }
 0x19e   :  { %v1038_v36 = vpop.f32.mrb[70].mxu1 }
 0x19f   :  { %1609 = vst.msk [vmem:[%s2843_s3 + $0x84] sm:$0xf] %vm1575_vm1, %v1862_v33  ;;  %v1268_v37 = vadd.f32 %v1267_v55, %v1036_v34  ;;  %v1039_v38 = vadd.f32 %v2593_v11, %v1038_v36  ;;  %v1040_v39 = vpop.f32.mrb[71].mxu1 }
 0x1a1   :  { %v1363_v42 = vmax.f32 %v1268_v37, 0.0  ;;  %v1271_v43 = vadd.f32 %v1270_v59, %v1039_v38  ;;  %v1299_v56 = vpop.f32.mrb[84].mxu0 }
 0x1a2   :  { %v1301_v57 = vpop.f32.mrb[85].mxu0 }
 0x1a3   :  { %v1863_v46 = vpack.c.bf16 %v1363_v42, %v1363_v42  ;;  %v1364_v47 = vmax.f32 %v1271_v43, 0.0  ;;  %v1302_v60 = vpop.f32.mrb[86].mxu0 }
 0x1a4   :  { %v1043_v48 = vpop.f32.mrb[72].mxu1  ;;  %v1304_v61 = vpop.f32.mrb[87].mxu0 }
 0x1a5   :  { %1610 = vst.msk [vmem:[%s2843_s3 + $0x88] sm:$0xf] %vm1575_vm1, %v1863_v46  ;;  %v1864_v49 = vpack.c.bf16 %v1364_v47, %v1364_v47  ;;  %v1044_v50 = vadd.f32 %v2593_v11, %v1043_v48  ;;  %v1045_v51 = vpop.f32.mrb[73].mxu1 }
 0x1a6   :  { %v1046_v52 = vpop.f32.mrb[74].mxu1 }
 0x1a7   :  { %1611 = vst.msk [vmem:[%s2843_s3 + $0x8c] sm:$0xf] %vm1575_vm1, %v1864_v49  ;;  %v1276_v53 = vadd.f32 %v1275_v7, %v1044_v50  ;;  %v1047_v54 = vadd.f32 %v2593_v11, %v1046_v52  ;;  %v1048_v55 = vpop.f32.mrb[75].mxu1 }
 0x1a9   :  { %v1365_v58 = vmax.f32 %v1276_v53, 0.0  ;;  %v1279_v59 = vadd.f32 %v1278_v12, %v1047_v54  ;;  %v1307_v8 = vpop.f32.mrb[88].mxu0 }
 0x1aa   :  { %v1309_v9 = vpop.f32.mrb[89].mxu0 }
 0x1ab   :  { %v1865_v62 = vpack.c.bf16 %v1365_v58, %v1365_v58  ;;  %v1366_v63 = vmax.f32 %v1279_v59, 0.0  ;;  %v1310_v13 = vpop.f32.mrb[90].mxu0 }
 0x1ac   :  { %v1051_v0 = vpop.f32.mrb[76].mxu1  ;;  %v1312_v14 = vpop.f32.mrb[91].mxu0 }
 0x1ad   :  { %1612 = vst.msk [vmem:[%s2843_s3 + $0x90] sm:$0xf] %vm1575_vm1, %v1865_v62  ;;  %v1866_v1 = vpack.c.bf16 %v1366_v63, %v1366_v63  ;;  %v1052_v2 = vadd.f32 %v2593_v11, %v1051_v0  ;;  %v1053_v3 = vpop.f32.mrb[77].mxu1 }
 0x1ae   :  { %v1054_v4 = vpop.f32.mrb[78].mxu1 }
 0x1af   :  { %1613 = vst.msk [vmem:[%s2843_s3 + $0x94] sm:$0xf] %vm1575_vm1, %v1866_v1  ;;  %v1284_v5 = vadd.f32 %v1283_v24, %v1052_v2  ;;  %v1055_v6 = vadd.f32 %v2593_v11, %v1054_v4  ;;  %v1056_v7 = vpop.f32.mrb[79].mxu1 }
 0x1b1   :  { %v1367_v10 = vmax.f32 %v1284_v5, 0.0  ;;  %v1287_v12 = vadd.f32 %v1286_v28, %v1055_v6  ;;  %v1315_v25 = vpop.f32.mrb[92].mxu0 }
 0x1b2   :  { %v1317_v26 = vpop.f32.mrb[93].mxu0 }
 0x1b3   :  { %v1867_v15 = vpack.c.bf16 %v1367_v10, %v1367_v10  ;;  %v1368_v16 = vmax.f32 %v1287_v12, 0.0  ;;  %v1318_v29 = vpop.f32.mrb[94].mxu0 }
 0x1b4   :  { %v1059_v17 = vpop.f32.mrb[80].mxu1  ;;  %v1320_v30 = vpop.f32.mrb[95].mxu0 }
 0x1b5   :  { %1614 = vst.msk [vmem:[%s2843_s3 + $0x98] sm:$0xf] %vm1575_vm1, %v1867_v15  ;;  %v1868_v18 = vpack.c.bf16 %v1368_v16, %v1368_v16  ;;  %v1060_v19 = vadd.f32 %v2593_v11, %v1059_v17  ;;  %v1061_v20 = vpop.f32.mrb[81].mxu1 }
 0x1b6   :  { %v1062_v21 = vpop.f32.mrb[82].mxu1 }
 0x1b7   :  { %1615 = vst.msk [vmem:[%s2843_s3 + $0x9c] sm:$0xf] %vm1575_vm1, %v1868_v18  ;;  %v1292_v22 = vadd.f32 %v1291_v40, %v1060_v19  ;;  %v1063_v23 = vadd.f32 %v2593_v11, %v1062_v21  ;;  %v1064_v24 = vpop.f32.mrb[83].mxu1 }
 0x1b9   :  { %v1369_v27 = vmax.f32 %v1292_v22, 0.0  ;;  %v1295_v28 = vadd.f32 %v1294_v44, %v1063_v23  ;;  %v1323_v41 = vpop.f32.mrb[96].mxu0 }
 0x1ba   :  { %v1325_v42 = vpop.f32.mrb[97].mxu0 }
 0x1bb   :  { %v1869_v31 = vpack.c.bf16 %v1369_v27, %v1369_v27  ;;  %v1370_v32 = vmax.f32 %v1295_v28, 0.0  ;;  %v1326_v45 = vpop.f32.mrb[98].mxu0 }
 0x1bc   :  { %v1067_v33 = vpop.f32.mrb[84].mxu1  ;;  %v1327_v46 = vpop.f32.mrb[99].mxu0 }
 0x1bd   :  { %1616 = vst.msk [vmem:[%s2843_s3 + $0xa0] sm:$0xf] %vm1575_vm1, %v1869_v31  ;;  %v1870_v34 = vpack.c.bf16 %v1370_v32, %v1370_v32  ;;  %v1068_v35 = vadd.f32 %v2593_v11, %v1067_v33  ;;  %v1069_v36 = vpop.f32.mrb[85].mxu1 }
 0x1be   :  { %v1070_v37 = vpop.f32.mrb[86].mxu1 }
 0x1bf   :  { %1617 = vst.msk [vmem:[%s2843_s3 + $0xa4] sm:$0xf] %vm1575_vm1, %v1870_v34  ;;  %v1300_v38 = vadd.f32 %v1299_v56, %v1068_v35  ;;  %v1071_v39 = vadd.f32 %v2593_v11, %v1070_v37  ;;  %v1072_v40 = vpop.f32.mrb[87].mxu1 }
 0x1c1   :  { %v1371_v43 = vmax.f32 %v1300_v38, 0.0  ;;  %v1303_v44 = vadd.f32 %v1302_v60, %v1071_v39 }
 0x1c3   :  { %v1871_v47 = vpack.c.bf16 %v1371_v43, %v1371_v43  ;;  %v1372_v48 = vmax.f32 %v1303_v44, 0.0 }
 0x1c4   :  { %v1075_v49 = vpop.f32.mrb[88].mxu1 }
 0x1c5   :  { %1618 = vst.msk [vmem:[%s2843_s3 + $0xa8] sm:$0xf] %vm1575_vm1, %v1871_v47  ;;  %v1872_v50 = vpack.c.bf16 %v1372_v48, %v1372_v48  ;;  %v1076_v51 = vadd.f32 %v2593_v11, %v1075_v49  ;;  %v1077_v52 = vpop.f32.mrb[89].mxu1 }
 0x1c6   :  { %v1078_v53 = vpop.f32.mrb[90].mxu1 }
 0x1c7   :  { %1619 = vst.msk [vmem:[%s2843_s3 + $0xac] sm:$0xf] %vm1575_vm1, %v1872_v50  ;;  %v1308_v54 = vadd.f32 %v1307_v8, %v1076_v51  ;;  %v1079_v55 = vadd.f32 %v2593_v11, %v1078_v53  ;;  %v1080_v56 = vpop.f32.mrb[91].mxu1 }
 0x1c9   :  { %v1373_v57 = vmax.f32 %v1308_v54, 0.0  ;;  %v1311_v58 = vadd.f32 %v1310_v13, %v1079_v55 }
 0x1cb   :  { %v1873_v59 = vpack.c.bf16 %v1373_v57, %v1373_v57  ;;  %v1374_v60 = vmax.f32 %v1311_v58, 0.0 }
 0x1cc   :  { %v1083_v61 = vpop.f32.mrb[92].mxu1 }
 0x1cd   :  { %1620 = vst.msk [vmem:[%s2843_s3 + $0xb0] sm:$0xf] %vm1575_vm1, %v1873_v59  ;;  %v1874_v62 = vpack.c.bf16 %v1374_v60, %v1374_v60  ;;  %v1084_v63 = vadd.f32 %v2593_v11, %v1083_v61  ;;  %v1085_v0 = vpop.f32.mrb[93].mxu1 }
 0x1ce   :  { %v1086_v1 = vpop.f32.mrb[94].mxu1 }
 0x1cf   :  { %1621 = vst.msk [vmem:[%s2843_s3 + $0xb4] sm:$0xf] %vm1575_vm1, %v1874_v62  ;;  %v1316_v2 = vadd.f32 %v1315_v25, %v1084_v63  ;;  %v1087_v3 = vadd.f32 %v2593_v11, %v1086_v1  ;;  %v1088_v4 = vpop.f32.mrb[95].mxu1 }
 0x1d1   :  { %v1375_v5 = vmax.f32 %v1316_v2, 0.0  ;;  %v1319_v6 = vadd.f32 %v1318_v29, %v1087_v3 }
 0x1d3   :  { %v1875_v7 = vpack.c.bf16 %v1375_v5, %v1375_v5  ;;  %v1376_v8 = vmax.f32 %v1319_v6, 0.0 }
 0x1d4   :  { %v1091_v9 = vpop.f32.mrb[96].mxu1 }
 0x1d5   :  { %1622 = vst.msk [vmem:[%s2843_s3 + $0xb8] sm:$0xf] %vm1575_vm1, %v1875_v7  ;;  %v1876_v10 = vpack.c.bf16 %v1376_v8, %v1376_v8  ;;  %v1092_v12 = vadd.f32 %v2593_v11, %v1091_v9  ;;  %v1093_v13 = vpop.f32.mrb[97].mxu1 }
 0x1d6   :  { %v1094_v14 = vpop.f32.mrb[98].mxu1 }
 0x1d7   :  { %1623 = vst.msk [vmem:[%s2843_s3 + $0xbc] sm:$0xf] %vm1575_vm1, %v1876_v10  ;;  %v1324_v15 = vadd.f32 %v1323_v41, %v1092_v12  ;;  %v1095_v16 = vpop.f32.mrb[99].mxu1 }
 0x1d9   :  { %v1377_v17 = vmax.f32 %v1324_v15, 0.0 }
 0x1db   :  { %v1877_v18 = vpack.c.bf16 %v1377_v17, %v1377_v17 }
 0x1dd   :  { %1624 = vst.msk [vmem:[%s2843_s3 + $0xc0] sm:$0xf] %vm1575_vm1, %v1877_v18 }

// kernel: classifier_forward.5
= control target key start
LH: loop header
LB: loop body
LE: loop exit
PB: predicated region body
PF: predicated region fallthrough
CT: control target
= control target key end

     0   :  { %s5837_s0 = inlined_call_operand.vmem [shape: bf16[72,800], index: 0, kind: input, shape index: {}]   ;;  %s5838_s1 = inlined_call_operand.vmem [shape: bf16[800,48], index: 1, kind: input, shape index: {}]   ;;  %s5839_s2 = inlined_call_operand.vmem [shape: f32[1,48], index: 2, kind: input, shape index: {}]   ;;  %s5840_s3 = inlined_call_operand.vmem [shape: f32[432,64], index: 3, kind: input, shape index: {}]   ;;  %s5841_s4 = inlined_call_operand.vmem [shape: f32[1,64], index: 4, kind: input, shape index: {}]   ;;  %s5842_s5 = inlined_call_operand.vmem [shape: f32[256,256], index: 5, kind: input, shape index: {}]   ;;  %s5843_s6 = inlined_call_operand.vmem [shape: f32[1,256], index: 6, kind: input, shape index: {}]   ;;  %s5844_s7 = inlined_call_operand.vmem [shape: f32[256,64], index: 7, kind: input, shape index: {}]   ;;  %s5845_s8 = inlined_call_operand.vmem [shape: f32[1,64], index: 8, kind: input, shape index: {}]   ;;  %s5846_s9 = inlined_call_operand.vmem [shape: f32[64,512], index: 9, kind: input, shape index: {}]   ;;  %s5847_s10 = inlined_call_operand.vmem [shape: f32[128,512], index: 10, kind: input, shape index: {}]   ;;  %s5848_s11 = inlined_call_operand.vmem [shape: f32[1,512], index: 11, kind: input, shape index: {}]   ;;  %s5849_s12 = inlined_call_operand.vmem [shape: f32[256,128], index: 12, kind: input, shape index: {}]   ;;  %s5850_s13 = inlined_call_operand.vmem [shape: f32[1,128], index: 13, kind: input, shape index: {}]   ;;  %s5851_s14 = inlined_call_operand.vmem [shape: f32[128,64], index: 14, kind: input, shape index: {}]   ;;  %s5852_s15 = inlined_call_operand.vmem [shape: f32[1,64], index: 15, kind: input, shape index: {}]   ;;  %s5853_s16 = inlined_call_operand.vmem [shape: f32[64,64], index: 16, kind: input, shape index: {}]   ;;  %s5854_s17 = inlined_call_operand.vmem [shape: f32[1,64], index: 17, kind: input, shape index: {}]   ;;  %s5855_s18 = inlined_call_operand.vmem [shape: f32[64,2], index: 18, kind: input, shape index: {}]   ;;  %s5856_s19 = inlined_call_operand.vmem [shape: f32[1,2], index: 19, kind: input, shape index: {}]   ;;  %s5857_s20 = inlined_call_operand.hbm [shape: f32[1,2], index: 20, kind: output, shape index: {}]  }
   0x1   :  { %5869 = sst [smem:[#allocation6_spill]] %s5837_s0 }
   0x2   :  { %5870 = sst [smem:[#allocation7_spill]] %s5838_s1 }
   0x3   :  { %5871 = sst [smem:[#allocation8_spill]] %s5839_s2 }
   0x4   :  { %5872 = sst [smem:[#allocation9_spill]] %s5840_s3 }
   0x5   :  { %5873 = sst [smem:[#allocation10_spill]] %s5841_s4 }
   0x6   :  { %s5874_s23 = sld [smem:[#allocation7_spill]]  ;;  %s5875_s28 = sld [smem:[#allocation6_spill]]  ;;  %v4148_v38 = vmov 0.0   ;;  %vm4149_vm0 = vmmov 0  }
   0xc   :  { %v3995_v0 = vld [vmem:[%s5874_s23 + $0x40] sm:$0xff]   ;;  %v3999_v4 = vld [vmem:[%s5874_s23 + $0x48] sm:$0xff]   ;;  %v4003_v8 = vld [vmem:[%s5874_s23 + $0x50] sm:$0xff]  }
   0xd   :  { %v3996_v1 = vld [vmem:[%s5874_s23] sm:$0xff]   ;;  %3056 = vmatprep.subr.bf16.mxu0 %v3995_v0  ;;  %v4000_v5 = vld [vmem:[%s5874_s23 + $0x8] sm:$0xff]   ;;  %v4004_v9 = vld [vmem:[%s5874_s23 + $0x10] sm:$0xff]  }
   0xe   :  { %v3997_v2 = vld [vmem:[%s5874_s23 + $0xc0] sm:$0xff]   ;;  %3057 = vmatpush3.bf16.msra.mxu0 %v3996_v1  ;;  %v4001_v6 = vld [vmem:[%s5874_s23 + $0xc8] sm:$0xff]   ;;  %v4005_v10 = vld [vmem:[%s5874_s23 + $0xd0] sm:$0xff]  }
   0xf   :  { %v3998_v3 = vld [vmem:[%s5874_s23 + $0x80] sm:$0xff]   ;;  %3102 = vmatprep.subr.bf16.mxu1 %v3997_v2  ;;  %3058 = vmatprep.subr.bf16.mxu0 %v3999_v4  ;;  %v4002_v7 = vld [vmem:[%s5874_s23 + $0x88] sm:$0xff]   ;;  %v4006_v11 = vld [vmem:[%s5874_s23 + $0x90] sm:$0xff]  }
  0x10   :  { %3103 = vmatpush3.bf16.msra.mxu1 %v3998_v3  ;;  %v4007_v12 = vld [vmem:[%s5874_s23 + $0x58] sm:$0xff]   ;;  %v4011_v16 = vld [vmem:[%s5874_s23 + $0x60] sm:$0xff]   ;;  %v4015_v20 = vld [vmem:[%s5874_s23 + $0x68] sm:$0xff]  }
  0x11   :  { %3104 = vmatprep.subr.bf16.mxu1 %v4001_v6  ;;  %v4008_v13 = vld [vmem:[%s5874_s23 + $0x18] sm:$0xff]   ;;  %v4012_v17 = vld [vmem:[%s5874_s23 + $0x20] sm:$0xff]   ;;  %v4016_v21 = vld [vmem:[%s5874_s23 + $0x28] sm:$0xff]  }
  0x12   :  { %3059 = vmatpush3.bf16.msra.mxu0 %v4000_v5  ;;  %v4009_v14 = vld [vmem:[%s5874_s23 + $0xd8] sm:$0xff]   ;;  %v4013_v18 = vld [vmem:[%s5874_s23 + $0xe0] sm:$0xff]   ;;  %v4017_v22 = vld [vmem:[%s5874_s23 + $0xe8] sm:$0xff]  }
  0x13   :  { %3060 = vmatprep.subr.bf16.mxu0 %v4003_v8  ;;  %v4010_v15 = vld [vmem:[%s5874_s23 + $0x98] sm:$0xff]   ;;  %v4014_v19 = vld [vmem:[%s5874_s23 + $0xa0] sm:$0xff]   ;;  %v4018_v23 = vld [vmem:[%s5874_s23 + $0xa8] sm:$0xff]  }
  0x14   :  { %3105 = vmatpush3.bf16.msra.mxu1 %v4002_v7  ;;  %v4019_v24 = vld [vmem:[%s5874_s23 + $0x70] sm:$0xff]   ;;  %v4023_v28 = vld [vmem:[%s5874_s23 + $0x78] sm:$0xff]   ;;  %v4028_v32 = vld [vmem:[%s5875_s28 + $0x4] ss:$28 sps:$4 sm:$0xff]  }
  0x15   :  { %3106 = vmatprep.subr.bf16.mxu1 %v4005_v10  ;;  %v4020_v25 = vld [vmem:[%s5874_s23 + $0x30] sm:$0xff]   ;;  %v4024_v29 = vld [vmem:[%s5874_s23 + $0x38] sm:$0xff]   ;;  %722 = vmatprep.mubr.bf16.mxu0 %v4028_v32  ;;  %v4030_v34 = vld [vmem:[%s5874_s23 + $0x140] sm:$0xff]  }
  0x16   :  { %3061 = vmatpush3.bf16.msra.mxu0 %v4004_v9  ;;  %v4021_v26 = vld [vmem:[%s5874_s23 + $0xf0] sm:$0xff]   ;;  %v4025_v30 = vld [vmem:[%s5874_s23 + $0xf8] sm:$0xff]   ;;  %v4031_v35 = vld [vmem:[%s5875_s28 + $0x8] ss:$28 sps:$4 sm:$0xff]  }
  0x17   :  { %3062 = vmatprep.subr.bf16.mxu0 %v4007_v12  ;;  %v4022_v27 = vld [vmem:[%s5874_s23 + $0xb0] sm:$0xff]   ;;  %v4026_v31 = vld [vmem:[%s5875_s28] ss:$28 sps:$4 sm:$0xff]   ;;  %v4033_v36 = vld [vmem:[%s5875_s28 + $0xc] ss:$28 sps:$4 sm:$0xff]  }
  0x18   :  { %3107 = vmatpush3.bf16.msra.mxu1 %v4006_v11  ;;  %v4029_v33 = vld [vmem:[%s5874_s23 + $0xb8] sm:$0xff]   ;;  %v4034_v37 = vld [vmem:[%s5874_s23 + $0x100] sm:$0xff]   ;;  %794 = vmatprep.mubr.bf16.mxu1 %v4033_v36  ;;  %v4035_v39 = vld [vmem:[%s5874_s23 + $0x148] sm:$0xff]  }
  0x19   :  { %3108 = vmatprep.subr.bf16.mxu1 %v4009_v14  ;;  %v4036_v40 = vld [vmem:[%s5874_s23 + $0x108] sm:$0xff]   ;;  %v4037_v41 = vld [vmem:[%s5874_s23 + $0x180] sm:$0xff]   ;;  %v4038_v42 = vld [vmem:[%s5875_s28 + $0x3c] ss:$28 sps:$4 sm:$0xff]  }
  0x1a   :  { %3063 = vmatpush3.bf16.msra.mxu0 %v4008_v13  ;;  %v4040_v43 = vld [vmem:[%s5875_s28 + $0x38] ss:$28 sps:$4 sm:$0xff]   ;;  %v4041_v44 = vld [vmem:[%s5875_s28 + $0x44] ss:$28 sps:$4 sm:$0xff]   ;;  %v4049_v50 = vld [vmem:[%s5875_s28 + $0x70] ss:$28 sps:$4 sm:$0xff]  }
  0x1b   :  { %3064 = vmatprep.subr.bf16.mxu0 %v4011_v16  ;;  %v4043_v45 = vld [vmem:[%s5875_s28 + $0x40] ss:$28 sps:$4 sm:$0xff]   ;;  %v4044_v46 = vld [vmem:[%s5874_s23 + $0x150] sm:$0xff]   ;;  %v4056_v56 = vld [vmem:[%s5875_s28 + $0xac] ss:$28 sps:$4 sm:$0xff]  }
  0x1c   :  { %3109 = vmatpush3.bf16.msra.mxu1 %v4010_v15  ;;  %v4045_v47 = vld [vmem:[%s5874_s23 + $0x110] sm:$0xff]   ;;  %v4048_v49 = vld [vmem:[%s5874_s23 + $0x158] sm:$0xff]   ;;  %v4054_v54 = vld [vmem:[%s5874_s23 + $0x160] sm:$0xff]  }
  0x1d   :  { %3110 = vmatprep.subr.bf16.mxu1 %v4013_v18  ;;  %v4046_v48 = vld [vmem:[%s5875_s28 + $0x74] ss:$28 sps:$4 sm:$0xff]   ;;  %v4050_v51 = vld [vmem:[%s5874_s23 + $0x118] sm:$0xff]   ;;  %v4055_v55 = vld [vmem:[%s5874_s23 + $0x120] sm:$0xff]  }
  0x1e   :  { %3065 = vmatpush3.bf16.msra.mxu0 %v4012_v17  ;;  %v4051_v52 = vld [vmem:[%s5875_s28 + $0x7c] ss:$28 sps:$4 sm:$0xff]   ;;  %v4059_v57 = vld [vmem:[%s5875_s28 + $0xb4] ss:$28 sps:$4 sm:$0xff]   ;;  %v4058_v58 = vld [vmem:[%s5875_s28 + $0xa8] ss:$28 sps:$4 sm:$0xff]  }
  0x1f   :  { %3066 = vmatprep.subr.bf16.mxu0 %v4015_v20  ;;  %v4053_v53 = vld [vmem:[%s5875_s28 + $0x78] ss:$28 sps:$4 sm:$0xff]   ;;  %v4061_v59 = vld [vmem:[%s5874_s23 + $0x168] sm:$0xff]   ;;  %v99_v0 = vld [vmem:[%s5875_s28 + $0xe0] sm:$0xff] }
  0x20   :  { %3111 = vmatpush3.bf16.msra.mxu1 %v4014_v19  ;;  %v4063_v60 = vld [vmem:[%s5874_s23 + $0x128] sm:$0xff]   ;;  %v4065_v63 = vld [vmem:[%s5874_s23 + $0x170] sm:$0xff]   ;;  %v2982_v1 = vcombine.high %v99_v0, %v99_v0  ;;  %v4071_v5 = vld [vmem:[%s5874_s23 + $0x178] sm:$0xff]   ;;  %v2981_v7 = vcombine.low %v99_v0, %v99_v0 }
  0x21   :  { %3112 = vmatprep.subr.bf16.mxu1 %v4017_v22  ;;  %v4062_v61 = vld [vmem:[%s5875_s28 + $0xb0] ss:$28 sps:$4 sm:$0xff]   ;;  %v4072_v6 = vld [vmem:[%s5874_s23 + $0x138] sm:$0xff]  }
  0x22   :  { %3067 = vmatpush3.bf16.msra.mxu0 %v4016_v21  ;;  %v4064_v62 = vld [vmem:[%s5874_s23 + $0x188] sm:$0xff]   ;;  %v4067_v2 = vld [vmem:[%s5874_s23 + $0x130] sm:$0xff]  }
  0x23   :  { %3068 = vmatprep.subr.bf16.mxu0 %v4019_v24  ;;  %v100_v3 = vld [vmem:[%s5875_s28 + $0xe8] sm:$0xff]  ;;  %v4075_v8 = vld [vmem:[%s5875_s28 + $0x14] ss:$28 sps:$4 sm:$0xff]  }
  0x24   :  { %3113 = vmatpush3.bf16.msra.mxu1 %v4018_v23  ;;  %v2984_v4 = vcombine.high %v100_v3, %v100_v3  ;;  %v2983_v9 = vcombine.low %v100_v3, %v100_v3  ;;  %v4073_v10 = vld [vmem:[%s5875_s28 + $0x10] ss:$28 sps:$4 sm:$0xff]  }
  0x25   :  { %3114 = vmatprep.subr.bf16.mxu1 %v4021_v26 }
  0x26   :  { %3069 = vmatpush3.bf16.msra.mxu0 %v4020_v25 }
  0x27   :  { %3070 = vmatprep.subr.bf16.mxu0 %v4023_v28 }
  0x28   :  { %3115 = vmatpush3.bf16.msra.mxu1 %v4022_v27 }
  0x29   :  { %3116 = vmatprep.subr.bf16.mxu1 %v4025_v30 }
  0x2a   :  { %3071 = vmatpush3.bf16.msra.mxu0 %v4024_v29 }
  0x2b   :  { %3148 = vmatprep.subr.bf16.mxu0 %v4030_v34 }
  0x2c   :  { %3117 = vmatpush3.bf16.msra.mxu1 %v4029_v33 }
  0x2d   :  { %723 = vmatmul.mubr.bf16.vlgmr.msra.gmra.mrb[0].mxu0 %v4026_v31  ;;  %3341 = vmatprep.subr.bf16.mxu1 %v4148_v38 }
  0x2e   :  { %3149 = vmatpush3.bf16.msra.mxu0 %v4034_v37  ;;  %730 = vmatprep.mubr.bf16.mxu0 %v4038_v42 }
  0x2f   :  { %795 = vmatmul.mubr.bf16.vlgmr.msra.gmra.mrb[0].mxu1 %v4031_v35  ;;  %3150 = vmatprep.subr.bf16.mxu0 %v4035_v39 }
  0x30   :  { %3342 = vmatpush3.bf16.msra.mxu1 %v4037_v41  ;;  %802 = vmatprep.mubr.bf16.mxu1 %v4041_v44 }
  0x31   :  { %3343 = vmatprep.subr.bf16.mxu1 %v4148_v38 }
  0x32   :  { %3151 = vmatpush3.bf16.msra.mxu0 %v4036_v40 }
  0x33   :  { %3152 = vmatprep.subr.bf16.mxu0 %v4044_v46 }
  0x34   :  { %3344 = vmatpush3.bf16.msra.mxu1 %v4064_v62 }
  0x35   :  { %731 = vmatmul.mubr.bf16.gmra.mrb[4].mxu0 %v4040_v43 }
  0x36   :  { %3153 = vmatpush3.bf16.msra.mxu0 %v4045_v47  ;;  %738 = vmatprep.mubr.bf16.mxu0 %v4046_v48 }
  0x37   :  { %803 = vmatmul.mubr.bf16.gmra.mrb[4].mxu1 %v4043_v45  ;;  %3154 = vmatprep.subr.bf16.mxu0 %v4048_v49 }
  0x38   :  { %810 = vmatprep.mubr.bf16.mxu1 %v4051_v52 }
  0x3a   :  { %3155 = vmatpush3.bf16.msra.mxu0 %v4050_v51 }
  0x3b   :  { %3156 = vmatprep.subr.bf16.mxu0 %v4054_v54 }
  0x3d   :  { %739 = vmatmul.mubr.bf16.gmra.mrb[8].mxu0 %v4049_v50 }
  0x3e   :  { %746 = vmatprep.mubr.bf16.mxu0 %v4056_v56  ;;  %3157 = vmatpush3.bf16.msra.mxu0 %v4055_v55 }
  0x3f   :  { %811 = vmatmul.mubr.bf16.gmra.mrb[8].mxu1 %v4053_v53  ;;  %3158 = vmatprep.subr.bf16.mxu0 %v4061_v59 }
  0x40   :  { %818 = vmatprep.mubr.bf16.mxu1 %v4059_v57 }
  0x42   :  { %3159 = vmatpush3.bf16.msra.mxu0 %v4063_v60 }
  0x43   :  { %3160 = vmatprep.subr.bf16.mxu0 %v4065_v63 }
  0x45   :  { %747 = vmatmul.mubr.bf16.gmra.mrb[12].mxu0 %v4058_v58 }
  0x46   :  { %754 = vmatprep.mubr.bf16.mxu0 %v2982_v1  ;;  %3161 = vmatpush3.bf16.msra.mxu0 %v4067_v2 }
  0x47   :  { %819 = vmatmul.mubr.bf16.gmra.mrb[12].mxu1 %v4062_v61  ;;  %3162 = vmatprep.subr.bf16.mxu0 %v4071_v5 }
  0x48   :  { %826 = vmatprep.mubr.bf16.mxu1 %v2984_v4 }
  0x4a   :  { %3163 = vmatpush3.bf16.msra.mxu0 %v4072_v6 }
  0x4d   :  { %755 = vmatmul.mubr.bf16.gmra.mrb[16].mxu0 %v2981_v7 }
  0x4e   :  { %866 = vmatprep.mubr.bf16.mxu0 %v4075_v8 }
  0x4f   :  { %827 = vmatmul.mubr.bf16.gmra.mrb[16].mxu1 %v2983_v9 }
  0x50   :  { %3345 = vmatprep.mubr.msk.bf16.mxu1 %vm4149_vm0, %v4148_v38 }
  0x51   :  { %25 = vsyncpa [#allocation4], 0  ;;  %v4077_v11 = vld [vmem:[%s5875_s28 + $0x4c] ss:$28 sps:$4 sm:$0xff]   ;;  %v4076_v12 = vld [vmem:[%s5875_s28 + $0x18] ss:$28 sps:$4 sm:$0xff]  }
  0x52   :  { %vm674_vm1 = vcmask 261120   ;;  %v4079_v13 = vld [vmem:[%s5875_s28 + $0x48] ss:$28 sps:$4 sm:$0xff]   ;;  %v4080_v15 = vld [vmem:[%s5875_s28 + $0x50] ss:$28 sps:$4 sm:$0xff]   ;;  %s5876_s25 = sld [smem:[#allocation8_spill]] }
  0x53   :  { %v4081_v14 = vld [vmem:[%s5875_s28 + $0x84] ss:$28 sps:$4 sm:$0xff]   ;;  %v4085_v17 = vld [vmem:[%s5875_s28 + $0xbc] ss:$28 sps:$4 sm:$0xff]   ;;  %v101_v19 = vld [vmem:[%s5875_s28 + $0xf0] sm:$0xff]  ;;  %vm987_vm2 = vcmask 392192  }
  0x54   :  { %v4083_v16 = vld [vmem:[%s5875_s28 + $0x80] ss:$28 sps:$4 sm:$0xff]   ;;  %v4084_v18 = vld [vmem:[%s5875_s28 + $0x88] ss:$28 sps:$4 sm:$0xff]   ;;  %v4087_v20 = vld [vmem:[%s5875_s28 + $0xb8] ss:$28 sps:$4 sm:$0xff]   ;;  %v2986_v21 = vcombine.high %v101_v19, %v101_v19  ;;  %v2985_v23 = vcombine.low %v101_v19, %v101_v19 }
  0x55   :  { %867 = vmatmul.mubr.bf16.vlgmr.msra.gmra.mrb[20].mxu0 %v4073_v10  ;;  %v4088_v22 = vld [vmem:[%s5875_s28 + $0xc0] ss:$28 sps:$4 sm:$0xff]   ;;  %v4091_v24 = vld [vmem:[%s5875_s28 + $0xf8] ss:$0 sps:$4 sm:$0xff]   ;;  %s4150_s28 = smov 96   ;;  %s5877_s26 = sld [smem:[#allocation9_spill]] }
  0x56   :  { %874 = vmatprep.mubr.bf16.mxu0 %v4077_v11  ;;  %s4151_s27 = smov 48   ;;  %s5867_s30 = smov 64   ;;  %vm1438_vm3 = vcmask 1040384   ;;  %vm1443_vm4 = vcmask 1041408   ;;  %vm1448_vm5 = vcmask 1042432   ;;  %vm1453_vm6 = vcmask 1043456  }
  0x57   :  { %3346 = vmatmul.mubr.msk.bf16.vlgmr.msra.gmra.mrb[20].mxu1 %vm674_vm1, %v4076_v12  ;;  %s4153_s0 = smov 16   ;;  %s5865_s2 = smov 112   ;;  %vm1458_vm7 = vcmask 1044480   ;;  %vm1463_vm8 = vcmask 1045504   ;;  %vm1468_vm9 = vcmask 1046528   ;;  %vm1035_vm10 = vcmask 785408  }
  0x58   :  { %3349 = vmatprep.mubr.msk.bf16.mxu1 %vm4149_vm0, %v4148_v38  ;;  %v4530_v26 = vld [vmem:[%s5876_s25] ss:$0 sm:$0xff]  ;;  %s5863_s21 = smov 80   ;;  %s5861_s1 = smov 32   ;;  %vm1037_vm11 = vcmask 130048   ;;  %vm1039_vm12 = vcmask 523264  }
  0x59   :  { %s5878_s25 = smov 64   ;;  %s5879_s23 = smov 112   ;;  %vm1041_vm13 = vcmask 916480   ;;  %vm1044_vm14 = vcmask 654336   ;;  %vm2936_vm15 = vcmask 8192  }
  0x5a   :  { %s5881_s22 = smov 32  }
  0x5d   :  { %875 = vmatmul.mubr.bf16.gmra.mrb[24].mxu0 %v4079_v13 }
  0x5e   :  { %882 = vmatprep.mubr.bf16.mxu0 %v4081_v14 }
  0x5f   :  { %3350 = vmatmul.mubr.msk.bf16.gmra.mrb[24].mxu1 %vm674_vm1, %v4080_v15 }
  0x60   :  { %3353 = vmatprep.mubr.msk.bf16.mxu1 %vm4149_vm0, %v4148_v38 }
  0x65   :  { %883 = vmatmul.mubr.bf16.gmra.mrb[28].mxu0 %v4083_v16 }
  0x66   :  { %890 = vmatprep.mubr.bf16.mxu0 %v4085_v17 }
  0x67   :  { %3354 = vmatmul.mubr.msk.bf16.gmra.mrb[28].mxu1 %vm674_vm1, %v4084_v18 }
  0x68   :  { %3357 = vmatprep.mubr.msk.bf16.mxu1 %vm4149_vm0, %v4148_v38 }
  0x6d   :  { %891 = vmatmul.mubr.bf16.gmra.mrb[32].mxu0 %v4087_v20 }
  0x6e   :  { %898 = vmatprep.mubr.bf16.mxu0 %v2986_v21 }
  0x6f   :  { %3358 = vmatmul.mubr.msk.bf16.gmra.mrb[32].mxu1 %vm674_vm1, %v4088_v22 }
  0x70   :  { %3361 = vmatprep.mubr.msk.bf16.mxu1 %vm4149_vm0, %v4148_v38 }
  0x75   :  { %899 = vmatmul.mubr.bf16.gmra.mrb[36].mxu0 %v2985_v23 }
  0x77   :  { %3362 = vmatmul.mubr.msk.bf16.gmra.mrb[36].mxu1 %vm674_vm1, %v4091_v24 }
 0x100   :  { %v3072_v25 = vpop.f32.mrb[0].mxu0 }
 0x101   :  { %v3073_v27 = vpop.f32.mrb[1].mxu0 }
 0x102   :  { %v3074_v28 = vadd.f32 %v3073_v27, %v3072_v25  ;;  %v3075_v29 = vpop.f32.mrb[2].mxu0  ;;  %v3118_v30 = vpop.f32.mrb[0].mxu1 }
 0x103   :  { %v3076_v31 = vpop.f32.mrb[3].mxu0  ;;  %v3119_v34 = vpop.f32.mrb[1].mxu1 }
 0x104   :  { %v725_v32 = vadd.f32 %v3074_v28, %v4530_v26  ;;  %v3077_v33 = vadd.f32 %v3076_v31, %v3075_v29  ;;  %v3120_v35 = vadd.f32 %v3119_v34, %v3118_v30  ;;  %v3121_v36 = vpop.f32.mrb[2].mxu1 }
 0x105   :  { %v3122_v39 = vpop.f32.mrb[3].mxu1 }
 0x106   :  { %v728_v37 = vadd.f32 %v3077_v33, %v4530_v26  ;;  %v4534_v40 = vadd.f32 %v3120_v35, %v725_v32  ;;  %v3123_v41 = vadd.f32 %v3122_v39, %v3121_v36 }
 0x108   :  { %v3078_v42 = vpop.f32.mrb[4].mxu0  ;;  %v4536_v43 = vadd.f32 %v3123_v41, %v728_v37 }
 0x109   :  { %v3079_v44 = vpop.f32.mrb[5].mxu0 }
 0x10a   :  { %v3080_v45 = vadd.f32 %v3079_v44, %v3078_v42  ;;  %v3081_v46 = vpop.f32.mrb[6].mxu0  ;;  %v3124_v47 = vpop.f32.mrb[4].mxu1 }
 0x10b   :  { %v3082_v48 = vpop.f32.mrb[7].mxu0  ;;  %v3125_v51 = vpop.f32.mrb[5].mxu1 }
 0x10c   :  { %v733_v49 = vadd.f32 %v3080_v45, %v4530_v26  ;;  %v3083_v50 = vadd.f32 %v3082_v48, %v3081_v46  ;;  %v3126_v52 = vadd.f32 %v3125_v51, %v3124_v47  ;;  %v3127_v53 = vpop.f32.mrb[6].mxu1 }
 0x10d   :  { %v3128_v55 = vpop.f32.mrb[7].mxu1 }
 0x10e   :  { %v736_v54 = vadd.f32 %v3083_v50, %v4530_v26  ;;  %v4540_v56 = vadd.f32 %v3126_v52, %v733_v49  ;;  %v3129_v57 = vadd.f32 %v3128_v55, %v3127_v53 }
 0x110   :  { %v3084_v58 = vpop.f32.mrb[8].mxu0  ;;  %v4542_v59 = vadd.f32 %v3129_v57, %v736_v54 }
 0x111   :  { %v3085_v60 = vpop.f32.mrb[9].mxu0 }
 0x112   :  { %v3086_v61 = vadd.f32 %v3085_v60, %v3084_v58  ;;  %v3087_v62 = vpop.f32.mrb[10].mxu0  ;;  %v3130_v63 = vpop.f32.mrb[8].mxu1 }
 0x113   :  { %v3088_v0 = vpop.f32.mrb[11].mxu0  ;;  %v3131_v3 = vpop.f32.mrb[9].mxu1 }
 0x114   :  { %v741_v1 = vadd.f32 %v3086_v61, %v4530_v26  ;;  %v3089_v2 = vadd.f32 %v3088_v0, %v3087_v62  ;;  %v3132_v4 = vadd.f32 %v3131_v3, %v3130_v63  ;;  %v3133_v5 = vpop.f32.mrb[10].mxu1 }
 0x115   :  { %v3134_v7 = vpop.f32.mrb[11].mxu1 }
 0x116   :  { %v744_v6 = vadd.f32 %v3089_v2, %v4530_v26  ;;  %v4546_v8 = vadd.f32 %v3132_v4, %v741_v1  ;;  %v3135_v9 = vadd.f32 %v3134_v7, %v3133_v5 }
 0x118   :  { %v3090_v10 = vpop.f32.mrb[12].mxu0  ;;  %v4548_v11 = vadd.f32 %v3135_v9, %v744_v6 }
 0x119   :  { %v3091_v12 = vpop.f32.mrb[13].mxu0 }
 0x11a   :  { %v3092_v13 = vadd.f32 %v3091_v12, %v3090_v10  ;;  %v3093_v14 = vpop.f32.mrb[14].mxu0  ;;  %v3136_v15 = vpop.f32.mrb[12].mxu1 }
 0x11b   :  { %v3094_v16 = vpop.f32.mrb[15].mxu0  ;;  %v3137_v19 = vpop.f32.mrb[13].mxu1 }
 0x11c   :  { %v749_v17 = vadd.f32 %v3092_v13, %v4530_v26  ;;  %v3095_v18 = vadd.f32 %v3094_v16, %v3093_v14  ;;  %v3138_v20 = vadd.f32 %v3137_v19, %v3136_v15  ;;  %v3139_v21 = vpop.f32.mrb[14].mxu1 }
 0x11d   :  { %v3140_v23 = vpop.f32.mrb[15].mxu1 }
 0x11e   :  { %v752_v22 = vadd.f32 %v3095_v18, %v4530_v26  ;;  %v4552_v24 = vadd.f32 %v3138_v20, %v749_v17  ;;  %v3141_v25 = vadd.f32 %v3140_v23, %v3139_v21 }
 0x120   :  { %v3096_v27 = vpop.f32.mrb[16].mxu0  ;;  %v4554_v28 = vadd.f32 %v3141_v25, %v752_v22 }
 0x121   :  { %v3097_v29 = vpop.f32.mrb[17].mxu0 }
 0x122   :  { %v3098_v30 = vadd.f32 %v3097_v29, %v3096_v27  ;;  %v3099_v31 = vpop.f32.mrb[18].mxu0  ;;  %v3142_v32 = vpop.f32.mrb[16].mxu1 }
 0x123   :  { %v3100_v33 = vpop.f32.mrb[19].mxu0  ;;  %v3143_v35 = vpop.f32.mrb[17].mxu1 }
 0x124   :  { %v757_v34 = vadd.f32 %v3098_v30, %v4530_v26  ;;  %v3144_v36 = vadd.f32 %v3143_v35, %v3142_v32  ;;  %v3145_v37 = vpop.f32.mrb[18].mxu1 }
 0x125   :  { %v3146_v39 = vpop.f32.mrb[19].mxu1 }
 0x126   :  { %v4557_v41 = vadd.f32 %v3144_v36, %v757_v34 }
 0x128   :  { %v3164_v42 = vpop.f32.mrb[20].mxu0 }
 0x129   :  { %v3165_v44 = vpop.f32.mrb[21].mxu0 }
 0x12a   :  { %v3166_v45 = vadd.f32 %v3165_v44, %v3164_v42  ;;  %v3167_v46 = vpop.f32.mrb[22].mxu0  ;;  %v940_v48 = vpop.f32.mrb[20].mxu1 }
 0x12b   :  { %v3168_v47 = vpop.f32.mrb[23].mxu0  ;;  %v3347_v51 = vpop.f32.mrb[21].mxu1 }
 0x12c   :  { %v3169_v49 = vadd.f32 %v3168_v47, %v3167_v46  ;;  %v869_v50 = vadd.f32 %v3166_v45, %v4534_v40  ;;  %v943_v52 = vpop.f32.mrb[22].mxu1 }
 0x12d   :  { %v3348_v54 = vpop.f32.mrb[23].mxu1 }
 0x12e   :  { %v941_v53 = vadd.f32 %v940_v48, %v869_v50  ;;  %v872_v26 = vadd.f32 %v3169_v49, %v4536_v43 }
 0x130   :  { %v978_v55 = vmax.f32 %v941_v53, 0.0  ;;  %v944_v57 = vadd.f32 %v943_v52, %v872_v26  ;;  %v3170_v58 = vpop.f32.mrb[24].mxu0 }
 0x131   :  { %v3171_v60 = vpop.f32.mrb[25].mxu0 }
 0x132   :  { %988 = vst.msk [vmem:[#allocation2] sm:$0xff] %vm987_vm2, %v978_v55  ;;  %v979_v61 = vmax.f32 %v944_v57, 0.0  ;;  %v3172_v62 = vadd.f32 %v3171_v60, %v3170_v58  ;;  %v3173_v63 = vpop.f32.mrb[26].mxu0  ;;  %v948_v1 = vpop.f32.mrb[24].mxu1  ;;  %v1489_v55 = vld [vmem:[%s5877_s26 + $0x80] sm:$0xff] }
 0x133   :  { %v3174_v0 = vpop.f32.mrb[27].mxu0  ;;  %v3351_v3 = vpop.f32.mrb[25].mxu1 }
 0x134   :  { %989 = vst.msk [vmem:[#allocation2 + $0x8] sm:$0xff] %vm987_vm2, %v979_v61  ;;  %v3175_v40 = vadd.f32 %v3174_v0, %v3173_v63  ;;  %v877_v2 = vadd.f32 %v3172_v62, %v4540_v56  ;;  %v951_v43 = vpop.f32.mrb[26].mxu1 }
 0x135   :  { %v3352_v6 = vpop.f32.mrb[27].mxu1 }
 0x136   :  { %v949_v4 = vadd.f32 %v948_v1, %v877_v2  ;;  %v880_v5 = vadd.f32 %v3175_v40, %v4542_v59 }
 0x138   :  { %v980_v7 = vmax.f32 %v949_v4, 0.0  ;;  %v952_v9 = vadd.f32 %v951_v43, %v880_v5  ;;  %v3176_v10 = vpop.f32.mrb[28].mxu0 }
 0x139   :  { %v3177_v12 = vpop.f32.mrb[29].mxu0  ;;  %v1048_v29 = vld [vmem:[#allocation2 + $0x5] sm:$0x1]  ;;  %v999_v30 = vld [vmem:[#allocation2 + $0x2] sm:$0x1] }
 0x13a   :  { %990 = vst.msk [vmem:[#allocation2 + $0x10] sm:$0xff] %vm987_vm2, %v980_v7  ;;  %v981_v13 = vmax.f32 %v952_v9, 0.0  ;;  %v3178_v14 = vadd.f32 %v3177_v12, %v3176_v10  ;;  %v3179_v15 = vpop.f32.mrb[30].mxu0  ;;  %v956_v17 = vpop.f32.mrb[28].mxu1  ;;  %v1047_v49 = vld [vmem:[#allocation2 + $0x4] sm:$0x1] }
 0x13b   :  { %v3180_v16 = vpop.f32.mrb[31].mxu0  ;;  %v3355_v19 = vpop.f32.mrb[29].mxu1  ;;  %v998_v50 = vld [vmem:[#allocation2 + $0x1] sm:$0x1]  ;;  %v1050_v63 = vld [vmem:[#allocation2 + $0xa] sm:$0x1] }
 0x13c   :  { %991 = vst.msk [vmem:[#allocation2 + $0x18] sm:$0xff] %vm987_vm2, %v981_v13  ;;  %v3181_v56 = vadd.f32 %v3180_v16, %v3179_v15  ;;  %v885_v18 = vadd.f32 %v3178_v14, %v4546_v8  ;;  %v959_v20 = vpop.f32.mrb[30].mxu1  ;;  %v1049_v0 = vld [vmem:[#allocation2 + $0x9] sm:$0x1]  ;;  %v1001_v12 = vld [vmem:[#allocation2 + $0x7] sm:$0x1] }
 0x13d   :  { %v3356_v22 = vpop.f32.mrb[31].mxu1  ;;  %v1000_v15 = vld [vmem:[#allocation2 + $0x6] sm:$0x1] }
 0x13e   :  { %v957_v59 = vadd.f32 %v956_v17, %v885_v18  ;;  %v888_v21 = vadd.f32 %v3181_v56, %v4548_v11 }
 0x140   :  { %v982_v23 = vmax.f32 %v957_v59, 0.0  ;;  %v960_v25 = vadd.f32 %v959_v20, %v888_v21  ;;  %v3182_v27 = vpop.f32.mrb[32].mxu0  ;;  %v1473_v59 = vld [vmem:[%s5877_s26] sm:$0xff]  ;;  %v4154_v21 = vmov 0.0|0.0  }
 0x141   :  { %v3183_v31 = vpop.f32.mrb[33].mxu0  ;;  %v1092_v32 = vld [vmem:[#allocation2 + $0x14] sm:$0x1]  ;;  %v1136_v33 = vld [vmem:[#allocation2 + $0x17] sm:$0x1]  ;;  %3470 = vmatprep.subr.bf16.mxu1 %v4154_v21 }
 0x142   :  { %992 = vst.msk [vmem:[#allocation2 + $0x20] sm:$0xff] %vm987_vm2, %v982_v23  ;;  %v983_v34 = vmax.f32 %v960_v25, 0.0  ;;  %v3184_v35 = vadd.f32 %v3183_v31, %v3182_v27  ;;  %v3185_v36 = vpop.f32.mrb[34].mxu0  ;;  %v3850_v8 = vpack.i.bf16 %v1092_v32, %v1048_v29  ;;  %v3855_v37 = vpack.i.bf16 %v1136_v33, %v999_v30  ;;  %v964_v42 = vpop.f32.mrb[32].mxu1  ;;  %v1091_v44 = vld [vmem:[#allocation2 + $0x13] sm:$0x1] }
 0x143   :  { %v3186_v39 = vpop.f32.mrb[35].mxu0  ;;  %v1135_v11 = vld [vmem:[#allocation2 + $0x16] sm:$0x1]  ;;  %v3359_v47 = vpop.f32.mrb[33].mxu1  ;;  %v3860_v53 = vpack.i.bf16 %v1091_v44, %v1047_v49  ;;  %v1094_v57 = vld [vmem:[#allocation2 + $0x19] sm:$0x1] }
 0x144   :  { %993 = vst.msk [vmem:[#allocation2 + $0x28] sm:$0xff] %vm987_vm2, %v983_v34  ;;  %v3187_v45 = vadd.f32 %v3186_v39, %v3185_v36  ;;  %3851 = vrot.lane.b32.xlu0 %v3850_v8, %s4150_s28  ;;  %3856 = vrot.lane.b32.xlu1 %v3855_v37, %s4150_s28  ;;  %v893_v46 = vadd.f32 %v3184_v35, %v4552_v24  ;;  %v967_v48 = vpop.f32.mrb[34].mxu1  ;;  %v1093_v58 = vld [vmem:[#allocation2 + $0x18] sm:$0x1]  ;;  %v1490_v24 = vld [vmem:[%s5877_s26 + $0x88] sm:$0xff] }
 0x145   :  { %v3865_v26 = vpack.i.bf16 %v1135_v11, %v998_v50  ;;  %v3360_v54 = vpop.f32.mrb[35].mxu1  ;;  %v3438_v1 = vpack.c.bf16 %v1490_v24, %v1489_v55  ;;  %v3875_v3 = vpack.i.bf16 %v1094_v57, %v1050_v63  ;;  %v3870_v43 = vpack.i.bf16 %v1093_v58, %v1049_v0  ;;  %v1138_v6 = vld [vmem:[#allocation2 + $0x1c] sm:$0x1]  ;;  %v1137_v7 = vld [vmem:[#allocation2 + $0x1b] sm:$0x1]  ;;  %v1474_v30 = vld [vmem:[%s5877_s26 + $0x8] sm:$0xff] }
 0x146   :  { %v965_v51 = vadd.f32 %v964_v42, %v893_v46  ;;  %v896_v52 = vadd.f32 %v3187_v45, %v4554_v28  ;;  %v1054_v13 = vld [vmem:[#allocation2 + $0x11] sm:$0x1]  ;;  %v3890_v18 = vpack.i.bf16 %v1138_v6, %v1001_v12  ;;  %v3880_v19 = vpack.i.bf16 %v1137_v7, %v1000_v15  ;;  %v1139_v22 = vld [vmem:[#allocation2 + $0x1d] sm:$0x1]  ;;  %v1002_v31 = vld [vmem:[#allocation2 + $0x8] sm:$0x1] }
 0x147   :  { %3439 = vmatprep.subr.bf16.mxu0 %v3438_v1  ;;  %v1361_v23 = vrot.slane %v1054_v13, 7  ;;  %v1051_v32 = vld [vmem:[#allocation2 + $0xb] sm:$0x1]  ;;  %v3440_v34 = vpack.c.bf16 %v1474_v30, %v1473_v59  ;;  %v3895_v35 = vpack.i.bf16 %v1139_v22, %v1002_v31  ;;  %v1005_v8 = vld [vmem:[#allocation2 + $0xe] sm:$0x1]  ;;  %v1491_v54 = vld [vmem:[%s5877_s26 + $0x90] sm:$0xff] }
 0x148   :  { %v984_v60 = vmax.f32 %v965_v51, 0.0  ;;  %v968_v61 = vadd.f32 %v967_v48, %v896_v52  ;;  %v3188_v62 = vpop.f32.mrb[36].mxu0  ;;  %3861 = vrot.lane.b32.xlu1 %v3860_v53, %s4151_s27  ;;  %3866 = vrot.lane.b32.xlu0 %v3865_v26, %s4151_s27  ;;  %v1097_v37 = vld [vmem:[#allocation2 + $0x1f] sm:$0x1]  ;;  %v1096_v39 = vld [vmem:[#allocation2 + $0x1e] sm:$0x1] }
 0x149   :  { %v3189_v28 = vpop.f32.mrb[37].mxu0  ;;  %v1098_v16 = vld [vmem:[#allocation2 + $0x20] sm:$0x1]  ;;  %v1142_v27 = vld [vmem:[#allocation2 + $0x23] sm:$0x1]  ;;  %v1442_v44 = vsel %vm1438_vm3, %v1005_v8, %v1361_v23  ;;  %3441 = vmatpush3.bf16.msra.mxu0 %v3440_v34  ;;  %v1506_v26 = vld [vmem:[%s5877_s26 + $0x108] sm:$0xff] }
 0x14a   :  { %994 = vst.msk [vmem:[#allocation2 + $0x30] sm:$0xff] %vm987_vm2, %v984_v60  ;;  %v985_v40 = vmax.f32 %v968_v61, 0.0  ;;  %v3190_v2 = vadd.f32 %v3189_v28, %v3188_v62  ;;  %v3191_v4 = vpop.f32.mrb[38].mxu0  ;;  %v972_v5 = vpop.f32.mrb[36].mxu1  ;;  %v1373_v29 = vrot.slane %v1098_v16, 6  ;;  %v1385_v42 = vrot.slane %v1142_v27, 5 }
 0x14b   :  { %v3192_v9 = vpop.f32.mrb[39].mxu0  ;;  %v3363_v14 = vpop.f32.mrb[37].mxu1  ;;  %v1052_v11 = vld [vmem:[#allocation2 + $0xf] sm:$0x1]  ;;  %v1505_v48 = vld [vmem:[%s5877_s26 + $0x100] sm:$0xff]  ;;  %v1492_v55 = vld [vmem:[%s5877_s26 + $0x98] sm:$0xff] }
 0x14c   :  { %995 = vst.msk [vmem:[#allocation2 + $0x38] sm:$0xff] %vm987_vm2, %v985_v40  ;;  %3876 = vrot.lane.b32.xlu1 %v3875_v3, %s5867_s30  ;;  %3871 = vrot.lane.b32.xlu0 %v3870_v43, %s4153_s0  ;;  %v901_v10 = vadd.f32 %v3190_v2, %v4557_v41  ;;  %v975_v17 = vpop.f32.mrb[38].mxu1  ;;  %v1095_v41 = vld [vmem:[#allocation2 + $0x1a] sm:$0x1]  ;;  %v1447_v47 = vsel %vm1443_vm4, %v1442_v44, %v1373_v29  ;;  %v1053_v49 = vld [vmem:[#allocation2 + $0x10] sm:$0x1] }
 0x14d   :  { %v3364_v20 = vpop.f32.mrb[39].mxu1  ;;  %v3885_v36 = vpack.i.bf16 %v1095_v41, %v1051_v32  ;;  %v1141_v50 = vld [vmem:[#allocation2 + $0x22] sm:$0x1]  ;;  %v1140_v51 = vld [vmem:[#allocation2 + $0x21] sm:$0x1]  ;;  %v3905_v52 = vpack.i.bf16 %v1097_v37, %v1053_v49  ;;  %v3900_v53 = vpack.i.bf16 %v1096_v39, %v1052_v11  ;;  %v1452_v58 = vsel %vm1448_vm5, %v1447_v47, %v1385_v42  ;;  %v1475_v62 = vld [vmem:[%s5877_s26 + $0x10] sm:$0xff] }
 0x14e   :  { %v973_v56 = vadd.f32 %v972_v5, %v901_v10  ;;  %v3471_v60 = vpack.c.bf16 %v1506_v26, %v1505_v48  ;;  %v3442_v61 = vpack.c.bf16 %v1492_v55, %v1491_v54  ;;  %v1476_v24 = vld [vmem:[%s5877_s26 + $0x18] sm:$0xff]  ;;  %v1507_v28 = vld [vmem:[%s5877_s26 + $0x110] sm:$0xff]  ;;  %v1004_v63 = vld [vmem:[#allocation2 + $0xd] sm:$0x1] }
 0x14f   :  { %v1003_v0 = vld [vmem:[#allocation2 + $0xc] sm:$0x1]  ;;  %v3444_v40 = vpack.c.bf16 %v1476_v24, %v1475_v62  ;;  %v1508_v2 = vld [vmem:[%s5877_s26 + $0x118] sm:$0xff]  ;;  %v1181_v4 = vld [vmem:[#allocation2 + $0x2a] sm:$0x1]  ;;  %v3915_v6 = vpack.i.bf16 %v1141_v50, %v1004_v63 }
 0x150   :  { %v986_v25 = vmax.f32 %v973_v56, 0.0  ;;  %3891 = vrot.lane.b32.xlu1 %v3890_v18, %s5867_s30  ;;  %3881 = vrot.lane.b32.xlu0 %v3880_v19, %s4153_s0  ;;  %v3474_v5 = vpack.c.bf16 %v1508_v2, %v1507_v28  ;;  %v3910_v7 = vpack.i.bf16 %v1140_v51, %v1003_v0  ;;  %v1225_v12 = vld [vmem:[#allocation2 + $0x2d] sm:$0x1]  ;;  %v1493_v13 = vld [vmem:[%s5877_s26 + $0xa0] sm:$0xff]  ;;  %v1224_v15 = vld [vmem:[#allocation2 + $0x29] sm:$0x1] }
 0x151   :  { %v1186_v33 = vld [vmem:[#allocation2 + $0x32] sm:$0x1]  ;;  %v1230_v45 = vld [vmem:[#allocation2 + $0x35] sm:$0x1]  ;;  %3472 = vmatpush1.bf16.msra.mxu1 %v3471_v60  ;;  %3443 = vmatprep.subr.bf16.mxu0 %v3442_v61  ;;  %v1180_v17 = vld [vmem:[#allocation2 + $0x26] sm:$0x1]  ;;  %v3925_v20 = vpack.i.bf16 %v1225_v12, %v1181_v4 }
 0x152   :  { %996 = vst.msk [vmem:[#allocation2 + $0x40] sm:$0xff] %vm987_vm2, %v986_v25  ;;  %v1397_v46 = vrot.slane %v1186_v33, 4  ;;  %v1409_v57 = vrot.slane %v1230_v45, 3  ;;  %3473 = vmatprep.subr.bf16.mxu1 %v4154_v21  ;;  %3445 = vmatpush3.bf16.msra.mxu0 %v3444_v40  ;;  %v1494_v56 = vld [vmem:[%s5877_s26 + $0xa8] sm:$0xff]  ;;  %v1509_v18 = vld [vmem:[%s5877_s26 + $0x120] sm:$0xff]  ;;  %v3920_v30 = vpack.i.bf16 %v1224_v15, %v1180_v17  ;;  %v1511_v33 = vld [vmem:[%s5877_s26 + $0x130] sm:$0xff] }
 0x153   :  { %v1223_v59 = vld [vmem:[#allocation2 + $0x28] sm:$0x1]  ;;  %v1182_v22 = vld [vmem:[#allocation2 + $0x2b] sm:$0x1]  ;;  %v1226_v41 = vld [vmem:[#allocation2 + $0x2e] sm:$0x1]  ;;  %v3446_v23 = vpack.c.bf16 %v1494_v56, %v1493_v13 }
 0x154   :  { %3896 = vrot.lane.b32.xlu1 %v3895_v35, %s5865_s2  ;;  %3886 = vrot.lane.b32.xlu0 %v3885_v36, %s5865_s2  ;;  %v1457_v1 = vsel %vm1453_vm6, %v1452_v58, %v1397_v46  ;;  %v1510_v25 = vld [vmem:[%s5877_s26 + $0x128] sm:$0xff]  ;;  %v1477_v27 = vld [vmem:[%s5877_s26 + $0x20] sm:$0xff]  ;;  %v1268_v44 = vld [vmem:[#allocation2 + $0x38] sm:$0x1]  ;;  %s5882_s2 = sld [smem:[#allocation10_spill]] }
 0x155   :  { %v1462_v14 = vsel %vm1458_vm7, %v1457_v1, %v1409_v57  ;;  %3475 = vmatpush1.bf16.msra.mxu1 %v3474_v5  ;;  %v1478_v29 = vld [vmem:[%s5877_s26 + $0x28] sm:$0xff]  ;;  %v3477_v31 = vpack.c.bf16 %v1510_v25, %v1509_v18  ;;  %v1512_v34 = vld [vmem:[%s5877_s26 + $0x138] sm:$0xff]  ;;  %v1495_v35 = vld [vmem:[%s5877_s26 + $0xb0] sm:$0xff]  ;;  %3447 = vmatprep.subr.bf16.mxu0 %v3446_v23 }
 0x156   :  { %3476 = vmatprep.subr.bf16.mxu1 %v4154_v21  ;;  %v3448_v32 = vpack.c.bf16 %v1478_v29, %v1477_v27  ;;  %v1496_v36 = vld [vmem:[%s5877_s26 + $0xb8] sm:$0xff]  ;;  %v1479_v8 = vld [vmem:[%s5877_s26 + $0x30] sm:$0xff]  ;;  %v1179_v39 = vld [vmem:[#allocation2 + $0x25] sm:$0x1]  ;;  %v3480_v46 = vpack.c.bf16 %v1512_v34, %v1511_v33 }
 0x157   :  { %v1480_v37 = vld [vmem:[%s5877_s26 + $0x38] sm:$0xff]  ;;  %v3450_v42 = vpack.c.bf16 %v1496_v36, %v1495_v35  ;;  %v1183_v11 = vld [vmem:[#allocation2 + $0x2c] sm:$0x1]  ;;  %v1227_v45 = vld [vmem:[#allocation2 + $0x2f] sm:$0x1]  ;;  %v3935_v51 = vpack.i.bf16 %v1223_v59, %v1179_v39 }
 0x158   :  { %3906 = vrot.lane.b32.xlu1 %v3905_v52, %s5863_s21  ;;  %3901 = vrot.lane.b32.xlu0 %v3900_v53, %s5861_s1  ;;  %v3452_v47 = vpack.c.bf16 %v1480_v37, %v1479_v8  ;;  %v1513_v48 = vld [vmem:[%s5877_s26 + $0x140] sm:$0xff]  ;;  %v1498_v50 = vld [vmem:[%s5877_s26 + $0xc8] sm:$0xff]  ;;  %v3930_v52 = vpack.i.bf16 %v1226_v41, %v1182_v22  ;;  %v1312_v57 = vld [vmem:[#allocation2 + $0x3b] sm:$0x1]  ;;  %v3940_v1 = vpack.i.bf16 %v1227_v45, %v1183_v11 }
 0x159   :  { %v1274_v3 = vld [vmem:[#allocation2 + $0x44] sm:$0x1]  ;;  %v1318_v43 = vld [vmem:[#allocation2 + $0x47] sm:$0x1]  ;;  %3478 = vmatpush1.bf16.msra.mxu1 %v3477_v31  ;;  %3449 = vmatpush3.bf16.msra.mxu0 %v3448_v32  ;;  %v1514_v53 = vld [vmem:[%s5877_s26 + $0x148] sm:$0xff]  ;;  %v3945_v0 = vpack.i.bf16 %v1312_v57, %v1268_v44 }
 0x15a   :  { %v1421_v9 = vrot.slane %v1274_v3, 2  ;;  %v1433_v10 = vrot.slane %v1318_v43, 1  ;;  %v1497_v49 = vld [vmem:[%s5877_s26 + $0xc0] sm:$0xff]  ;;  %3479 = vmatprep.subr.bf16.mxu1 %v4154_v21  ;;  %3451 = vmatprep.subr.bf16.mxu0 %v3450_v42  ;;  %v1482_v55 = vld [vmem:[%s5877_s26 + $0x48] sm:$0xff]  ;;  %v1499_v58 = vld [vmem:[%s5877_s26 + $0xd0] sm:$0xff]  ;;  %v3483_v24 = vpack.c.bf16 %v1514_v53, %v1513_v48 }
 0x15b   :  { %v3454_v26 = vpack.c.bf16 %v1498_v50, %v1497_v49  ;;  %v1481_v54 = vld [vmem:[%s5877_s26 + $0x40] sm:$0xff]  ;;  %v1500_v60 = vld [vmem:[%s5877_s26 + $0xd8] sm:$0xff]  ;;  %v1515_v63 = vld [vmem:[%s5877_s26 + $0x150] sm:$0xff] }
 0x15c   :  { %3916 = vrot.lane.b32.xlu1 %v3915_v6, %s5863_s21  ;;  %3911 = vrot.lane.b32.xlu0 %v3910_v7, %s5861_s1  ;;  %v1467_v16 = vsel %vm1463_vm8, %v1462_v14, %v1421_v9  ;;  %v1311_v61 = vld [vmem:[#allocation2 + $0x3a] sm:$0x1]  ;;  %v1269_v62 = vld [vmem:[#allocation2 + $0x3c] sm:$0x1]  ;;  %v3456_v28 = vpack.c.bf16 %v1482_v55, %v1481_v54  ;;  %v3458_v2 = vpack.c.bf16 %v1500_v60, %v1499_v58  ;;  %v1483_v3 = vld [vmem:[%s5877_s26 + $0x50] sm:$0xff] }
 0x15d   :  { %v1472_v19 = vsel %vm1468_vm9, %v1467_v16, %v1433_v10  ;;  %3481 = vmatpush1.bf16.msra.mxu1 %v3480_v46  ;;  %3453 = vmatpush3.bf16.msra.mxu0 %v3452_v47  ;;  %v1516_v40 = vld [vmem:[%s5877_s26 + $0x158] sm:$0xff]  ;;  %v1501_v5 = vld [vmem:[%s5877_s26 + $0xe0] sm:$0xff]  ;;  %v1502_v6 = vld [vmem:[%s5877_s26 + $0xe8] sm:$0xff] }
 0x15e   :  { %3044 = vmatprep.mubr.msk.f32.mxu1 %vm987_vm2, %v1472_v19  ;;  %3482 = vmatprep.subr.bf16.mxu1 %v4154_v21  ;;  %v1484_v43 = vld [vmem:[%s5877_s26 + $0x58] sm:$0xff]  ;;  %v1267_v7 = vld [vmem:[#allocation2 + $0x37] sm:$0x1]  ;;  %v3486_v9 = vpack.c.bf16 %v1516_v40, %v1515_v63  ;;  %v1517_v12 = vld [vmem:[%s5877_s26 + $0x160] sm:$0xff]  ;;  %v3462_v16 = vpack.c.bf16 %v1502_v6, %v1501_v5 }
 0x15f   :  { %3455 = vmatprep.subr.bf16.mxu0 %v3454_v26  ;;  %v1313_v4 = vld [vmem:[#allocation2 + $0x3f] sm:$0x1]  ;;  %v3460_v10 = vpack.c.bf16 %v1484_v43, %v1483_v3  ;;  %v3955_v13 = vpack.i.bf16 %v1311_v61, %v1267_v7  ;;  %v1518_v15 = vld [vmem:[%s5877_s26 + $0x168] sm:$0xff]  ;;  %v1485_v17 = vld [vmem:[%s5877_s26 + $0x60] sm:$0xff] }
 0x160   :  { %3926 = vrot.lane.b32.xlu1 %v3925_v20, %s4153_s0  ;;  %3921 = vrot.lane.b32.xlu0 %v3920_v30, %s4150_s28  ;;  %v3950_v14 = vpack.i.bf16 %v1313_v4, %v1269_v62  ;;  %v1486_v56 = vld [vmem:[%s5877_s26 + $0x68] sm:$0xff]  ;;  %v1314_v18 = vld [vmem:[#allocation2 + $0x40] sm:$0x1]  ;;  %v1315_v19 = vld [vmem:[#allocation2 + $0x41] sm:$0x1]  ;;  %v3489_v25 = vpack.c.bf16 %v1518_v15, %v1517_v12 }
 0x161   :  { %3484 = vmatpush1.bf16.msra.mxu1 %v3483_v24  ;;  %3457 = vmatpush3.bf16.msra.mxu0 %v3456_v28  ;;  %v1503_v20 = vld [vmem:[%s5877_s26 + $0xf0] sm:$0xff]  ;;  %v1504_v59 = vld [vmem:[%s5877_s26 + $0xf8] sm:$0xff]  ;;  %v3464_v29 = vpack.c.bf16 %v1486_v56, %v1485_v17  ;;  %v1273_v45 = vld [vmem:[#allocation2 + $0x43] sm:$0x1] }
 0x162   :  { %3485 = vmatprep.subr.bf16.mxu1 %v4154_v21  ;;  %3459 = vmatprep.subr.bf16.mxu0 %v3458_v2  ;;  %v1270_v22 = vld [vmem:[#allocation2 + $0x3d] sm:$0x1]  ;;  %v1271_v41 = vld [vmem:[#allocation2 + $0x3e] sm:$0x1]  ;;  %v1185_v23 = vld [vmem:[#allocation2 + $0x31] sm:$0x1]  ;;  %v3466_v33 = vpack.c.bf16 %v1504_v59, %v1503_v20 }
 0x163   :  { %v1519_v27 = vld [vmem:[%s5877_s26 + $0x170] sm:$0xff]  ;;  %v3960_v30 = vpack.i.bf16 %v1314_v18, %v1270_v22  ;;  %v3965_v31 = vpack.i.bf16 %v1315_v19, %v1271_v41  ;;  %v1520_v32 = vld [vmem:[%s5877_s26 + $0x178] sm:$0xff]  ;;  %v1521_v46 = vld [vmem:[%s5877_s26 + $0x180] sm:$0xff] }
 0x164   :  { %3936 = vrot.lane.b32.xlu1 %v3935_v51, %s4151_s27  ;;  %3931 = vrot.lane.b32.xlu0 %v3930_v52, %s5878_s25  ;;  %v1487_v34 = vld [vmem:[%s5877_s26 + $0x70] sm:$0xff]  ;;  %v1488_v35 = vld [vmem:[%s5877_s26 + $0x78] sm:$0xff]  ;;  %v3492_v39 = vpack.c.bf16 %v1520_v32, %v1519_v27  ;;  %v1317_v48 = vld [vmem:[#allocation2 + $0x46] sm:$0x1] }
 0x165   :  { %3487 = vmatpush1.bf16.msra.mxu1 %v3486_v9  ;;  %3461 = vmatpush3.bf16.msra.mxu0 %v3460_v10  ;;  %v1229_v36 = vld [vmem:[#allocation2 + $0x34] sm:$0x1]  ;;  %v1184_v8 = vld [vmem:[#allocation2 + $0x30] sm:$0x1]  ;;  %v1228_v37 = vld [vmem:[#allocation2 + $0x33] sm:$0x1]  ;;  %v3468_v42 = vpack.c.bf16 %v1488_v35, %v1487_v34  ;;  %v3985_v52 = vpack.i.bf16 %v1317_v48, %v1273_v45 }
 0x166   :  { %3488 = vmatprep.subr.bf16.mxu1 %v4154_v21  ;;  %3463 = vmatprep.subr.bf16.mxu0 %v3462_v16  ;;  %v3975_v44 = vpack.i.bf16 %v1229_v36, %v1185_v23  ;;  %v3970_v11 = vpack.i.bf16 %v1228_v37, %v1184_v8  ;;  %v1522_v47 = vld [vmem:[%s5877_s26 + $0x188] sm:$0xff]  ;;  %v1272_v49 = vld [vmem:[#allocation2 + $0x42] sm:$0x1]  ;;  %v1316_v50 = vld [vmem:[#allocation2 + $0x45] sm:$0x1] }
 0x167   :  { %v3495_v51 = vpack.c.bf16 %v1522_v47, %v1521_v46  ;;  %v3980_v53 = vpack.i.bf16 %v1316_v50, %v1272_v49  ;;  %v1523_v26 = vld [vmem:[%s5877_s26 + $0x190] sm:$0xff]  ;;  %v1524_v54 = vld [vmem:[%s5877_s26 + $0x198] sm:$0xff]  ;;  %v1525_v57 = vld [vmem:[%s5877_s26 + $0x1a0] sm:$0xff] }
 0x168   :  { %3946 = vrot.lane.b32.xlu1 %v3945_v0, %s4150_s28  ;;  %3941 = vrot.lane.b32.xlu0 %v3940_v1, %s5879_s23  ;;  %v3498_v55 = vpack.c.bf16 %v1524_v54, %v1523_v26  ;;  %v1526_v58 = vld [vmem:[%s5877_s26 + $0x1a8] sm:$0xff]  ;;  %v1046_v3 = vld [vmem:[#allocation2 + $0x3] sm:$0x1]  ;;  %v1090_v7 = vld [vmem:[#allocation2 + $0x12] sm:$0x1] }
 0x169   :  { %3490 = vmatpush1.bf16.msra.mxu1 %v3489_v25  ;;  %3465 = vmatpush3.bf16.msra.mxu0 %v3464_v29  ;;  %v3501_v60 = vpack.c.bf16 %v1526_v58, %v1525_v57  ;;  %v997_v17 = vld [vmem:[#allocation2] sm:$0x1]  ;;  %v1134_v25 = vld [vmem:[#allocation2 + $0x15] sm:$0x1] }
 0x16a   :  { %3491 = vmatprep.subr.bf16.mxu1 %v4154_v21  ;;  %3467 = vmatprep.subr.bf16.mxu0 %v3466_v33 }
 0x16c   :  { %3956 = vrot.lane.b32.xlu1 %v3955_v13, %s4151_s27  ;;  %3951 = vrot.lane.b32.xlu0 %v3950_v14, %s4153_s0 }
 0x16d   :  { %3493 = vmatpush1.bf16.msra.mxu1 %v3492_v39  ;;  %3469 = vmatpush3.bf16.msra.mxu0 %v3468_v42 }
 0x16e   :  { %3494 = vmatprep.subr.bf16.mxu1 %v4154_v21 }
 0x170   :  { %3961 = vrot.lane.b32.xlu1 %v3960_v30, %s5878_s25  ;;  %3966 = vrot.lane.b32.xlu0 %v3965_v31, %s5879_s23  ;;  %s5880_s23 = smov 80  }
 0x171   :  { %3496 = vmatpush1.bf16.msra.mxu1 %v3495_v51 }
 0x172   :  { %3497 = vmatprep.subr.bf16.mxu1 %v4154_v21 }
 0x174   :  { %3976 = vrot.lane.b32.xlu1 %v3975_v44, %s5880_s23  ;;  %3971 = vrot.lane.b32.xlu0 %v3970_v11, %s5881_s22 }
 0x175   :  { %3499 = vmatpush1.bf16.msra.mxu1 %v3498_v55 }
 0x176   :  { %3500 = vmatprep.subr.bf16.mxu1 %v4154_v21 }
 0x178   :  { %3986 = vrot.lane.b32.xlu1 %v3985_v52, %s5880_s23  ;;  %3981 = vrot.lane.b32.xlu0 %v3980_v53, %s5881_s22 }
 0x179   :  { %3502 = vmatpush1.bf16.msra.mxu1 %v3501_v60 }
 0x1b6   :  { %v3852_v61 = vpop.permute.xlu0 %3851  ;;  %v3857_v62 = vpop.permute.xlu1 %3856 }
 0x1b7   :  { %v3853_v5 = vunpack.i.l.bf16 %v3852_v61  ;;  %v3854_v15 = vunpack.i.h.bf16 %v3852_v61  ;;  %v3858_v23 = vunpack.i.l.bf16 %v3857_v62  ;;  %v3859_v31 = vunpack.i.h.bf16 %v3857_v62 }
 0x1ba   :  { %v3862_v24 = vpop.permute.xlu1 %3861  ;;  %v3867_v28 = vpop.permute.xlu0 %3866 }
 0x1bb   :  { %v3863_v1 = vunpack.i.l.bf16 %v3862_v24  ;;  %v3864_v43 = vunpack.i.h.bf16 %v3862_v24  ;;  %v3868_v6 = vunpack.i.l.bf16 %v3867_v28  ;;  %v3869_v16 = vunpack.i.h.bf16 %v3867_v28 }
 0x1bd   :  { %v1083_v4 = vsel %vm987_vm2, %v1046_v3, %v3863_v1  ;;  %v1127_v12 = vsel %vm987_vm2, %v1090_v7, %v3864_v43  ;;  %v1034_v56 = vsel %vm987_vm2, %v997_v17, %v3868_v6  ;;  %v1171_v32 = vsel %vm987_vm2, %v1134_v25, %v3869_v16 }
 0x1be   :  { %v3877_v63 = vpop.permute.xlu1 %3876  ;;  %v3872_v0 = vpop.permute.xlu0 %3871  ;;  %v1084_v13 = vsel %vm1035_vm10, %v1083_v4, %v3853_v5  ;;  %v1128_v18 = vsel %vm1035_vm10, %v1127_v12, %v3854_v15  ;;  %v1036_v34 = vsel %vm1035_vm10, %v1034_v56, %v3858_v23  ;;  %v1172_v52 = vsel %vm1035_vm10, %v1171_v32, %v3859_v31  ;;  %v1178_v56 = vld [vmem:[#allocation2 + $0x24] sm:$0x1] }
 0x1bf   :  { %v3873_v14 = vunpack.i.l.bf16 %v3872_v0  ;;  %v1358_v19 = vrot.slane %v1084_v13, 7  ;;  %v3878_v20 = vunpack.i.l.bf16 %v3877_v63  ;;  %v3874_v59 = vunpack.i.h.bf16 %v3872_v0 }
 0x1c0   :  { %v1370_v33 = vrot.slane %v1128_v18, 6  ;;  %v3879_v35 = vunpack.i.h.bf16 %v3877_v63  ;;  %v1382_v0 = vrot.slane %v1172_v52, 5 }
 0x1c1   :  { %v1085_v27 = vsel %vm1037_vm11, %v3853_v5, %v3873_v14  ;;  %v1439_v8 = vsel %vm1438_vm3, %v1036_v34, %v1358_v19  ;;  %v1129_v37 = vsel %vm1037_vm11, %v3854_v15, %v3874_v59  ;;  %v1222_v34 = vld [vmem:[#allocation2 + $0x27] sm:$0x1] }
 0x1c2   :  { %v4786_v40 = vpop.permute.xlu1 %3891  ;;  %v3882_v2 = vpop.permute.xlu0 %3881  ;;  %v1086_v42 = vsel %vm1039_vm12, %v1085_v27, %v3878_v20  ;;  %v1444_v54 = vsel %vm1443_vm4, %v1439_v8, %v1370_v33  ;;  %v1130_v57 = vsel %vm1039_vm12, %v1129_v37, %v3879_v35 }
 0x1c3   :  { %v3884_v29 = vunpack.i.h.bf16 %v3882_v2  ;;  %v3883_v36 = vunpack.i.l.bf16 %v3882_v2  ;;  %v3894_v39 = vunpack.i.h.bf16 %v4786_v40  ;;  %v3893_v49 = vunpack.i.l.bf16 %v4786_v40 }
 0x1c4   :  { %v4823_v43 = vsel %vm1448_vm5, %v1444_v54, %v1382_v0 }
 0x1c5   :  { %v1173_v45 = vsel %vm1037_vm11, %v3859_v31, %v3884_v29  ;;  %v1038_v53 = vsel %vm1037_vm11, %v3858_v23, %v3883_v36 }
 0x1c6   :  { %v4789_v9 = vpop.permute.xlu1 %3896  ;;  %v3887_v10 = vpop.permute.xlu0 %3886  ;;  %v1174_v55 = vsel %vm1039_vm12, %v1173_v45, %v3894_v39  ;;  %v1040_v1 = vsel %vm1039_vm12, %v1038_v53, %v3893_v49 }
 0x1c7   :  { %v3888_v30 = vunpack.i.l.bf16 %v3887_v10  ;;  %v3899_v46 = vunpack.i.h.bf16 %v4789_v9  ;;  %v3889_v47 = vunpack.i.h.bf16 %v3887_v10  ;;  %v3898_v26 = vunpack.i.l.bf16 %v4789_v9 }
 0x1c9   :  { %v1087_v48 = vsel %vm1041_vm13, %v1086_v42, %v3888_v30  ;;  %v1175_v62 = vsel %vm1041_vm13, %v1174_v55, %v3899_v46  ;;  %v1131_v24 = vsel %vm1041_vm13, %v1130_v57, %v3889_v47  ;;  %v1042_v3 = vsel %vm1041_vm13, %v1040_v1, %v3898_v26 }
 0x1ca   :  { %v3907_v22 = vpop.permute.xlu1 %3906  ;;  %v3902_v41 = vpop.permute.xlu0 %3901  ;;  %v1359_v58 = vrot.slane %v1087_v48, 7  ;;  %v1383_v4 = vrot.slane %v1175_v62, 5  ;;  %v1371_v5 = vrot.slane %v1131_v24, 6 }
 0x1cb   :  { %v3904_v50 = vunpack.i.h.bf16 %v3902_v41  ;;  %v3903_v51 = vunpack.i.l.bf16 %v3902_v41  ;;  %v3909_v28 = vunpack.i.h.bf16 %v3907_v22  ;;  %v3908_v63 = vunpack.i.l.bf16 %v3907_v22 }
 0x1cc   :  { %v1440_v6 = vsel %vm1438_vm3, %v1042_v3, %v1359_v58  ;;  %v1266_v58 = vld [vmem:[#allocation2 + $0x36] sm:$0x1] }
 0x1cd   :  { %v1088_v40 = vsel %vm674_vm1, %v3888_v30, %v3903_v51  ;;  %v1132_v2 = vsel %vm674_vm1, %v3889_v47, %v3904_v50  ;;  %v1445_v41 = vsel %vm1443_vm4, %v1440_v6, %v1371_v5 }
 0x1ce   :  { %v4802_v44 = vpop.permute.xlu1 %3916  ;;  %v4804_v11 = vpop.permute.xlu0 %3911  ;;  %v4827_v10 = vsel %vm1044_vm14, %v1088_v40, %v3908_v63  ;;  %v4830_v12 = vsel %vm1044_vm14, %v1132_v2, %v3909_v28 }
 0x1cf   :  { %v3914_v13 = vunpack.i.h.bf16 %v4804_v11  ;;  %v3913_v15 = vunpack.i.l.bf16 %v4804_v11  ;;  %v1372_v23 = vrot.slane %v4830_v12, 6  ;;  %v3919_v25 = vunpack.i.h.bf16 %v4802_v44 }
 0x1d0   :  { %v1360_v31 = vrot.slane %v4827_v10, 7  ;;  %v3918_v32 = vunpack.i.l.bf16 %v4802_v44  ;;  %v1450_v44 = vsel %vm1448_vm5, %v1445_v41, %v1383_v4 }
 0x1d1   :  { %v1176_v33 = vsel %vm674_vm1, %v3899_v46, %v3914_v13  ;;  %v1043_v42 = vsel %vm674_vm1, %v3898_v26, %v3913_v15 }
 0x1d2   :  { %v3927_v60 = vpop.permute.xlu1 %3926  ;;  %v3922_v61 = vpop.permute.xlu0 %3921  ;;  %v4853_v46 = vsel %vm1044_vm14, %v1176_v33, %v3919_v25  ;;  %v1045_v55 = vsel %vm1044_vm14, %v1043_v42, %v3918_v32 }
 0x1d3   :  { %v3928_v16 = vunpack.i.l.bf16 %v3927_v60  ;;  %v3923_v17 = vunpack.i.l.bf16 %v3922_v61  ;;  %v3929_v19 = vunpack.i.h.bf16 %v3927_v60  ;;  %v3924_v20 = vunpack.i.h.bf16 %v3922_v61  ;;  %v1310_v60 = vld [vmem:[#allocation2 + $0x39] sm:$0x1] }
 0x1d5   :  { %v1217_v36 = vsel %vm1037_vm11, %v3923_v17, %v3928_v16  ;;  %v1261_v11 = vsel %vm1037_vm11, %v3924_v20, %v3929_v19 }
 0x1d6   :  { %v3937_v7 = vpop.permute.xlu1 %3936  ;;  %v3932_v9 = vpop.permute.xlu0 %3931 }
 0x1d7   :  { %v3938_v14 = vunpack.i.l.bf16 %v3937_v7  ;;  %v3939_v18 = vunpack.i.h.bf16 %v3937_v7  ;;  %v3933_v22 = vunpack.i.l.bf16 %v3932_v9  ;;  %v3934_v27 = vunpack.i.h.bf16 %v3932_v9 }
 0x1d9   :  { %v1215_v59 = vsel %vm987_vm2, %v1178_v56, %v3938_v14  ;;  %v1259_v8 = vsel %vm987_vm2, %v1222_v34, %v3939_v18  ;;  %v1218_v45 = vsel %vm1039_vm12, %v1217_v36, %v3933_v22  ;;  %v1262_v48 = vsel %vm1039_vm12, %v1261_v11, %v3934_v27 }
 0x1da   :  { %v3947_v29 = vpop.permute.xlu1 %3946  ;;  %v4838_v30 = vpop.permute.xlu0 %3941  ;;  %v1216_v35 = vsel %vm1035_vm10, %v1215_v59, %v3923_v17  ;;  %v1260_v52 = vsel %vm1035_vm10, %v1259_v8, %v3924_v20  ;;  %v1441_v17 = vsel %vm1438_vm3, %v1045_v55, %v1360_v31  ;;  %v1384_v36 = vrot.slane %v4853_v46, 5 }
 0x1db   :  { %v3944_v37 = vunpack.i.h.bf16 %v4838_v30  ;;  %v3943_v39 = vunpack.i.l.bf16 %v4838_v30  ;;  %v1394_v47 = vrot.slane %v1216_v35, 4  ;;  %v3948_v57 = vunpack.i.l.bf16 %v3947_v29 }
 0x1dc   :  { %v3949_v24 = vunpack.i.h.bf16 %v3947_v29  ;;  %v1406_v1 = vrot.slane %v1260_v52, 3  ;;  %v1446_v11 = vsel %vm1443_vm4, %v1441_v17, %v1372_v23  ;;  %v1709_v17 = vld [vmem:[%s5842_s5 + $0x50] sm:$0xff] }
 0x1dd   :  { %v1219_v49 = vsel %vm1041_vm13, %v1218_v45, %v3943_v39  ;;  %v1263_v53 = vsel %vm1041_vm13, %v1262_v48, %v3944_v37  ;;  %v1454_v5 = vsel %vm1453_vm6, %v4823_v43, %v1394_v47  ;;  %v1451_v23 = vsel %vm1448_vm5, %v1446_v11, %v1384_v36  ;;  %v1721_v36 = vld [vmem:[%s5842_s5 + $0xb0] sm:$0xff] }
 0x1de   :  { %v3957_v50 = vpop.permute.xlu1 %3956  ;;  %v3952_v51 = vpop.permute.xlu0 %3951  ;;  %v1395_v28 = vrot.slane %v1219_v49, 4  ;;  %v1407_v40 = vrot.slane %v1263_v53, 3  ;;  %v1459_v25 = vsel %vm1458_vm7, %v1454_v5, %v1406_v1  ;;  %v1699_v1 = vld [vmem:[%s5842_s5] sm:$0xff] }
 0x1df   :  { %v3959_v26 = vunpack.i.h.bf16 %v3957_v50  ;;  %v3958_v54 = vunpack.i.l.bf16 %v3957_v50  ;;  %v3954_v61 = vunpack.i.h.bf16 %v3952_v51  ;;  %v3953_v62 = vunpack.i.l.bf16 %v3952_v51 }
 0x1e0   :  { %v1455_v19 = vsel %vm1453_vm6, %v1450_v44, %v1395_v28 }
 0x1e1   :  { %v1347_v63 = vsel %vm987_vm2, %v1310_v60, %v3959_v26  ;;  %v1303_v0 = vsel %vm987_vm2, %v1266_v58, %v3958_v54  ;;  %v1349_v7 = vsel %vm1037_vm11, %v3949_v24, %v3954_v61  ;;  %v1305_v14 = vsel %vm1037_vm11, %v3948_v57, %v3953_v62 }
 0x1e2   :  { %v1304_v2 = vsel %vm1035_vm10, %v1303_v0, %v3948_v57  ;;  %v3962_v3 = vpop.permute.xlu1 %3961  ;;  %v3967_v4 = vpop.permute.xlu0 %3966  ;;  %v1348_v6 = vsel %vm1035_vm10, %v1347_v63, %v3949_v24  ;;  %v1460_v34 = vsel %vm1458_vm7, %v1455_v19, %v1407_v40  ;;  %v1700_v63 = vld [vmem:[%s5842_s5 + $0x8] sm:$0xff]  ;;  %v1702_v0 = vld [vmem:[%s5842_s5 + $0x18] sm:$0xff] }
 0x1e3   :  { %v3964_v9 = vunpack.i.h.bf16 %v3962_v3  ;;  %v3963_v10 = vunpack.i.l.bf16 %v3962_v3  ;;  %v1418_v13 = vrot.slane %v1304_v2, 2  ;;  %v3969_v15 = vunpack.i.h.bf16 %v3967_v4  ;;  %v1701_v2 = vld [vmem:[%s5842_s5 + $0x10] sm:$0xff]  ;;  %v1704_v3 = vld [vmem:[%s5842_s5 + $0x28] sm:$0xff] }
 0x1e4   :  { %v3968_v16 = vunpack.i.l.bf16 %v3967_v4  ;;  %v1430_v43 = vrot.slane %v1348_v6, 1  ;;  %v3503_v40 = vpack.c.bf16 %v1702_v0, %v1700_v63  ;;  %v1706_v4 = vld [vmem:[%s5842_s5 + $0x38] sm:$0xff]  ;;  %v3505_v5 = vpack.c.bf16 %v1701_v2, %v1699_v1  ;;  %v1739_v0 = vld [vmem:[%s5842_s5 + $0x140] sm:$0xff]  ;;  %v1741_v1 = vld [vmem:[%s5842_s5 + $0x150] sm:$0xff] }
 0x1e5   :  { %v1306_v56 = vsel %vm1039_vm12, %v1305_v14, %v3963_v10  ;;  %v1350_v18 = vsel %vm1039_vm12, %v1349_v7, %v3964_v9  ;;  %v1464_v35 = vsel %vm1463_vm8, %v1459_v25, %v1418_v13  ;;  %v3507_v6 = vpack.c.bf16 %v1706_v4, %v1704_v3  ;;  %v1703_v7 = vld [vmem:[%s5842_s5 + $0x20] sm:$0xff]  ;;  %v1705_v9 = vld [vmem:[%s5842_s5 + $0x30] sm:$0xff]  ;;  %v1708_v10 = vld [vmem:[%s5842_s5 + $0x48] sm:$0xff] }
 0x1e6   :  { %v1307_v20 = vsel %vm1041_vm13, %v1306_v56, %v3968_v16  ;;  %v1351_v59 = vsel %vm1041_vm13, %v1350_v18, %v3969_v15  ;;  %v3977_v22 = vpop.permute.xlu1 %3976  ;;  %v3972_v41 = vpop.permute.xlu0 %3971  ;;  %3504 = vmatprep.subr.bf16.mxu0 %v3503_v40  ;;  %v1710_v13 = vld [vmem:[%s5842_s5 + $0x58] sm:$0xff]  ;;  %v3509_v14 = vpack.c.bf16 %v1705_v9, %v1703_v7  ;;  %v1712_v56 = vld [vmem:[%s5842_s5 + $0x68] sm:$0xff]  ;;  %v3545_v3 = vpack.c.bf16 %v1741_v1, %v1739_v0  ;;  %v1870_v0 = vld [vmem:[%s5844_s7 + $0xb0] sm:$0xff] }
 0x1e7   :  { %v1419_v27 = vrot.slane %v1307_v20, 2  ;;  %v3979_v29 = vunpack.i.h.bf16 %v3977_v22  ;;  %v3978_v30 = vunpack.i.l.bf16 %v3977_v22  ;;  %v3974_v32 = vunpack.i.h.bf16 %v3972_v41  ;;  %v1714_v18 = vld [vmem:[%s5842_s5 + $0x78] sm:$0xff]  ;;  %v1711_v20 = vld [vmem:[%s5842_s5 + $0x60] sm:$0xff]  ;;  %v1716_v22 = vld [vmem:[%s5842_s5 + $0x88] sm:$0xff] }
 0x1e8   :  { %v3973_v31 = vunpack.i.l.bf16 %v3972_v41  ;;  %v1431_v33 = vrot.slane %v1351_v59, 1  ;;  %v1713_v59 = vld [vmem:[%s5842_s5 + $0x70] sm:$0xff]  ;;  %v1718_v41 = vld [vmem:[%s5842_s5 + $0x98] sm:$0xff]  ;;  %v1744_v40 = vld [vmem:[%s5842_s5 + $0x168] sm:$0xff] }
 0x1e9   :  { %v1264_v8 = vsel %vm674_vm1, %v3944_v37, %v3974_v32  ;;  %v1465_v42 = vsel %vm1463_vm8, %v1460_v34, %v1419_v27  ;;  %v1469_v37 = vsel %vm1468_vm9, %v1464_v35, %v1430_v43  ;;  %v3515_v43 = vpack.c.bf16 %v1714_v18, %v1712_v56  ;;  %v1720_v32 = vld [vmem:[%s5842_s5 + $0xa8] sm:$0xff]  ;;  %v1719_v35 = vld [vmem:[%s5842_s5 + $0xa0] sm:$0xff]  ;;  %v1746_v2 = vld [vmem:[%s5842_s5 + $0x178] sm:$0xff] }
 0x1ea   :  { %v1220_v45 = vsel %vm674_vm1, %v3943_v39, %v3973_v31  ;;  %v1265_v44 = vsel %vm1044_vm14, %v1264_v8, %v3979_v29  ;;  %v3987_v47 = vpop.permute.xlu1 %3986  ;;  %v3982_v48 = vpop.permute.xlu0 %3981  ;;  %v1470_v49 = vsel %vm1468_vm9, %v1465_v42, %v1431_v33  ;;  %v3517_v25 = vpack.c.bf16 %v1713_v59, %v1711_v20  ;;  %v1715_v29 = vld [vmem:[%s5842_s5 + $0x80] sm:$0xff]  ;;  %v1722_v31 = vld [vmem:[%s5842_s5 + $0xb8] sm:$0xff]  ;;  %v1724_v8 = vld [vmem:[%s5842_s5 + $0xc8] sm:$0xff] }
 0x1eb   :  { %v1221_v50 = vsel %vm1044_vm14, %v1220_v45, %v3978_v30  ;;  %v3989_v51 = vunpack.i.h.bf16 %v3987_v47  ;;  %v3988_v46 = vunpack.i.l.bf16 %v3987_v47  ;;  %1601 = vmatprep.mubr.f32.mxu0 %v1470_v49  ;;  %v3984_v53 = vunpack.i.h.bf16 %v3982_v48  ;;  %v1717_v30 = vld [vmem:[%s5842_s5 + $0x90] sm:$0xff]  ;;  %v1726_v42 = vld [vmem:[%s5842_s5 + $0xd8] sm:$0xff]  ;;  %v1748_v7 = vld [vmem:[%s5842_s5 + $0x188] sm:$0xff] }
 0x1ec   :  { %v1396_v52 = vrot.slane %v1221_v50, 4  ;;  %v3983_v12 = vunpack.i.l.bf16 %v3982_v48  ;;  %1602 = vmatmul.mubr.f32.vlgmr.msra.gmra.mrb[40].mxu0 %v1469_v37  ;;  %v1408_v39 = vrot.slane %v1265_v44, 3  ;;  %v3519_v27 = vpack.c.bf16 %v1718_v41, %v1716_v22  ;;  %v1723_v44 = vld [vmem:[%s5842_s5 + $0xc0] sm:$0xff]  ;;  %v1725_v47 = vld [vmem:[%s5842_s5 + $0xd0] sm:$0xff]  ;;  %v1728_v48 = vld [vmem:[%s5842_s5 + $0xe8] sm:$0xff] }
 0x1ed   :  { %v1352_v54 = vsel %vm674_vm1, %v3969_v15, %v3984_v53  ;;  %3506 = vmatpush1.bf16.msra.mxu0 %v3505_v5  ;;  %v3511_v15 = vpack.c.bf16 %v1710_v13, %v1708_v10  ;;  %v3521_v33 = vpack.c.bf16 %v1717_v30, %v1715_v29  ;;  %v3523_v34 = vpack.c.bf16 %v1722_v31, %v1720_v32  ;;  %v1730_v49 = vld [vmem:[%s5842_s5 + $0xf8] sm:$0xff]  ;;  %v1729_v37 = vld [vmem:[%s5842_s5 + $0xf0] sm:$0xff]  ;;  %v1743_v5 = vld [vmem:[%s5842_s5 + $0x160] sm:$0xff] }
 0x1ee   :  { %v1308_v26 = vsel %vm674_vm1, %v3968_v16, %v3983_v12  ;;  %v1456_v55 = vsel %vm1453_vm6, %v1451_v23, %v1396_v52  ;;  %v1353_v58 = vsel %vm1044_vm14, %v1352_v54, %v3989_v51  ;;  %3508 = vmatprep.subr.bf16.mxu0 %v3507_v6  ;;  %v1707_v16 = vld [vmem:[%s5842_s5 + $0x40] sm:$0xff]  ;;  %v3525_v11 = vpack.c.bf16 %v1721_v36, %v1719_v35  ;;  %v1732_v52 = vld [vmem:[%s5842_s5 + $0x108] sm:$0xff]  ;;  %v1734_v53 = vld [vmem:[%s5842_s5 + $0x118] sm:$0xff] }
 0x1ef   :  { %v1309_v57 = vsel %vm1044_vm14, %v1308_v26, %v3988_v46  ;;  %v1432_v61 = vrot.slane %v1353_v58, 1  ;;  %v1461_v62 = vsel %vm1458_vm7, %v1456_v55, %v1408_v39  ;;  %v3513_v19 = vpack.c.bf16 %v1709_v17, %v1707_v16  ;;  %v1727_v46 = vld [vmem:[%s5842_s5 + $0xe0] sm:$0xff]  ;;  %v1733_v26 = vld [vmem:[%s5842_s5 + $0x110] sm:$0xff]  ;;  %v1736_v54 = vld [vmem:[%s5842_s5 + $0x128] sm:$0xff] }
 0x1f0   :  { %v1420_v60 = vrot.slane %v1309_v57, 2  ;;  %v3527_v45 = vpack.c.bf16 %v1726_v42, %v1724_v8  ;;  %v3529_v50 = vpack.c.bf16 %v1725_v47, %v1723_v44  ;;  %v3531_v51 = vpack.c.bf16 %v1730_v49, %v1728_v48  ;;  %v1731_v39 = vld [vmem:[%s5842_s5 + $0x100] sm:$0xff]  ;;  %v1738_v55 = vld [vmem:[%s5842_s5 + $0x138] sm:$0xff]  ;;  %v1745_v6 = vld [vmem:[%s5842_s5 + $0x170] sm:$0xff] }
 0x1f1   :  { %3510 = vmatpush1.bf16.msra.mxu0 %v3509_v14  ;;  %v3533_v12 = vpack.c.bf16 %v1729_v37, %v1727_v46  ;;  %v3535_v23 = vpack.c.bf16 %v1734_v53, %v1732_v52  ;;  %v3537_v57 = vpack.c.bf16 %v1733_v26, %v1731_v39  ;;  %v3539_v58 = vpack.c.bf16 %v1738_v55, %v1736_v54  ;;  %v1750_v9 = vld [vmem:[%s5842_s5 + $0x198] sm:$0xff]  ;;  %v1747_v14 = vld [vmem:[%s5842_s5 + $0x180] sm:$0xff]  ;;  %v1752_v16 = vld [vmem:[%s5842_s5 + $0x1a8] sm:$0xff] }
 0x1f2   :  { %v1466_v24 = vsel %vm1463_vm8, %v1461_v62, %v1420_v60  ;;  %3512 = vmatprep.subr.bf16.mxu0 %v3511_v15  ;;  %v1735_v60 = vld [vmem:[%s5842_s5 + $0x120] sm:$0xff]  ;;  %v1740_v62 = vld [vmem:[%s5842_s5 + $0x148] sm:$0xff]  ;;  %v3547_v4 = vpack.c.bf16 %v1746_v2, %v1744_v40  ;;  %v3549_v10 = vpack.c.bf16 %v1745_v6, %v1743_v5  ;;  %v3551_v13 = vpack.c.bf16 %v1750_v9, %v1748_v7  ;;  %v1749_v15 = vld [vmem:[%s5842_s5 + $0x190] sm:$0xff] }
 0x1f3   :  { %v1471_v28 = vsel %vm1468_vm9, %v1466_v24, %v1432_v61  ;;  %v1737_v61 = vld [vmem:[%s5842_s5 + $0x130] sm:$0xff]  ;;  %v1742_v24 = vld [vmem:[%s5842_s5 + $0x158] sm:$0xff]  ;;  %v3553_v56 = vpack.c.bf16 %v1749_v15, %v1747_v14  ;;  %v1756_v20 = vld [vmem:[%s5842_s5 + $0x1c8] sm:$0xff] }
 0x1f4   :  { %1672 = vmatmul.mubr.f32.vlgmr.msra.gmra.mrb[40].mxu1 %v1471_v28  ;;  %v3541_v28 = vpack.c.bf16 %v1737_v61, %v1735_v60  ;;  %v3543_v63 = vpack.c.bf16 %v1742_v24, %v1740_v62  ;;  %v1754_v17 = vld [vmem:[%s5842_s5 + $0x1b8] sm:$0xff]  ;;  %v3043_v30 = vld [vmem:[%s5882_s2] ss:$0 sm:$0xff]  ;;  %v1849_v52 = vld [vmem:[%s5844_s7 + $0x8] sm:$0xff] }
 0x1f5   :  { %3514 = vmatpush1.bf16.msra.mxu0 %v3513_v19  ;;  %v3555_v18 = vpack.c.bf16 %v1754_v17, %v1752_v16  ;;  %v1751_v19 = vld [vmem:[%s5842_s5 + $0x1a0] sm:$0xff]  ;;  %v1758_v59 = vld [vmem:[%s5842_s5 + $0x1d8] sm:$0xff]  ;;  %v1866_v53 = vld [vmem:[%s5844_s7 + $0x90] sm:$0xff] }
 0x1f6   :  { %3516 = vmatprep.subr.bf16.mxu0 %v3515_v43  ;;  %v1753_v43 = vld [vmem:[%s5842_s5 + $0x1b0] sm:$0xff]  ;;  %v3559_v41 = vpack.c.bf16 %v1758_v59, %v1756_v20  ;;  %v1755_v31 = vld [vmem:[%s5842_s5 + $0x1c0] sm:$0xff]  ;;  %v1762_v8 = vld [vmem:[%s5842_s5 + $0x1f8] sm:$0xff] }
 0x1f7   :  { %v3557_v22 = vpack.c.bf16 %v1753_v43, %v1751_v19  ;;  %v1759_v42 = vld [vmem:[%s5842_s5 + $0x1e0] sm:$0xff]  ;;  %v1850_v54 = vld [vmem:[%s5844_s7 + $0x10] sm:$0xff]  ;;  %v1851_v55 = vld [vmem:[%s5844_s7 + $0x18] sm:$0xff] }
 0x1f8   :  { %v1848_v46 = vld [vmem:[%s5844_s7] sm:$0xff]  ;;  %v1869_v60 = vld [vmem:[%s5844_s7 + $0xa8] sm:$0xff]  ;;  %v3573_v62 = vpack.c.bf16 %v1851_v55, %v1850_v54  ;;  %v1871_v1 = vld [vmem:[%s5844_s7 + $0xb8] sm:$0xff] }
 0x1f9   :  { %3518 = vmatpush1.bf16.msra.mxu0 %v3517_v25  ;;  %v3569_v26 = vpack.c.bf16 %v1849_v52, %v1848_v46  ;;  %v3579_v2 = vpack.c.bf16 %v1871_v1, %v1870_v0  ;;  %v1872_v5 = vld [vmem:[%s5844_s7 + $0xc0] sm:$0xff]  ;;  %v1873_v6 = vld [vmem:[%s5844_s7 + $0xc8] sm:$0xff]  ;;  %v1874_v14 = vld [vmem:[%s5844_s7 + $0xd0] sm:$0xff] }
 0x1fa   :  { %3520 = vmatprep.subr.bf16.mxu0 %v3519_v27  ;;  %v3583_v9 = vpack.c.bf16 %v1873_v6, %v1872_v5  ;;  %v1875_v15 = vld [vmem:[%s5844_s7 + $0xd8] sm:$0xff]  ;;  %v1876_v19 = vld [vmem:[%s5844_s7 + $0xe0] sm:$0xff]  ;;  %v1877_v43 = vld [vmem:[%s5844_s7 + $0xe8] sm:$0xff] }
 0x1fb   :  { %v3587_v17 = vpack.c.bf16 %v1875_v15, %v1874_v14  ;;  %v3591_v59 = vpack.c.bf16 %v1877_v43, %v1876_v19  ;;  %v2166_v52 = vld [vmem:[%s5847_s10 + $0x48] sm:$0xff]  ;;  %v1765_v19 = vlaneseq }
 0x1fc   :  { %v2174_v54 = vld [vmem:[%s5847_s10 + $0x88] sm:$0xff] }
 0x1fd   :  { %3522 = vmatpush1.bf16.msra.mxu0 %v3521_v33  ;;  %v1757_v33 = vld [vmem:[%s5842_s5 + $0x1d0] sm:$0xff]  ;;  %v2178_v55 = vld [vmem:[%s5847_s10 + $0xa8] sm:$0xff]  ;;  %v5314_v43 = vshrl.u32 %v1765_v19, 7 }
 0x1fe   :  { %3524 = vmatprep.subr.bf16.mxu0 %v3523_v34  ;;  %v1760_v34 = vld [vmem:[%s5842_s5 + $0x1e8] sm:$0xff]  ;;  %v3561_v36 = vpack.c.bf16 %v1757_v33, %v1755_v31  ;;  %v1972_v19 = vld [vmem:[%s5846_s9 + $0x70] sm:$0xff] }
 0x1ff   :  { %v3563_v47 = vpack.c.bf16 %v1762_v8, %v1760_v34  ;;  %v2194_v5 = vld [vmem:[%s5847_s10 + $0x128] sm:$0xff] }
 0x200   :  { %v2202_v14 = vld [vmem:[%s5847_s10 + $0x168] sm:$0xff] }
 0x201   :  { %3526 = vmatpush1.bf16.msra.mxu0 %v3525_v11  ;;  %v1761_v11 = vld [vmem:[%s5842_s5 + $0x1f0] sm:$0xff] }
 0x202   :  { %3528 = vmatprep.subr.bf16.mxu0 %v3527_v45  ;;  %v3565_v48 = vpack.c.bf16 %v1761_v11, %v1759_v42  ;;  %v1878_v42 = vld [vmem:[%s5844_s7 + $0xf0] sm:$0xff]  ;;  %v1879_v11 = vld [vmem:[%s5844_s7 + $0xf8] sm:$0xff] }
 0x205   :  { %3530 = vmatpush1.bf16.msra.mxu0 %v3529_v50  ;;  %v1864_v50 = vld [vmem:[%s5844_s7 + $0x80] sm:$0xff] }
 0x206   :  { %3532 = vmatprep.subr.bf16.mxu0 %v3531_v51  ;;  %v1865_v51 = vld [vmem:[%s5844_s7 + $0x88] sm:$0xff] }
 0x207   :  { %v3567_v37 = vpack.c.bf16 %v1865_v51, %v1864_v50  ;;  %v2162_v50 = vld [vmem:[%s5847_s10 + $0x28] sm:$0xff]  ;;  %v2157_v51 = vld [vmem:[%s5847_s10] sm:$0xff] }
 0x209   :  { %3534 = vmatpush1.bf16.msra.mxu0 %v3533_v12  ;;  %v1867_v12 = vld [vmem:[%s5844_s7 + $0x98] sm:$0xff]  ;;  %3568 = vmatprep.subr.bf16.mxu1 %v3567_v37  ;;  %v2161_v37 = vld [vmem:[%s5847_s10 + $0x20] sm:$0xff] }
 0x20a   :  { %3536 = vmatprep.subr.bf16.mxu0 %v3535_v23  ;;  %3570 = vmatpush3.bf16.msra.mxu1 %v3569_v26  ;;  %v2169_v26 = vld [vmem:[%s5847_s10 + $0x60] sm:$0xff] }
 0x20d   :  { %3538 = vmatpush1.bf16.msra.mxu0 %v3537_v57  ;;  %v1868_v57 = vld [vmem:[%s5844_s7 + $0xa0] sm:$0xff] }
 0x20e   :  { %3540 = vmatprep.subr.bf16.mxu0 %v3539_v58  ;;  %v3571_v58 = vpack.c.bf16 %v1867_v12, %v1866_v53  ;;  %v3575_v24 = vpack.c.bf16 %v1869_v60, %v1868_v57  ;;  %v2170_v53 = vld [vmem:[%s5847_s10 + $0x68] sm:$0xff]  ;;  %v5220_v12 = vpack.c.bf16 %v2161_v37, %v2157_v51  ;;  %v5244_v60 = vpack.c.bf16 %v2178_v55, %v2174_v54  ;;  %v1974_v51 = vld [vmem:[%s5846_s9 + $0x80] sm:$0xff] }
 0x20f   :  { %v1978_v37 = vld [vmem:[%s5846_s9 + $0xa0] sm:$0xff]  ;;  %v1987_v55 = vld [vmem:[%s5846_s9 + $0xe8] sm:$0xff] }
 0x210   :  { %3572 = vmatprep.subr.bf16.mxu1 %v3571_v58  ;;  %v1959_v58 = vld [vmem:[%s5846_s9 + $0x8] sm:$0xff] }
 0x211   :  { %3542 = vmatpush1.bf16.msra.mxu0 %v3541_v28  ;;  %v1852_v28 = vld [vmem:[%s5844_s7 + $0x20] sm:$0xff]  ;;  %3574 = vmatpush3.bf16.msra.mxu1 %v3573_v62 }
 0x212   :  { %3544 = vmatprep.subr.bf16.mxu0 %v3543_v63  ;;  %v1853_v63 = vld [vmem:[%s5844_s7 + $0x28] sm:$0xff]  ;;  %3576 = vmatprep.subr.bf16.mxu1 %v3575_v24  ;;  %v2177_v62 = vld [vmem:[%s5847_s10 + $0xa0] sm:$0xff] }
 0x213   :  { %v3577_v40 = vpack.c.bf16 %v1853_v63, %v1852_v28  ;;  %v1963_v24 = vld [vmem:[%s5846_s9 + $0x28] sm:$0xff] }
 0x214   :  { %v2182_v28 = vld [vmem:[%s5847_s10 + $0xc8] sm:$0xff]  ;;  %v3599_v0 = vpack.c.bf16 %v1963_v24, %v1959_v58  ;;  %v2205_v58 = vld [vmem:[%s5847_s10 + $0x180] sm:$0xff] }
 0x215   :  { %3546 = vmatpush1.bf16.msra.mxu0 %v3545_v3  ;;  %v1854_v3 = vld [vmem:[%s5844_s7 + $0x30] sm:$0xff]  ;;  %3578 = vmatpush3.bf16.msra.mxu1 %v3577_v40  ;;  %v2186_v63 = vld [vmem:[%s5847_s10 + $0xe8] sm:$0xff] }
 0x216   :  { %3548 = vmatprep.subr.bf16.mxu0 %v3547_v4  ;;  %v1855_v4 = vld [vmem:[%s5844_s7 + $0x38] sm:$0xff]  ;;  %3580 = vmatprep.subr.bf16.mxu1 %v3579_v2  ;;  %v5265_v40 = vpack.c.bf16 %v2186_v63, %v2182_v28  ;;  %v2181_v2 = vld [vmem:[%s5847_s10 + $0xc0] sm:$0xff] }
 0x217   :  { %v3581_v7 = vpack.c.bf16 %v1855_v4, %v1854_v3  ;;  %v2185_v3 = vld [vmem:[%s5847_s10 + $0xe0] sm:$0xff]  ;;  %v2190_v4 = vld [vmem:[%s5847_s10 + $0x108] sm:$0xff] }
 0x218   :  { %v5280_v6 = vpack.c.bf16 %v2185_v3, %v2181_v2  ;;  %v1982_v28 = vld [vmem:[%s5846_s9 + $0xc0] sm:$0xff]  ;;  %v2218_v3 = vld [vmem:[%s5847_s10 + $0x1e8] sm:$0xff] }
 0x219   :  { %3550 = vmatpush1.bf16.msra.mxu0 %v3549_v10  ;;  %v1856_v10 = vld [vmem:[%s5844_s7 + $0x40] sm:$0xff]  ;;  %3582 = vmatpush3.bf16.msra.mxu1 %v3581_v7  ;;  %v5283_v7 = vpack.c.bf16 %v2194_v5, %v2190_v4  ;;  %v1961_v4 = vld [vmem:[%s5846_s9 + $0x18] sm:$0xff] }
 0x21a   :  { %3552 = vmatprep.subr.bf16.mxu0 %v3551_v13  ;;  %v1857_v13 = vld [vmem:[%s5844_s7 + $0x48] sm:$0xff]  ;;  %3584 = vmatprep.subr.bf16.mxu1 %v3583_v9  ;;  %v2189_v9 = vld [vmem:[%s5847_s10 + $0x100] sm:$0xff]  ;;  %v1965_v5 = vld [vmem:[%s5846_s9 + $0x38] sm:$0xff] }
 0x21b   :  { %v3585_v16 = vpack.c.bf16 %v1857_v13, %v1856_v10  ;;  %v2193_v10 = vld [vmem:[%s5847_s10 + $0x120] sm:$0xff]  ;;  %v2198_v13 = vld [vmem:[%s5847_s10 + $0x148] sm:$0xff] }
 0x21c   :  { %v5298_v15 = vpack.c.bf16 %v2193_v10, %v2189_v9  ;;  %v1986_v63 = vld [vmem:[%s5846_s9 + $0xe0] sm:$0xff]  ;;  %v3615_v10 = vpack.c.bf16 %v1965_v5, %v1961_v4 }
 0x21d   :  { %3554 = vmatpush1.bf16.msra.mxu0 %v3553_v56  ;;  %v1858_v56 = vld [vmem:[%s5844_s7 + $0x50] sm:$0xff]  ;;  %3586 = vmatpush3.bf16.msra.mxu1 %v3585_v16  ;;  %v5301_v16 = vpack.c.bf16 %v2202_v14, %v2198_v13  ;;  %v3613_v2 = vpack.c.bf16 %v1986_v63, %v1982_v28  ;;  %v2213_v13 = vld [vmem:[%s5847_s10 + $0x1c0] sm:$0xff] }
 0x21e   :  { %3556 = vmatprep.subr.bf16.mxu0 %v3555_v18  ;;  %v1859_v18 = vld [vmem:[%s5844_s7 + $0x58] sm:$0xff]  ;;  %3588 = vmatprep.subr.bf16.mxu1 %v3587_v17  ;;  %v2197_v17 = vld [vmem:[%s5847_s10 + $0x140] sm:$0xff]  ;;  %v2183_v63 = vld [vmem:[%s5847_s10 + $0xd0] sm:$0xff] }
 0x21f   :  { %v3589_v20 = vpack.c.bf16 %v1859_v18, %v1858_v56  ;;  %v2201_v56 = vld [vmem:[%s5847_s10 + $0x160] sm:$0xff] }
 0x220   :  { %v5310_v18 = vpack.c.bf16 %v2201_v56, %v2197_v17  ;;  %v2217_v14 = vld [vmem:[%s5847_s10 + $0x1e0] sm:$0xff] }
 0x221   :  { %3558 = vmatpush1.bf16.msra.mxu0 %v3557_v22  ;;  %3590 = vmatpush3.bf16.msra.mxu1 %v3589_v20  ;;  %v1767_v20 = vsub.s32 0, %v5314_v43  ;;  %v3661_v17 = vpack.c.bf16 %v2217_v14, %v2213_v13  ;;  %v2200_v13 = vld [vmem:[%s5847_s10 + $0x158] sm:$0xff] }
 0x222   :  { %3560 = vmatprep.subr.bf16.mxu0 %v3559_v41  ;;  %3592 = vmatprep.subr.bf16.mxu1 %v3591_v59  ;;  %v1763_v59 = vld [vmem:[%s5843_s6] sm:$0x3]  ;;  %v2204_v14 = vld [vmem:[%s5847_s10 + $0x178] sm:$0xff] }
 0x225   :  { %3562 = vmatpush1.bf16.msra.mxu0 %v3561_v36  ;;  %v1861_v36 = vld [vmem:[%s5844_s7 + $0x68] sm:$0xff] }
 0x226   :  { %3564 = vmatprep.subr.bf16.mxu0 %v3563_v47  ;;  %v1863_v47 = vld [vmem:[%s5844_s7 + $0x78] sm:$0xff] }
 0x229   :  { %3566 = vmatpush1.bf16.msra.mxu0 %v3565_v48 }
 0x2bf   :  { %v3233_v25 = vpop.f32.mrb[40].mxu0 }
 0x2c0   :  { %v3234_v27 = vpop.f32.mrb[41].mxu0 }
 0x2c1   :  { %v3235_v29 = vadd.f32 %v3234_v27, %v3233_v25 }
 0x2c3   :  { %v1604_v32 = vadd.f32 %v3235_v29, %v3043_v30 }
 0x2c7   :  { %v1673_v35 = vpop.f32.mrb[40].mxu1 }
 0x2c8   :  { %v1674_v45 = vadd.f32 %v1673_v35, %v1604_v32  ;;  %v1675_v44 = vpop.f32.mrb[41].mxu1  ;;  %v1860_v35 = vld [vmem:[%s5844_s7 + $0x60] sm:$0xff] }
 0x2c9   :  { %v3593_v8 = vpack.c.bf16 %v1861_v36, %v1860_v35  ;;  %v3595_v44 = vpack.c.bf16 %v1879_v11, %v1878_v42  ;;  %v1971_v35 = vld [vmem:[%s5846_s9 + $0x68] sm:$0xff] }
 0x2ca   :  { %v5092_v49 = vmax.f32 %v1674_v45, 0.0  ;;  %v1862_v45 = vld [vmem:[%s5844_s7 + $0x70] sm:$0xff]  ;;  %s4158_s7 = smov [#allocation3]  }
 0x2cb   :  { %3594 = vmatpush3.bf16.msra.mxu1 %v3593_v8  ;;  %v3597_v48 = vpack.c.bf16 %v1863_v47, %v1862_v45  ;;  %v1966_v45 = vld [vmem:[%s5846_s9 + $0x40] sm:$0xff]  ;;  %v1975_v47 = vld [vmem:[%s5846_s9 + $0x88] sm:$0xff]  ;;  %s2944_s1 = sshll.u32 %s4158_s7, 4  ;;  %s2945_s1 = int_to_ptr.vmem [resolvable:$true] %s2944_s1 }
 0x2cc   :  { %v1679_v23 = vrot.slane %v5092_v49, 1  ;;  %v1685_v39 = vrot.slane %v5092_v49, 3  ;;  %v1683_v27 = vrot.slane %v5092_v49, 2  ;;  %3596 = vmatprep.subr.bf16.mxu1 %v3595_v44  ;;  %v1970_v44 = vld [vmem:[%s5846_s9 + $0x60] sm:$0xff]  ;;  %p4129_p1 = scmp.lt.s32.totalorder %s2945_s1, %s2945_s1 }
 0x2ce   :  { %v3990_v61 = vpack.i.bf16 %v1679_v23, %v1685_v39  ;;  %v5222_v23 = vpack.c.bf16 %v2170_v53, %v2166_v52  ;;  %v2165_v39 = vld [vmem:[%s5847_s10 + $0x40] sm:$0xff]  ;;  %v3609_v52 = vpack.c.bf16 %v1978_v37, %v1974_v51  ;;  %v2206_v53 = vld [vmem:[%s5847_s10 + $0x188] sm:$0xff]  ;;  %v2167_v37 = vld [vmem:[%s5847_s10 + $0x50] sm:$0xff] }
 0x2cf   :  { %3598 = vmatpush3.bf16.msra.mxu1 %v3597_v48  ;;  %v5238_v57 = vpack.c.bf16 %v2169_v26, %v2165_v39  ;;  %v1979_v48 = vld [vmem:[%s5846_s9 + $0xa8] sm:$0xff] }
 0x2d0   :  { %3991 = vrot.lane.b32.xlu0 %v3990_v61, %s5878_s25  ;;  %v2173_v61 = vld [vmem:[%s5847_s10 + $0x80] sm:$0xff]  ;;  %3600 = vmatprep.subr.bf16.mxu1 %v3599_v0  ;;  %v2210_v39 = vld [vmem:[%s5847_s10 + $0x1a8] sm:$0xff] }
 0x2d1   :  { %v5262_v1 = vpack.c.bf16 %v2177_v62, %v2173_v61  ;;  %v1983_v26 = vld [vmem:[%s5846_s9 + $0xc8] sm:$0xff]  ;;  %v3655_v54 = vpack.c.bf16 %v2210_v39, %v2206_v53  ;;  %v2209_v61 = vld [vmem:[%s5847_s10 + $0x1a0] sm:$0xff]  ;;  %v2176_v53 = vld [vmem:[%s5847_s10 + $0x98] sm:$0xff] }
 0x2d2   :  { %v3611_v62 = vpack.c.bf16 %v1987_v55, %v1983_v26  ;;  %v3657_v24 = vpack.c.bf16 %v2209_v61, %v2205_v58  ;;  %v2214_v0 = vld [vmem:[%s5847_s10 + $0x1c8] sm:$0xff]  ;;  %v2180_v39 = vld [vmem:[%s5847_s10 + $0xb8] sm:$0xff]  ;;  %v2175_v55 = vld [vmem:[%s5847_s10 + $0x90] sm:$0xff] }
 0x2d3   :  { %v3659_v9 = vpack.c.bf16 %v2218_v3, %v2214_v0  ;;  %v2179_v58 = vld [vmem:[%s5847_s10 + $0xb0] sm:$0xff]  ;;  %v2184_v61 = vld [vmem:[%s5847_s10 + $0xd8] sm:$0xff] }
 0x2d4   :  { %v2187_v0 = vld [vmem:[%s5847_s10 + $0xf0] sm:$0xff]  ;;  %v2196_v3 = vld [vmem:[%s5847_s10 + $0x138] sm:$0xff] }
 0x2d5   :  { %v3677_v4 = vpack.c.bf16 %v2187_v0, %v2183_v63 }
 0x342   :  { %v3992_v22 = vpop.permute.xlu0 %3991 }
 0x343   :  { %v3994_v41 = vunpack.i.h.bf16 %v3992_v22  ;;  %v3993_v25 = vunpack.i.l.bf16 %v3992_v22  ;;  %v1771_v22 = vsub.s32 1, %v5314_v43 }
 0x345   :  { %v1689_v29 = vsel %vm1039_vm12, %v5092_v49, %v3994_v41  ;;  %v1690_v30 = vsel %vm1039_vm12, %v1683_v27, %v3993_v25  ;;  %v2158_v49 = vld [vmem:[%s5847_s10 + $0x8] sm:$0xff]  ;;  %v1768_v41 = vrot.slane %v1763_v59, %v1767_v20  ;;  %v1772_v25 = vrot.slane %v1763_v59, %v1771_v22  ;;  %v1977_v59 = vld [vmem:[%s5846_s9 + $0x98] sm:$0xff] }
 0x346   :  { %v1693_v32 = vrot.slane %v1689_v29, 3  ;;  %v1694_v31 = vrot.slane %v1690_v30, 3  ;;  %v5209_v46 = vpack.c.bf16 %v2162_v50, %v2158_v49  ;;  %v3605_v49 = vpack.c.bf16 %v1970_v44, %v1966_v45  ;;  %v2159_v44 = vld [vmem:[%s5847_s10 + $0x10] sm:$0xff] }
 0x347   :  { %v3607_v50 = vpack.c.bf16 %v1979_v48, %v1975_v47  ;;  %v2163_v47 = vld [vmem:[%s5847_s10 + $0x30] sm:$0xff]  ;;  %v2168_v48 = vld [vmem:[%s5847_s10 + $0x58] sm:$0xff] }
 0x348   :  { %v1698_v33 = vsel %vm1438_vm3, %v1690_v30, %v1694_v31  ;;  %v1697_v34 = vsel %vm1438_vm3, %v1689_v29, %v1693_v32  ;;  %3632 = vmatprep.subr.bf16.mxu0 %v5209_v46  ;;  %v1958_v32 = vld [vmem:[%s5846_s9] sm:$0xff] }
 0x349   :  { %1839 = vmatprep.mubr.f32.mxu0 %v1698_v33  ;;  %v1962_v31 = vld [vmem:[%s5846_s9 + $0x20] sm:$0xff] }
 0x34a   :  { %1840 = vmatmul.mubr.f32.vlgmr.msra.gmra.mrb[42].mxu0 %v1697_v34  ;;  %v1967_v34 = vld [vmem:[%s5846_s9 + $0x48] sm:$0xff]  ;;  %v3601_v8 = vpack.c.bf16 %v1962_v31, %v1958_v32  ;;  %v1985_v32 = vld [vmem:[%s5846_s9 + $0xd8] sm:$0xff] }
 0x34b   :  { %2285 = vmatprep.mubr.f32.mxu0 %v4148_v38  ;;  %3634 = vmatpush1.bf16.msra.mxu0 %v5220_v12  ;;  %v3603_v11 = vpack.c.bf16 %v1971_v35, %v1967_v34  ;;  %v1989_v31 = vld [vmem:[%s5846_s9 + $0xf8] sm:$0xff]  ;;  %v1984_v35 = vld [vmem:[%s5846_s9 + $0xd0] sm:$0xff] }
 0x34c   :  { %3636 = vmatprep.subr.bf16.mxu0 %v5222_v23  ;;  %v3627_v34 = vpack.c.bf16 %v1989_v31, %v1985_v32  ;;  %v1990_v32 = vld [vmem:[%s5848_s11] sm:$0xf] }
 0x34d   :  { %v1999_v31 = vrot.slane %v1990_v32, %v1771_v22  ;;  %v2006_v22 = vsub.s32 3, %v5314_v43 }
 0x34f   :  { %3638 = vmatpush1.bf16.msra.mxu0 %v5238_v57 }
 0x350   :  { %3640 = vmatprep.subr.bf16.mxu0 %v5244_v60 }
 0x353   :  { %3642 = vmatpush1.bf16.msra.mxu0 %v5262_v1 }
 0x354   :  { %3644 = vmatprep.subr.bf16.mxu0 %v5265_v40 }
 0x357   :  { %3646 = vmatpush1.bf16.msra.mxu0 %v5280_v6 }
 0x358   :  { %3648 = vmatprep.subr.bf16.mxu0 %v5283_v7 }
 0x35b   :  { %3650 = vmatpush1.bf16.msra.mxu0 %v5298_v15 }
 0x35c   :  { %3652 = vmatprep.subr.bf16.mxu0 %v5301_v16 }
 0x35f   :  { %3654 = vmatpush1.bf16.msra.mxu0 %v5310_v18 }
 0x360   :  { %3656 = vmatprep.subr.bf16.mxu0 %v3655_v54 }
 0x363   :  { %3658 = vmatpush1.bf16.msra.mxu0 %v3657_v24 }
 0x364   :  { %3660 = vmatprep.subr.bf16.mxu0 %v3659_v9 }
 0x367   :  { %3662 = vmatpush1.bf16.msra.mxu0 %v3661_v17 }
 0x368   :  { %3696 = vmatprep.subr.bf16.mxu0 %v5209_v46 }
 0x36a   :  { %2286 = vmatmul.mubr.f32.vlgmr.msra.gmra.mrb[44].mxu0 %v4148_v38 }
 0x36b   :  { %3698 = vmatpush1.bf16.msra.mxu0 %v5220_v12  ;;  %2455 = vmatprep.mubr.f32.mxu0 %v4148_v38  ;;  %v3045_v12 = vld [vmem:[%s5845_s8] ss:$0 sm:$0xff] }
 0x36c   :  { %3700 = vmatprep.subr.bf16.mxu0 %v5222_v23 }
 0x36f   :  { %3702 = vmatpush1.bf16.msra.mxu0 %v5238_v57 }
 0x370   :  { %3704 = vmatprep.subr.bf16.mxu0 %v5244_v60  ;;  %v1960_v60 = vld [vmem:[%s5846_s9 + $0x10] sm:$0xff] }
 0x373   :  { %3706 = vmatpush1.bf16.msra.mxu0 %v5262_v1  ;;  %v1964_v1 = vld [vmem:[%s5846_s9 + $0x30] sm:$0xff] }
 0x374   :  { %3708 = vmatprep.subr.bf16.mxu0 %v5265_v40  ;;  %v1969_v40 = vld [vmem:[%s5846_s9 + $0x58] sm:$0xff] }
 0x377   :  { %3710 = vmatpush1.bf16.msra.mxu0 %v5280_v6  ;;  %v1973_v6 = vld [vmem:[%s5846_s9 + $0x78] sm:$0xff] }
 0x378   :  { %3712 = vmatprep.subr.bf16.mxu0 %v5283_v7  ;;  %v3619_v56 = vpack.c.bf16 %v1973_v6, %v1969_v40  ;;  %v2207_v6 = vld [vmem:[%s5847_s10 + $0x190] sm:$0xff] }
 0x37b   :  { %3714 = vmatpush1.bf16.msra.mxu0 %v5298_v15  ;;  %v3617_v15 = vpack.c.bf16 %v1964_v1, %v1960_v60  ;;  %v2212_v60 = vld [vmem:[%s5847_s10 + $0x1b8] sm:$0xff] }
 0x37c   :  { %3716 = vmatprep.subr.bf16.mxu0 %v5301_v16 }
 0x37f   :  { %3718 = vmatpush1.bf16.msra.mxu0 %v5310_v18  ;;  %v1968_v18 = vld [vmem:[%s5846_s9 + $0x50] sm:$0xff] }
 0x380   :  { %3720 = vmatprep.subr.bf16.mxu0 %v3655_v54  ;;  %v3671_v54 = vpack.c.bf16 %v2180_v39, %v2176_v53 }
 0x383   :  { %3722 = vmatpush1.bf16.msra.mxu0 %v3657_v24  ;;  %v3673_v24 = vpack.c.bf16 %v2179_v58, %v2175_v55 }
 0x384   :  { %3724 = vmatprep.subr.bf16.mxu0 %v3659_v9  ;;  %v2191_v9 = vld [vmem:[%s5847_s10 + $0x110] sm:$0xff] }
 0x387   :  { %3726 = vmatpush1.bf16.msra.mxu0 %v3661_v17 }
 0x41d   :  { %v1841_v27 = vpop.f32.mrb[42].mxu0 }
 0x41e   :  { %v1842_v29 = vadd.f32 %v1841_v27, %v1768_v41  ;;  %v1843_v30 = vpop.f32.mrb[43].mxu0  ;;  %v1981_v41 = vld [vmem:[%s5846_s9 + $0xb8] sm:$0xff] }
 0x41f   :  { %v1844_v33 = vadd.f32 %v1843_v30, %v1772_v25  ;;  %v3621_v25 = vpack.c.bf16 %v1972_v19, %v1968_v18  ;;  %v3623_v27 = vpack.c.bf16 %v1981_v41, %v1977_v59  ;;  %v1980_v30 = vld [vmem:[%s5846_s9 + $0xb0] sm:$0xff] }
 0x420   :  { %v1846_v42 = vmax.f32 %v1842_v29, 0.0  ;;  %v1976_v29 = vld [vmem:[%s5846_s9 + $0x90] sm:$0xff] }
 0x421   :  { %v1847_v36 = vmax.f32 %v1844_v33, 0.0  ;;  %v3625_v33 = vpack.c.bf16 %v1980_v30, %v1976_v29  ;;  %v2215_v19 = vld [vmem:[%s5847_s10 + $0x1d0] sm:$0xff] }
 0x422   :  { %v2219_v59 = vld [vmem:[%s5847_s10 + $0x1f0] sm:$0xff] }
 0x423   :  { %1951 = vmatprep.mubr.f32.mxu1 %v1847_v36  ;;  %v1988_v36 = vld [vmem:[%s5846_s9 + $0xf0] sm:$0xff]  ;;  %v3693_v41 = vpack.c.bf16 %v2219_v59, %v2215_v19  ;;  %v2602_v19 = vld [vmem:[%s5849_s12 + $0xb8] sm:$0xff] }
 0x424   :  { %1952 = vmatmul.mubr.f32.vlgmr.msra.gmra.mrb[42].mxu1 %v1846_v42  ;;  %v2164_v42 = vld [vmem:[%s5847_s10 + $0x38] sm:$0xff] }
 0x425   :  { %3602 = vmatpush1.bf16.msra.mxu1 %v3601_v8  ;;  %2079 = vmatprep.mubr.f32.mxu1 %v4148_v38  ;;  %v2160_v8 = vld [vmem:[%s5847_s10 + $0x18] sm:$0xff] }
 0x426   :  { %3604 = vmatprep.subr.bf16.mxu1 %v3603_v11  ;;  %v3629_v11 = vpack.c.bf16 %v1988_v36, %v1984_v35  ;;  %v5465_v45 = vpack.c.bf16 %v2164_v42, %v2160_v8 }
 0x429   :  { %3606 = vmatpush1.bf16.msra.mxu1 %v3605_v49  ;;  %v2172_v49 = vld [vmem:[%s5847_s10 + $0x78] sm:$0xff] }
 0x42a   :  { %3608 = vmatprep.subr.bf16.mxu1 %v3607_v50  ;;  %v3665_v50 = vpack.c.bf16 %v2163_v47, %v2159_v44  ;;  %v3667_v51 = vpack.c.bf16 %v2172_v49, %v2168_v48  ;;  %v2002_v47 = vsub.s32 2, %v5314_v43 }
 0x42d   :  { %3610 = vmatpush1.bf16.msra.mxu1 %v3609_v52  ;;  %v2171_v52 = vld [vmem:[%s5847_s10 + $0x70] sm:$0xff] }
 0x42e   :  { %3612 = vmatprep.subr.bf16.mxu1 %v3611_v62  ;;  %v3669_v26 = vpack.c.bf16 %v2171_v52, %v2167_v37  ;;  %v2188_v62 = vld [vmem:[%s5847_s10 + $0xf8] sm:$0xff] }
 0x42f   :  { %v3675_v28 = vpack.c.bf16 %v2188_v62, %v2184_v61 }
 0x431   :  { %3614 = vmatpush1.bf16.msra.mxu1 %v3613_v2  ;;  %v2192_v2 = vld [vmem:[%s5847_s10 + $0x118] sm:$0xff] }
 0x432   :  { %3616 = vmatprep.subr.bf16.mxu1 %v3615_v10  ;;  %v3679_v5 = vpack.c.bf16 %v2196_v3, %v2192_v2  ;;  %v2195_v10 = vld [vmem:[%s5847_s10 + $0x130] sm:$0xff] }
 0x433   :  { %v3681_v17 = vpack.c.bf16 %v2195_v10, %v2191_v9  ;;  %v2595_v9 = vld [vmem:[%s5849_s12 + $0x80] sm:$0xff]  ;;  %v2596_v10 = vld [vmem:[%s5849_s12 + $0x88] sm:$0xff] }
 0x4f7   :  { %v3268_v46 = vpop.f32.mrb[42].mxu1 }
 0x4f8   :  { %v3269_v23 = vpop.f32.mrb[43].mxu1 }
 0x4f9   :  { %v3270_v57 = vadd.f32 %v3269_v23, %v3268_v46  ;;  %v3683_v46 = vpack.c.bf16 %v2204_v14, %v2200_v13  ;;  %v2203_v23 = vld [vmem:[%s5847_s10 + $0x170] sm:$0xff]  ;;  %v3759_v13 = vpack.c.bf16 %v2596_v10, %v2595_v9  ;;  %v2579_v14 = vld [vmem:[%s5849_s12] sm:$0xff] }
 0x4fa   :  { %v2689_v10 = vld [vmem:[%s5851_s14 + $0x30] sm:$0xff] }
 0x4fb   :  { %v1954_v7 = vadd.f32 %v3270_v57, %v3045_v12  ;;  %v2199_v12 = vld [vmem:[%s5847_s10 + $0x150] sm:$0xff]  ;;  %v2208_v57 = vld [vmem:[%s5847_s10 + $0x198] sm:$0xff]  ;;  %3760 = vmatprep.subr.bf16.mxu0 %v3759_v13 }
 0x4fc   :  { %v3685_v1 = vpack.c.bf16 %v2203_v23, %v2199_v12  ;;  %v3687_v40 = vpack.c.bf16 %v2212_v60, %v2208_v57  ;;  %v2597_v12 = vld [vmem:[%s5849_s12 + $0x90] sm:$0xff]  ;;  %v2598_v23 = vld [vmem:[%s5849_s12 + $0x98] sm:$0xff] }
 0x4fd   :  { %v1957_v16 = vmax.f32 %v1954_v7, 0.0  ;;  %v2211_v7 = vld [vmem:[%s5847_s10 + $0x1b0] sm:$0xff]  ;;  %v3763_v60 = vpack.c.bf16 %v2598_v23, %v2597_v12  ;;  %v2690_v13 = vld [vmem:[%s5851_s14 + $0x38] sm:$0xff] }
 0x4fe   :  { %v2581_v57 = vld [vmem:[%s5849_s12 + $0x10] sm:$0xff] }
 0x4ff   :  { %3046 = vmatmul.mubr.msk.f32.vlgmr.msra.gmra.mrb[44].mxu1 %vm1039_vm12, %v1957_v16  ;;  %v2693_v23 = vld [vmem:[%s5851_s14 + $0x50] sm:$0xff] }
 0x500   :  { %3618 = vmatpush1.bf16.msra.mxu1 %v3617_v15  ;;  %2150 = vmatprep.mubr.f32.mxu1 %v4148_v38  ;;  %v2216_v15 = vld [vmem:[%s5847_s10 + $0x1d8] sm:$0xff] }
 0x501   :  { %3620 = vmatprep.subr.bf16.mxu1 %v3619_v56  ;;  %v3689_v56 = vpack.c.bf16 %v2211_v7, %v2207_v6  ;;  %v2600_v6 = vld [vmem:[%s5849_s12 + $0xa8] sm:$0xff] }
 0x504   :  { %3622 = vmatpush1.bf16.msra.mxu1 %v3621_v25  ;;  %v2287_v25 = vpop.f32.mrb[44].mxu0 }
 0x505   :  { %3624 = vmatprep.subr.bf16.mxu1 %v3623_v27  ;;  %v2289_v27 = vpop.f32.mrb[45].mxu0 }
 0x508   :  { %3626 = vmatpush1.bf16.msra.mxu1 %v3625_v33 }
 0x509   :  { %3628 = vmatprep.subr.bf16.mxu1 %v3627_v34  ;;  %v1995_v34 = vrot.slane %v1990_v32, %v1767_v20  ;;  %v2003_v20 = vrot.slane %v1990_v32, %v2002_v47  ;;  %v2590_v47 = vld [vmem:[%s5849_s12 + $0x58] sm:$0xff] }
 0x50c   :  { %3630 = vmatpush1.bf16.msra.mxu1 %v3629_v11 }
 0x50d   :  { %3664 = vmatprep.subr.bf16.mxu1 %v5465_v45 }
 0x50f   :  { %3047 = vmatmul.mubr.msk.f32.vlgmr.msra.gmra.mrb[46].mxu1 %vm1039_vm12, %v1957_v16  ;;  %v2220_v16 = vld [vmem:[%s5847_s10 + $0x1f8] sm:$0xff] }
 0x510   :  { %3666 = vmatpush1.bf16.msra.mxu1 %v3665_v50  ;;  %2356 = vmatprep.mubr.f32.mxu1 %v4148_v38  ;;  %v3691_v18 = vpack.c.bf16 %v2220_v16, %v2216_v15  ;;  %v2583_v16 = vld [vmem:[%s5849_s12 + $0x20] sm:$0xff] }
 0x511   :  { %3668 = vmatprep.subr.bf16.mxu1 %v3667_v51 }
 0x514   :  { %3670 = vmatpush1.bf16.msra.mxu1 %v3669_v26 }
 0x515   :  { %3672 = vmatprep.subr.bf16.mxu1 %v3671_v54 }
 0x518   :  { %3674 = vmatpush1.bf16.msra.mxu1 %v3673_v24 }
 0x519   :  { %3676 = vmatprep.subr.bf16.mxu1 %v3675_v28 }
 0x51c   :  { %3678 = vmatpush1.bf16.msra.mxu1 %v3677_v4 }
 0x51d   :  { %3680 = vmatprep.subr.bf16.mxu1 %v3679_v5 }
 0x520   :  { %3682 = vmatpush1.bf16.msra.mxu1 %v3681_v17 }
 0x521   :  { %3684 = vmatprep.subr.bf16.mxu1 %v3683_v46 }
 0x524   :  { %3686 = vmatpush1.bf16.msra.mxu1 %v3685_v1 }
 0x525   :  { %3688 = vmatprep.subr.bf16.mxu1 %v3687_v40 }
 0x528   :  { %3690 = vmatpush1.bf16.msra.mxu1 %v3689_v56 }
 0x529   :  { %3692 = vmatprep.subr.bf16.mxu1 %v3691_v18 }
 0x52c   :  { %3694 = vmatpush1.bf16.msra.mxu1 %v3693_v41 }
 0x52d   :  { %3728 = vmatprep.subr.bf16.mxu1 %v5465_v45 }
 0x52f   :  { %2357 = vmatmul.mubr.f32.vlgmr.msra.gmra.mrb[48].mxu1 %v4148_v38 }
 0x530   :  { %3730 = vmatpush1.bf16.msra.mxu1 %v3665_v50  ;;  %2526 = vmatprep.mubr.f32.mxu1 %v4148_v38  ;;  %v2007_v50 = vrot.slane %v1990_v32, %v2006_v22  ;;  %v2607_v22 = vld [vmem:[%s5849_s12 + $0xe0] sm:$0xff] }
 0x531   :  { %3732 = vmatprep.subr.bf16.mxu1 %v3667_v51 }
 0x534   :  { %3734 = vmatpush1.bf16.msra.mxu1 %v3669_v26 }
 0x535   :  { %3736 = vmatprep.subr.bf16.mxu1 %v3671_v54 }
 0x538   :  { %3738 = vmatpush1.bf16.msra.mxu1 %v3673_v24 }
 0x539   :  { %3740 = vmatprep.subr.bf16.mxu1 %v3675_v28 }
 0x53c   :  { %3742 = vmatpush1.bf16.msra.mxu1 %v3677_v4 }
 0x53d   :  { %3744 = vmatprep.subr.bf16.mxu1 %v3679_v5 }
 0x540   :  { %3746 = vmatpush1.bf16.msra.mxu1 %v3681_v17  ;;  %v2580_v17 = vld [vmem:[%s5849_s12 + $0x8] sm:$0xff] }
 0x541   :  { %3748 = vmatprep.subr.bf16.mxu1 %v3683_v46  ;;  %v3761_v46 = vpack.c.bf16 %v2580_v17, %v2579_v14  ;;  %v3801_v14 = vpack.c.bf16 %v2690_v13, %v2689_v10  ;;  %v2691_v17 = vld [vmem:[%s5851_s14 + $0x40] sm:$0xff]  ;;  %v2777_v10 = vld [vmem:[%s5853_s16 + $0x30] sm:$0xff]  ;;  %v2778_v13 = vld [vmem:[%s5853_s16 + $0x38] sm:$0xff] }
 0x544   :  { %3750 = vmatpush1.bf16.msra.mxu1 %v3685_v1  ;;  %v2582_v1 = vld [vmem:[%s5849_s12 + $0x18] sm:$0xff] }
 0x545   :  { %3752 = vmatprep.subr.bf16.mxu1 %v3687_v40  ;;  %v2599_v40 = vld [vmem:[%s5849_s12 + $0xa0] sm:$0xff]  ;;  %v3765_v7 = vpack.c.bf16 %v2582_v1, %v2581_v57  ;;  %v2694_v57 = vld [vmem:[%s5851_s14 + $0x58] sm:$0xff] }
 0x546   :  { %v3767_v15 = vpack.c.bf16 %v2600_v6, %v2599_v40 }
 0x548   :  { %3754 = vmatpush1.bf16.msra.mxu1 %v3689_v56  ;;  %v2584_v56 = vld [vmem:[%s5849_s12 + $0x28] sm:$0xff] }
 0x549   :  { %3756 = vmatprep.subr.bf16.mxu1 %v3691_v18  ;;  %v2601_v18 = vld [vmem:[%s5849_s12 + $0xb0] sm:$0xff]  ;;  %v3769_v59 = vpack.c.bf16 %v2584_v56, %v2583_v16 }
 0x54c   :  { %3758 = vmatpush1.bf16.msra.mxu1 %v3693_v41  ;;  %v3771_v41 = vpack.c.bf16 %v2602_v19, %v2601_v18 }
 0x54d   :  { %3791 = vmatprep.subr.bf16.mxu1 %v4154_v21 }
 0x5d2   :  { %v2081_v29 = vpop.f32.mrb[44].mxu1 }
 0x5d3   :  { %v2083_v30 = vpop.f32.mrb[45].mxu1  ;;  %v5573_v8 = vadd.f32 %v2081_v29, %v1995_v34  ;;  %v2603_v29 = vld [vmem:[%s5849_s12 + $0xc0] sm:$0xff]  ;;  %v2588_v34 = vld [vmem:[%s5849_s12 + $0x48] sm:$0xff] }
 0x5d4   :  { %v5571_v36 = vadd.f32 %v2083_v30, %v1999_v31  ;;  %v2604_v30 = vld [vmem:[%s5849_s12 + $0xc8] sm:$0xff] }
 0x5d5   :  { %v2363_v11 = vadd.f32 %v2287_v25, %v5573_v8  ;;  %v2585_v25 = vld [vmem:[%s5849_s12 + $0x30] sm:$0xff]  ;;  %v3775_v31 = vpack.c.bf16 %v2604_v30, %v2603_v29 }
 0x5d6   :  { %v2364_v42 = vadd.f32 %v2289_v27, %v5571_v36  ;;  %v2586_v27 = vld [vmem:[%s5849_s12 + $0x38] sm:$0xff] }
 0x5d7   :  { %v3048_v44 = vmul.f32 -1.442695, %v2363_v11  ;;  %v3773_v32 = vpack.c.bf16 %v2586_v27, %v2585_v25 }
 0x5d8   :  { %v3049_v45 = vmul.f32 -1.442695, %v2364_v42  ;;  %v2606_v42 = vld [vmem:[%s5849_s12 + $0xd8] sm:$0xff] }
 0x5da   :  { %4092 = vpow2.f32 %v3049_v45 }
 0x5db   :  { %4094 = vpow2.f32 %v3048_v44  ;;  %v2589_v44 = vld [vmem:[%s5849_s12 + $0x50] sm:$0xff] }
 0x5e2   :  { %v2152_v33 = vpop.f32.mrb[46].mxu1 }
 0x5e3   :  { %v2154_v35 = vpop.f32.mrb[47].mxu1  ;;  %v5579_v52 = vadd.f32 %v2152_v33, %v2003_v20  ;;  %v2587_v33 = vld [vmem:[%s5849_s12 + $0x40] sm:$0xff] }
 0x5e4   :  { %v4093_v48 = vpop.eup %4092  ;;  %v5581_v53 = vadd.f32 %v2154_v35, %v2007_v50  ;;  %v2605_v35 = vld [vmem:[%s5849_s12 + $0xd0] sm:$0xff]  ;;  %v3777_v11 = vpack.c.bf16 %v2588_v34, %v2587_v33  ;;  %v2591_v20 = vld [vmem:[%s5849_s12 + $0x60] sm:$0xff] }
 0x5e5   :  { %v4095_v49 = vpop.eup %4094  ;;  %v2376_v51 = vadd.f32 1.0, %v4093_v48  ;;  %v3779_v45 = vpack.c.bf16 %v2606_v42, %v2605_v35  ;;  %v2608_v48 = vld [vmem:[%s5849_s12 + $0xe8] sm:$0xff] }
 0x5e6   :  { %v2370_v37 = vadd.f32 1.0, %v4095_v49  ;;  %v3781_v49 = vpack.c.bf16 %v2590_v47, %v2589_v44  ;;  %v3783_v50 = vpack.c.bf16 %v2608_v48, %v2607_v22 }
 0x5e7   :  { %4096 = vrcp.f32 %v2376_v51  ;;  %v2592_v51 = vld [vmem:[%s5849_s12 + $0x68] sm:$0xff] }
 0x5e8   :  { %4098 = vrcp.f32 %v2370_v37  ;;  %v2609_v37 = vld [vmem:[%s5849_s12 + $0xf0] sm:$0xff] }
 0x5f1   :  { %v4097_v58 = vpop.eup %4096 }
 0x5f2   :  { %v4099_v61 = vpop.eup %4098  ;;  %v2386_v24 = vmul.f32 0.0, %v4097_v58  ;;  %v2686_v58 = vld [vmem:[%s5851_s14 + $0x18] sm:$0xff] }
 0x602   :  { %v2358_v39 = vpop.f32.mrb[48].mxu1 }
 0x603   :  { %v2365_v26 = vadd.f32 %v2358_v39, %v5579_v52  ;;  %v2360_v54 = vpop.f32.mrb[49].mxu1  ;;  %v2610_v39 = vld [vmem:[%s5849_s12 + $0xf8] sm:$0xff] }
 0x604   :  { %v2366_v55 = vadd.f32 %v2360_v54, %v5581_v53  ;;  %v2684_v54 = vld [vmem:[%s5851_s14 + $0x8] sm:$0xff] }
 0x605   :  { %4100 = vtanh.f32 %v2365_v26  ;;  %v2683_v26 = vld [vmem:[%s5851_s14] sm:$0xff] }
 0x606   :  { %v3050_v43 = vmul.f32 -1.442695, %v2366_v55  ;;  %v2685_v55 = vld [vmem:[%s5851_s14 + $0x10] sm:$0xff] }
 0x608   :  { %4102 = vpow2.f32 %v3050_v43  ;;  %v3792_v43 = vpack.c.bf16 %v2684_v54, %v2683_v26  ;;  %v2773_v26 = vld [vmem:[%s5853_s16 + $0x10] sm:$0xff] }
 0x60f   :  { %v4101_v62 = vpop.eup %4100 }
 0x610   :  { %v2387_v28 = vmul.f32 %v4101_v62, %v4099_v61  ;;  %v3785_v61 = vpack.c.bf16 %v2592_v51, %v2591_v20  ;;  %v3787_v62 = vpack.c.bf16 %v2610_v39, %v2609_v37  ;;  %v2696_v20 = vld [vmem:[%s5851_s14 + $0x68] sm:$0xff]  ;;  %v2771_v37 = vld [vmem:[%s5853_s16] sm:$0xff] }
 0x611   :  { %v2772_v39 = vld [vmem:[%s5853_s16 + $0x8] sm:$0xff] }
 0x612   :  { %v4103_v63 = vpop.eup %4102  ;;  %v5585_v0 = vadd.f32 %v2387_v28, %v2386_v24  ;;  %v2593_v24 = vld [vmem:[%s5849_s12 + $0x70] sm:$0xff]  ;;  %v2594_v28 = vld [vmem:[%s5849_s12 + $0x78] sm:$0xff] }
 0x613   :  { %v2383_v2 = vadd.f32 1.0, %v4103_v63  ;;  %v3795_v63 = vpack.c.bf16 %v2686_v58, %v2685_v55  ;;  %v3816_v55 = vpack.c.bf16 %v2772_v39, %v2771_v37 }
 0x614   :  { %4104 = vtanh.f32 %v5585_v0  ;;  %v2569_v42 = vrot.slane %v5585_v0, 7  ;;  %v2695_v0 = vld [vmem:[%s5851_s14 + $0x60] sm:$0xff] }
 0x615   :  { %4106 = vrcp.f32 %v2383_v2  ;;  %v2687_v2 = vld [vmem:[%s5851_s14 + $0x20] sm:$0xff]  ;;  %v3810_v51 = vpack.c.bf16 %v2696_v20, %v2695_v0 }
 0x61e   :  { %v4105_v3 = vpop.eup %4104 }
 0x61f   :  { %v4107_v4 = vpop.eup %4106 }
 0x620   :  { %v5588_v5 = vmul.f32 %v4107_v4, %v4105_v3  ;;  %v2688_v3 = vld [vmem:[%s5851_s14 + $0x28] sm:$0xff]  ;;  %v3789_v4 = vpack.c.bf16 %v2594_v28, %v2593_v24 }
 0x621   :  { %v3798_v9 = vpack.c.bf16 %v2688_v3, %v2687_v2 }
 0x622   :  { %2456 = vmatmul.mubr.f32.vlgmr.msra.gmra.mrb[46].mxu0 %v5588_v5  ;;  %2527 = vmatmul.mubr.f32.vlgmr.msra.gmra.mrb[50].mxu1 %v5588_v5 }
 0x623   :  { %3397 = vmatprep.mubr.msk.f32.mxu1 %vm4149_vm0, %v4148_v38  ;;  %3762 = vmatpush3.bf16.msra.mxu0 %v3761_v46  ;;  %v2692_v46 = vld [vmem:[%s5851_s14 + $0x48] sm:$0xff] }
 0x624   :  { %3764 = vmatprep.subr.bf16.mxu0 %v3763_v60  ;;  %3793 = vmatpush3.bf16.msra.mxu1 %v3792_v43  ;;  %v3804_v12 = vpack.c.bf16 %v2692_v46, %v2691_v17  ;;  %v3807_v60 = vpack.c.bf16 %v2694_v57, %v2693_v23  ;;  %v2774_v43 = vld [vmem:[%s5853_s16 + $0x18] sm:$0xff]  ;;  %v2854_v17 = vld [vmem:[%s5855_s18] sm:$0xff]  ;;  %v2855_v46 = vld [vmem:[%s5855_s18 + $0x8] sm:$0xff] }
 0x625   :  { %3794 = vmatprep.subr.bf16.mxu1 %v4154_v21  ;;  %v3819_v58 = vpack.c.bf16 %v2774_v43, %v2773_v26  ;;  %v2857_v23 = vld [vmem:[%s5855_s18 + $0x18] sm:$0xff] }
 0x627   :  { %3766 = vmatpush3.bf16.msra.mxu0 %v3765_v7 }
 0x628   :  { %3768 = vmatprep.subr.bf16.mxu0 %v3767_v15  ;;  %3796 = vmatpush3.bf16.msra.mxu1 %v3795_v63  ;;  %v2611_v63 = vld [vmem:[%s5850_s13] sm:$0x1] }
 0x629   :  { %3797 = vmatprep.subr.bf16.mxu1 %v4154_v21 }
 0x62b   :  { %3770 = vmatpush3.bf16.msra.mxu0 %v3769_v59 }
 0x62c   :  { %3772 = vmatprep.subr.bf16.mxu0 %v3771_v41  ;;  %3799 = vmatpush3.bf16.msra.mxu1 %v3798_v9 }
 0x62d   :  { %3800 = vmatprep.subr.bf16.mxu1 %v4154_v21 }
 0x62f   :  { %3774 = vmatpush3.bf16.msra.mxu0 %v3773_v32 }
 0x630   :  { %3776 = vmatprep.subr.bf16.mxu0 %v3775_v31  ;;  %3802 = vmatpush3.bf16.msra.mxu1 %v3801_v14  ;;  %v3825_v14 = vpack.c.bf16 %v2778_v13, %v2777_v10 }
 0x631   :  { %3803 = vmatprep.subr.bf16.mxu1 %v4154_v21 }
 0x633   :  { %3778 = vmatpush3.bf16.msra.mxu0 %v3777_v11 }
 0x634   :  { %3780 = vmatprep.subr.bf16.mxu0 %v3779_v45  ;;  %3805 = vmatpush3.bf16.msra.mxu1 %v3804_v12  ;;  %v3828_v12 = vpack.c.bf16 %v2855_v46, %v2854_v17 }
 0x635   :  { %3806 = vmatprep.subr.bf16.mxu1 %v4154_v21 }
 0x637   :  { %3782 = vmatpush3.bf16.msra.mxu0 %v3781_v49 }
 0x638   :  { %3784 = vmatprep.subr.bf16.mxu0 %v3783_v50  ;;  %3808 = vmatpush3.bf16.msra.mxu1 %v3807_v60  ;;  %v2697_v50 = vld [vmem:[%s5851_s14 + $0x70] sm:$0xff]  ;;  %v2858_v60 = vld [vmem:[%s5855_s18 + $0x20] sm:$0xff] }
 0x639   :  { %3809 = vmatprep.subr.bf16.mxu1 %v4154_v21 }
 0x63b   :  { %3786 = vmatpush3.bf16.msra.mxu0 %v3785_v61  ;;  %v2775_v61 = vld [vmem:[%s5853_s16 + $0x20] sm:$0xff] }
 0x63c   :  { %3788 = vmatprep.subr.bf16.mxu0 %v3787_v62  ;;  %3811 = vmatpush3.bf16.msra.mxu1 %v3810_v51  ;;  %v2776_v62 = vld [vmem:[%s5853_s16 + $0x28] sm:$0xff] }
 0x63d   :  { %3812 = vmatprep.subr.bf16.mxu1 %v4154_v21  ;;  %v3822_v24 = vpack.c.bf16 %v2776_v62, %v2775_v61 }
 0x63f   :  { %3790 = vmatpush3.bf16.msra.mxu0 %v3789_v4 }
 0x640   :  { %3815 = vmatprep.subr.bf16.mxu0 %v4154_v21 }
 0x6f5   :  { %v2457_v1 = vpop.f32.mrb[46].mxu0  ;;  %v2528_v40 = vpop.f32.mrb[50].mxu1 }
 0x6f6   :  { %v2537_v6 = vrot.slane %v2457_v1, 7  ;;  %v2459_v7 = vpop.f32.mrb[47].mxu0  ;;  %v2530_v15 = vpop.f32.mrb[51].mxu1  ;;  %v2539_v27 = vrot.slane %v2528_v40, 7  ;;  %v2859_v1 = vld [vmem:[%s5855_s18 + $0x28] sm:$0xff] }
 0x6f7   :  { %v2538_v16 = vrot.slane %v2459_v7, 7  ;;  %v2540_v41 = vrot.slane %v2530_v15, 7  ;;  %v3834_v40 = vpack.c.bf16 %v2859_v1, %v2858_v60 }
 0x6f8   :  { %v2545_v56 = vadd.f32 %v2537_v6, %v5573_v8  ;;  %v2547_v30 = vadd.f32 %v2539_v27, %v5579_v52  ;;  %v2699_v6 = vld [vmem:[%s5852_s15] sm:$0x1] }
 0x6f9   :  { %v2546_v18 = vadd.f32 %v2538_v16, %v5571_v36  ;;  %v2548_v25 = vadd.f32 %v2540_v41, %v5581_v53 }
 0x6fa   :  { %v3051_v19 = vmul.f32 -1.442695, %v2545_v56 }
 0x6fb   :  { %v3052_v59 = vmul.f32 -1.442695, %v2546_v18  ;;  %v3053_v29 = vmul.f32 -1.442695, %v2548_v25  ;;  %v2860_v18 = vld [vmem:[%s5855_s18 + $0x30] sm:$0xff] }
 0x6fc   :  { %4108 = vpow2.f32 %v3051_v19  ;;  %v2861_v19 = vld [vmem:[%s5855_s18 + $0x38] sm:$0xff] }
 0x6fd   :  { %4110 = vpow2.f32 %v3052_v59  ;;  %v3837_v59 = vpack.c.bf16 %v2861_v19, %v2860_v18 }
 0x6fe   :  { %4112 = vpow2.f32 %v3053_v29 }
 0x6ff   :  { %4114 = vtanh.f32 %v2547_v30  ;;  %v2862_v30 = vld [vmem:[%s5856_s19] sm:$0x1] }
 0x706   :  { %v4109_v32 = vpop.eup %4108 }
 0x707   :  { %v4111_v31 = vpop.eup %4110  ;;  %v2552_v33 = vadd.f32 1.0, %v4109_v32 }
 0x708   :  { %v2558_v34 = vadd.f32 1.0, %v4111_v31  ;;  %v4113_v36 = vpop.eup %4112 }
 0x709   :  { %4116 = vrcp.f32 %v2552_v33  ;;  %v4115_v8 = vpop.eup %4114  ;;  %v2565_v53 = vadd.f32 1.0, %v4113_v36 }
 0x70a   :  { %4118 = vrcp.f32 %v2558_v34 }
 0x70b   :  { %4120 = vrcp.f32 %v2565_v53 }
 0x713   :  { %v4117_v35 = vpop.eup %4116 }
 0x714   :  { %v4119_v11 = vpop.eup %4118  ;;  %v2572_v45 = vmul.f32 %v4117_v35, %v4115_v8 }
 0x715   :  { %v2571_v44 = vmul.f32 %v4119_v11, %v2569_v42  ;;  %v4121_v52 = vpop.eup %4120 }
 0x717   :  { %v2573_v47 = vadd.f32 %v2572_v45, %v2571_v44 }
 0x719   :  { %4122 = vtanh.f32 %v2573_v47 }
 0x723   :  { %v4123_v22 = vpop.eup %4122 }
 0x724   :  { %v2575_v48 = vmul.f32 %v4123_v22, %v4121_v52 }
 0x726   :  { %v2577_v49 = vrot.slane %v2575_v48, 1 }
 0x728   :  { %2676 = vmatprep.mubr.f32.mxu0 %v2577_v49 }
 0x729   :  { %2677 = vmatmul.mubr.f32.vlgmr.msra.gmra.mrb[48].mxu0 %v5588_v5  ;;  %v2698_v5 = vld [vmem:[%s5851_s14 + $0x78] sm:$0xff] }
 0x72a   :  { %3416 = vmatprep.mubr.msk.f32.mxu0 %vm4149_vm0, %v4148_v38  ;;  %v3813_v54 = vpack.c.bf16 %v2698_v5, %v2697_v50  ;;  %3817 = vmatpush3.bf16.msra.mxu0 %v3816_v55 }
 0x72b   :  { %3818 = vmatprep.subr.bf16.mxu0 %v4154_v21 }
 0x72c   :  { %3814 = vmatpush3.bf16.msra.mxu1 %v3813_v54 }
 0x72d   :  { %3827 = vmatprep.subr.bf16.mxu1 %v4154_v21 }
 0x72e   :  { %3820 = vmatpush3.bf16.msra.mxu0 %v3819_v58 }
 0x72f   :  { %3821 = vmatprep.subr.bf16.mxu0 %v4154_v21 }
 0x732   :  { %3823 = vmatpush3.bf16.msra.mxu0 %v3822_v24 }
 0x733   :  { %3824 = vmatprep.subr.bf16.mxu0 %v4154_v21 }
 0x736   :  { %3826 = vmatpush3.bf16.msra.mxu0 %v3825_v14 }
 0x7fc   :  { %v3303_v28 = vpop.f32.mrb[48].mxu0 }
 0x7fd   :  { %v3304_v2 = vpop.f32.mrb[49].mxu0 }
 0x7fe   :  { %v3305_v3 = vadd.f32 %v3304_v2, %v3303_v28 }
 0x800   :  { %v2679_v4 = vadd.f32 %v3305_v3, %v2611_v63 }
 0x802   :  { %v2682_v9 = vmax.f32 %v2679_v4, 0.0 }
 0x804   :  { %3398 = vmatmul.mubr.f32.vlgmr.msra.gmra.mrb[52].mxu1 %v2682_v9 }
 0x805   :  { %3435 = vmatprep.mubr.msk.f32.mxu1 %vm4149_vm0, %v4148_v38  ;;  %v2856_v38 = vld [vmem:[%s5855_s18 + $0x10] sm:$0xff]  ;;  %3829 = vmatpush3.bf16.msra.mxu1 %v3828_v12  ;;  %s4124_s18 = scalar_lea.vmem %s2945_s1, 16 }
 0x806   :  { %v3831_v57 = vpack.c.bf16 %v2857_v23, %v2856_v38  ;;  %3830 = vmatprep.subr.bf16.mxu1 %v4154_v21  ;;  %p4125_p0 = scmp.ne.s32.totalorder %s2945_s1, %s4124_s18 }
 0x809   :  { %3832 = vmatpush3.bf16.msra.mxu1 %v3831_v57 }
 0x80a   :  { %3833 = vmatprep.subr.bf16.mxu1 %v4154_v21 }
 0x80d   :  { %3835 = vmatpush3.bf16.msra.mxu1 %v3834_v40 }
 0x80e   :  { %3836 = vmatprep.subr.bf16.mxu1 %v4154_v21  ;;  %v2779_v21 = vld [vmem:[%s5854_s17] sm:$0x1]  ;;  %s4128_s17 = scalar_lea.vmem %s2945_s1, 32 }
 0x80f   :  { %p4130_p2 = scmp.lt.s32.totalorder %s4128_s17, %s4124_s18 }
 0x811   :  { %3838 = vmatpush3.bf16.msra.mxu1 %v3837_v59  ;;  %p4131_p3 = por %p4130_p2, %p4129_p1 }
 0x813   :  { %p4132_p4 = pnand %p4131_p3, %p4125_p0 }
 0x8d7   :  { %v2766_v7 = vpop.f32.mrb[52].mxu1 }
 0x8d8   :  { %v2767_v15 = vadd.f32 %v2766_v7, %v2699_v6  ;;  %v3399_v16 = vpop.f32.mrb[53].mxu1 }
 0x8da   :  { %v2770_v56 = vmax.f32 %v2767_v15, 0.0 }
 0x8dc   :  { %3417 = vmatmul.mubr.msk.f32.vlgmr.msra.gmra.mrb[50].mxu0 %vm1039_vm12, %v2770_v56 }
 0x9af   :  { %v2849_v41 = vpop.f32.mrb[50].mxu0 }
 0x9b0   :  { %v2850_v25 = vadd.f32 %v2849_v41, %v2779_v21  ;;  %v3418_v27 = vpop.f32.mrb[51].mxu0 }
 0x9b2   :  { %v2853_v29 = vmax.f32 %v2850_v25, 0.0 }
 0x9b4   :  { %3436 = vmatmul.mubr.msk.f32.vlgmr.msra.gmra.mrb[54].mxu1 %vm1039_vm12, %v2853_v29 }
 0xa87   :  { %v2932_v32 = vpop.f32.mrb[54].mxu1 }
 0xa88   :  { %v2933_v31 = vadd.f32 %v2932_v32, %v2862_v30  ;;  %v3437_v33 = vpop.f32.mrb[55].mxu1 }
 0xa8a   :  { %2937 = vst.msk [vmem:[#allocation3] sm:$0x1] %vm2936_vm15, %v2933_v31 }
 0xa8b   :  { %4135 = shalt.err (!%p4132_p4)
}
 0xa8c   :  { %s4136_s19 = scalar_lea.hbm %s5857_s20, 16 }
 0xa8d   :  { %p4137_p5 = scmp.ne.s32.totalorder %s5857_s20, %s4136_s19  ;;  %p4140_p6 = scmp.lt.u32.totalorder %s4136_s19, %s5857_s20 }
 0xa8f   :  { %p4142_p7 = pnand %p4140_p6, %p4137_p5 }
 0xa91   :  { %4145 = shalt.err (!%p4142_p7)
}
 0xa92   :  { %2947 = dma.vmem_to_hbm [thread:$0]  %s2945_s1, 16, %s5857_s20, [#allocation4]  }
 0xa93   :  { %4146 = dma.done.wait [#allocation4], 16  }
 0xa94   :  { %4147 = vsyncadd [#allocation4], 4294967280 }
 0xa95   :  { %2951 = vsyncpa [#allocation4], 1 }

</bundles_post_ra>
